<compile_context>
chip_gen: v7x
topology: tpu7x:2x2x1
jax: 0.10.0
libtpu: 0.0.40
codegen_flags: <defaults>
</compile_context>

<pallas_src>
import functools

import jax
import jax.numpy as jnp
from jax import lax
from jax.experimental import pallas as pl
from jax.experimental.pallas import tpu as pltpu

_LANE = 128
_SUBLANE = 8


def _round_up(v, m):
    return (v + m - 1) // m * m


def _default_im2col_in_vmem():
    # v5e's MXU is 128 deep, so per-tap K=Cin_p matmuls already fill it; v6e/v7x have
    # 256-deep MXUs that benefit from one K=KH*KW*Cin_p im2col matmul.
    try:
        kind = jax.devices()[0].device_kind.lower()
    except Exception:
        return True
    return not any(v in kind for v in ("v2", "v3", "v4", "v5"))


def _vmem_limit_bytes(working_set_bytes):
    # Per-generation scoped-VMEM limit: sized from the actual working set, capped at
    # ~75% of physical VMEM (64 MiB on v7x, 128 MiB on v5e/v6e).
    try:
        cap = int(pltpu.get_tpu_info().vmem_capacity_bytes)
    except Exception:
        cap = 64 * 1024 * 1024
    want = max(int(1.5 * working_set_bytes) + (4 << 20), 32 << 20)
    return int(min(want, int(0.75 * cap)))


# ----------------------------- Pallas kernel -------------------------------

def _pconv_layer_kernel(x_ref, msum_ref, w_ref, b_ref, out_ref, mask_ref, *scratch,
                        kh, kw, pad, h_out, w_out, wp, slide_winsize, im2col_in_vmem):
    # x_ref:    (1, M, Cin_p)          zero-padded input rows, flattened (row*Wp + col)
    # msum_ref: (1, HW, 1)             precomputed mask window-sum per output pixel
    # w_ref:    (KH*KW, Cin_p, Cout_p) or (KH*KW*Cin_p, Cout_p)   conv weight
    # b_ref:    (1, Cout_p)            conv bias (f32)
    # out_ref:  (1, HW, Cout_p)        fused layer output (lane-dense)
    # mask_ref: (1, HW, 1)             update mask (narrow; broadcast outside)
    hw = h_out * w_out
    hww = h_out * wp                 # per-tap slab rows; cols ow >= W are junk, cropped below
    cin_p = x_ref.shape[-1]
    cout_p = out_ref.shape[-1]
    b = b_ref[...]                   # [1, Cout_p] f32

    # --- convolution: each tap is a sublane-offset slice of the flattened tile ---
    # Tap (i,j) of output pixel (oh,ow) is flat row (i*Wp+j) + (oh*Wp+ow); kw-1 extra
    # zero rows appended in the wrapper guarantee the last tap slice stays in bounds.
    xs_center = None
    if im2col_in_vmem:
        # Deep-K path (v6e/v7x): pack taps into a VMEM slab, ONE matmul, K = KH*KW*Cin_p.
        slab_ref = scratch[0]        # (hww, KH*KW*Cin_p)
        for i in range(kh):
            for j in range(kw):
                xs = x_ref[0, i * wp + j:i * wp + j + hww, :]
                slab_ref[:, (i * kw + j) * cin_p:(i * kw + j + 1) * cin_p] = xs
                if i == pad and j == pad:
                    xs_center = xs
        acc = jnp.dot(slab_ref[...], w_ref[...], preferred_element_type=jnp.float32)
    else:
        # Per-tap path (v5e): K = Cin_p matmuls; accumulation kept as acc = acc + dot(...)
        # so v7x's MRB can accumulate in place if this path is ever used there.
        acc = jnp.zeros((hww, cout_p), jnp.float32)
        for i in range(kh):
            for j in range(kw):
                xs = x_ref[0, i * wp + j:i * wp + j + hww, :]
                acc = acc + jnp.dot(xs, w_ref[i * kw + j],
                                    preferred_element_type=jnp.float32)
                if i == pad and j == pad:
                    xs_center = xs

    # Single crop [H, Wp, C] -> [H, W, C] (the only strided copy left).
    acc = acc.reshape(h_out, wp, cout_p)[:, :w_out, :].reshape(hw, cout_p)

    # --- partial-conv mask math, folded into one narrow per-pixel scale ---
    #   (((conv+bias)-bias)*ratio*um + bias) * um * um  ==  conv*(ratio*um^3) + bias*um^2
    # Narrow [HW,1] math only; exact division kept (EUP/approx recip would loosen the
    # f32 check).  mask_ref stays (HW,1): the per-pixel scale must be sublane-major to
    # broadcast against [HW,Cout] rows, so a lane-dense relayout would cost more than
    # the few masked narrow stores it saves.
    msum = msum_ref[0]                                    # [HW, 1] f32
    um = jnp.clip(msum, 0.0, 1.0)
    ratio0 = slide_winsize / (msum + 1e-8)
    umsq = um * um
    scale = ratio0 * um * umsq
    out = acc * scale + b * umsq

    # --- InstanceNorm2d (affine=False, eps=1e-5, biased var), fused single-pass stats ---
    inv_hw = 1.0 / float(hw)
    mean = jnp.sum(out, axis=0, keepdims=True) * inv_hw   # [1, Cout_p]
    ex2 = jnp.sum(out * out, axis=0, keepdims=True) * inv_hw
    var = jnp.maximum(ex2 - mean * mean, 0.0)
    out = (out - mean) * lax.rsqrt(var + 1e-5)

    # --- residual (reuse the already-loaded center tap; same single crop) + ReLU ---
    # TODO(synk): residual adds the compute_dtype (bf16) copy of x; feed an f32 x if
    # bit-parity with the PyTorch residual matters more than halved x HBM traffic.
    xc = xs_center.reshape(h_out, wp, cin_p)[:, :w_out, :].reshape(hw, cin_p)
    out = out + xc.astype(jnp.float32)
    out = jnp.maximum(out, 0.0)

    out_ref[0] = out.astype(out_ref.dtype)
    mask_ref[0] = um.astype(mask_ref.dtype)


# ------------------------------ core wrapper --------------------------------

def _pconv_layer_core(x_nhwc, mask_sum_nhw, weight_oihw, bias, *, stride, padding,
                      compute_dtype, out_dtype, im2col_in_vmem):
    """Runs the fused kernel on NHWC data + channel-summed mask. Returns NHWC out, [N,H,W] mask."""
    n, h, w, cin = x_nhwc.shape
    cout, cin_w, kh, kw = weight_oihw.shape
    if cin_w != cin:
        raise ValueError("weight Cin does not match input Cin")
    if stride != 1:
        raise ValueError("residual path requires stride=1")
    ho = h + 2 * padding - kh + 1
    wo = w + 2 * padding - kw + 1
    if ho != h or wo != w:
        raise ValueError("residual path requires 'same' padding")
    if cin != cout:
        raise ValueError("residual path requires in_channels == out_channels")
    if im2col_in_vmem is None:
        im2col_in_vmem = _default_im2col_in_vmem()

    hw = ho * wo
    cin_p = _round_up(cin, _LANE)
    cout_p = _round_up(cout, _LANE)
    hp, wp = h + 2 * padding, w + 2 * padding
    hww = ho * wp
    slide_winsize = float(cin * kh * kw)

    # x: zero-pad spatially (conv padding) + channels (lanes), flatten rows, append kw-1
    # extra zero rows.  Cast to compute dtype first so the pad/reshape chain moves half
    # the bytes (XLA fuses cast+pad+reshape into one pass).
    x_c = x_nhwc.astype(compute_dtype)
    x_pad = jnp.pad(x_c, ((0, 0), (padding, padding), (padding, padding), (0, cin_p - cin)))
    m_rows = hp * wp + (kw - 1)
    m_rows_p = _round_up(m_rows, _SUBLANE)
    x_flat = jnp.pad(x_pad.reshape(n, hp * wp, cin_p),
                     ((0, 0), (0, m_rows_p - hp * wp), (0, 0)))

    # Mask "conv" (all-ones weights over all Cin) == per-pixel window sum of the
    # channel-summed mask.  Tiny [N, HW, 1] array; replaces a full mask im2col.
    msum = lax.reduce_window(mask_sum_nhw.astype(jnp.float32), 0.0, lax.add,
                             window_dimensions=(1, kh, kw),
                             window_strides=(1, stride, stride),
                             padding=((0, 0), (padding, padding), (padding, padding)))
    msum = msum.reshape(n, hw, 1)

    # weight [Cout,Cin,KH,KW] -> matmul-ready, zero lane padding.
    w_hwio = jnp.transpose(weight_oihw.astype(jnp.float32), (2, 3, 1, 0))
    w_hwio = jnp.pad(w_hwio, ((0, 0), (0, 0), (0, cin_p - cin), (0, cout_p - cout)))
    if im2col_in_vmem:
        w_mat = w_hwio.reshape(kh * kw * cin_p, cout_p).astype(compute_dtype)
        w_spec = pl.BlockSpec((kh * kw * cin_p, cout_p), lambda i: (0, 0))
    else:
        w_mat = w_hwio.reshape(kh * kw, cin_p, cout_p).astype(compute_dtype)
        w_spec = pl.BlockSpec((kh * kw, cin_p, cout_p), lambda i: (0, 0, 0))
    # NOTE: weight index_map is constant across the grid; at very wide channels consider
    # pipeline_mode=pl.Buffered(1) on this spec to avoid double-buffering it on v7x.
    b_mat = jnp.pad(bias.astype(jnp.float32), (0, cout_p - cout)).reshape(1, cout_p)

    scratch_shapes = []
    if im2col_in_vmem:
        scratch_shapes.append(pltpu.VMEM((hww, kh * kw * cin_p), compute_dtype))

    kernel = functools.partial(
        _pconv_layer_kernel, kh=kh, kw=kw, pad=padding, h_out=ho, w_out=wo, wp=wp,
        slide_winsize=slide_winsize, im2col_in_vmem=im2col_in_vmem)

    csz = jnp.dtype(compute_dtype).itemsize
    osz = jnp.dtype(out_dtype).itemsize
    block_bytes = (m_rows_p * cin_p * csz + hw * 4 + w_mat.size * csz + cout_p * 4
                   + hw * cout_p * osz + hw * 4)
    temp_bytes = (hww * cout_p * 4 + 2 * hw * cout_p * 4
                  + (hww * kh * kw * cin_p * csz if im2col_in_vmem else 0))
    vmem_limit = _vmem_limit_bytes(2 * block_bytes + temp_bytes)

    out_flat, um_flat = pl.pallas_call(
        kernel,
        out_shape=(
            jax.ShapeDtypeStruct((n, hw, cout_p), out_dtype),
            jax.ShapeDtypeStruct((n, hw, 1), jnp.float32),
        ),
        grid_spec=pltpu.PrefetchScalarGridSpec(
            num_scalar_prefetch=0,
            grid=(n,),
            in_specs=[
                pl.BlockSpec((1, m_rows_p, cin_p), lambda i: (i, 0, 0)),   # flattened padded x
                pl.BlockSpec((1, hw, 1), lambda i: (i, 0, 0)),             # mask window sum
                w_spec,                                                    # weights
                pl.BlockSpec((1, cout_p), lambda i: (0, 0)),               # bias
            ],
            out_specs=[
                pl.BlockSpec((1, hw, cout_p), lambda i: (i, 0, 0)),        # out (lane-dense)
                pl.BlockSpec((1, hw, 1), lambda i: (i, 0, 0)),             # update mask
            ],
            scratch_shapes=scratch_shapes),
        compiler_params=pltpu.CompilerParams(
            dimension_semantics=("parallel",),
            vmem_limit_bytes=vmem_limit),
    )(x_flat, msum, w_mat, b_mat)

    out_nhwc = out_flat[:, :, :cout].reshape(n, ho, wo, cout)
    um_nhw = um_flat.reshape(n, ho, wo)
    return out_nhwc, um_nhw


# ------------------------------ entry points ---------------------------------

def pconv_layer_forward_nhwc(x_nhwc, mask_nhwc, weight_oihw, bias, *, stride=1, padding=1,
                             compute_dtype=jnp.bfloat16, out_dtype=jnp.float32,
                             im2col_in_vmem=None):
    """Channels-last entry: skips the NCHW<->NHWC layout passes entirely."""
    msum_nhw = jnp.sum(mask_nhwc.astype(jnp.float32), axis=-1)
    out_nhwc, um_nhw = _pconv_layer_core(
        x_nhwc, msum_nhw, weight_oihw, bias, stride=stride, padding=padding,
        compute_dtype=compute_dtype, out_dtype=out_dtype, im2col_in_vmem=im2col_in_vmem)
    mask_update = jnp.broadcast_to(um_nhw[..., None], out_nhwc.shape).astype(jnp.float32)
    return out_nhwc, mask_update


def pconv_layer_forward(x_nchw, mask_nchw, weight_oihw, bias, *, stride=1, padding=1,
                        compute_dtype=jnp.bfloat16, out_dtype=jnp.float32,
                        im2col_in_vmem=None):
    """Forward pass of PConvLayer (act='ReLU', use_norm=True, residual=True), NCHW like PyTorch.

    Returns (out [N, Cout, H, W], mask_update [N, Cout, H, W]).
    """
    n, cin, h, w = x_nchw.shape
    cout = weight_oihw.shape[0]
    x_nhwc = jnp.transpose(x_nchw, (0, 2, 3, 1))
    msum_nhw = jnp.sum(mask_nchw.astype(jnp.float32), axis=1)   # channel-summed mask, no transpose
    out_nhwc, um_nhw = _pconv_layer_core(
        x_nhwc, msum_nhw, weight_oihw, bias, stride=stride, padding=padding,
        compute_dtype=compute_dtype, out_dtype=out_dtype, im2col_in_vmem=im2col_in_vmem)
    out = jnp.transpose(out_nhwc, (0, 3, 1, 2))
    mask_update = jnp.broadcast_to(um_nhw[:, None, :, :], (n, cout, h, w)).astype(jnp.float32)
    return out, mask_update


# ----------------------------- pure-JAX reference ----------------------------

def _reference_forward(x, mask, w, b, *, stride=1, padding=1):
    dn = ("NCHW", "OIHW", "NCHW")
    pad = [(padding, padding), (padding, padding)]
    bias4 = b[None, :, None, None]
    raw = lax.conv_general_dilated(x, w, (stride, stride), pad, dimension_numbers=dn) + bias4
    wm = jnp.ones_like(w)
    um = lax.conv_general_dilated(mask, wm, (stride, stride), pad, dimension_numbers=dn)
    slide = w.shape[1] * w.shape[2] * w.shape[3]
    ratio = slide / (um + 1e-8)
    umc = jnp.clip(um, 0.0, 1.0)
    ratio = ratio * umc
    out = ((raw - bias4) * ratio + bias4) * umc
    out = out * umc
    mean = out.mean(axis=(2, 3), keepdims=True)
    var = ((out - mean) ** 2).mean(axis=(2, 3), keepdims=True)
    out = (out - mean) / jnp.sqrt(var + 1e-5)
    out = out + x
    out = jnp.maximum(out, 0.0)
    return out, umc


# ---------------------------------- main -------------------------------------

if __name__ == "__main__":
    N, C, H, W = 2, 4, 16, 16      # in_channels == out_channels (residual path)
    KH = KW = 3
    STRIDE, PAD = 1, 1

    key = jax.random.PRNGKey(0)
    kx, km, kw_, kb = jax.random.split(key, 4)

    x = jax.random.normal(kx, (N, C, H, W), dtype=jnp.float32)
    # binary mask with holes (same mask on all input channels, typical usage)
    hole = (jax.random.uniform(km, (N, 1, H, W)) > 0.3).astype(jnp.float32)
    mask = jnp.broadcast_to(hole, (N, C, H, W)).astype(jnp.float32)

    fan_in = C * KH * KW
    weight = jax.random.normal(kw_, (C, C, KH, KW), dtype=jnp.float32) / jnp.sqrt(fan_in)
    bias = 0.1 * jax.random.normal(kb, (C,), dtype=jnp.float32)

    ref_out, ref_mask = _reference_forward(x, mask, weight, bias, stride=STRIDE, padding=PAD)

    # --- f32 MXU path, per-tap contraction (K=Cin_p): tight check ---
    out32, m32 = pconv_layer_forward(x, mask, weight, bias, stride=STRIDE, padding=PAD,
                                     compute_dtype=jnp.float32, im2col_in_vmem=False)
    jax.block_until_ready((out32, m32))
    assert out32.shape == (N, C, H, W) and m32.shape == (N, C, H, W)
    assert jnp.allclose(out32, ref_out, rtol=2e-4, atol=2e-4)
    assert jnp.allclose(m32, ref_mask, rtol=1e-6, atol=1e-6)

    # --- f32 MXU path, deep-K contraction (im2col in VMEM, K=KH*KW*Cin_p): tight check ---
    out32d, m32d = pconv_layer_forward(x, mask, weight, bias, stride=STRIDE, padding=PAD,
                                       compute_dtype=jnp.float32, im2col_in_vmem=True)
    jax.block_until_ready((out32d, m32d))
    assert jnp.allclose(out32d, ref_out, rtol=2e-4, atol=2e-4)
    assert jnp.allclose(m32d, ref_mask, rtol=1e-6, atol=1e-6)

    # --- bf16 MXU path (default / fast), contraction depth auto-selected per chip ---
    out16, m16 = pconv_layer_forward(x, mask, weight, bias, stride=STRIDE, padding=PAD)
    jax.block_until_ready((out16, m16))
    xq = x.astype(jnp.bfloat16).astype(jnp.float32)
    wq = weight.astype(jnp.bfloat16).astype(jnp.float32)
    ref_out16, ref_mask16 = _reference_forward(xq, mask, wq, bias, stride=STRIDE, padding=PAD)
    assert jnp.allclose(out16, ref_out16, rtol=2e-3, atol=2e-3)
    assert jnp.allclose(m16, ref_mask16, rtol=1e-6, atol=1e-6)

    print("KERNEL_OK")
</pallas_src>

<mosaic_0001>
module attributes {stable_mosaic.version = 11 : i64} {
  func.func @_pconv_layer_kernel(%arg0: i32, %arg1: memref<1x328x128xf32, #tpu.memory_space<vmem>>, %arg2: memref<1x256x1xf32, #tpu.memory_space<vmem>>, %arg3: memref<9x128x128xf32, #tpu.memory_space<vmem>>, %arg4: memref<1x128xf32, #tpu.memory_space<vmem>>, %arg5: memref<1x256x128xf32, #tpu.memory_space<vmem>>, %arg6: memref<1x256x1xf32, #tpu.memory_space<vmem>>) attributes {dimension_semantics = [#tpu.dimension_semantics<parallel>], iteration_bounds = array<i64: 2>, scalar_prefetch = 0 : i64, scratch_operands = 0 : i64, tpu.core_type = #tpu.core_type<tc>, window_params = [{transform_indices = @transform_0, window_bounds = array<i64: 1, 328, 128>}, {transform_indices = @transform_1, window_bounds = array<i64: 1, 256, 1>}, {pipeline_mode = #tpu.pipeline_mode<synchronous>, transform_indices = @transform_2, window_bounds = array<i64: 9, 128, 128>}, {pipeline_mode = #tpu.pipeline_mode<synchronous>, transform_indices = @transform_3, window_bounds = array<i64: 1, 128>}, {transform_indices = @transform_4, window_bounds = array<i64: 1, 256, 128>}, {transform_indices = @transform_5, window_bounds = array<i64: 1, 256, 1>}]} {
    %c0 = arith.constant 0 : index
    %c0_0 = arith.constant 0 : index
    %0 = vector.load %arg4[%c0, %c0_0] : memref<1x128xf32, #tpu.memory_space<vmem>>, vector<1x128xf32>
    %cst = arith.constant 0.000000e+00 : f32
    %1 = vector.broadcast %cst : f32 to vector<288x128xf32>
    %c0_1 = arith.constant 0 : index
    %c0_2 = arith.constant 0 : index
    %c0_3 = arith.constant 0 : index
    %2 = vector.load %arg1[%c0_1, %c0_2, %c0_3] : memref<1x328x128xf32, #tpu.memory_space<vmem>>, vector<1x288x128xf32>
    %3 = vector.shape_cast %2 : vector<1x288x128xf32> to vector<288x128xf32>
    %c0_4 = arith.constant 0 : index
    %c0_5 = arith.constant 0 : index
    %c0_6 = arith.constant 0 : index
    %4 = vector.load %arg3[%c0_4, %c0_5, %c0_6] : memref<9x128x128xf32, #tpu.memory_space<vmem>>, vector<1x128x128xf32>
    %5 = vector.shape_cast %4 : vector<1x128x128xf32> to vector<128x128xf32>
    %cst_7 = arith.constant dense<0.000000e+00> : vector<288x128xf32>
    %6 = tpu.matmul %3, %5, %cst_7 {dimension_numbers = #tpu.dot_dimension_numbers<[1], [0], [0], [1], [0, 0, 1, 1], [], []>} : vector<288x128xf32>, vector<128x128xf32>, vector<288x128xf32> -> vector<288x128xf32>
    %7 = arith.addf %1, %6 : vector<288x128xf32>
    %c0_8 = arith.constant 0 : index
    %c1 = arith.constant 1 : index
    %c0_9 = arith.constant 0 : index
    %8 = vector.load %arg1[%c0_8, %c1, %c0_9] : memref<1x328x128xf32, #tpu.memory_space<vmem>>, vector<1x288x128xf32>
    %9 = vector.shape_cast %8 : vector<1x288x128xf32> to vector<288x128xf32>
    %c1_10 = arith.constant 1 : index
    %c0_11 = arith.constant 0 : index
    %c0_12 = arith.constant 0 : index
    %10 = vector.load %arg3[%c1_10, %c0_11, %c0_12] : memref<9x128x128xf32, #tpu.memory_space<vmem>>, vector<1x128x128xf32>
    %11 = vector.shape_cast %10 : vector<1x128x128xf32> to vector<128x128xf32>
    %cst_13 = arith.constant dense<0.000000e+00> : vector<288x128xf32>
    %12 = tpu.matmul %9, %11, %cst_13 {dimension_numbers = #tpu.dot_dimension_numbers<[1], [0], [0], [1], [0, 0, 1, 1], [], []>} : vector<288x128xf32>, vector<128x128xf32>, vector<288x128xf32> -> vector<288x128xf32>
    %13 = arith.addf %7, %12 : vector<288x128xf32>
    %c0_14 = arith.constant 0 : index
    %c2 = arith.constant 2 : index
    %c0_15 = arith.constant 0 : index
    %14 = vector.load %arg1[%c0_14, %c2, %c0_15] : memref<1x328x128xf32, #tpu.memory_space<vmem>>, vector<1x288x128xf32>
    %15 = vector.shape_cast %14 : vector<1x288x128xf32> to vector<288x128xf32>
    %c2_16 = arith.constant 2 : index
    %c0_17 = arith.constant 0 : index
    %c0_18 = arith.constant 0 : index
    %16 = vector.load %arg3[%c2_16, %c0_17, %c0_18] : memref<9x128x128xf32, #tpu.memory_space<vmem>>, vector<1x128x128xf32>
    %17 = vector.shape_cast %16 : vector<1x128x128xf32> to vector<128x128xf32>
    %cst_19 = arith.constant dense<0.000000e+00> : vector<288x128xf32>
    %18 = tpu.matmul %15, %17, %cst_19 {dimension_numbers = #tpu.dot_dimension_numbers<[1], [0], [0], [1], [0, 0, 1, 1], [], []>} : vector<288x128xf32>, vector<128x128xf32>, vector<288x128xf32> -> vector<288x128xf32>
    %19 = arith.addf %13, %18 : vector<288x128xf32>
    %c0_20 = arith.constant 0 : index
    %c18 = arith.constant 18 : index
    %c0_21 = arith.constant 0 : index
    %20 = vector.load %arg1[%c0_20, %c18, %c0_21] : memref<1x328x128xf32, #tpu.memory_space<vmem>>, vector<1x288x128xf32>
    %21 = vector.shape_cast %20 : vector<1x288x128xf32> to vector<288x128xf32>
    %c3 = arith.constant 3 : index
    %c0_22 = arith.constant 0 : index
    %c0_23 = arith.constant 0 : index
    %22 = vector.load %arg3[%c3, %c0_22, %c0_23] : memref<9x128x128xf32, #tpu.memory_space<vmem>>, vector<1x128x128xf32>
    %23 = vector.shape_cast %22 : vector<1x128x128xf32> to vector<128x128xf32>
    %cst_24 = arith.constant dense<0.000000e+00> : vector<288x128xf32>
    %24 = tpu.matmul %21, %23, %cst_24 {dimension_numbers = #tpu.dot_dimension_numbers<[1], [0], [0], [1], [0, 0, 1, 1], [], []>} : vector<288x128xf32>, vector<128x128xf32>, vector<288x128xf32> -> vector<288x128xf32>
    %25 = arith.addf %19, %24 : vector<288x128xf32>
    %c0_25 = arith.constant 0 : index
    %c19 = arith.constant 19 : index
    %c0_26 = arith.constant 0 : index
    %26 = vector.load %arg1[%c0_25, %c19, %c0_26] : memref<1x328x128xf32, #tpu.memory_space<vmem>>, vector<1x288x128xf32>
    %27 = vector.shape_cast %26 : vector<1x288x128xf32> to vector<288x128xf32>
    %c4 = arith.constant 4 : index
    %c0_27 = arith.constant 0 : index
    %c0_28 = arith.constant 0 : index
    %28 = vector.load %arg3[%c4, %c0_27, %c0_28] : memref<9x128x128xf32, #tpu.memory_space<vmem>>, vector<1x128x128xf32>
    %29 = vector.shape_cast %28 : vector<1x128x128xf32> to vector<128x128xf32>
    %cst_29 = arith.constant dense<0.000000e+00> : vector<288x128xf32>
    %30 = tpu.matmul %27, %29, %cst_29 {dimension_numbers = #tpu.dot_dimension_numbers<[1], [0], [0], [1], [0, 0, 1, 1], [], []>} : vector<288x128xf32>, vector<128x128xf32>, vector<288x128xf32> -> vector<288x128xf32>
    %31 = arith.addf %25, %30 : vector<288x128xf32>
    %c0_30 = arith.constant 0 : index
    %c20 = arith.constant 20 : index
    %c0_31 = arith.constant 0 : index
    %32 = vector.load %arg1[%c0_30, %c20, %c0_31] : memref<1x328x128xf32, #tpu.memory_space<vmem>>, vector<1x288x128xf32>
    %33 = vector.shape_cast %32 : vector<1x288x128xf32> to vector<288x128xf32>
    %c5 = arith.constant 5 : index
    %c0_32 = arith.constant 0 : index
    %c0_33 = arith.constant 0 : index
    %34 = vector.load %arg3[%c5, %c0_32, %c0_33] : memref<9x128x128xf32, #tpu.memory_space<vmem>>, vector<1x128x128xf32>
    %35 = vector.shape_cast %34 : vector<1x128x128xf32> to vector<128x128xf32>
    %cst_34 = arith.constant dense<0.000000e+00> : vector<288x128xf32>
    %36 = tpu.matmul %33, %35, %cst_34 {dimension_numbers = #tpu.dot_dimension_numbers<[1], [0], [0], [1], [0, 0, 1, 1], [], []>} : vector<288x128xf32>, vector<128x128xf32>, vector<288x128xf32> -> vector<288x128xf32>
    %37 = arith.addf %31, %36 : vector<288x128xf32>
    %c0_35 = arith.constant 0 : index
    %c36 = arith.constant 36 : index
    %c0_36 = arith.constant 0 : index
    %38 = vector.load %arg1[%c0_35, %c36, %c0_36] : memref<1x328x128xf32, #tpu.memory_space<vmem>>, vector<1x288x128xf32>
    %39 = vector.shape_cast %38 : vector<1x288x128xf32> to vector<288x128xf32>
    %c6 = arith.constant 6 : index
    %c0_37 = arith.constant 0 : index
    %c0_38 = arith.constant 0 : index
    %40 = vector.load %arg3[%c6, %c0_37, %c0_38] : memref<9x128x128xf32, #tpu.memory_space<vmem>>, vector<1x128x128xf32>
    %41 = vector.shape_cast %40 : vector<1x128x128xf32> to vector<128x128xf32>
    %cst_39 = arith.constant dense<0.000000e+00> : vector<288x128xf32>
    %42 = tpu.matmul %39, %41, %cst_39 {dimension_numbers = #tpu.dot_dimension_numbers<[1], [0], [0], [1], [0, 0, 1, 1], [], []>} : vector<288x128xf32>, vector<128x128xf32>, vector<288x128xf32> -> vector<288x128xf32>
    %43 = arith.addf %37, %42 : vector<288x128xf32>
    %c0_40 = arith.constant 0 : index
    %c37 = arith.constant 37 : index
    %c0_41 = arith.constant 0 : index
    %44 = vector.load %arg1[%c0_40, %c37, %c0_41] : memref<1x328x128xf32, #tpu.memory_space<vmem>>, vector<1x288x128xf32>
    %45 = vector.shape_cast %44 : vector<1x288x128xf32> to vector<288x128xf32>
    %c7 = arith.constant 7 : index
    %c0_42 = arith.constant 0 : index
    %c0_43 = arith.constant 0 : index
    %46 = vector.load %arg3[%c7, %c0_42, %c0_43] : memref<9x128x128xf32, #tpu.memory_space<vmem>>, vector<1x128x128xf32>
    %47 = vector.shape_cast %46 : vector<1x128x128xf32> to vector<128x128xf32>
    %cst_44 = arith.constant dense<0.000000e+00> : vector<288x128xf32>
    %48 = tpu.matmul %45, %47, %cst_44 {dimension_numbers = #tpu.dot_dimension_numbers<[1], [0], [0], [1], [0, 0, 1, 1], [], []>} : vector<288x128xf32>, vector<128x128xf32>, vector<288x128xf32> -> vector<288x128xf32>
    %49 = arith.addf %43, %48 : vector<288x128xf32>
    %c0_45 = arith.constant 0 : index
    %c38 = arith.constant 38 : index
    %c0_46 = arith.constant 0 : index
    %50 = vector.load %arg1[%c0_45, %c38, %c0_46] : memref<1x328x128xf32, #tpu.memory_space<vmem>>, vector<1x288x128xf32>
    %51 = vector.shape_cast %50 : vector<1x288x128xf32> to vector<288x128xf32>
    %c8 = arith.constant 8 : index
    %c0_47 = arith.constant 0 : index
    %c0_48 = arith.constant 0 : index
    %52 = vector.load %arg3[%c8, %c0_47, %c0_48] : memref<9x128x128xf32, #tpu.memory_space<vmem>>, vector<1x128x128xf32>
    %53 = vector.shape_cast %52 : vector<1x128x128xf32> to vector<128x128xf32>
    %cst_49 = arith.constant dense<0.000000e+00> : vector<288x128xf32>
    %54 = tpu.matmul %51, %53, %cst_49 {dimension_numbers = #tpu.dot_dimension_numbers<[1], [0], [0], [1], [0, 0, 1, 1], [], []>} : vector<288x128xf32>, vector<128x128xf32>, vector<288x128xf32> -> vector<288x128xf32>
    %55 = arith.addf %49, %54 : vector<288x128xf32>
    %56 = vector.shape_cast %55 : vector<288x128xf32> to vector<16x18x128xf32>
    %57 = vector.extract_strided_slice %56 {offsets = [0, 0, 0], sizes = [16, 16, 128], strides = [1, 1, 1]} : vector<16x18x128xf32> to vector<16x16x128xf32>
    %58 = vector.shape_cast %57 : vector<16x16x128xf32> to vector<256x128xf32>
    %c0_50 = arith.constant 0 : index
    %c0_51 = arith.constant 0 : index
    %c0_52 = arith.constant 0 : index
    %59 = vector.load %arg2[%c0_50, %c0_51, %c0_52] : memref<1x256x1xf32, #tpu.memory_space<vmem>>, vector<1x256x1xf32>
    %60 = vector.shape_cast %59 : vector<1x256x1xf32> to vector<256x1xf32>
    %cst_53 = arith.constant 0.000000e+00 : f32
    %cst_54 = arith.constant 1.000000e+00 : f32
    %61 = vector.broadcast %cst_53 : f32 to vector<256x1xf32>
    %62 = arith.maximumf %61, %60 : vector<256x1xf32>
    %63 = vector.broadcast %cst_54 : f32 to vector<256x1xf32>
    %64 = arith.minimumf %63, %62 : vector<256x1xf32>
    %cst_55 = arith.constant 9.99999993E-9 : f32
    %65 = vector.broadcast %cst_55 : f32 to vector<256x1xf32>
    %66 = arith.addf %60, %65 : vector<256x1xf32>
    %cst_56 = arith.constant 3.600000e+01 : f32
    %67 = vector.broadcast %cst_56 : f32 to vector<256x1xf32>
    %68 = arith.divf %67, %66 : vector<256x1xf32>
    %69 = arith.mulf %64, %64 : vector<256x1xf32>
    %70 = arith.mulf %68, %64 : vector<256x1xf32>
    %71 = arith.mulf %70, %69 : vector<256x1xf32>
    %72 = vector.broadcast %71 : vector<256x1xf32> to vector<256x128xf32>
    %73 = arith.mulf %58, %72 : vector<256x128xf32>
    %74 = vector.broadcast %0 : vector<1x128xf32> to vector<256x128xf32>
    %75 = vector.broadcast %69 : vector<256x1xf32> to vector<256x128xf32>
    %76 = arith.mulf %74, %75 : vector<256x128xf32>
    %77 = arith.addf %73, %76 : vector<256x128xf32>
    %cst_57 = arith.constant dense<0.000000e+00> : vector<128xf32>
    %78 = vector.multi_reduction <add>, %77, %cst_57 [0] : vector<256x128xf32> to vector<128xf32>
    %79 = vector.shape_cast %78 : vector<128xf32> to vector<1x128xf32>
    %cst_58 = arith.constant 3.906250e-03 : f32
    %80 = vector.broadcast %cst_58 : f32 to vector<1x128xf32>
    %81 = arith.mulf %79, %80 : vector<1x128xf32>
    %82 = arith.mulf %77, %77 : vector<256x128xf32>
    %cst_59 = arith.constant dense<0.000000e+00> : vector<128xf32>
    %83 = vector.multi_reduction <add>, %82, %cst_59 [0] : vector<256x128xf32> to vector<128xf32>
    %84 = vector.shape_cast %83 : vector<128xf32> to vector<1x128xf32>
    %cst_60 = arith.constant 3.906250e-03 : f32
    %85 = vector.broadcast %cst_60 : f32 to vector<1x128xf32>
    %86 = arith.mulf %84, %85 : vector<1x128xf32>
    %87 = arith.mulf %81, %81 : vector<1x128xf32>
    %88 = arith.subf %86, %87 : vector<1x128xf32>
    %cst_61 = arith.constant 0.000000e+00 : f32
    %89 = vector.broadcast %cst_61 : f32 to vector<1x128xf32>
    %90 = arith.maximumf %88, %89 : vector<1x128xf32>
    %91 = vector.broadcast %81 : vector<1x128xf32> to vector<256x128xf32>
    %92 = arith.subf %77, %91 : vector<256x128xf32>
    %cst_62 = arith.constant 9.99999974E-6 : f32
    %93 = vector.broadcast %cst_62 : f32 to vector<1x128xf32>
    %94 = arith.addf %90, %93 : vector<1x128xf32>
    %95 = math.rsqrt %94 : vector<1x128xf32>
    %96 = vector.broadcast %95 : vector<1x128xf32> to vector<256x128xf32>
    %97 = arith.mulf %92, %96 : vector<256x128xf32>
    %98 = vector.shape_cast %27 : vector<288x128xf32> to vector<16x18x128xf32>
    %99 = vector.extract_strided_slice %98 {offsets = [0, 0, 0], sizes = [16, 16, 128], strides = [1, 1, 1]} : vector<16x18x128xf32> to vector<16x16x128xf32>
    %100 = vector.shape_cast %99 : vector<16x16x128xf32> to vector<256x128xf32>
    %101 = arith.addf %97, %100 : vector<256x128xf32>
    %cst_63 = arith.constant 0.000000e+00 : f32
    %102 = vector.broadcast %cst_63 : f32 to vector<256x128xf32>
    %103 = arith.maximumf %101, %102 : vector<256x128xf32>
    %c0_64 = arith.constant 0 : index
    %c0_65 = arith.constant 0 : index
    %c0_66 = arith.constant 0 : index
    %104 = vector.load %arg5[%c0_64, %c0_65, %c0_66] : memref<1x256x128xf32, #tpu.memory_space<vmem>>, vector<1x256x128xf32>
    %105 = vector.shape_cast %104 : vector<1x256x128xf32> to vector<256x128xf32>
    %106 = vector.shape_cast %103 : vector<256x128xf32> to vector<1x256x128xf32>
    tpu.vector_store %arg5[%c0_64, %c0_65, %c0_66], %106 {strides = array<i32>} : memref<1x256x128xf32, #tpu.memory_space<vmem>>, vector<1x256x128xf32>,
    %c0_67 = arith.constant 0 : index
    %c0_68 = arith.constant 0 : index
    %c0_69 = arith.constant 0 : index
    %107 = vector.load %arg6[%c0_67, %c0_68, %c0_69] : memref<1x256x1xf32, #tpu.memory_space<vmem>>, vector<1x256x1xf32>
    %108 = vector.shape_cast %107 : vector<1x256x1xf32> to vector<256x1xf32>
    %109 = vector.shape_cast %64 : vector<256x1xf32> to vector<1x256x1xf32>
    tpu.vector_store %arg6[%c0_67, %c0_68, %c0_69], %109 {strides = array<i32>} : memref<1x256x1xf32, #tpu.memory_space<vmem>>, vector<1x256x1xf32>,
    return
  }
  func.func @transform_0(%arg0: i32) -> (i32, i32, i32) {
    %c0_i32 = arith.constant 0 : i32
    %c0_i32_0 = arith.constant 0 : i32
    %c0_i32_1 = arith.constant 0 : i32
    return %arg0, %c0_i32, %c0_i32_0 : i32, i32, i32
  }
  func.func @transform_1(%arg0: i32) -> (i32, i32, i32) {
    %c0_i32 = arith.constant 0 : i32
    %c0_i32_0 = arith.constant 0 : i32
    %c0_i32_1 = arith.constant 0 : i32
    return %arg0, %c0_i32, %c0_i32_0 : i32, i32, i32
  }
  func.func @transform_2(%arg0: i32) -> (i32, i32, i32) {
    %c0_i32 = arith.constant 0 : i32
    %c0_i32_0 = arith.constant 0 : i32
    %c0_i32_1 = arith.constant 0 : i32
    %c0_i32_2 = arith.constant 0 : i32
    return %c0_i32, %c0_i32_0, %c0_i32_1 : i32, i32, i32
  }
  func.func @transform_3(%arg0: i32) -> (i32, i32) {
    %c0_i32 = arith.constant 0 : i32
    %c0_i32_0 = arith.constant 0 : i32
    %c0_i32_1 = arith.constant 0 : i32
    return %c0_i32, %c0_i32_0 : i32, i32
  }
  func.func @transform_4(%arg0: i32) -> (i32, i32, i32) {
    %c0_i32 = arith.constant 0 : i32
    %c0_i32_0 = arith.constant 0 : i32
    %c0_i32_1 = arith.constant 0 : i32
    return %arg0, %c0_i32, %c0_i32_0 : i32, i32, i32
  }
  func.func @transform_5(%arg0: i32) -> (i32, i32, i32) {
    %c0_i32 = arith.constant 0 : i32
    %c0_i32_0 = arith.constant 0 : i32
    %c0_i32_1 = arith.constant 0 : i32
    return %arg0, %c0_i32, %c0_i32_0 : i32, i32, i32
  }
}

</mosaic_0001>

<bundles_post_ra>
// kernel: tpu_custom_call.1
= control target key start
LH: loop header
LB: loop body
LE: loop exit
PB: predicated region body
PF: predicated region fallthrough
CT: control target
= control target key end

     0   :  { %11 = vsyncpa [#allocation3], 0  ;;  %s19078_s0 = inlined_call_operand.hbm [shape: f32[2,328,128], index: 0, kind: input, shape index: {}]   ;;  %s19079_s1 = inlined_call_operand.vmem [shape: f32[2,256,1], index: 1, kind: input, shape index: {}]   ;;  %s19080_s2 = inlined_call_operand.hbm [shape: f32[9,128,128], index: 2, kind: input, shape index: {}]   ;;  %s19081_s3 = inlined_call_operand.vmem [shape: f32[1,128], index: 3, kind: input, shape index: {}]   ;;  %s19082_s4 = inlined_call_operand.hbm [shape: f32[2,256,128], index: 4, kind: output, shape index: {0}]   ;;  %s19083_s5 = inlined_call_operand.vmem [shape: f32[2,256,1], index: 5, kind: output, shape index: {1}]  }
   0x1   :  { %13 = vsyncpa [#allocation3 + $0x1], 0 }
   0x2   :  { %14 = vsyncpa [#allocation6], 0 }
   0x3   :  { %15 = vsyncpa [#allocation4], 0 }
   0x4   :  { %17 = vsyncpa [#allocation4 + $0x1], 0  ;;  %s12676_s18 = smov 0   ;;  %s12678_s19 = smov 0  }
   0x5   :  { %s12680_s20 = smov 0   ;;  %s12682_s21 = smov 0  }
   0x6 LB: > { %s12697_s22 = sadd.s32 4294967295, %s12631_s21   ;;  %s10443_s23 = sadd.s32 4294967294, %s12631_s21   ;;  %s12631_s21 = sphi %s12682_s21, %s21254_s21   ;;  %s12627_s20 = sphi %s12680_s20, %s21253_s20   ;;  %s12623_s19 = sphi %s12678_s19, %s21252_s19   ;;  %s12619_s18 = sphi %s12676_s18, %s21251_s18  }
   0x7   : > { %p43_p0 = scmp.ne.s32.totalorder %s12623_s19, %s12619_s18  ;;  %p19084_p1 = scmp.eq.s32.totalorder %s12697_s22, 0 }
   0x8   : > { %p141_p3 = scmp.eq.s32.totalorder %s10443_s23, 1  ;;  %p10444_p5 = scmp.ge.s32.totalorder %s12631_s21, 1 }
   0x9   : > { %p12706_p4 = por %p19084_p1, %p43_p0  ;;  %p174_p7 = scmp.lt.s32.totalorder %s12631_s21, 3 }
   0xa   : > { %p12711_p6 = por %p141_p3, %p43_p0  ;;  %s12633_s27 = smov [#allocation5]  }
   0xb   : > { %s19692_s24 = scalar_select %p12706_p4, 1, 0 }
   0xc   : > { %s19693_s25 = scalar_select %p12711_p6, 1, 0 }
   0xd   : > { %p12716_p8 = pnand %p10444_p5, %p174_p7  ;;  %s186_s28 = sshll.u32 %s12633_s27, 4  ;;  %s12720_s28 = int_to_ptr.vmem [resolvable:$true] %s186_s28 }
   0xe   : > { %s12732_s30 = sadd.s32 1, %s12631_s21   ;;  %s30_s6 = sadd.s32 1, %s12627_s20 }
   0xf   : > { %s19694_s26 = scalar_select %p12716_p8, 1, 0 }
  0x10   : > { %p12309_p9 = pneg %p12716_p8  ;;  %s27_s7 = ssub.s32 %s12631_s21, %s12732_s30 }
  0x11   : > { %s12503_s10 = scalar_lea.hbm %s19080_s2, 18432 }
  0x12   : > { %p12727_p11 = pnand %p12309_p9, %p19084_p1  ;;  %p12504_p12 = scmp.ne.s32.totalorder %s19080_s2, %s12503_s10 }
  0x13   : > { %p12510_p5 = scmp.lt.u32.totalorder %s12503_s10, %s19080_s2 }
  0x14   : > { %p12505_p13 = pneg %p12727_p11 }
  0x16   : > { %p12506_p0 = pnand %p12505_p13, %p12504_p12 }
  0x18   : > { %p12507_p3 = pneg %p12506_p0 }
  0x1a   : > { %p12512_p7 = pnand %p12510_p5, %p12507_p3 }
  0x1c   : > { %12515 = shalt.err (!%p12512_p7)
}
  0x1d   : > { %s12516_s15 = scalar_lea.vmem %s12720_s28, 18432  ;;  %p12524_p2 = scmp.lt.s32.totalorder %s12720_s28, %s12720_s28 }
  0x1e   : > { %p12517_p9 = scmp.ne.s32.totalorder %s12720_s28, %s12516_s15  ;;  %p12525_p6 = scmp.lt.s32.totalorder %s12516_s15, %s12516_s15 }
  0x20   : > { %p12519_p10 = pnand %p12517_p9, %p12505_p13  ;;  %p12526_p4 = por %p12525_p6, %p12524_p2 }
  0x22   : > { %p12520_p1 = pneg %p12519_p10 }
  0x24   : > { %p12527_p8 = pnand %p12526_p4, %p12520_p1 }
  0x26   : > { %12530 = shalt.err (!%p12527_p8)
}
  0x27   : > { %s19087_s16 = smov 128   ;;  %s12635_s17 = smov 8  }
  0x28   : > { %12312 = dma.hbm_to_vmem [thread:$0]  (!%p12727_p11), %s19080_s2, 18432, %s12720_s28, [#allocation6], %s19087_s16, %s19087_s16, %s12635_s17  }
  0x29   : > { %p28_p1 = scmp.eq.s32.totalorder %s27_s7, 0  ;;  %p37_p2 = scmp.ne.s32.totalorder %s12627_s20, %s12623_s19 }
  0x2a   : > { %p38_p4 = scmp.eq.s32.totalorder %s12631_s21, 0  ;;  %p12322_p6 = scmp.lt.s32.totalorder %s12631_s21, 2 }
  0x2b   : > { %s12766_s8 = scalar_select %p28_p1, %s12627_s20, %s30_s6  }
  0x2c   : > { %p39_p8 = por %p38_p4, %p37_p2  ;;  %p19696_p10 = scmp.eq.s32.totalorder %s12697_s22, 1 }
  0x2d   : > { %s203_s29 = sand.u32 1, %s12627_s20   ;;  %s12299_s10 = smul.u32 5248, %s12631_s21 }
  0x2e   : > { %p12770_p12 = por %p19696_p10, %p37_p2  ;;  %s12298_s11 = smul.u32 328, %s203_s29 }
  0x2f   : > { %p12776_p13 = pnand %p12322_p6, %p39_p8  ;;  %s12783_s6 = scalar_lea.hbm %s19078_s0, %s12299_s10 }
  0x30   : > { %s207_s13 = scalar_lea.vmem [#allocation2], %s12298_s11  ;;  %s12787_s15 = scalar_lea.sflag [#allocation3], %s203_s29 }
  0x31   : > { %s214_s14 = sshll.u32 %s207_s13, 4  ;;  %s12531_s23 = scalar_lea.hbm %s12783_s6, 5248  ;;  %s12785_s14 = int_to_ptr.vmem [resolvable:$true] %s214_s14 }
  0x32   : > { %p12532_p11 = scmp.ne.s32.totalorder %s12783_s6, %s12531_s23  ;;  %p12533_p0 = pneg %p12776_p13 }
  0x33   : > { %s12536_s28 = scalar_lea.hbm %s19078_s0, 10496  ;;  %p12537_p7 = scmp.lt.u32.totalorder %s12783_s6, %s19078_s0 }
  0x34   : > { %p12534_p3 = pnand %p12533_p0, %p12532_p11  ;;  %p12538_p9 = scmp.lt.u32.totalorder %s12536_s28, %s12531_s23 }
  0x35   : > { %p12540_p2 = scmp.lt.u32.totalorder %s12531_s23, %s12783_s6 }
  0x36   : > { %p12535_p5 = pneg %p12534_p3  ;;  %p12539_p1 = por %p12538_p9, %p12537_p7 }
  0x38   : > { %p12541_p4 = por %p12540_p2, %p12539_p1 }
  0x3a   : > { %p12542_p6 = pnand %p12541_p4, %p12535_p5 }
  0x3c   : > { %12545 = shalt.err (!%p12542_p6)
}
  0x3d   : > { %s12546_s29 = scalar_lea.vmem %s12785_s14, 5248  ;;  %s12636_s11 = smov [#allocation2]  }
  0x3e   : > { %p12547_p8 = scmp.ne.s32.totalorder %s12785_s14, %s12546_s29  ;;  %s12551_s13 = sshll.u32 %s12636_s11, 4  ;;  %s12552_s13 = int_to_ptr.vmem [resolvable:$false] %s12551_s13 }
  0x3f   : > { %s12553_s16 = scalar_lea.vmem %s12552_s13, 10496  ;;  %p12554_p3 = scmp.lt.s32.totalorder %s12785_s14, %s12552_s13 }
  0x40   : > { %p12549_p10 = pnand %p12547_p8, %p12533_p0  ;;  %p12555_p7 = scmp.lt.s32.totalorder %s12553_s16, %s12546_s29 }
  0x42   : > { %p12550_p11 = pneg %p12549_p10  ;;  %p12556_p9 = por %p12555_p7, %p12554_p3 }
  0x44   : > { %p12557_p1 = pnand %p12556_p9, %p12550_p11 }
  0x46   : > { %12560 = shalt.err (!%p12557_p1)
}
  0x47   : > { %s19699_s23 = smov 128   ;;  %p19700_p0 = scmp.ne.s32.totalorder %s19694_s26, 0 }
  0x48   : > { %12316 = dma.hbm_to_vmem [thread:$0]  (!%p12776_p13), %s12783_s6, 5248, %s12785_s14, %s12787_s15, %s19699_s23, %s19699_s23, %s12635_s17  }
  0x49   : > { %234 = sbr.rel (%p19700_p0) target bundleno = 1207 (0x4b7), region = 36 }
  0x50   : > { %s12821_s27 = sand.u32 1, %s12623_s19   ;;  %p19701_p5 = scmp.ne.s32.totalorder %s19692_s24, 0 }
  0x51   : > { %s12300_s10 = smul.u32 328, %s12821_s27  ;;  %s237_s28 = scalar_lea.sflag [#allocation3], %s12821_s27 }
  0x53   : > { %s12825_s7 = scalar_lea.vmem [#allocation2], %s12300_s10 }
  0x54   : > { %12606 = dma.done.wait (%p19701_p5), %s237_s28, 5248  }
  0x55   : > { %12608 = vsyncadd (%p19701_p5), %s237_s28, 4294962048  ;;  %p19702_p13 = scmp.eq.s32.totalorder %s12697_s22, 0 }
  0x57   : > { %12610 = dma.done.wait (%p19702_p13), [#allocation6], 18432   ;;  %p19703_p2 = pmov %p19702_p13 }
  0x58   : > { %v381_v0 = vld [vmem:[#allocation5 + $0x80] sm:$0xff]  ;;  %v382_v1 = vld [vmem:[#allocation5 + $0x88] sm:$0xff]  ;;  %v383_v5 = vld [vmem:[#allocation5 + $0x90] sm:$0xff]  ;;  %p281_p4 = scmp.lt.s32.totalorder %s12697_s22, 1  ;;  %vm10268_vm0 = vcmask 7168   ;;  %s10450_s16 = sshll.u32 %s12821_s27, 8 }
  0x59   : > { %12612 = vsyncadd (%p19703_p2), [#allocation6], 4294948864  ;;  %v1592_v2 = vld [vmem:[#allocation5 + $0x200] sm:$0xff]  ;;  %v11706_v3 = vpack.c.bf16 %v382_v1, %v381_v0  ;;  %v1593_v4 = vld [vmem:[#allocation5 + $0x208] sm:$0xff]  ;;  %s17177_s23 = scalar_lea.vmem [#allocation7], %s10450_s16  ;;  %s10463_s10 = sshll.u32 %s12697_s22, 12 }
  0x5a   : > { %v384_v6 = vld [vmem:[#allocation5 + $0x98] sm:$0xff]  ;;  %v12835_v7 = vpack.c.bf16 %v1593_v4, %v1592_v2  ;;  %v1594_v9 = vld [vmem:[#allocation5 + $0x210] sm:$0xff]  ;;  %v385_v11 = vld [vmem:[#allocation5 + $0xa0] sm:$0xff]  ;;  %s12919_s24 = scalar_select %p281_p4, %s12697_s22, 1 }
  0x5b   : > { %v11710_v8 = vpack.c.bf16 %v384_v6, %v383_v5  ;;  %v1595_v10 = vld [vmem:[#allocation5 + $0x218] sm:$0xff]  ;;  %11707 = vmatprep.subr.bf16.mxu1 %v11706_v3  ;;  %v386_v13 = vld [vmem:[#allocation5 + $0xa8] sm:$0xff]  ;;  %v1596_v14 = vld [vmem:[#allocation5 + $0x220] sm:$0xff]  ;;  %s10320_s28 = sshll.u32 %s17177_s23, 4  ;;  %s19029_s22 = scalar_lea.hbm %s19082_s4, %s10463_s10  ;;  %s19031_s28 = int_to_ptr.vmem [resolvable:$true] %s10320_s28 }
  0x5c   : > { %19704 = vst [vmem:[#allocation11_spill] sm:$0xff] %v12835_v7  ;;  %v12837_v12 = vpack.c.bf16 %v1595_v10, %v1594_v9  ;;  %v1597_v15 = vld [vmem:[#allocation5 + $0x228] sm:$0xff]  ;;  %11835 = vmatprep.subr.bf16.mxu0 %v12835_v7  ;;  %11709 = vmatpush3.bf16.msra.mxu1 %v11706_v3  ;;  %v11714_v16 = vpack.c.bf16 %v386_v13, %v385_v11  ;;  %v387_v18 = vld [vmem:[#allocation5 + $0xb0] sm:$0xff]  ;;  %v388_v19 = vld [vmem:[#allocation5 + $0xb8] sm:$0xff]  ;;  %s10461_s26 = sshll.u32 %s12919_s24, 8  ;;  %s12561_s17 = scalar_lea.vmem %s19031_s28, 4096 }
  0x5d   : > { %11837 = vmatpush3.bf16.msra.mxu0 %v12835_v7  ;;  %11711 = vmatprep.subr.bf16.mxu1 %v11710_v8  ;;  %v12842_v17 = vpack.c.bf16 %v1597_v15, %v1596_v14  ;;  %v1598_v20 = vld [vmem:[#allocation5 + $0x230] sm:$0xff]  ;;  %v1599_v21 = vld [vmem:[#allocation5 + $0x238] sm:$0xff]  ;;  %v11718_v22 = vpack.c.bf16 %v388_v19, %v387_v18  ;;  %v389_v24 = vld [vmem:[#allocation5 + $0xc0] sm:$0xff]  ;;  %s12945_s6 = scalar_lea.vmem %s19079_s1, %s10461_s26  ;;  %s12969_s29 = scalar_lea.vmem %s19083_s5, %s10461_s26 }
  0x5e   : > { %19705 = vst [vmem:[#allocation12_spill] sm:$0xff] %v12837_v12  ;;  %11839 = vmatprep.subr.bf16.mxu0 %v12837_v12  ;;  %v12846_v23 = vpack.c.bf16 %v1599_v21, %v1598_v20  ;;  %v390_v25 = vld [vmem:[#allocation5 + $0xc8] sm:$0xff]  ;;  %v344_v26 = vld [vmem:[%s12825_s7 + $0x1] sm:$0xff]  ;;  %s10302_s26 = scalar_lea.sflag [#allocation4], %s12821_s27  ;;  %p12562_p6 = scmp.ne.s32.totalorder %s19031_s28, %s12561_s17 }
  0x5f   : > { %19706 = vst [vmem:[#allocation13_spill] sm:$0xff] %v12842_v17  ;;  %v1600_v27 = vld [vmem:[#allocation5 + $0x240] sm:$0xff]  ;;  %v1601_v28 = vld [vmem:[#allocation5 + $0x248] sm:$0xff]  ;;  %10964 = vmatprep.mubr.f32.mxu1 %v344_v26  ;;  %v11722_v30 = vpack.c.bf16 %v390_v25, %v389_v24  ;;  %v391_v32 = vld [vmem:[#allocation5 + $0xd0] sm:$0xff]  ;;  %s12643_s12 = smov [#allocation7]  }
  0x60   : > { %11713 = vmatpush3.bf16.msra.mxu1 %v11710_v8  ;;  %19707 = vst [vmem:[#allocation14_spill] sm:$0xff] %v12846_v23  ;;  %v1555_v29 = vld [vmem:[%s12825_s7 + $0x13] sm:$0xff]  ;;  %v12852_v31 = vpack.c.bf16 %v1601_v28, %v1600_v27  ;;  %v392_v33 = vld [vmem:[#allocation5 + $0xd8] sm:$0xff]  ;;  %p12563_p8 = pnand %p12562_p6, %p12770_p12 }
  0x61   : > { %11841 = vmatpush3.bf16.msra.mxu0 %v12837_v12  ;;  %11715 = vmatprep.subr.bf16.mxu1 %v11714_v16  ;;  %v1602_v34 = vld [vmem:[#allocation5 + $0x250] sm:$0xff]  ;;  %v1603_v35 = vld [vmem:[#allocation5 + $0x258] sm:$0xff]  ;;  %v11726_v36 = vpack.c.bf16 %v392_v33, %v391_v32  ;;  %v393_v38 = vld [vmem:[#allocation5 + $0xe0] sm:$0xff] }
  0x62   : > { %11843 = vmatprep.subr.bf16.mxu0 %v12842_v17  ;;  %11308 = vmatprep.mubr.f32.mxu0 %v1555_v29  ;;  %19708 = vst [vmem:[#allocation15_spill] sm:$0xff] %v12852_v31  ;;  %v12856_v37 = vpack.c.bf16 %v1603_v35, %v1602_v34  ;;  %v394_v39 = vld [vmem:[#allocation5 + $0xe8] sm:$0xff]  ;;  %v1604_v40 = vld [vmem:[#allocation5 + $0x260] sm:$0xff]  ;;  %v395_v44 = vld [vmem:[#allocation5 + $0xf0] sm:$0xff]  ;;  %p12564_p10 = pneg %p12563_p8 }
  0x63   : > { %v1605_v41 = vld [vmem:[#allocation5 + $0x268] sm:$0xff]  ;;  %v11730_v42 = vpack.c.bf16 %v394_v39, %v393_v38  ;;  %v396_v45 = vld [vmem:[#allocation5 + $0xf8] sm:$0xff]  ;;  %v1606_v46 = vld [vmem:[#allocation5 + $0x270] sm:$0xff] }
  0x64   : > { %11717 = vmatpush3.bf16.msra.mxu1 %v11714_v16  ;;  %19709 = vst [vmem:[#allocation16_spill] sm:$0xff] %v12856_v37  ;;  %v12860_v43 = vpack.c.bf16 %v1605_v41, %v1604_v40  ;;  %v1607_v47 = vld [vmem:[#allocation5 + $0x278] sm:$0xff]  ;;  %v11734_v48 = vpack.c.bf16 %v396_v45, %v395_v44  ;;  %v328_v50 = vld [vmem:[#allocation5] sm:$0xff]  ;;  %v329_v51 = vld [vmem:[#allocation5 + $0x8] sm:$0xff] }
  0x65   : > { %11845 = vmatpush3.bf16.msra.mxu0 %v12842_v17  ;;  %11719 = vmatprep.subr.bf16.mxu1 %v11718_v22  ;;  %v12864_v49 = vpack.c.bf16 %v1607_v47, %v1606_v46  ;;  %v1926_v52 = vld [vmem:[#allocation5 + $0x280] sm:$0xff]  ;;  %v1927_v53 = vld [vmem:[#allocation5 + $0x288] sm:$0xff]  ;;  %v11738_v54 = vpack.c.bf16 %v329_v51, %v328_v50  ;;  %v1928_v56 = vld [vmem:[#allocation5 + $0x290] sm:$0xff] }
  0x66   : > { %11847 = vmatprep.subr.bf16.mxu0 %v12846_v23  ;;  %19710 = vst [vmem:[#allocation17_spill] sm:$0xff] %v12860_v43  ;;  %v11866_v55 = vpack.c.bf16 %v1927_v53, %v1926_v52  ;;  %v1929_v57 = vld [vmem:[#allocation5 + $0x298] sm:$0xff]  ;;  %v330_v59 = vld [vmem:[#allocation5 + $0x10] sm:$0xff]  ;;  %v1930_v2 = vld [vmem:[#allocation5 + $0x2a0] sm:$0xff] }
  0x67   : > { %19711 = vst [vmem:[#allocation18_spill] sm:$0xff] %v12864_v49  ;;  %v345_v58 = vld [vmem:[%s12825_s7 + $0x9] sm:$0xff]  ;;  %v1556_v61 = vld [vmem:[%s12825_s7 + $0x1b] sm:$0xff]  ;;  %v346_v62 = vld [vmem:[%s12825_s7 + $0x11] sm:$0xff]  ;;  %v11870_v63 = vpack.c.bf16 %v1929_v57, %v1928_v56 }
  0x68   : > { %11721 = vmatpush3.bf16.msra.mxu1 %v11718_v22  ;;  %v331_v60 = vld [vmem:[#allocation5 + $0x18] sm:$0xff]  ;;  %v1931_v3 = vld [vmem:[#allocation5 + $0x2a8] sm:$0xff]  ;;  %v332_v5 = vld [vmem:[#allocation5 + $0x20] sm:$0xff] }
  0x69   : > { %11849 = vmatpush3.bf16.msra.mxu0 %v12846_v23  ;;  %11723 = vmatprep.subr.bf16.mxu1 %v11722_v30  ;;  %v1557_v0 = vld [vmem:[%s12825_s7 + $0x23] sm:$0xff]  ;;  %v11742_v1 = vpack.c.bf16 %v331_v60, %v330_v59  ;;  %v347_v4 = vld [vmem:[%s12825_s7 + $0x19] sm:$0xff]  ;;  %v1558_v8 = vld [vmem:[%s12825_s7 + $0x2b] sm:$0xff]  ;;  %v11874_v11 = vpack.c.bf16 %v1931_v3, %v1930_v2 }
  0x6a   : > { %11851 = vmatprep.subr.bf16.mxu0 %v12852_v31  ;;  %v333_v6 = vld [vmem:[#allocation5 + $0x28] sm:$0xff]  ;;  %v348_v9 = vld [vmem:[%s12825_s7 + $0x21] sm:$0xff] }
  0x6b   : > { %v1559_v10 = vld [vmem:[%s12825_s7 + $0x33] sm:$0xff]  ;;  %v1933_v14 = vld [vmem:[#allocation5 + $0x2b8] sm:$0xff]  ;;  %v11746_v15 = vpack.c.bf16 %v333_v6, %v332_v5 }
  0x6c   : > { %11725 = vmatpush3.bf16.msra.mxu1 %v11722_v30  ;;  %v1932_v13 = vld [vmem:[#allocation5 + $0x2b0] sm:$0xff]  ;;  %v349_v16 = vld [vmem:[%s12825_s7 + $0x29] sm:$0xff] }
  0x6d   : > { %11853 = vmatpush3.bf16.msra.mxu0 %v12852_v31  ;;  %11727 = vmatprep.subr.bf16.mxu1 %v11726_v36  ;;  %v334_v18 = vld [vmem:[#allocation5 + $0x30] sm:$0xff]  ;;  %v335_v19 = vld [vmem:[#allocation5 + $0x38] sm:$0xff]  ;;  %v11878_v24 = vpack.c.bf16 %v1933_v14, %v1932_v13  ;;  %v1934_v25 = vld [vmem:[#allocation5 + $0x2c0] sm:$0xff] }
  0x6e   : > { %11855 = vmatprep.subr.bf16.mxu0 %v12856_v37  ;;  %v1560_v20 = vld [vmem:[%s12825_s7 + $0x3b] sm:$0xff]  ;;  %v350_v21 = vld [vmem:[%s12825_s7 + $0x31] sm:$0xff]  ;;  %v1561_v22 = vld [vmem:[%s12825_s7 + $0x43] sm:$0xff]  ;;  %v11750_v27 = vpack.c.bf16 %v335_v19, %v334_v18 }
  0x6f   : > { %v1935_v26 = vld [vmem:[#allocation5 + $0x2c8] sm:$0xff]  ;;  %v336_v29 = vld [vmem:[#allocation5 + $0x40] sm:$0xff]  ;;  %v1937_v38 = vld [vmem:[#allocation5 + $0x2d8] sm:$0xff] }
  0x70   : > { %11729 = vmatpush3.bf16.msra.mxu1 %v11726_v36  ;;  %v351_v28 = vld [vmem:[%s12825_s7 + $0x39] sm:$0xff]  ;;  %v1562_v32 = vld [vmem:[%s12825_s7 + $0x4b] sm:$0xff]  ;;  %v352_v33 = vld [vmem:[%s12825_s7 + $0x41] sm:$0xff]  ;;  %v11882_v35 = vpack.c.bf16 %v1935_v26, %v1934_v25 }
  0x71   : > { %11857 = vmatpush3.bf16.msra.mxu0 %v12856_v37  ;;  %11731 = vmatprep.subr.bf16.mxu1 %v11730_v42  ;;  %v337_v30 = vld [vmem:[#allocation5 + $0x48] sm:$0xff]  ;;  %v1936_v36 = vld [vmem:[#allocation5 + $0x2d0] sm:$0xff]  ;;  %v340_v53 = vld [vmem:[#allocation5 + $0x60] sm:$0xff] }
  0x72   : > { %11859 = vmatprep.subr.bf16.mxu0 %v12860_v43  ;;  %v1563_v34 = vld [vmem:[%s12825_s7 + $0x53] sm:$0xff]  ;;  %v11754_v39 = vpack.c.bf16 %v337_v30, %v336_v29  ;;  %v353_v40 = vld [vmem:[%s12825_s7 + $0x49] sm:$0xff]  ;;  %v1564_v44 = vld [vmem:[%s12825_s7 + $0x5b] sm:$0xff]  ;;  %v11886_v47 = vpack.c.bf16 %v1937_v38, %v1936_v36  ;;  %v12637_v29 = vmov 0  }
  0x73   : > { %v338_v41 = vld [vmem:[#allocation5 + $0x50] sm:$0xff]  ;;  %v1939_v50 = vld [vmem:[#allocation5 + $0x2e8] sm:$0xff]  ;;  %v1941_v60 = vld [vmem:[#allocation5 + $0x2f8] sm:$0xff]  ;;  %12368 = vset.pattern.permute.xlu0 %v12637_v29  ;;  %12369 = vset.pattern.permute.xlu1 %v12637_v29 }
  0x74   : > { %11733 = vmatpush3.bf16.msra.mxu1 %v11730_v42  ;;  %v339_v42 = vld [vmem:[#allocation5 + $0x58] sm:$0xff]  ;;  %v354_v45 = vld [vmem:[%s12825_s7 + $0x51] sm:$0xff] }
  0x75   : > { %11861 = vmatpush3.bf16.msra.mxu0 %v12860_v43  ;;  %11735 = vmatprep.subr.bf16.mxu1 %v11734_v48  ;;  %v1565_v46 = vld [vmem:[%s12825_s7 + $0x63] sm:$0xff]  ;;  %v11758_v51 = vpack.c.bf16 %v339_v42, %v338_v41  ;;  %v355_v52 = vld [vmem:[%s12825_s7 + $0x59] sm:$0xff]  ;;  %v358_v2 = vld [vmem:[%s12825_s7 + $0x71] sm:$0xff] }
  0x76   : > { %11863 = vmatprep.subr.bf16.mxu0 %v12864_v49  ;;  %v356_v56 = vld [vmem:[%s12825_s7 + $0x61] sm:$0xff]  ;;  %v1567_v57 = vld [vmem:[%s12825_s7 + $0x73] sm:$0xff]  ;;  %v1570_v13 = vld [vmem:[%s12825_s7 + $0x8b] sm:$0xff] }
  0x77   : > { %v1940_v59 = vld [vmem:[#allocation5 + $0x2f0] sm:$0xff]  ;;  %v2260_v5 = vld [vmem:[#allocation5 + $0x300] sm:$0xff]  ;;  %v2261_v6 = vld [vmem:[#allocation5 + $0x308] sm:$0xff] }
  0x78   : > { %11737 = vmatpush3.bf16.msra.mxu1 %v11734_v48  ;;  %v1938_v48 = vld [vmem:[#allocation5 + $0x2e0] sm:$0xff]  ;;  %v2263_v25 = vld [vmem:[#allocation5 + $0x318] sm:$0xff]  ;;  %v2266_v41 = vld [vmem:[#allocation5 + $0x330] sm:$0xff] }
  0x79   : > { %11865 = vmatpush3.bf16.msra.mxu0 %v12864_v49  ;;  %11739 = vmatprep.subr.bf16.mxu1 %v11738_v54  ;;  %v1569_v3 = vld [vmem:[%s12825_s7 + $0x83] sm:$0xff]  ;;  %v363_v26 = vld [vmem:[%s12825_s7 + $0x99] sm:$0xff]  ;;  %v12923_v36 = vld [vmem:[%s12825_s7 + $0x2c] sm:$0xff] }
  0x7a   : > { %11867 = vmatprep.subr.bf16.mxu0 %v11866_v55  ;;  %v360_v14 = vld [vmem:[%s12825_s7 + $0x81] sm:$0xff]  ;;  %v361_v19 = vld [vmem:[%s12825_s7 + $0x89] sm:$0xff]  ;;  %v366_v38 = vld [vmem:[%s12825_s7 + $0xb1] sm:$0xff] }
  0x7b   : > { %10965 = vmatmul.mubr.f32.vlgmr.msra.gmra.mrb[0].mxu1 %v345_v58  ;;  %v11890_v58 = vpack.c.bf16 %v1939_v50, %v1938_v48  ;;  %v12913_v30 = vld [vmem:[%s12825_s7 + $0x24] sm:$0xff] }
  0x7c   : > { %11309 = vmatmul.mubr.f32.vlgmr.msra.gmra.mrb[0].mxu0 %v1556_v61  ;;  %11741 = vmatpush3.bf16.msra.mxu1 %v11738_v54  ;;  %v341_v54 = vld [vmem:[#allocation5 + $0x68] sm:$0xff]  ;;  %v2267_v42 = vld [vmem:[#allocation5 + $0x338] sm:$0xff]  ;;  %v2268_v50 = vld [vmem:[#allocation5 + $0x340] sm:$0xff] }
  0x7d   : > { %11869 = vmatpush3.bf16.msra.mxu0 %v11866_v55  ;;  %10967 = vmatprep.mubr.f32.mxu1 %v346_v62  ;;  %v1566_v55 = vld [vmem:[%s12825_s7 + $0x6b] sm:$0xff]  ;;  %v11762_v61 = vpack.c.bf16 %v341_v54, %v340_v53  ;;  %v11910_v48 = vpack.c.bf16 %v2267_v42, %v2266_v41  ;;  %v2274_v29 = vld [vmem:[#allocation5 + $0x370] sm:$0xff] }
  0x7e   : > { %11311 = vmatprep.mubr.f32.mxu0 %v1557_v0  ;;  %11871 = vmatprep.subr.bf16.mxu0 %v11870_v63  ;;  %v357_v62 = vld [vmem:[%s12825_s7 + $0x69] sm:$0xff]  ;;  %v370_v54 = vld [vmem:[%s12825_s7 + $0xd1] sm:$0xff]  ;;  %v13012_v42 = vld [vmem:[%s12825_s7 + $0x7c] sm:$0xff] }
  0x7f   : > { %10968 = vmatmul.mubr.f32.gmra.mrb[2].mxu1 %v347_v4  ;;  %11743 = vmatprep.subr.bf16.mxu1 %v11742_v1  ;;  %v343_v0 = vld [vmem:[#allocation5 + $0x78] sm:$0xff]  ;;  %v11894_v4 = vpack.c.bf16 %v1941_v60, %v1940_v59  ;;  %v2270_v59 = vld [vmem:[#allocation5 + $0x350] sm:$0xff]  ;;  %v3999_v41 = vld [vmem:[%s12945_s6 + $0x30] sm:$0xff] }
  0x80   : > { %11312 = vmatmul.mubr.f32.gmra.mrb[2].mxu0 %v1558_v8  ;;  %10970 = vmatprep.mubr.f32.mxu1 %v348_v9  ;;  %v359_v9 = vld [vmem:[%s12825_s7 + $0x79] sm:$0xff]  ;;  %v12951_v53 = vld [vmem:[%s12825_s7 + $0x4c] sm:$0xff] }
  0x81   : > { %11873 = vmatpush3.bf16.msra.mxu0 %v11870_v63  ;;  %11314 = vmatprep.mubr.f32.mxu0 %v1559_v10  ;;  %v342_v63 = vld [vmem:[#allocation5 + $0x70] sm:$0xff]  ;;  %v924_v10 = vld [vmem:[#allocation5 + $0x100] sm:$0xff]  ;;  %v2271_v60 = vld [vmem:[#allocation5 + $0x358] sm:$0xff] }
  0x82   : > { %11875 = vmatprep.subr.bf16.mxu0 %v11874_v11  ;;  %11745 = vmatpush3.bf16.msra.mxu1 %v11742_v1  ;;  %v1568_v1 = vld [vmem:[%s12825_s7 + $0x7b] sm:$0xff]  ;;  %v11766_v8 = vpack.c.bf16 %v343_v0, %v342_v63 }
  0x83   : > { %10971 = vmatmul.mubr.f32.gmra.mrb[4].mxu1 %v349_v16  ;;  %11747 = vmatprep.subr.bf16.mxu1 %v11746_v15  ;;  %v11898_v16 = vpack.c.bf16 %v2261_v6, %v2260_v5  ;;  %v12961_v63 = vld [vmem:[%s12825_s7 + $0x5c] sm:$0xff] }
  0x84   : > { %11315 = vmatmul.mubr.f32.gmra.mrb[4].mxu0 %v1560_v20  ;;  %10973 = vmatprep.mubr.f32.mxu1 %v350_v21  ;;  %v1572_v20 = vld [vmem:[%s12825_s7 + $0x9b] sm:$0xff]  ;;  %v362_v21 = vld [vmem:[%s12825_s7 + $0x91] sm:$0xff] }
  0x85   : > { %11877 = vmatpush3.bf16.msra.mxu0 %v11874_v11  ;;  %11317 = vmatprep.mubr.f32.mxu0 %v1561_v22  ;;  %v925_v11 = vld [vmem:[#allocation5 + $0x108] sm:$0xff]  ;;  %v372_v0 = vld [vmem:[%s12825_s7 + $0xe1] sm:$0xff] }
  0x86   : > { %11879 = vmatprep.subr.bf16.mxu0 %v11878_v24  ;;  %11749 = vmatpush3.bf16.msra.mxu1 %v11746_v15  ;;  %v1571_v15 = vld [vmem:[%s12825_s7 + $0x93] sm:$0xff]  ;;  %v12901_v18 = vpack.c.bf16 %v925_v11, %v924_v10  ;;  %v3994_v6 = vld [vmem:[%s12945_s6 + $0x8] sm:$0xff] }
  0x87   : > { %10974 = vmatmul.mubr.f32.gmra.mrb[6].mxu1 %v351_v28  ;;  %11751 = vmatprep.subr.bf16.mxu1 %v11750_v27  ;;  %v1889_v22 = vld [vmem:[%s12825_s7 + $0x14] sm:$0xff]  ;;  %v364_v28 = vld [vmem:[%s12825_s7 + $0xa1] sm:$0xff]  ;;  %v4026_v10 = vmax.f32 %v3994_v6, 0.0  ;;  %v4090_v11 = vadd.f32 1e-08, %v3994_v6 }
  0x88   : > { %11318 = vmatmul.mubr.f32.gmra.mrb[6].mxu0 %v1562_v32  ;;  %10976 = vmatprep.mubr.f32.mxu1 %v352_v33  ;;  %v2264_v33 = vld [vmem:[#allocation5 + $0x320] sm:$0xff]  ;;  %v13276_v7 = vld [vmem:[%s12945_s6 + $0x80] sm:$0xff] }
  0x89   : > { %11320 = vmatprep.mubr.f32.mxu0 %v1563_v34  ;;  %11881 = vmatpush3.bf16.msra.mxu0 %v11878_v24  ;;  %v2262_v24 = vld [vmem:[#allocation5 + $0x310] sm:$0xff]  ;;  %v2265_v34 = vld [vmem:[#allocation5 + $0x328] sm:$0xff] }
  0x8a   : > { %11883 = vmatprep.subr.bf16.mxu0 %v11882_v35  ;;  %11753 = vmatpush3.bf16.msra.mxu1 %v11750_v27  ;;  %v1890_v27 = vld [vmem:[%s12825_s7 + $0x1c] sm:$0xff]  ;;  %v11902_v32 = vpack.c.bf16 %v2263_v25, %v2262_v24  ;;  %v12991_v24 = vmin.f32 %v4026_v10, 1.0 }
  0x8b   : > { %10977 = vmatmul.mubr.f32.gmra.mrb[8].mxu1 %v353_v40  ;;  %11755 = vmatprep.subr.bf16.mxu1 %v11754_v39  ;;  %v11906_v40 = vpack.c.bf16 %v2265_v34, %v2264_v33  ;;  %v375_v33 = vld [vmem:[%s12825_s7 + $0xf9] sm:$0xff] }
  0x8c   : > { %11321 = vmatmul.mubr.f32.gmra.mrb[8].mxu0 %v1564_v44  ;;  %10979 = vmatprep.mubr.f32.mxu1 %v354_v45  ;;  %v367_v44 = vld [vmem:[%s12825_s7 + $0xb9] sm:$0xff]  ;;  %10270 = vst.msk [vmem:[%s12969_s29 + $0x8] sm:$0xff] %vm10268_vm0, %v12991_v24 }
  0x8d   : > { %11323 = vmatprep.mubr.f32.mxu0 %v1565_v46  ;;  %11885 = vmatpush3.bf16.msra.mxu0 %v11882_v35  ;;  %v365_v35 = vld [vmem:[%s12825_s7 + $0xa9] sm:$0xff]  ;;  %v12934_v45 = vld [vmem:[%s12825_s7 + $0x3c] sm:$0xff] }
  0x8e   : > { %11887 = vmatprep.subr.bf16.mxu0 %v11886_v47  ;;  %11757 = vmatpush3.bf16.msra.mxu1 %v11754_v39  ;;  %v12927_v39 = vld [vmem:[%s12825_s7 + $0x34] sm:$0xff]  ;;  %v368_v46 = vld [vmem:[%s12825_s7 + $0xc1] sm:$0xff] }
  0x8f   : > { %10980 = vmatmul.mubr.f32.gmra.mrb[10].mxu1 %v355_v52  ;;  %11759 = vmatprep.subr.bf16.mxu1 %v11758_v51  ;;  %v369_v52 = vld [vmem:[%s12825_s7 + $0xc9] sm:$0xff] }
  0x90   : > { %11324 = vmatmul.mubr.f32.gmra.mrb[10].mxu0 %v1566_v55  ;;  %10982 = vmatprep.mubr.f32.mxu1 %v356_v56  ;;  %v12955_v55 = vld [vmem:[%s12825_s7 + $0x54] sm:$0xff] }
  0x91   : > { %11326 = vmatprep.mubr.f32.mxu0 %v1567_v57  ;;  %11889 = vmatpush3.bf16.msra.mxu0 %v11886_v47  ;;  %v12938_v47 = vld [vmem:[%s12825_s7 + $0x44] sm:$0xff] }
  0x92   : > { %11891 = vmatprep.subr.bf16.mxu0 %v11890_v58  ;;  %11761 = vmatpush3.bf16.msra.mxu1 %v11758_v51  ;;  %v2269_v51 = vld [vmem:[#allocation5 + $0x348] sm:$0xff]  ;;  %v3993_v57 = vld [vmem:[%s12945_s6] sm:$0xff] }
  0x93   : > { %10983 = vmatmul.mubr.f32.gmra.mrb[12].mxu1 %v357_v62  ;;  %11763 = vmatprep.subr.bf16.mxu1 %v11762_v61  ;;  %v11914_v56 = vpack.c.bf16 %v2269_v51, %v2268_v50  ;;  %v4089_v62 = vadd.f32 1e-08, %v3993_v57  ;;  %v4000_v50 = vld [vmem:[%s12945_s6 + $0x38] sm:$0xff]  ;;  %v927_v51 = vld [vmem:[#allocation5 + $0x118] sm:$0xff] }
  0x94   : > { %11327 = vmatmul.mubr.f32.gmra.mrb[12].mxu0 %v1568_v1  ;;  %10985 = vmatprep.mubr.f32.mxu1 %v358_v2  ;;  %v3995_v1 = vld [vmem:[%s12945_s6 + $0x10] sm:$0xff] }
  0x95   : > { %11329 = vmatprep.mubr.f32.mxu0 %v1569_v3  ;;  %11893 = vmatpush3.bf16.msra.mxu0 %v11890_v58  ;;  %v371_v58 = vld [vmem:[%s12825_s7 + $0xd9] sm:$0xff]  ;;  %v12974_v2 = vld [vmem:[%s12825_s7 + $0x64] sm:$0xff]  ;;  %12406 = vrcp.f32 %v4089_v62  ;;  %v4027_v5 = vmax.f32 %v3995_v1, 0.0 }
  0x96   : > { %11895 = vmatprep.subr.bf16.mxu0 %v11894_v4  ;;  %11765 = vmatpush3.bf16.msra.mxu1 %v11762_v61  ;;  %v4025_v61 = vmax.f32 %v3993_v57, 0.0  ;;  %v2272_v3 = vld [vmem:[#allocation5 + $0x360] sm:$0xff]  ;;  %v4001_v62 = vld [vmem:[%s12945_s6 + $0x40] sm:$0xff] }
  0x97   : > { %10986 = vmatmul.mubr.f32.gmra.mrb[14].mxu1 %v359_v9  ;;  %11767 = vmatprep.subr.bf16.mxu1 %v11766_v8  ;;  %v4091_v9 = vadd.f32 1e-08, %v3995_v1  ;;  %v13025_v57 = vld [vmem:[%s12825_s7 + $0x84] sm:$0xff]  ;;  %v2595_v1 = vld [vmem:[#allocation5 + $0x388] sm:$0xff]  ;;  %v4097_v6 = vadd.f32 1e-08, %v4001_v62 }
  0x98   : > { %11330 = vmatmul.mubr.f32.gmra.mrb[14].mxu0 %v1570_v13  ;;  %10988 = vmatprep.mubr.f32.mxu1 %v360_v14  ;;  %v3996_v13 = vld [vmem:[%s12945_s6 + $0x18] sm:$0xff] }
  0x99   : > { %11332 = vmatprep.mubr.f32.mxu0 %v1571_v15  ;;  %11897 = vmatpush3.bf16.msra.mxu0 %v11894_v4  ;;  %v12976_v4 = vmin.f32 %v4025_v61, 1.0  ;;  %v2273_v14 = vld [vmem:[#allocation5 + $0x368] sm:$0xff]  ;;  %v12983_v15 = vmin.f32 %v4027_v5, 1.0  ;;  %12408 = vrcp.f32 %v4091_v9  ;;  %v4096_v61 = vadd.f32 1e-08, %v4000_v50 }
  0x9a   : > { %11899 = vmatprep.subr.bf16.mxu0 %v11898_v16  ;;  %11769 = vmatpush3.bf16.msra.mxu1 %v11766_v8  ;;  %v11918_v8 = vpack.c.bf16 %v2271_v60, %v2270_v59  ;;  %12410 = vrcp.f32 %v4090_v11  ;;  %v11922_v34 = vpack.c.bf16 %v2273_v14, %v2272_v3  ;;  %v4032_v60 = vmax.f32 %v4000_v50, 0.0  ;;  %v4002_v11 = vld [vmem:[%s12945_s6 + $0x48] sm:$0xff] }
  0x9b   : > { %10989 = vmatmul.mubr.f32.gmra.mrb[16].mxu1 %v361_v19  ;;  %11771 = vmatprep.subr.bf16.mxu1 %v12901_v18  ;;  %10269 = vst.msk [vmem:[%s12969_s29] sm:$0xff] %vm10268_vm0, %v12976_v4  ;;  %v4092_v19 = vadd.f32 1e-08, %v3996_v13  ;;  %10271 = vst.msk [vmem:[%s12969_s29 + $0x10] sm:$0xff] %vm10268_vm0, %v12983_v15  ;;  %v4033_v5 = vmax.f32 %v4001_v62, 0.0 }
  0x9c   : > { %11333 = vmatmul.mubr.f32.gmra.mrb[16].mxu0 %v1572_v20  ;;  %10991 = vmatprep.mubr.f32.mxu1 %v362_v21  ;;  %v3997_v20 = vld [vmem:[%s12945_s6 + $0x20] sm:$0xff]  ;;  %v373_v21 = vld [vmem:[%s12825_s7 + $0xe9] sm:$0xff]  ;;  %v13039_v10 = vmin.f32 %v4032_v60, 1.0 }
  0x9d   : > { %11394 = vmatprep.mubr.f32.mxu0 %v1889_v22  ;;  %v12989_v22 = vld [vmem:[%s12825_s7 + $0x6c] sm:$0xff]  ;;  %v4029_v25 = vmax.f32 %v3997_v20, 0.0  ;;  %12412 = vrcp.f32 %v4092_v19  ;;  %v13051_v19 = vmin.f32 %v4033_v5, 1.0  ;;  %v292_v5 = vld [vmem:[%s12825_s7] sm:$0xff] }
  0x9e   : > { %10276 = vst.msk [vmem:[%s12969_s29 + $0x38] sm:$0xff] %vm10268_vm0, %v13039_v10 }
  0x9f   : > { %10992 = vmatmul.mubr.f32.gmra.mrb[18].mxu1 %v363_v26  ;;  %v4093_v26 = vadd.f32 1e-08, %v3997_v20  ;;  %v13055_v20 = vld [vmem:[%s12825_s7 + $0x8c] sm:$0xff]  ;;  %10277 = vst.msk [vmem:[%s12969_s29 + $0x40] sm:$0xff] %vm10268_vm0, %v13051_v19 }
  0xa0   : > { %11395 = vmatmul.mubr.f32.vlgmr.msra.gmra.mrb[0].mxu0 %v1890_v27  ;;  %10994 = vmatprep.mubr.f32.mxu1 %v364_v28  ;;  %v374_v27 = vld [vmem:[%s12825_s7 + $0xf1] sm:$0xff] }
  0xa1   : > { %11901 = vmatpush3.bf16.msra.mxu0 %v11898_v16  ;;  %11397 = vmatprep.mubr.f32.mxu0 %v12913_v30  ;;  %v4028_v16 = vmax.f32 %v3996_v13, 0.0  ;;  %v12996_v28 = vld [vmem:[%s12825_s7 + $0x74] sm:$0xff]  ;;  %12414 = vrcp.f32 %v4093_v26  ;;  %v377_v13 = vld [vmem:[%s12825_s7 + $0x109] sm:$0xff]  ;;  %v4034_v26 = vmax.f32 %v4002_v11, 0.0 }
  0xa2   : > { %11903 = vmatprep.subr.bf16.mxu0 %v11902_v32 }
  0xa3   : > { %10995 = vmatmul.mubr.f32.gmra.mrb[20].mxu1 %v365_v35  ;;  %v2275_v35 = vld [vmem:[#allocation5 + $0x378] sm:$0xff] }
  0xa4   : > { %11398 = vmatmul.mubr.f32.gmra.mrb[2].mxu0 %v12923_v36  ;;  %10997 = vmatprep.mubr.f32.mxu1 %v366_v38  ;;  %v13007_v38 = vmin.f32 %v4029_v25, 1.0 }
  0xa5   : > { %11400 = vmatprep.mubr.f32.mxu0 %v12927_v39  ;;  %11905 = vmatpush3.bf16.msra.mxu0 %v11902_v32  ;;  %v13001_v32 = vmin.f32 %v4028_v16, 1.0  ;;  %v13046_v16 = vmul.f32 %v12976_v4, %v12976_v4 }
  0xa6   : > { %11907 = vmatprep.subr.bf16.mxu0 %v11906_v40  ;;  %10273 = vst.msk [vmem:[%s12969_s29 + $0x20] sm:$0xff] %vm10268_vm0, %v13007_v38 }
  0xa7   : > { %10998 = vmatmul.mubr.f32.gmra.mrb[22].mxu1 %v367_v44  ;;  %v376_v44 = vld [vmem:[%s12825_s7 + $0x101] sm:$0xff]  ;;  %10272 = vst.msk [vmem:[%s12969_s29 + $0x18] sm:$0xff] %vm10268_vm0, %v13001_v32 }
  0xa8   : > { %11401 = vmatmul.mubr.f32.gmra.mrb[4].mxu0 %v12934_v45  ;;  %11000 = vmatprep.mubr.f32.mxu1 %v368_v46  ;;  %v926_v46 = vld [vmem:[#allocation5 + $0x110] sm:$0xff] }
  0xa9   : > { %11403 = vmatprep.mubr.f32.mxu0 %v12938_v47  ;;  %11909 = vmatpush3.bf16.msra.mxu0 %v11906_v40  ;;  %v3998_v40 = vld [vmem:[%s12945_s6 + $0x28] sm:$0xff]  ;;  %v13034_v9 = vpack.c.bf16 %v927_v51, %v926_v46  ;;  %v4004_v51 = vld [vmem:[%s12945_s6 + $0x58] sm:$0xff] }
  0xaa   : > { %11911 = vmatprep.subr.bf16.mxu0 %v11910_v48  ;;  %v4036_v62 = vmax.f32 %v4004_v51, 0.0 }
  0xab   : > { %11001 = vmatmul.mubr.f32.gmra.mrb[24].mxu1 %v369_v52  ;;  %v4094_v52 = vadd.f32 1e-08, %v3998_v40 }
  0xac   : > { %11404 = vmatmul.mubr.f32.gmra.mrb[6].mxu0 %v12951_v53  ;;  %11003 = vmatprep.mubr.f32.mxu1 %v370_v54  ;;  %v4031_v54 = vmax.f32 %v3999_v41, 0.0 }
  0xad   : > { %11406 = vmatprep.mubr.f32.mxu0 %v12955_v55  ;;  %11913 = vmatpush3.bf16.msra.mxu0 %v11910_v48  ;;  %v4030_v48 = vmax.f32 %v3998_v40, 0.0  ;;  %12416 = vrcp.f32 %v4094_v52 }
  0xae   : > { %11915 = vmatprep.subr.bf16.mxu0 %v11914_v56  ;;  %v13032_v3 = vmin.f32 %v4031_v54, 1.0  ;;  %v379_v54 = vld [vmem:[%s12825_s7 + $0x119] sm:$0xff] }
  0xaf   : > { %11004 = vmatmul.mubr.f32.gmra.mrb[26].mxu1 %v371_v58  ;;  %v13027_v58 = vpack.c.bf16 %v2275_v35, %v2274_v29  ;;  %v13029_v59 = vmin.f32 %v4030_v48, 1.0  ;;  %v4003_v29 = vld [vmem:[%s12945_s6 + $0x50] sm:$0xff] }
  0xb0   : > { %11407 = vmatmul.mubr.f32.gmra.mrb[8].mxu0 %v12961_v63  ;;  %11006 = vmatprep.mubr.f32.mxu1 %v372_v0  ;;  %v2594_v0 = vld [vmem:[#allocation5 + $0x380] sm:$0xff]  ;;  %10275 = vst.msk [vmem:[%s12969_s29 + $0x30] sm:$0xff] %vm10268_vm0, %v13032_v3  ;;  %v4035_v50 = vmax.f32 %v4003_v29, 0.0 }
  0xb1   : > { %11409 = vmatprep.mubr.f32.mxu0 %v12974_v2  ;;  %11917 = vmatpush3.bf16.msra.mxu0 %v11914_v56  ;;  %v4095_v56 = vadd.f32 1e-08, %v3999_v41  ;;  %10274 = vst.msk [vmem:[%s12969_s29 + $0x28] sm:$0xff] %vm10268_vm0, %v13029_v59  ;;  %v13058_v25 = vpack.c.bf16 %v2595_v1, %v2594_v0  ;;  %v13065_v35 = vld [vmem:[%s12825_s7 + $0x94] sm:$0xff]  ;;  %v13075_v41 = vmul.f32 %v12991_v24, %v12991_v24  ;;  %v13092_v1 = vld [vmem:[%s12825_s7 + $0x9c] sm:$0xff] }
  0xb2   : > { %11919 = vmatprep.subr.bf16.mxu0 %v11918_v8 }
  0xb3   : > { %11007 = vmatmul.mubr.f32.gmra.mrb[28].mxu1 %v373_v21  ;;  %12418 = vrcp.f32 %v4095_v56  ;;  %v378_v21 = vld [vmem:[%s12825_s7 + $0x111] sm:$0xff] }
  0xb4   : > { %11410 = vmatmul.mubr.f32.gmra.mrb[10].mxu0 %v12989_v22  ;;  %11009 = vmatprep.mubr.f32.mxu1 %v374_v27  ;;  %12420 = vrcp.f32 %v4096_v61  ;;  %v4098_v27 = vadd.f32 1e-08, %v4002_v11  ;;  %v4099_v61 = vadd.f32 1e-08, %v4003_v29  ;;  %v13099_v11 = vmul.f32 %v13007_v38, %v13007_v38 }
  0xb5   : > { %11412 = vmatprep.mubr.f32.mxu0 %v12996_v28  ;;  %11921 = vmatpush3.bf16.msra.mxu0 %v11918_v8  ;;  %v12407_v8 = vpop.eup %12406  ;;  %12422 = vrcp.f32 %v4097_v6 }
  0xb6   : > { %11923 = vmatprep.subr.bf16.mxu0 %v11922_v34  ;;  %v4122_v14 = vmul.f32 36.0, %v12407_v8  ;;  %12424 = vrcp.f32 %v4098_v27 }
  0xb7   : > { %11010 = vmatmul.mubr.f32.gmra.mrb[30].mxu1 %v375_v33  ;;  %v12409_v33 = vpop.eup %12408  ;;  %12426 = vrcp.f32 %v4099_v61 }
  0xb8   : > { %11413 = vmatmul.mubr.f32.gmra.mrb[12].mxu0 %v13012_v42  ;;  %11012 = vmatprep.mubr.f32.mxu1 %v376_v44  ;;  %v4217_v40 = vmul.f32 %v4122_v14, %v12976_v4  ;;  %v13079_v44 = vmul.f32 %v13001_v32, %v13001_v32  ;;  %v12411_v46 = vpop.eup %12410  ;;  %v4126_v48 = vmul.f32 36.0, %v12409_v33  ;;  %v13084_v4 = vmin.f32 %v4034_v26, 1.0  ;;  %v13107_v14 = vld [vmem:[%s12825_s7 + $0xa4] sm:$0xff] }
  0xb9   : > { %11415 = vmatprep.mubr.f32.mxu0 %v13025_v57  ;;  %11925 = vmatpush3.bf16.msra.mxu0 %v11922_v34  ;;  %v13071_v34 = vmul.f32 %v12983_v15, %v12983_v15  ;;  %v12413_v52 = vpop.eup %12412  ;;  %v4124_v60 = vmul.f32 36.0, %v12411_v46  ;;  %v4005_v26 = vld [vmem:[%s12945_s6 + $0x60] sm:$0xff]  ;;  %v13118_v33 = vmul.f32 %v13029_v59, %v13029_v59  ;;  %v293_v46 = vld [vmem:[%s12825_s7 + $0x8] sm:$0xff] }
  0xba   : > { %11927 = vmatprep.subr.bf16.mxu0 %v13027_v58  ;;  %v4249_v56 = vmul.f32 %v4217_v40, %v13046_v16  ;;  %v12415_v0 = vpop.eup %12414  ;;  %v4219_v6 = vmul.f32 %v4126_v48, %v12983_v15  ;;  %v4128_v8 = vmul.f32 36.0, %v12413_v52  ;;  %10278 = vst.msk [vmem:[%s12969_s29 + $0x48] sm:$0xff] %vm10268_vm0, %v13084_v4  ;;  %v4037_v52 = vmax.f32 %v4005_v26, 0.0 }
  0xbb   : > { %11013 = vmatmul.mubr.f32.gmra.mrb[32].mxu1 %v377_v13  ;;  %v13104_v13 = vmin.f32 %v4035_v50, 1.0  ;;  %v4130_v15 = vmul.f32 36.0, %v12415_v0  ;;  %v12417_v40 = vpop.eup %12416  ;;  %v13129_v50 = vmul.f32 %v13032_v3, %v13032_v3 }
  0xbc   : > { %11416 = vmatmul.mubr.f32.gmra.mrb[14].mxu0 %v13055_v20  ;;  %11015 = vmatprep.mubr.f32.mxu1 %v378_v21  ;;  %v13111_v21 = vmin.f32 %v4036_v62, 1.0  ;;  %v4251_v27 = vmul.f32 %v4219_v6, %v13071_v34  ;;  %v4220_v29 = vmul.f32 %v4128_v8, %v13001_v32  ;;  %v4101_v62 = vadd.f32 1e-08, %v4005_v26  ;;  %v928_v6 = vld [vmem:[#allocation5 + $0x120] sm:$0xff]  ;;  %v929_v8 = vld [vmem:[#allocation5 + $0x128] sm:$0xff] }
  0xbd   : > { %11418 = vmatprep.mubr.f32.mxu0 %v13065_v35  ;;  %11929 = vmatpush3.bf16.msra.mxu0 %v13027_v58  ;;  %v4218_v58 = vmul.f32 %v4124_v60, %v12991_v24  ;;  %10279 = vst.msk [vmem:[%s12969_s29 + $0x50] sm:$0xff] %vm10268_vm0, %v13104_v13  ;;  %v4100_v24 = vadd.f32 1e-08, %v4004_v51  ;;  %v4221_v32 = vmul.f32 %v4130_v15, %v13007_v38  ;;  %v12419_v51 = vpop.eup %12418  ;;  %v294_v60 = vld [vmem:[%s12825_s7 + $0x10] sm:$0xff]  ;;  %v4132_v38 = vmul.f32 36.0, %v12417_v40 }
  0xbe   : > { %11931 = vmatprep.subr.bf16.mxu0 %v13058_v25  ;;  %4283 = vperm.xlu0 %12368, %v4249_v56   ;;  %10280 = vst.msk [vmem:[%s12969_s29 + $0x58] sm:$0xff] %vm10268_vm0, %v13111_v21  ;;  %v13137_v56 = vld [vmem:[%s12825_s7 + $0xac] sm:$0xff]  ;;  %v4252_v61 = vmul.f32 %v4220_v29, %v13079_v44  ;;  %v12421_v0 = vpop.eup %12420  ;;  %v4134_v15 = vmul.f32 36.0, %v12419_v51  ;;  %v13145_v49 = vmin.f32 %v4037_v52, 1.0 }
  0xbf   : > { %11016 = vmatmul.mubr.f32.gmra.mrb[34].mxu1 %v379_v54  ;;  %v4250_v48 = vmul.f32 %v4218_v58, %v13075_v41  ;;  %v4006_v54 = vld [vmem:[%s12945_s6 + $0x68] sm:$0xff]  ;;  %4291 = vperm.xlu1 %12369, %v4251_v27   ;;  %12428 = vrcp.f32 %v4100_v24  ;;  %v4253_v58 = vmul.f32 %v4221_v32, %v13099_v11  ;;  %v12423_v29 = vpop.eup %12422  ;;  %v295_v24 = vld [vmem:[%s12825_s7 + $0x18] sm:$0xff]  ;;  %v4222_v26 = vmul.f32 %v4132_v38, %v13029_v59  ;;  %v4007_v59 = vld [vmem:[%s12945_s6 + $0x70] sm:$0xff] }
  0xc0   : > { %11419 = vmatmul.mubr.f32.gmra.mrb[16].mxu0 %v13092_v1  ;;  %11050 = vmatprep.mubr.f32.mxu1 %v292_v5  ;;  %v13142_v5 = vld [vmem:[%s12825_s7 + $0xb4] sm:$0xff]  ;;  %v4038_v27 = vmax.f32 %v4006_v54, 0.0  ;;  %v4136_v40 = vmul.f32 36.0, %v12421_v0  ;;  %12430 = vrcp.f32 %v4101_v62  ;;  %v4102_v43 = vadd.f32 1e-08, %v4006_v54  ;;  %v296_v32 = vld [vmem:[%s12825_s7 + $0x20] sm:$0xff]  ;;  %v12425_v38 = vpop.eup %12424 }
  0xc1   : > { %11421 = vmatprep.mubr.f32.mxu0 %v13107_v14  ;;  %v4223_v52 = vmul.f32 %v4134_v15, %v13032_v3  ;;  %v4138_v51 = vmul.f32 36.0, %v12423_v29  ;;  %10281 = vst.msk [vmem:[%s12969_s29 + $0x60] sm:$0xff] %vm10268_vm0, %v13145_v49  ;;  %v930_v54 = vld [vmem:[#allocation5 + $0x130] sm:$0xff]  ;;  %v931_v62 = vld [vmem:[#allocation5 + $0x138] sm:$0xff]  ;;  %v13165_v0 = vmul.f32 %v13039_v10, %v13039_v10  ;;  %v4008_v3 = vld [vmem:[%s12945_s6 + $0x78] sm:$0xff]  ;;  %v4039_v29 = vmax.f32 %v4007_v59, 0.0 }
  0xc2   : > { %4287 = vperm.xlu0 %12368, %v4250_v48   ;;  %v13152_v48 = vld [vmem:[%s12825_s7 + $0xbc] sm:$0xff]  ;;  %12432 = vrcp.f32 %v4102_v43  ;;  %v13169_v15 = vld [vmem:[%s12825_s7 + $0xc4] sm:$0xff]  ;;  %v4040_v37 = vmax.f32 %v4008_v3, 0.0  ;;  %v4104_v31 = vadd.f32 1e-08, %v4008_v3 }
  0xc3   : > { %11051 = vmatmul.mubr.f32.vlgmr.msra.gmra.mrb[0].mxu1 %v293_v46  ;;  %v13159_v46 = vmin.f32 %v4038_v27, 1.0  ;;  %4295 = vperm.xlu1 %12369, %v4252_v61   ;;  %v4254_v27 = vmul.f32 %v4222_v26, %v13118_v33  ;;  %v4255_v43 = vmul.f32 %v4223_v52, %v13129_v50  ;;  %v4225_v61 = vmul.f32 %v4138_v51, %v13051_v19 }
  0xc4   : > { %11422 = vmatmul.mubr.f32.gmra.mrb[18].mxu0 %v13137_v56  ;;  %11773 = vmatpush3.bf16.msra.mxu1 %v12901_v18  ;;  %v11778_v18 = vpack.c.bf16 %v929_v8, %v928_v6  ;;  %v13176_v6 = vmul.f32 %v13051_v19, %v13051_v19  ;;  %v4140_v8 = vmul.f32 36.0, %v12425_v38  ;;  %v4103_v26 = vadd.f32 1e-08, %v4007_v59  ;;  %v932_v59 = vld [vmem:[#allocation5 + $0x140] sm:$0xff] }
  0xc5   : > { %11053 = vmatprep.mubr.f32.mxu1 %v294_v60  ;;  %11424 = vmatprep.mubr.f32.mxu0 %v13142_v5  ;;  %v4224_v60 = vmul.f32 %v4136_v40, %v13039_v10  ;;  %10282 = vst.msk [vmem:[%s12969_s29 + $0x68] sm:$0xff] %vm10268_vm0, %v13159_v46  ;;  %v12427_v10 = vpop.eup %12426  ;;  %v297_v40 = vld [vmem:[%s12825_s7 + $0x28] sm:$0xff]  ;;  %v11782_v38 = vpack.c.bf16 %v931_v62, %v930_v54  ;;  %v13195_v51 = vmin.f32 %v4039_v29, 1.0  ;;  %v933_v54 = vld [vmem:[#allocation5 + $0x148] sm:$0xff]  ;;  %v13202_v3 = vmin.f32 %v4040_v37, 1.0 }
  0xc6   : > { %11775 = vmatprep.subr.bf16.mxu1 %v13034_v9  ;;  %4299 = vperm.xlu0 %12368, %v4253_v58   ;;  %v298_v58 = vld [vmem:[%s12825_s7 + $0x30] sm:$0xff]  ;;  %v13193_v19 = vmul.f32 %v13084_v4, %v13084_v4  ;;  %v4142_v52 = vmul.f32 36.0, %v12427_v10  ;;  %12434 = vrcp.f32 %v4103_v26  ;;  %v4226_v62 = vmul.f32 %v4140_v8, %v13084_v4  ;;  %v300_v8 = vld [vmem:[%s12825_s7 + $0x40] sm:$0xff] }
  0xc7   : > { %11054 = vmatmul.mubr.f32.gmra.mrb[2].mxu1 %v295_v24  ;;  %v13187_v24 = vld [vmem:[%s12825_s7 + $0xcc] sm:$0xff]  ;;  %4303 = vperm.xlu1 %12369, %v4254_v27   ;;  %12436 = vrcp.f32 %v4104_v31  ;;  %v4257_v26 = vmul.f32 %v4225_v61, %v13176_v6  ;;  %v13207_v10 = vmul.f32 %v13104_v13, %v13104_v13  ;;  %10283 = vst.msk [vmem:[%s12969_s29 + $0x70] sm:$0xff] %vm10268_vm0, %v13195_v51  ;;  %v299_v31 = vld [vmem:[%s12825_s7 + $0x38] sm:$0xff]  ;;  %10284 = vst.msk [vmem:[%s12969_s29 + $0x78] sm:$0xff] %vm10268_vm0, %v13202_v3 }
  0xc8   : > { %11425 = vmatmul.mubr.f32.gmra.mrb[20].mxu0 %v13152_v48  ;;  %11056 = vmatprep.mubr.f32.mxu1 %v296_v32  ;;  %v13198_v32 = vld [vmem:[%s12825_s7 + $0xd4] sm:$0xff]  ;;  %v4227_v27 = vmul.f32 %v4142_v52, %v13104_v13  ;;  %v13224_v13 = vld [vmem:[%s12825_s7 + $0xe4] sm:$0xff]  ;;  %v13229_v52 = vmul.f32 %v13111_v21, %v13111_v21  ;;  %v13273_v12 = vmul.f32 %v13202_v3, %v13202_v3 }
  0xc9   : > { %11427 = vmatprep.mubr.f32.mxu0 %v13169_v15  ;;  %11777 = vmatpush3.bf16.msra.mxu1 %v13034_v9  ;;  %v4256_v9 = vmul.f32 %v4224_v60, %v13165_v0  ;;  %v12429_v29 = vpop.eup %12428  ;;  %v13220_v60 = vld [vmem:[%s12825_s7 + $0xdc] sm:$0xff] }
  0xca   : > { %11779 = vmatprep.subr.bf16.mxu1 %v11778_v18  ;;  %4307 = vperm.xlu0 %12368, %v4255_v43   ;;  %v4144_v37 = vmul.f32 36.0, %v12429_v29  ;;  %v12431_v4 = vpop.eup %12430  ;;  %v11786_v43 = vpack.c.bf16 %v933_v54, %v932_v59  ;;  %v934_v61 = vld [vmem:[#allocation5 + $0x150] sm:$0xff]  ;;  %v4259_v59 = vmul.f32 %v4227_v27, %v13207_v10  ;;  %v13235_v54 = vmul.f32 %v13145_v49, %v13145_v49 }
  0xcb   : > { %11057 = vmatmul.mubr.f32.gmra.mrb[4].mxu1 %v297_v40  ;;  %v935_v40 = vld [vmem:[#allocation5 + $0x158] sm:$0xff]  ;;  %4311 = vperm.xlu1 %12369, %v4256_v9   ;;  %v4146_v23 = vmul.f32 36.0, %v12431_v4  ;;  %v13246_v27 = vld [vmem:[%s12825_s7 + $0xf4] sm:$0xff] }
  0xcc   : > { %11428 = vmatmul.mubr.f32.gmra.mrb[22].mxu0 %v13187_v24  ;;  %11059 = vmatprep.mubr.f32.mxu1 %v298_v58  ;;  %v4258_v58 = vmul.f32 %v4226_v62, %v13193_v19  ;;  %v4228_v29 = vmul.f32 %v4144_v37, %v13111_v21  ;;  %v301_v9 = vld [vmem:[%s12825_s7 + $0x48] sm:$0xff]  ;;  %v302_v37 = vld [vmem:[%s12825_s7 + $0x50] sm:$0xff]  ;;  %19712 = vst [vmem:[#allocation19_spill] sm:$0xff] %v13246_v27 }
  0xcd   : > { %11430 = vmatprep.mubr.f32.mxu0 %v13198_v32  ;;  %11781 = vmatpush3.bf16.msra.mxu1 %v11778_v18  ;;  %v12433_v18 = vpop.eup %12432  ;;  %v4229_v62 = vmul.f32 %v4146_v23, %v13145_v49  ;;  %v13242_v21 = vld [vmem:[%s12825_s7 + $0xec] sm:$0xff]  ;;  %v13251_v23 = vmul.f32 %v13159_v46, %v13159_v46 }
  0xce   : > { %11783 = vmatprep.subr.bf16.mxu1 %v11782_v38  ;;  %4315 = vperm.xlu0 %12368, %v4257_v26   ;;  %v4148_v17 = vmul.f32 36.0, %v12433_v18  ;;  %v11790_v26 = vpack.c.bf16 %v935_v40, %v934_v61  ;;  %v937_v4 = vld [vmem:[#allocation5 + $0x168] sm:$0xff] }
  0xcf   : > { %11060 = vmatmul.mubr.f32.gmra.mrb[6].mxu1 %v299_v31  ;;  %v936_v31 = vld [vmem:[#allocation5 + $0x160] sm:$0xff]  ;;  %4319 = vperm.xlu1 %12369, %v4258_v58   ;;  %v303_v40 = vld [vmem:[%s12825_s7 + $0x58] sm:$0xff] }
  0xd0   : > { %11431 = vmatmul.mubr.f32.gmra.mrb[24].mxu0 %v13220_v60  ;;  %11062 = vmatprep.mubr.f32.mxu1 %v300_v8  ;;  %v4260_v8 = vmul.f32 %v4228_v29, %v13229_v52  ;;  %v4230_v49 = vmul.f32 %v4148_v17, %v13159_v46  ;;  %v12435_v18 = vpop.eup %12434  ;;  %v13259_v29 = vmul.f32 %v13195_v51, %v13195_v51  ;;  %v13263_v17 = vld [vmem:[%s12825_s7 + $0xfc] sm:$0xff] }
  0xd1   : > { %11433 = vmatprep.mubr.f32.mxu0 %v13224_v13  ;;  %11785 = vmatpush3.bf16.msra.mxu1 %v11782_v38  ;;  %v4261_v38 = vmul.f32 %v4229_v62, %v13235_v54  ;;  %v12437_v61 = vpop.eup %12436  ;;  %v4150_v58 = vmul.f32 36.0, %v12435_v18  ;;  %19713 = vst [vmem:[#allocation20_spill] sm:$0xff] %v13263_v17  ;;  %v304_v46 = vld [vmem:[%s12825_s7 + $0x60] sm:$0xff] }
  0xd2   : > { %11787 = vmatprep.subr.bf16.mxu1 %v11786_v43  ;;  %4323 = vperm.xlu0 %12368, %v4259_v59   ;;  %v11794_v59 = vpack.c.bf16 %v937_v4, %v936_v31  ;;  %v13267_v62 = vld [vmem:[%s12825_s7 + $0x104] sm:$0xff] }
  0xd3   : > { %11063 = vmatmul.mubr.f32.gmra.mrb[8].mxu1 %v301_v9  ;;  %v4152_v9 = vmul.f32 36.0, %v12437_v61  ;;  %19714 = vst [vmem:[#allocation21_spill] sm:$0xff] %v13267_v62  ;;  %4327 = vperm.xlu1 %12369, %v4260_v8   ;;  %v4231_v18 = vmul.f32 %v4150_v58, %v13195_v51  ;;  %v939_v31 = vld [vmem:[#allocation5 + $0x178] sm:$0xff]  ;;  %v4041_v8 = vmax.f32 %v13276_v7, 0.0  ;;  %v306_v58 = vld [vmem:[%s12825_s7 + $0x70] sm:$0xff] }
  0xd4   : > { %11434 = vmatmul.mubr.f32.gmra.mrb[26].mxu0 %v13242_v21  ;;  %11065 = vmatprep.mubr.f32.mxu1 %v302_v37  ;;  %v4262_v37 = vmul.f32 %v4230_v49, %v13251_v23  ;;  %v305_v51 = vld [vmem:[%s12825_s7 + $0x68] sm:$0xff] }
  0xd5   : > { %11436 = vmatprep.mubr.f32.mxu0 %v13246_v27  ;;  %11789 = vmatpush3.bf16.msra.mxu1 %v11786_v43  ;;  %v938_v43 = vld [vmem:[#allocation5 + $0x170] sm:$0xff]  ;;  %v4232_v4 = vmul.f32 %v4152_v9, %v13202_v3  ;;  %v4263_v49 = vmul.f32 %v4231_v18, %v13259_v29  ;;  %v13284_v61 = vld [vmem:[%s12945_s6 + $0x88] sm:$0xff]  ;;  %v13306_v27 = vld [vmem:[%s12945_s6 + $0x90] sm:$0xff] }
  0xd6   : > { %11791 = vmatprep.subr.bf16.mxu1 %v11790_v26  ;;  %4331 = vperm.xlu0 %12368, %v4261_v38   ;;  %v13291_v38 = vmin.f32 %v4041_v8, 1.0  ;;  %v4042_v3 = vmax.f32 %v13284_v61, 0.0  ;;  %v13295_v9 = vld [vmem:[%s12825_s7 + $0x114] sm:$0xff] }
  0xd7   : > { %11066 = vmatmul.mubr.f32.gmra.mrb[10].mxu1 %v303_v40  ;;  %v13288_v40 = vld [vmem:[%s12825_s7 + $0x10c] sm:$0xff]  ;;  %4335 = vperm.xlu1 %12369, %v4262_v37   ;;  %v4264_v18 = vmul.f32 %v4232_v4, %v13273_v12  ;;  %v13310_v37 = vld [vmem:[%s12825_s7 + $0x11c] sm:$0xff]  ;;  %v13318_v4 = vld [vmem:[%s12825_s7 + $0x124] sm:$0xff] }
  0xd8   : > { %11437 = vmatmul.mubr.f32.gmra.mrb[28].mxu0 %v13263_v17  ;;  %11068 = vmatprep.mubr.f32.mxu1 %v304_v46  ;;  %v11798_v46 = vpack.c.bf16 %v939_v31, %v938_v43  ;;  %10285 = vst.msk [vmem:[%s12969_s29 + $0x80] sm:$0xff] %vm10268_vm0, %v13291_v38  ;;  %v13301_v8 = vmin.f32 %v4042_v3, 1.0  ;;  %v307_v17 = vld [vmem:[%s12825_s7 + $0x78] sm:$0xff]  ;;  %v308_v43 = vld [vmem:[%s12825_s7 + $0x80] sm:$0xff]  ;;  %v4043_v31 = vmax.f32 %v13306_v27, 0.0  ;;  %19715 = vst [vmem:[#allocation22_spill] sm:$0xff] %v13318_v4 }
  0xd9   : > { %11439 = vmatprep.mubr.f32.mxu0 %v13267_v62  ;;  %11793 = vmatpush3.bf16.msra.mxu1 %v11790_v26  ;;  %v1258_v62 = vld [vmem:[#allocation5 + $0x180] sm:$0xff]  ;;  %v1259_v26 = vld [vmem:[#allocation5 + $0x188] sm:$0xff] }
  0xda   : > { %11795 = vmatprep.subr.bf16.mxu1 %v11794_v59  ;;  %4339 = vperm.xlu0 %12368, %v4263_v49   ;;  %10286 = vst.msk [vmem:[%s12969_s29 + $0x88] sm:$0xff] %vm10268_vm0, %v13301_v8  ;;  %v13323_v49 = vmin.f32 %v4043_v31, 1.0  ;;  %v13332_v3 = vld [vmem:[%s12825_s7 + $0x12c] sm:$0xff]  ;;  %v312_v31 = vld [vmem:[%s12825_s7 + $0xa0] sm:$0xff] }
  0xdb   : > { %11069 = vmatmul.mubr.f32.gmra.mrb[12].mxu1 %v305_v51  ;;  %v13320_v51 = vpack.c.bf16 %v1259_v26, %v1258_v62  ;;  %4343 = vperm.xlu1 %12369, %v4264_v18   ;;  %19716 = vst [vmem:[#allocation23_spill] sm:$0xff] %v13332_v3  ;;  %v310_v62 = vld [vmem:[%s12825_s7 + $0x90] sm:$0xff]  ;;  %v2597_v18 = vld [vmem:[#allocation5 + $0x398] sm:$0xff] }
  0xdc   : > { %11440 = vmatmul.mubr.f32.gmra.mrb[30].mxu0 %v13288_v40  ;;  %11071 = vmatprep.mubr.f32.mxu1 %v306_v58  ;;  %v13328_v58 = vld [vmem:[%s12945_s6 + $0x98] sm:$0xff]  ;;  %10287 = vst.msk [vmem:[%s12969_s29 + $0x90] sm:$0xff] %vm10268_vm0, %v13323_v49 }
  0xdd   : > { %11442 = vmatprep.mubr.f32.mxu0 %v13295_v9  ;;  %11797 = vmatpush3.bf16.msra.mxu1 %v11794_v59  ;;  %v309_v59 = vld [vmem:[%s12825_s7 + $0x88] sm:$0xff] }
  0xde   : > { %11799 = vmatprep.subr.bf16.mxu1 %v11798_v46  ;;  %5569 = vperm.xlu0 %12368, %v13046_v16   ;;  %v4044_v16 = vmax.f32 %v13328_v58, 0.0 }
  0xdf   : > { %11072 = vmatmul.mubr.f32.gmra.mrb[14].mxu1 %v307_v17  ;;  %5574 = vperm.xlu1 %12369, %v13075_v41   ;;  %v2596_v17 = vld [vmem:[#allocation5 + $0x390] sm:$0xff] }
  0xe0   : > { %11443 = vmatmul.mubr.f32.gmra.mrb[32].mxu0 %v13310_v37  ;;  %11074 = vmatprep.mubr.f32.mxu1 %v308_v43  ;;  %v13342_v26 = vmin.f32 %v4044_v16, 1.0  ;;  %v13347_v43 = vld [vmem:[%s12945_s6 + $0xa0] sm:$0xff]  ;;  %v2599_v16 = vld [vmem:[#allocation5 + $0x3a8] sm:$0xff] }
  0xe1   : > { %11445 = vmatprep.mubr.f32.mxu0 %v13318_v4  ;;  %11801 = vmatpush3.bf16.msra.mxu1 %v11798_v46  ;;  %v311_v46 = vld [vmem:[%s12825_s7 + $0x98] sm:$0xff]  ;;  %v4045_v41 = vmax.f32 %v13347_v43, 0.0  ;;  %v13363_v4 = vld [vmem:[%s12945_s6 + $0xa8] sm:$0xff] }
  0xe2   : > { %11803 = vmatprep.subr.bf16.mxu1 %v13320_v51  ;;  %5579 = vperm.xlu0 %12368, %v13071_v34   ;;  %10288 = vst.msk [vmem:[%s12969_s29 + $0x98] sm:$0xff] %vm10268_vm0, %v13342_v26  ;;  %v11934_v34 = vpack.c.bf16 %v2597_v18, %v2596_v17  ;;  %v315_v18 = vld [vmem:[%s12825_s7 + $0xb8] sm:$0xff] }
  0xe3   : > { %11075 = vmatmul.mubr.f32.gmra.mrb[16].mxu1 %v309_v59  ;;  %5584 = vperm.xlu1 %12369, %v13079_v44   ;;  %v4105_v59 = vadd.f32 1e-08, %v13276_v7  ;;  %v314_v44 = vld [vmem:[%s12825_s7 + $0xb0] sm:$0xff]  ;;  %v4046_v7 = vmax.f32 %v13363_v4, 0.0 }
  0xe4   : > { %11446 = vmatmul.mubr.f32.gmra.mrb[34].mxu0 %v13332_v3  ;;  %11077 = vmatprep.mubr.f32.mxu1 %v310_v62  ;;  %v2598_v62 = vld [vmem:[#allocation5 + $0x3a0] sm:$0xff]  ;;  %v13358_v3 = vmin.f32 %v4045_v41, 1.0 }
  0xe5   : > { %11480 = vmatprep.mubr.f32.mxu0 %v12913_v30  ;;  %v313_v30 = vld [vmem:[%s12825_s7 + $0xa8] sm:$0xff]  ;;  %12438 = vrcp.f32 %v4105_v59  ;;  %v13375_v17 = vmin.f32 %v4046_v7, 1.0  ;;  %v13396_v59 = vld [vmem:[%s12945_s6 + $0xb8] sm:$0xff]  ;;  %v13412_v7 = vld [vmem:[%s12945_s6 + $0xc0] sm:$0xff] }
  0xe6   : > { %5589 = vperm.xlu0 %12368, %v13099_v11   ;;  %10289 = vst.msk [vmem:[%s12969_s29 + $0xa0] sm:$0xff] %vm10268_vm0, %v13358_v3  ;;  %v11938_v11 = vpack.c.bf16 %v2599_v16, %v2598_v62  ;;  %v318_v62 = vld [vmem:[%s12825_s7 + $0xd0] sm:$0xff] }
  0xe7   : > { %11078 = vmatmul.mubr.f32.gmra.mrb[18].mxu1 %v311_v46  ;;  %5594 = vperm.xlu1 %12369, %v13118_v33   ;;  %v13380_v46 = vld [vmem:[%s12945_s6 + $0xb0] sm:$0xff]  ;;  %v316_v33 = vld [vmem:[%s12825_s7 + $0xc0] sm:$0xff]  ;;  %10290 = vst.msk [vmem:[%s12969_s29 + $0xa8] sm:$0xff] %vm10268_vm0, %v13375_v17 }
  0xe8   : > { %11481 = vmatmul.mubr.f32.vlgmr.msra.gmra.mrb[0].mxu0 %v12923_v36  ;;  %11080 = vmatprep.mubr.f32.mxu1 %v312_v31  ;;  %v4106_v36 = vadd.f32 1e-08, %v13284_v61  ;;  %v4047_v61 = vmax.f32 %v13380_v46, 0.0  ;;  %v2603_v31 = vld [vmem:[#allocation5 + $0x3c8] sm:$0xff] }
  0xe9   : > { %11933 = vmatpush3.bf16.msra.mxu0 %v13058_v25  ;;  %11483 = vmatprep.mubr.f32.mxu0 %v12927_v39  ;;  %v2600_v25 = vld [vmem:[#allocation5 + $0x3b0] sm:$0xff]  ;;  %v2601_v39 = vld [vmem:[#allocation5 + $0x3b8] sm:$0xff] }
  0xea   : > { %11935 = vmatprep.subr.bf16.mxu0 %v11934_v34  ;;  %5599 = vperm.xlu0 %12368, %v13129_v50   ;;  %v11942_v50 = vpack.c.bf16 %v2601_v39, %v2600_v25  ;;  %12440 = vrcp.f32 %v4106_v36  ;;  %v13391_v41 = vmin.f32 %v4047_v61, 1.0  ;;  %v2609_v61 = vld [vmem:[#allocation5 + $0x3f8] sm:$0xff] }
  0xeb   : > { %11081 = vmatmul.mubr.f32.gmra.mrb[20].mxu1 %v313_v30  ;;  %5604 = vperm.xlu1 %12369, %v13165_v0   ;;  %v4048_v0 = vmax.f32 %v13396_v59, 0.0 }
  0xec   : > { %11484 = vmatmul.mubr.f32.gmra.mrb[2].mxu0 %v12934_v45  ;;  %11083 = vmatprep.mubr.f32.mxu1 %v314_v44  ;;  %v4107_v45 = vadd.f32 1e-08, %v13306_v27  ;;  %10291 = vst.msk [vmem:[%s12969_s29 + $0xb0] sm:$0xff] %vm10268_vm0, %v13391_v41  ;;  %v2605_v27 = vld [vmem:[#allocation5 + $0x3d8] sm:$0xff]  ;;  %v319_v44 = vld [vmem:[%s12825_s7 + $0xd8] sm:$0xff] }
  0xed   : > { %11486 = vmatprep.mubr.f32.mxu0 %v12938_v47  ;;  %11937 = vmatpush3.bf16.msra.mxu0 %v11934_v34  ;;  %v2602_v47 = vld [vmem:[#allocation5 + $0x3c0] sm:$0xff]  ;;  %v13407_v16 = vmin.f32 %v4048_v0, 1.0  ;;  %v4111_v0 = vadd.f32 1e-08, %v13380_v46 }
  0xee   : > { %11939 = vmatprep.subr.bf16.mxu0 %v11938_v11  ;;  %5609 = vperm.xlu0 %12368, %v13176_v6   ;;  %v317_v34 = vld [vmem:[%s12825_s7 + $0xc8] sm:$0xff]  ;;  %v11946_v6 = vpack.c.bf16 %v2603_v31, %v2602_v47  ;;  %12442 = vrcp.f32 %v4107_v45  ;;  %v326_v46 = vld [vmem:[%s12825_s7 + $0x110] sm:$0xff] }
  0xef   : > { %11084 = vmatmul.mubr.f32.gmra.mrb[22].mxu1 %v315_v18  ;;  %5614 = vperm.xlu1 %12369, %v13193_v19   ;;  %v12439_v30 = vpop.eup %12438  ;;  %v320_v19 = vld [vmem:[%s12825_s7 + $0xe0] sm:$0xff]  ;;  %10292 = vst.msk [vmem:[%s12969_s29 + $0xb8] sm:$0xff] %vm10268_vm0, %v13407_v16  ;;  %v321_v18 = vld [vmem:[%s12825_s7 + $0xe8] sm:$0xff] }
  0xf0   : > { %11487 = vmatmul.mubr.f32.gmra.mrb[4].mxu0 %v12951_v53  ;;  %11086 = vmatprep.mubr.f32.mxu1 %v316_v33  ;;  %v4108_v53 = vadd.f32 1e-08, %v13328_v58  ;;  %v4049_v58 = vmax.f32 %v13412_v7, 0.0  ;;  %v4154_v36 = vmul.f32 36.0, %v12439_v30  ;;  %v13428_v33 = vld [vmem:[%s12945_s6 + $0xc8] sm:$0xff] }
  0xf1   : > { %11489 = vmatprep.mubr.f32.mxu0 %v12955_v55  ;;  %11941 = vmatpush3.bf16.msra.mxu0 %v11938_v11  ;;  %v2604_v55 = vld [vmem:[#allocation5 + $0x3d0] sm:$0xff]  ;;  %v2607_v11 = vld [vmem:[#allocation5 + $0x3e8] sm:$0xff] }
  0xf2   : > { %11943 = vmatprep.subr.bf16.mxu0 %v11942_v50  ;;  %5619 = vperm.xlu0 %12368, %v13207_v10   ;;  %v11950_v10 = vpack.c.bf16 %v2605_v27, %v2604_v55  ;;  %12444 = vrcp.f32 %v4108_v53  ;;  %v13423_v25 = vmin.f32 %v4049_v58, 1.0  ;;  %v4233_v45 = vmul.f32 %v4154_v36, %v13291_v38 }
  0xf3   : > { %11087 = vmatmul.mubr.f32.gmra.mrb[24].mxu1 %v317_v34  ;;  %5624 = vperm.xlu1 %12369, %v13229_v52   ;;  %v322_v52 = vld [vmem:[%s12825_s7 + $0xf0] sm:$0xff] }
  0xf4   : > { %11490 = vmatmul.mubr.f32.gmra.mrb[6].mxu0 %v12961_v63  ;;  %11089 = vmatprep.mubr.f32.mxu1 %v318_v62  ;;  %v4109_v63 = vadd.f32 1e-08, %v13347_v43  ;;  %v12441_v39 = vpop.eup %12440  ;;  %10293 = vst.msk [vmem:[%s12969_s29 + $0xc0] sm:$0xff] %vm10268_vm0, %v13423_v25  ;;  %v4050_v43 = vmax.f32 %v13428_v33, 0.0  ;;  %v324_v62 = vld [vmem:[%s12825_s7 + $0x100] sm:$0xff] }
  0xf5   : > { %11492 = vmatprep.mubr.f32.mxu0 %v12974_v2  ;;  %11945 = vmatpush3.bf16.msra.mxu0 %v11942_v50  ;;  %v2606_v2 = vld [vmem:[#allocation5 + $0x3e0] sm:$0xff]  ;;  %v4201_v50 = vmul.f32 %v13291_v38, %v13291_v38  ;;  %v4156_v47 = vmul.f32 36.0, %v12441_v39  ;;  %v327_v39 = vld [vmem:[%s12825_s7 + $0x118] sm:$0xff] }
  0xf6   : > { %11947 = vmatprep.subr.bf16.mxu0 %v11946_v6  ;;  %5629 = vperm.xlu0 %12368, %v13235_v54   ;;  %v11954_v54 = vpack.c.bf16 %v2607_v11, %v2606_v2  ;;  %12446 = vrcp.f32 %v4109_v63  ;;  %v13442_v31 = vmin.f32 %v4050_v43, 1.0  ;;  %v1261_v43 = vld [vmem:[#allocation5 + $0x198] sm:$0xff] }
  0xf7   : > { %11090 = vmatmul.mubr.f32.gmra.mrb[26].mxu1 %v319_v44  ;;  %5634 = vperm.xlu1 %12369, %v13251_v23   ;;  %v323_v23 = vld [vmem:[%s12825_s7 + $0xf8] sm:$0xff]  ;;  %v4265_v53 = vmul.f32 %v4233_v45, %v4201_v50  ;;  %v4234_v55 = vmul.f32 %v4156_v47, %v13301_v8  ;;  %v325_v44 = vld [vmem:[%s12825_s7 + $0x108] sm:$0xff] }
  0xf8   : > { %11493 = vmatmul.mubr.f32.gmra.mrb[8].mxu0 %v12989_v22  ;;  %11092 = vmatprep.mubr.f32.mxu1 %v320_v19  ;;  %v4110_v22 = vadd.f32 1e-08, %v13363_v4  ;;  %v12443_v34 = vpop.eup %12442  ;;  %v13447_v4 = vld [vmem:[%s12945_s6 + $0xd0] sm:$0xff]  ;;  %10294 = vst.msk [vmem:[%s12969_s29 + $0xc8] sm:$0xff] %vm10268_vm0, %v13442_v31  ;;  %v13465_v19 = vld [vmem:[%s12945_s6 + $0xd8] sm:$0xff]  ;;  %v13502_v47 = vld [vmem:[%s12945_s6 + $0xe8] sm:$0xff] }
  0xf9   : > { %11495 = vmatprep.mubr.f32.mxu0 %v12996_v28  ;;  %11949 = vmatpush3.bf16.msra.mxu0 %v11946_v6  ;;  %v2608_v28 = vld [vmem:[#allocation5 + $0x3f0] sm:$0xff]  ;;  %v2929_v6 = vld [vmem:[#allocation5 + $0x408] sm:$0xff]  ;;  %v4158_v27 = vmul.f32 36.0, %v12443_v34  ;;  %v4052_v58 = vmax.f32 %v13465_v19, 0.0 }
  0xfa   : > { %11951 = vmatprep.subr.bf16.mxu0 %v11950_v10  ;;  %5639 = vperm.xlu0 %12368, %v13259_v29   ;;  %v4051_v29 = vmax.f32 %v13447_v4, 0.0  ;;  %v11958_v38 = vpack.c.bf16 %v2609_v61, %v2608_v28  ;;  %12448 = vrcp.f32 %v4110_v22  ;;  %v888_v45 = vld [vmem:[%s12825_s7 + $0xa] sm:$0xff]  ;;  %v13510_v34 = vld [vmem:[%s12825_s7 + $0x12] sm:$0xff] }
  0xfb   : > { %11093 = vmatmul.mubr.f32.gmra.mrb[28].mxu1 %v321_v18  ;;  %5644 = vperm.xlu1 %12369, %v13273_v12   ;;  %12450 = vrcp.f32 %v4111_v0  ;;  %v4235_v63 = vmul.f32 %v4158_v27, %v13323_v49  ;;  %v13479_v11 = vmin.f32 %v4052_v58, 1.0  ;;  %v13484_v18 = vld [vmem:[%s12945_s6 + $0xe0] sm:$0xff]  ;;  %v1265_v27 = vld [vmem:[#allocation5 + $0x1b8] sm:$0xff] }
  0xfc   : > { %11496 = vmatmul.mubr.f32.gmra.mrb[10].mxu0 %v13012_v42  ;;  %11095 = vmatprep.mubr.f32.mxu1 %v322_v52  ;;  %v4202_v42 = vmul.f32 %v13301_v8, %v13301_v8  ;;  %v13460_v30 = vmin.f32 %v4051_v29, 1.0  ;;  %v12445_v12 = vpop.eup %12444  ;;  %v4053_v52 = vmax.f32 %v13484_v18, 0.0 }
  0xfd   : > { %11498 = vmatprep.mubr.f32.mxu0 %v13025_v57  ;;  %11953 = vmatpush3.bf16.msra.mxu0 %v11950_v10  ;;  %v2928_v57 = vld [vmem:[#allocation5 + $0x400] sm:$0xff]  ;;  %v4112_v10 = vadd.f32 1e-08, %v13396_v59  ;;  %v4160_v2 = vmul.f32 36.0, %v12445_v12  ;;  %10296 = vst.msk [vmem:[%s12969_s29 + $0xd8] sm:$0xff] %vm10268_vm0, %v13479_v11 }
  0xfe   : > { %11955 = vmatprep.subr.bf16.mxu0 %v11954_v54  ;;  %5649 = vperm.xlu0 %12368, %v4201_v50   ;;  %10295 = vst.msk [vmem:[%s12969_s29 + $0xd0] sm:$0xff] %vm10268_vm0, %v13460_v30  ;;  %v13473_v8 = vpack.c.bf16 %v2929_v6, %v2928_v57  ;;  %v887_v59 = vld [vmem:[%s12825_s7 + $0x2] sm:$0xff]  ;;  %v13497_v61 = vmin.f32 %v4053_v52, 1.0  ;;  %v13521_v6 = vld [vmem:[%s12825_s7 + $0x1a] sm:$0xff] }
  0xff   : > { %11096 = vmatmul.mubr.f32.gmra.mrb[30].mxu1 %v323_v23  ;;  %5654 = vperm.xlu1 %12369, %v4202_v42   ;;  %12452 = vrcp.f32 %v4112_v10  ;;  %v4236_v22 = vmul.f32 %v4160_v2, %v13342_v26  ;;  %v4114_v23 = vadd.f32 1e-08, %v13428_v33  ;;  %v13524_v33 = vld [vmem:[%s12945_s6 + $0xf0] sm:$0xff]  ;;  %v13548_v10 = vld [vmem:[%s12945_s6 + $0xf8] sm:$0xff]  ;;  %v4116_v2 = vadd.f32 1e-08, %v13465_v19 }
 0x100   : > { %11499 = vmatmul.mubr.f32.gmra.mrb[12].mxu0 %v13055_v20  ;;  %11098 = vmatprep.mubr.f32.mxu1 %v324_v62  ;;  %v4203_v20 = vmul.f32 %v13323_v49, %v13323_v49  ;;  %v12447_v36 = vpop.eup %12446  ;;  %v4113_v49 = vadd.f32 1e-08, %v13412_v7  ;;  %10297 = vst.msk [vmem:[%s12969_s29 + $0xe0] sm:$0xff] %vm10268_vm0, %v13497_v61  ;;  %v4054_v7 = vmax.f32 %v13502_v47, 0.0  ;;  %v1263_v62 = vld [vmem:[#allocation5 + $0x1a8] sm:$0xff]  ;;  %v13572_v19 = vld [vmem:[%s12825_s7 + $0x42] sm:$0xff] }
 0x101   : > { %11501 = vmatprep.mubr.f32.mxu0 %v13065_v35  ;;  %11957 = vmatpush3.bf16.msra.mxu0 %v11954_v54  ;;  %v4266_v35 = vmul.f32 %v4234_v55, %v4202_v42  ;;  %v4162_v28 = vmul.f32 36.0, %v12447_v36  ;;  %v1267_v36 = vld [vmem:[#allocation5 + $0x1c8] sm:$0xff]  ;;  %s12565_s6 = sshll.u32 %s12643_s12, 4  ;;  %s12566_s6 = int_to_ptr.vmem [resolvable:$false] %s12565_s6 }
 0x102   : > { %11959 = vmatprep.subr.bf16.mxu0 %v11958_v38  ;;  %4347 = vperm.xlu0 %12368, %v4265_v53   ;;  %v4267_v54 = vmul.f32 %v4235_v63, %v4203_v20  ;;  %12454 = vrcp.f32 %v4113_v49  ;;  %v13516_v0 = vmin.f32 %v4054_v7, 1.0  ;;  %v13529_v53 = vld [vmem:[%s12825_s7 + $0x22] sm:$0xff]  ;;  %v13585_v7 = vld [vmem:[%s12825_s7 + $0x4a] sm:$0xff]  ;;  %s12567_s14 = scalar_lea.vmem %s12566_s6, 8192  ;;  %p12568_p11 = scmp.lt.s32.totalorder %s19031_s28, %s12566_s6 }
 0x103   : > { %11099 = vmatmul.mubr.f32.gmra.mrb[32].mxu1 %v325_v44  ;;  %5659 = vperm.xlu1 %12369, %v4203_v20   ;;  %12456 = vrcp.f32 %v4114_v23  ;;  %v4118_v23 = vadd.f32 1e-08, %v13502_v47  ;;  %v13603_v47 = vld [vmem:[%s12825_s7 + $0x62] sm:$0xff]  ;;  %p12569_p3 = scmp.lt.s32.totalorder %s12567_s14, %s12561_s17 }
 0x104   : > { %11502 = vmatmul.mubr.f32.gmra.mrb[14].mxu0 %v13092_v1  ;;  %11101 = vmatprep.mubr.f32.mxu1 %v326_v46  ;;  %v4204_v1 = vmul.f32 %v13342_v26, %v13342_v26  ;;  %v12449_v50 = vpop.eup %12448  ;;  %10298 = vst.msk [vmem:[%s12969_s29 + $0xe8] sm:$0xff] %vm10268_vm0, %v13516_v0 }
 0x105   : > { %11504 = vmatprep.mubr.f32.mxu0 %v13107_v14  ;;  %11961 = vmatpush3.bf16.msra.mxu0 %v11958_v38  ;;  %v1260_v14 = vld [vmem:[#allocation5 + $0x190] sm:$0xff]  ;;  %v4237_v38 = vmul.f32 %v4162_v28, %v13358_v3  ;;  %v4164_v42 = vmul.f32 36.0, %v12449_v50  ;;  %v12451_v57 = vpop.eup %12450  ;;  %p12570_p7 = por %p12569_p3, %p12568_p11 }
 0x106   : > { %11963 = vmatprep.subr.bf16.mxu0 %v13473_v8  ;;  %4351 = vperm.xlu0 %12368, %v4266_v35   ;;  %v11806_v26 = vpack.c.bf16 %v1261_v43, %v1260_v14  ;;  %v4268_v29 = vmul.f32 %v4236_v22, %v4204_v1  ;;  %v4166_v46 = vmul.f32 36.0, %v12451_v57  ;;  %v13552_v35 = vld [vmem:[%s12825_s7 + $0x32] sm:$0xff]  ;;  %v13568_v14 = vld [vmem:[%s12825_s7 + $0x3a] sm:$0xff]  ;;  %v4117_v43 = vadd.f32 1e-08, %v13484_v18 }
 0x107   : > { %11102 = vmatmul.mubr.f32.gmra.mrb[34].mxu1 %v327_v39  ;;  %5664 = vperm.xlu1 %12369, %v4204_v1   ;;  %v4238_v44 = vmul.f32 %v4164_v42, %v13375_v17  ;;  %v13589_v18 = vld [vmem:[%s12825_s7 + $0x52] sm:$0xff]  ;;  %p12571_p9 = pnand %p12570_p7, %p12564_p10 }
 0x108   : > { %11505 = vmatmul.mubr.f32.gmra.mrb[16].mxu0 %v13137_v56  ;;  %11136 = vmatprep.mubr.f32.mxu1 %v887_v59  ;;  %v4205_v56 = vmul.f32 %v13358_v3, %v13358_v3  ;;  %v4055_v3 = vmax.f32 %v13524_v33, 0.0  ;;  %v4239_v59 = vmul.f32 %v4166_v46, %v13391_v41  ;;  %v19718_v57 = vld [vmem:[#allocation20_spill] sm:$0xff] }
 0x109   : > { %11507 = vmatprep.mubr.f32.mxu0 %v13142_v5  ;;  %v1262_v5 = vld [vmem:[#allocation5 + $0x1a0] sm:$0xff]  ;;  %v12453_v20 = vpop.eup %12452 }
 0x10a   : > { %4355 = vperm.xlu0 %12368, %v4267_v54   ;;  %v11810_v55 = vpack.c.bf16 %v1263_v62, %v1262_v5  ;;  %v4269_v12 = vmul.f32 %v4237_v38, %v4205_v56  ;;  %v13540_v58 = vmin.f32 %v4055_v3, 1.0  ;;  %v4168_v52 = vmul.f32 36.0, %v12453_v20  ;;  %v1269_v54 = vld [vmem:[#allocation5 + $0x1d8] sm:$0xff]  ;;  %v1271_v5 = vld [vmem:[#allocation5 + $0x1e8] sm:$0xff] }
 0x10b   : > { %11137 = vmatmul.mubr.f32.vlgmr.msra.gmra.mrb[0].mxu1 %v888_v45  ;;  %5669 = vperm.xlu1 %12369, %v4205_v56   ;;  %v13599_v3 = vld [vmem:[%s12825_s7 + $0x5a] sm:$0xff] }
 0x10c   : > { %11508 = vmatmul.mubr.f32.gmra.mrb[18].mxu0 %v13152_v48  ;;  %11805 = vmatpush3.bf16.msra.mxu1 %v13320_v51  ;;  %v4206_v48 = vmul.f32 %v13375_v17, %v13375_v17  ;;  %v4115_v51 = vadd.f32 1e-08, %v13447_v4  ;;  %v13545_v4 = vld [vmem:[%s12825_s7 + $0x2a] sm:$0xff]  ;;  %10299 = vst.msk [vmem:[%s12969_s29 + $0xf0] sm:$0xff] %vm10268_vm0, %v13540_v58  ;;  %v4056_v17 = vmax.f32 %v13548_v10, 0.0  ;;  %v12455_v49 = vpop.eup %12454  ;;  %v4240_v28 = vmul.f32 %v4168_v52, %v13407_v16 }
 0x10d   : > { %11139 = vmatprep.mubr.f32.mxu1 %v13510_v34  ;;  %11510 = vmatprep.mubr.f32.mxu0 %v13169_v15  ;;  %v1264_v15 = vld [vmem:[#allocation5 + $0x1b0] sm:$0xff]  ;;  %v4170_v50 = vmul.f32 36.0, %v12455_v49  ;;  %v12457_v45 = vpop.eup %12456 }
 0x10e   : > { %11807 = vmatprep.subr.bf16.mxu1 %v11806_v26  ;;  %4359 = vperm.xlu0 %12368, %v4268_v29   ;;  %v11814_v63 = vpack.c.bf16 %v1265_v27, %v1264_v15  ;;  %12458 = vrcp.f32 %v4115_v51  ;;  %v4270_v39 = vmul.f32 %v4238_v44, %v4206_v48  ;;  %v13563_v1 = vmin.f32 %v4056_v17, 1.0  ;;  %v1272_v15 = vld [vmem:[#allocation5 + $0x1f0] sm:$0xff]  ;;  %v1273_v27 = vld [vmem:[#allocation5 + $0x1f8] sm:$0xff] }
 0x10f   : > { %11140 = vmatmul.mubr.f32.gmra.mrb[2].mxu1 %v13521_v6  ;;  %5674 = vperm.xlu1 %12369, %v4206_v48   ;;  %12460 = vrcp.f32 %v4116_v2  ;;  %v4241_v29 = vmul.f32 %v4170_v50, %v13423_v25  ;;  %v4172_v38 = vmul.f32 36.0, %v12457_v45  ;;  %v4119_v51 = vadd.f32 1e-08, %v13524_v33  ;;  %v13613_v17 = vld [vmem:[%s12825_s7 + $0x6a] sm:$0xff]  ;;  %v13617_v33 = vld [vmem:[%s12825_s7 + $0x72] sm:$0xff] }
 0x110   : > { %11511 = vmatmul.mubr.f32.gmra.mrb[20].mxu0 %v13187_v24  ;;  %11142 = vmatprep.mubr.f32.mxu1 %v13529_v53  ;;  %v4207_v24 = vmul.f32 %v13391_v41, %v13391_v41  ;;  %10300 = vst.msk [vmem:[%s12969_s29 + $0xf8] sm:$0xff] %vm10268_vm0, %v13563_v1  ;;  %12462 = vrcp.f32 %v4117_v43  ;;  %v13641_v43 = vld [vmem:[%s12825_s7 + $0x8a] sm:$0xff]  ;;  %v2930_v50 = vld [vmem:[#allocation5 + $0x410] sm:$0xff] }
 0x111   : > { %11513 = vmatprep.mubr.f32.mxu0 %v13198_v32  ;;  %11809 = vmatpush3.bf16.msra.mxu1 %v11806_v26  ;;  %v1266_v32 = vld [vmem:[#allocation5 + $0x1c0] sm:$0xff]  ;;  %12464 = vrcp.f32 %v4118_v23  ;;  %v4242_v44 = vmul.f32 %v4172_v38, %v13442_v31  ;;  %v2931_v45 = vld [vmem:[#allocation5 + $0x418] sm:$0xff] }
 0x112   : > { %11811 = vmatprep.subr.bf16.mxu1 %v11810_v55  ;;  %4363 = vperm.xlu0 %12368, %v4269_v12   ;;  %v11818_v41 = vpack.c.bf16 %v1267_v36, %v1266_v32  ;;  %v4271_v22 = vmul.f32 %v4239_v59, %v4207_v24  ;;  %v19717_v26 = vld [vmem:[#allocation19_spill] sm:$0xff]  ;;  %12466 = vrcp.f32 %v4119_v51  ;;  %v19720_v36 = vld [vmem:[#allocation22_spill] sm:$0xff]  ;;  %v11966_v38 = vpack.c.bf16 %v2931_v45, %v2930_v50 }
 0x113   : > { %11143 = vmatmul.mubr.f32.gmra.mrb[4].mxu1 %v13545_v4  ;;  %5679 = vperm.xlu1 %12369, %v4207_v24   ;;  %v11830_v24 = vpack.c.bf16 %v1273_v27, %v1272_v15  ;;  %v2257_v59 = vld [vmem:[%s12825_s7 + $0x134] sm:$0xff]  ;;  %v13668_v15 = vld [vmem:[%s12825_s7 + $0xaa] sm:$0xff]  ;;  %v2560_v27 = vld [vmem:[%s12825_s7 + $0x3d] sm:$0xff] }
 0x114   : > { %11514 = vmatmul.mubr.f32.gmra.mrb[22].mxu0 %v13220_v60  ;;  %11145 = vmatprep.mubr.f32.mxu1 %v13552_v35  ;;  %v4208_v60 = vmul.f32 %v13407_v16, %v13407_v16  ;;  %v4209_v16 = vmul.f32 %v13423_v25, %v13423_v25  ;;  %v4210_v25 = vmul.f32 %v13442_v31, %v13442_v31  ;;  %v2939_v50 = vld [vmem:[#allocation5 + $0x458] sm:$0xff] }
 0x115   : > { %11516 = vmatprep.mubr.f32.mxu0 %v13224_v13  ;;  %11813 = vmatpush3.bf16.msra.mxu1 %v11810_v55  ;;  %v1268_v13 = vld [vmem:[#allocation5 + $0x1d0] sm:$0xff] }
 0x116   : > { %11815 = vmatprep.subr.bf16.mxu1 %v11814_v63  ;;  %4367 = vperm.xlu0 %12368, %v4270_v39   ;;  %v11822_v56 = vpack.c.bf16 %v1269_v54, %v1268_v13  ;;  %v4272_v62 = vmul.f32 %v4240_v28, %v4208_v60  ;;  %v19719_v55 = vld [vmem:[#allocation21_spill] sm:$0xff]  ;;  %v4273_v12 = vmul.f32 %v4241_v29, %v4209_v16  ;;  %v19722_v28 = vld [vmem:[#allocation11_spill] sm:$0xff] }
 0x117   : > { %11146 = vmatmul.mubr.f32.gmra.mrb[6].mxu1 %v13568_v14  ;;  %5684 = vperm.xlu1 %12369, %v4208_v60   ;;  %v4274_v31 = vmul.f32 %v4242_v44, %v4210_v25  ;;  %v13631_v39 = vld [vmem:[%s12825_s7 + $0x82] sm:$0xff]  ;;  %v13645_v54 = vld [vmem:[%s12825_s7 + $0x92] sm:$0xff]  ;;  %v13705_v45 = vld [vmem:[%s12825_s7 + $0xda] sm:$0xff] }
 0x118   : > { %11517 = vmatmul.mubr.f32.gmra.mrb[24].mxu0 %v13242_v21  ;;  %11148 = vmatprep.mubr.f32.mxu1 %v13572_v19  ;;  %v1270_v21 = vld [vmem:[#allocation5 + $0x1e0] sm:$0xff]  ;;  %v12459_v42 = vpop.eup %12458  ;;  %v2258_v13 = vld [vmem:[%s12825_s7 + $0x13c] sm:$0xff] }
 0x119   : > { %11519 = vmatprep.mubr.f32.mxu0 %v19717_v26  ;;  %11817 = vmatpush3.bf16.msra.mxu1 %v11814_v63  ;;  %v11826_v48 = vpack.c.bf16 %v1271_v5, %v1270_v21  ;;  %v4174_v46 = vmul.f32 36.0, %v12459_v42  ;;  %v12461_v20 = vpop.eup %12460  ;;  %v4120_v63 = vadd.f32 1e-08, %v13548_v10  ;;  %v13627_v10 = vld [vmem:[%s12825_s7 + $0x7a] sm:$0xff]  ;;  %v19721_v60 = vld [vmem:[#allocation23_spill] sm:$0xff] }
 0x11a   : > { %11819 = vmatprep.subr.bf16.mxu1 %v11818_v41  ;;  %4371 = vperm.xlu0 %12368, %v4271_v22   ;;  %v4176_v2 = vmul.f32 36.0, %v12461_v20  ;;  %v12463_v32 = vpop.eup %12462  ;;  %v2557_v22 = vld [vmem:[%s12825_s7 + $0x25] sm:$0xff]  ;;  %v13655_v21 = vld [vmem:[%s12825_s7 + $0x9a] sm:$0xff]  ;;  %v2558_v5 = vld [vmem:[%s12825_s7 + $0x2d] sm:$0xff] }
 0x11b   : > { %11149 = vmatmul.mubr.f32.gmra.mrb[8].mxu1 %v13585_v7  ;;  %5689 = vperm.xlu1 %12369, %v4209_v16   ;;  %12468 = vrcp.f32 %v4120_v63  ;;  %v4178_v49 = vmul.f32 36.0, %v12463_v32  ;;  %v2559_v29 = vld [vmem:[%s12825_s7 + $0x35] sm:$0xff]  ;;  %v2561_v44 = vld [vmem:[%s12825_s7 + $0x45] sm:$0xff] }
 0x11c   : > { %11520 = vmatmul.mubr.f32.gmra.mrb[26].mxu0 %v19718_v57  ;;  %11151 = vmatprep.mubr.f32.mxu1 %v13589_v18  ;;  %v4244_v52 = vmul.f32 %v4176_v2, %v13479_v11  ;;  %v2932_v57 = vld [vmem:[#allocation5 + $0x420] sm:$0xff]  ;;  %v2934_v63 = vld [vmem:[#allocation5 + $0x430] sm:$0xff] }
 0x11d   : > { %11522 = vmatprep.mubr.f32.mxu0 %v19719_v55  ;;  %11821 = vmatpush3.bf16.msra.mxu1 %v11818_v41  ;;  %v12465_v41 = vpop.eup %12464  ;;  %v2933_v55 = vld [vmem:[#allocation5 + $0x428] sm:$0xff]  ;;  %v13686_v2 = vld [vmem:[%s12825_s7 + $0xc2] sm:$0xff] }
 0x11e   : > { %11823 = vmatprep.subr.bf16.mxu1 %v11822_v56  ;;  %4375 = vperm.xlu0 %12368, %v4272_v62   ;;  %v4180_v16 = vmul.f32 36.0, %v12465_v41  ;;  %v12467_v23 = vpop.eup %12466  ;;  %v13659_v62 = vld [vmem:[%s12825_s7 + $0xa2] sm:$0xff]  ;;  %v2563_v32 = vld [vmem:[%s12825_s7 + $0x55] sm:$0xff] }
 0x11f   : > { %11152 = vmatmul.mubr.f32.gmra.mrb[10].mxu1 %v13599_v3  ;;  %5694 = vperm.xlu1 %12369, %v4210_v25   ;;  %v4182_v51 = vmul.f32 36.0, %v12467_v23  ;;  %v2564_v41 = vld [vmem:[%s12825_s7 + $0x5d] sm:$0xff] }
 0x120   : > { %11523 = vmatmul.mubr.f32.gmra.mrb[28].mxu0 %v13288_v40  ;;  %11154 = vmatprep.mubr.f32.mxu1 %v13603_v47  ;;  %v4211_v40 = vmul.f32 %v13460_v30, %v13460_v30  ;;  %v4246_v25 = vmul.f32 %v4180_v16, %v13516_v0  ;;  %v2567_v16 = vld [vmem:[%s12825_s7 + $0x75] sm:$0xff] }
 0x121   : > { %11525 = vmatprep.mubr.f32.mxu0 %v13295_v9  ;;  %11825 = vmatpush3.bf16.msra.mxu1 %v11822_v56  ;;  %v4243_v9 = vmul.f32 %v4174_v46, %v13460_v30  ;;  %v4245_v56 = vmul.f32 %v4178_v49, %v13497_v61  ;;  %v11970_v46 = vpack.c.bf16 %v2933_v55, %v2932_v57  ;;  %v13695_v49 = vld [vmem:[%s12825_s7 + $0xca] sm:$0xff] }
 0x122   : > { %11827 = vmatprep.subr.bf16.mxu1 %v11826_v48  ;;  %4379 = vperm.xlu0 %12368, %v4273_v12   ;;  %v13673_v12 = vld [vmem:[%s12825_s7 + $0xb2] sm:$0xff]  ;;  %v2569_v57 = vld [vmem:[%s12825_s7 + $0x85] sm:$0xff] }
 0x123   : > { %11155 = vmatmul.mubr.f32.gmra.mrb[12].mxu1 %v13613_v17  ;;  %5699 = vperm.xlu1 %12369, %v4211_v40   ;;  %v4275_v30 = vmul.f32 %v4243_v9, %v4211_v40  ;;  %v4247_v40 = vmul.f32 %v4182_v51, %v13540_v58  ;;  %v2562_v9 = vld [vmem:[%s12825_s7 + $0x4d] sm:$0xff]  ;;  %v13725_v51 = vld [vmem:[%s12825_s7 + $0xfa] sm:$0xff] }
 0x124   : > { %11526 = vmatmul.mubr.f32.gmra.mrb[30].mxu0 %v13310_v37  ;;  %11157 = vmatprep.mubr.f32.mxu1 %v13617_v33  ;;  %v4212_v37 = vmul.f32 %v13479_v11, %v13479_v11  ;;  %v4213_v11 = vmul.f32 %v13497_v61, %v13497_v61  ;;  %v4214_v61 = vmul.f32 %v13516_v0, %v13516_v0 }
 0x125   : > { %11528 = vmatprep.mubr.f32.mxu0 %v19720_v36  ;;  %11829 = vmatpush3.bf16.msra.mxu1 %v11826_v48  ;;  %v12469_v42 = vpop.eup %12468  ;;  %v4215_v0 = vmul.f32 %v13540_v58, %v13540_v58  ;;  %v4216_v58 = vmul.f32 %v13563_v1, %v13563_v1 }
 0x126   : > { %11831 = vmatprep.subr.bf16.mxu1 %v11830_v24  ;;  %4383 = vperm.xlu0 %12368, %v4274_v31   ;;  %v4276_v26 = vmul.f32 %v4244_v52, %v4212_v37  ;;  %v4277_v48 = vmul.f32 %v4245_v56, %v4213_v11  ;;  %v4184_v20 = vmul.f32 36.0, %v12469_v42  ;;  %v13682_v31 = vld [vmem:[%s12825_s7 + $0xba] sm:$0xff]  ;;  %v13709_v56 = vld [vmem:[%s12825_s7 + $0xe2] sm:$0xff]  ;;  %v13719_v42 = vld [vmem:[%s12825_s7 + $0xf2] sm:$0xff] }
 0x127   : > { %11158 = vmatmul.mubr.f32.gmra.mrb[14].mxu1 %v13627_v10  ;;  %5704 = vperm.xlu1 %12369, %v4212_v37   ;;  %v2936_v37 = vld [vmem:[#allocation5 + $0x440] sm:$0xff]  ;;  %v4279_v52 = vmul.f32 %v4247_v40, %v4215_v0  ;;  %v13745_v40 = vld [vmem:[%s12825_s7 + $0x11a] sm:$0xff] }
 0x128   : > { %11529 = vmatmul.mubr.f32.gmra.mrb[32].mxu0 %v19721_v60  ;;  %11160 = vmatprep.mubr.f32.mxu1 %v13631_v39  ;;  %v13699_v60 = vld [vmem:[%s12825_s7 + $0xd2] sm:$0xff] }
 0x129   : > { %11531 = vmatprep.mubr.f32.mxu0 %v2257_v59  ;;  %11833 = vmatpush3.bf16.msra.mxu1 %v11830_v24  ;;  %v4278_v24 = vmul.f32 %v4246_v25, %v4214_v61  ;;  %v4248_v59 = vmul.f32 %v4184_v20, %v13563_v1  ;;  %v2565_v1 = vld [vmem:[%s12825_s7 + $0x65] sm:$0xff] }
 0x12a   : > { %11994 = vmatprep.subr.bf16.mxu1 %v19722_v28  ;;  %4387 = vperm.xlu0 %12368, %v4275_v30   ;;  %v2937_v30 = vld [vmem:[#allocation5 + $0x448] sm:$0xff]  ;;  %v2943_v25 = vld [vmem:[#allocation5 + $0x478] sm:$0xff] }
 0x12b   : > { %11161 = vmatmul.mubr.f32.gmra.mrb[16].mxu1 %v13641_v43  ;;  %5709 = vperm.xlu1 %12369, %v4213_v11   ;;  %v2938_v11 = vld [vmem:[#allocation5 + $0x450] sm:$0xff]  ;;  %v13735_v20 = vld [vmem:[%s12825_s7 + $0x10a] sm:$0xff] }
 0x12c   : > { %11532 = vmatmul.mubr.f32.gmra.mrb[34].mxu0 %v2258_v13  ;;  %11163 = vmatprep.mubr.f32.mxu1 %v13645_v54  ;;  %v11978_v13 = vpack.c.bf16 %v2937_v30, %v2936_v37  ;;  %v11982_v23 = vpack.c.bf16 %v2939_v50, %v2938_v11  ;;  %v2579_v37 = vld [vmem:[%s12825_s7 + $0xd5] sm:$0xff]  ;;  %v2895_v11 = vld [vmem:[%s12825_s7 + $0x46] sm:$0xff] }
 0x12d   : > { %11566 = vmatprep.mubr.f32.mxu0 %v2557_v22  ;;  %v4280_v22 = vmul.f32 %v4248_v59, %v4216_v58  ;;  %v2578_v59 = vld [vmem:[%s12825_s7 + $0xcd] sm:$0xff] }
 0x12e   : > { %4391 = vperm.xlu0 %12368, %v4276_v26   ;;  %v2566_v26 = vld [vmem:[%s12825_s7 + $0x6d] sm:$0xff] }
 0x12f   : > { %11164 = vmatmul.mubr.f32.gmra.mrb[18].mxu1 %v13655_v21  ;;  %5714 = vperm.xlu1 %12369, %v4214_v61   ;;  %v2568_v61 = vld [vmem:[%s12825_s7 + $0x7d] sm:$0xff]  ;;  %v2904_v50 = vld [vmem:[%s12825_s7 + $0x8e] sm:$0xff] }
 0x130   : > { %11567 = vmatmul.mubr.f32.vlgmr.msra.gmra.mrb[0].mxu0 %v2558_v5  ;;  %11166 = vmatprep.mubr.f32.mxu1 %v13659_v62  ;;  %v2940_v5 = vld [vmem:[#allocation5 + $0x460] sm:$0xff]  ;;  %v19723_v30 = vld [vmem:[#allocation12_spill] sm:$0xff] }
 0x131   : > { %11965 = vmatpush3.bf16.msra.mxu0 %v13473_v8  ;;  %11569 = vmatprep.mubr.f32.mxu0 %v2559_v29  ;;  %v2935_v8 = vld [vmem:[#allocation5 + $0x438] sm:$0xff]  ;;  %v2941_v29 = vld [vmem:[#allocation5 + $0x468] sm:$0xff] }
 0x132   : > { %11967 = vmatprep.subr.bf16.mxu0 %v11966_v38  ;;  %4395 = vperm.xlu0 %12368, %v4277_v48   ;;  %v11974_v36 = vpack.c.bf16 %v2935_v8, %v2934_v63  ;;  %v11986_v55 = vpack.c.bf16 %v2941_v29, %v2940_v5  ;;  %v2942_v48 = vld [vmem:[#allocation5 + $0x470] sm:$0xff]  ;;  %v1256_v5 = vld [vmem:[%s12825_s7 + $0x12a] sm:$0xff] }
 0x133   : > { %11167 = vmatmul.mubr.f32.gmra.mrb[20].mxu1 %v13668_v15  ;;  %5719 = vperm.xlu1 %12369, %v4215_v0   ;;  %v11990_v0 = vpack.c.bf16 %v2943_v25, %v2942_v48  ;;  %v2572_v63 = vld [vmem:[%s12825_s7 + $0x9d] sm:$0xff]  ;;  %v13739_v8 = vld [vmem:[%s12825_s7 + $0x112] sm:$0xff] }
 0x134   : > { %11570 = vmatmul.mubr.f32.gmra.mrb[2].mxu0 %v2560_v27  ;;  %11169 = vmatprep.mubr.f32.mxu1 %v13673_v12  ;;  %v2570_v27 = vld [vmem:[%s12825_s7 + $0x8d] sm:$0xff]  ;;  %v2910_v48 = vld [vmem:[%s12825_s7 + $0xbe] sm:$0xff] }
 0x135   : > { %11572 = vmatprep.mubr.f32.mxu0 %v2561_v44  ;;  %11969 = vmatpush3.bf16.msra.mxu0 %v11966_v38  ;;  %v13715_v38 = vld [vmem:[%s12825_s7 + $0xea] sm:$0xff]  ;;  %v13729_v44 = vld [vmem:[%s12825_s7 + $0x102] sm:$0xff]  ;;  %v13852_v25 = vld [vmem:[%s12825_s7 + $0xb3] sm:$0xff] }
 0x136   : > { %11971 = vmatprep.subr.bf16.mxu0 %v11970_v46  ;;  %4399 = vperm.xlu0 %12368, %v4278_v24   ;;  %v2573_v24 = vld [vmem:[%s12825_s7 + $0xa5] sm:$0xff] }
 0x137   : > { %11170 = vmatmul.mubr.f32.gmra.mrb[22].mxu1 %v13682_v31  ;;  %5724 = vperm.xlu1 %12369, %v4216_v58   ;;  %v2577_v58 = vld [vmem:[%s12825_s7 + $0xc5] sm:$0xff] }
 0x138   : > { %11573 = vmatmul.mubr.f32.gmra.mrb[4].mxu0 %v2562_v9  ;;  %11172 = vmatprep.mubr.f32.mxu1 %v13686_v2  ;;  %v2574_v9 = vld [vmem:[%s12825_s7 + $0xad] sm:$0xff] }
 0x139   : > { %11575 = vmatprep.mubr.f32.mxu0 %v2563_v32  ;;  %11973 = vmatpush3.bf16.msra.mxu0 %v11970_v46  ;;  %v2571_v46 = vld [vmem:[%s12825_s7 + $0x95] sm:$0xff] }
 0x13a   : > { %11975 = vmatprep.subr.bf16.mxu0 %v11974_v36  ;;  %4403 = vperm.xlu0 %12368, %v4279_v52   ;;  %v2575_v32 = vld [vmem:[%s12825_s7 + $0xb5] sm:$0xff]  ;;  %v2584_v52 = vld [vmem:[%s12825_s7 + $0xfd] sm:$0xff] }
 0x13b   : > { %11173 = vmatmul.mubr.f32.gmra.mrb[24].mxu1 %v13695_v49  ;;  %4407 = vperm.xlu1 %12369, %v4280_v22   ;;  %v2892_v22 = vld [vmem:[%s12825_s7 + $0x2e] sm:$0xff] }
 0x13c   : > { %11576 = vmatmul.mubr.f32.gmra.mrb[6].mxu0 %v2564_v41  ;;  %11175 = vmatprep.mubr.f32.mxu1 %v13699_v60  ;;  %v2586_v41 = vld [vmem:[%s12825_s7 + $0x10d] sm:$0xff] }
 0x13d   : > { %11578 = vmatprep.mubr.f32.mxu0 %v2565_v1  ;;  %11977 = vmatpush3.bf16.msra.mxu0 %v11974_v36  ;;  %v2576_v36 = vld [vmem:[%s12825_s7 + $0xbd] sm:$0xff] }
 0x13e   : > { %11979 = vmatprep.subr.bf16.mxu0 %v11978_v13  ;;  %v2588_v1 = vld [vmem:[%s12825_s7 + $0x11d] sm:$0xff]  ;;  %v13837_v29 = vpop.permute.xlu1 %4291 }
 0x13f   : > { %11176 = vmatmul.mubr.f32.gmra.mrb[26].mxu1 %v13705_v45 }
 0x140   : > { %11579 = vmatmul.mubr.f32.gmra.mrb[8].mxu0 %v2566_v26  ;;  %11178 = vmatprep.mubr.f32.mxu1 %v13709_v56  ;;  %v13830_v26 = vpop.permute.xlu0 %4283 }
 0x141   : > { %11581 = vmatprep.mubr.f32.mxu0 %v2567_v16  ;;  %11981 = vmatpush3.bf16.msra.mxu0 %v11978_v13  ;;  %v19729_v13 = vld [vmem:[#allocation18_spill] sm:$0xff] }
 0x142   : > { %11983 = vmatprep.subr.bf16.mxu0 %v11982_v23  ;;  %v1255_v16 = vld [vmem:[%s12825_s7 + $0x122] sm:$0xff] }
 0x143   : > { %11179 = vmatmul.mubr.f32.gmra.mrb[28].mxu1 %v13715_v38 }
 0x144   : > { %11582 = vmatmul.mubr.f32.gmra.mrb[10].mxu0 %v2568_v61  ;;  %11181 = vmatprep.mubr.f32.mxu1 %v13719_v42  ;;  %v13841_v61 = vld [vmem:[%s12825_s7 + $0xa3] sm:$0xff] }
 0x145   : > { %11584 = vmatprep.mubr.f32.mxu0 %v2569_v57  ;;  %11985 = vmatpush3.bf16.msra.mxu0 %v11982_v23  ;;  %v2907_v23 = vld [vmem:[%s12825_s7 + $0xa6] sm:$0xff]  ;;  %v13844_v57 = vpop.permute.xlu0 %4287 }
 0x146   : > { %11987 = vmatprep.subr.bf16.mxu0 %v11986_v55 }
 0x147   : > { %11182 = vmatmul.mubr.f32.gmra.mrb[30].mxu1 %v13725_v51 }
 0x148   : > { %11585 = vmatmul.mubr.f32.gmra.mrb[12].mxu0 %v2570_v27  ;;  %11184 = vmatprep.mubr.f32.mxu1 %v13729_v44  ;;  %v13855_v27 = vpop.permute.xlu1 %4295 }
 0x149   : > { %11587 = vmatprep.mubr.f32.mxu0 %v2571_v46  ;;  %11989 = vmatpush3.bf16.msra.mxu0 %v11986_v55  ;;  %v13848_v55 = vld [vmem:[%s12825_s7 + $0xab] sm:$0xff]  ;;  %v13862_v46 = vpop.permute.xlu0 %4299 }
 0x14a   : > { %11991 = vmatprep.subr.bf16.mxu0 %v11990_v0 }
 0x14b   : > { %11185 = vmatmul.mubr.f32.gmra.mrb[32].mxu1 %v13735_v20 }
 0x14c   : > { %11588 = vmatmul.mubr.f32.gmra.mrb[14].mxu0 %v2572_v63  ;;  %11187 = vmatprep.mubr.f32.mxu1 %v13739_v8  ;;  %v2913_v63 = vld [vmem:[%s12825_s7 + $0xd6] sm:$0xff] }
 0x14d   : > { %11590 = vmatprep.mubr.f32.mxu0 %v2573_v24  ;;  %11993 = vmatpush3.bf16.msra.mxu0 %v11990_v0  ;;  %v2912_v0 = vld [vmem:[%s12825_s7 + $0xce] sm:$0xff]  ;;  %v13874_v24 = vpop.permute.xlu1 %4303 }
 0x14f   : > { %11188 = vmatmul.mubr.f32.gmra.mrb[34].mxu1 %v13745_v40 }
 0x150   : > { %11591 = vmatmul.mubr.f32.gmra.mrb[16].mxu0 %v2574_v9  ;;  %11222 = vmatprep.mubr.f32.mxu1 %v13510_v34  ;;  %v2580_v34 = vld [vmem:[%s12825_s7 + $0xdd] sm:$0xff]  ;;  %v13878_v9 = vld [vmem:[%s12825_s7 + $0xd3] sm:$0xff] }
 0x151   : > { %11593 = vmatprep.mubr.f32.mxu0 %v2575_v32  ;;  %19731 = vst [vmem:[#allocation20_spill] sm:$0xff] %v13878_v9  ;;  %v2915_v32 = vld [vmem:[%s12825_s7 + $0xe6] sm:$0xff] }
 0x153   : > { %11223 = vmatmul.mubr.f32.vlgmr.msra.gmra.mrb[0].mxu1 %v13521_v6  ;;  %v2581_v6 = vld [vmem:[%s12825_s7 + $0xe5] sm:$0xff] }
 0x154   : > { %11594 = vmatmul.mubr.f32.gmra.mrb[18].mxu0 %v2576_v36  ;;  %12002 = vmatpush3.bf16.msra.mxu1 %v19722_v28  ;;  %v19724_v28 = vld [vmem:[#allocation13_spill] sm:$0xff]  ;;  %v13881_v36 = vpop.permute.xlu0 %4307 }
 0x155   : > { %11225 = vmatprep.mubr.f32.mxu1 %v13529_v53  ;;  %11596 = vmatprep.mubr.f32.mxu0 %v2577_v58  ;;  %v2582_v53 = vld [vmem:[%s12825_s7 + $0xed] sm:$0xff]  ;;  %v1580_v58 = vld [vmem:[%s12825_s7 + $0xdb] sm:$0xff] }
 0x156   : > { %11995 = vmatprep.subr.bf16.mxu1 %v19723_v30 }
 0x157   : > { %11226 = vmatmul.mubr.f32.gmra.mrb[2].mxu1 %v13545_v4  ;;  %v2583_v4 = vld [vmem:[%s12825_s7 + $0xf5] sm:$0xff] }
 0x158   : > { %11597 = vmatmul.mubr.f32.gmra.mrb[20].mxu0 %v2578_v59  ;;  %11228 = vmatprep.mubr.f32.mxu1 %v13552_v35  ;;  %v19725_v35 = vld [vmem:[#allocation14_spill] sm:$0xff] }
 0x159   : > { %11599 = vmatprep.mubr.f32.mxu0 %v2579_v37  ;;  %12003 = vmatpush3.bf16.msra.mxu1 %v19723_v30  ;;  %v2916_v59 = vld [vmem:[%s12825_s7 + $0xee] sm:$0xff]  ;;  %v1581_v37 = vld [vmem:[%s12825_s7 + $0xe3] sm:$0xff]  ;;  %v13888_v30 = vpop.permute.xlu1 %4311 }
 0x15a   : > { %11996 = vmatprep.subr.bf16.mxu1 %v19724_v28  ;;  %19732 = vst [vmem:[#allocation21_spill] sm:$0xff] %v13888_v30 }
 0x15b   : > { %11229 = vmatmul.mubr.f32.gmra.mrb[4].mxu1 %v13568_v14  ;;  %v2585_v14 = vld [vmem:[%s12825_s7 + $0x105] sm:$0xff] }
 0x15c   : > { %11600 = vmatmul.mubr.f32.gmra.mrb[22].mxu0 %v2580_v34  ;;  %11231 = vmatprep.mubr.f32.mxu1 %v13572_v19  ;;  %v19726_v19 = vld [vmem:[#allocation15_spill] sm:$0xff] }
 0x15d   : > { %11602 = vmatprep.mubr.f32.mxu0 %v2581_v6  ;;  %12004 = vmatpush3.bf16.msra.mxu1 %v19724_v28  ;;  %v2917_v34 = vld [vmem:[%s12825_s7 + $0xf6] sm:$0xff]  ;;  %v1582_v6 = vld [vmem:[%s12825_s7 + $0xeb] sm:$0xff]  ;;  %v13892_v28 = vpop.permute.xlu0 %4315 }
 0x15e   : > { %11997 = vmatprep.subr.bf16.mxu1 %v19725_v35  ;;  %19733 = vst [vmem:[#allocation22_spill] sm:$0xff] %v13892_v28 }
 0x15f   : > { %11232 = vmatmul.mubr.f32.gmra.mrb[6].mxu1 %v13585_v7  ;;  %v2587_v7 = vld [vmem:[%s12825_s7 + $0x115] sm:$0xff] }
 0x160   : > { %11603 = vmatmul.mubr.f32.gmra.mrb[24].mxu0 %v2582_v53  ;;  %11234 = vmatprep.mubr.f32.mxu1 %v13589_v18  ;;  %v19727_v18 = vld [vmem:[#allocation16_spill] sm:$0xff] }
 0x161   : > { %11605 = vmatprep.mubr.f32.mxu0 %v2583_v4  ;;  %12005 = vmatpush3.bf16.msra.mxu1 %v19725_v35  ;;  %v2918_v53 = vld [vmem:[%s12825_s7 + $0xfe] sm:$0xff]  ;;  %v1583_v4 = vld [vmem:[%s12825_s7 + $0xf3] sm:$0xff]  ;;  %v2919_v35 = vld [vmem:[%s12825_s7 + $0x106] sm:$0xff] }
 0x162   : > { %11998 = vmatprep.subr.bf16.mxu1 %v19726_v19 }
 0x163   : > { %11235 = vmatmul.mubr.f32.gmra.mrb[8].mxu1 %v13599_v3  ;;  %v2589_v3 = vld [vmem:[%s12825_s7 + $0x125] sm:$0xff] }
 0x164   : > { %11606 = vmatmul.mubr.f32.gmra.mrb[26].mxu0 %v2584_v52  ;;  %11237 = vmatprep.mubr.f32.mxu1 %v13603_v47  ;;  %v19728_v47 = vld [vmem:[#allocation17_spill] sm:$0xff]  ;;  %v13897_v52 = vpop.permute.xlu1 %4319 }
 0x165   : > { %11608 = vmatprep.mubr.f32.mxu0 %v2585_v14  ;;  %12006 = vmatpush3.bf16.msra.mxu1 %v19726_v19  ;;  %19734 = vst [vmem:[#allocation23_spill] sm:$0xff] %v13897_v52  ;;  %v1584_v14 = vld [vmem:[%s12825_s7 + $0xfb] sm:$0xff]  ;;  %v2920_v19 = vld [vmem:[%s12825_s7 + $0x10e] sm:$0xff] }
 0x166   : > { %11999 = vmatprep.subr.bf16.mxu1 %v19727_v18 }
 0x167   : > { %11238 = vmatmul.mubr.f32.gmra.mrb[10].mxu1 %v13613_v17  ;;  %v2590_v17 = vld [vmem:[%s12825_s7 + $0x12d] sm:$0xff] }
 0x168   : > { %11609 = vmatmul.mubr.f32.gmra.mrb[28].mxu0 %v2586_v41  ;;  %11240 = vmatprep.mubr.f32.mxu1 %v13617_v33  ;;  %v2591_v33 = vld [vmem:[%s12825_s7 + $0x135] sm:$0xff]  ;;  %v1585_v41 = vld [vmem:[%s12825_s7 + $0x103] sm:$0xff] }
 0x169   : > { %11611 = vmatprep.mubr.f32.mxu0 %v2587_v7  ;;  %12007 = vmatpush3.bf16.msra.mxu1 %v19727_v18  ;;  %v13902_v7 = vpop.permute.xlu0 %4323  ;;  %v2921_v18 = vld [vmem:[%s12825_s7 + $0x116] sm:$0xff] }
 0x16a   : > { %12000 = vmatprep.subr.bf16.mxu1 %v19728_v47  ;;  %19735 = vst [vmem:[#allocation11_spill] sm:$0xff] %v13902_v7 }
 0x16b   : > { %11241 = vmatmul.mubr.f32.gmra.mrb[12].mxu1 %v13627_v10  ;;  %v2592_v10 = vld [vmem:[%s12825_s7 + $0x13d] sm:$0xff] }
 0x16c   : > { %11612 = vmatmul.mubr.f32.gmra.mrb[30].mxu0 %v2588_v1  ;;  %11243 = vmatprep.mubr.f32.mxu1 %v13631_v39  ;;  %v2891_v39 = vld [vmem:[%s12825_s7 + $0x26] sm:$0xff] }
 0x16d   : > { %11614 = vmatprep.mubr.f32.mxu0 %v2589_v3  ;;  %12008 = vmatpush3.bf16.msra.mxu1 %v19728_v47  ;;  %v1586_v1 = vld [vmem:[%s12825_s7 + $0x10b] sm:$0xff]  ;;  %v2922_v3 = vld [vmem:[%s12825_s7 + $0x11e] sm:$0xff]  ;;  %v1587_v47 = vld [vmem:[%s12825_s7 + $0x113] sm:$0xff] }
 0x16e   : > { %12001 = vmatprep.subr.bf16.mxu1 %v19729_v13 }
 0x16f   : > { %11244 = vmatmul.mubr.f32.gmra.mrb[14].mxu1 %v13641_v43  ;;  %v2893_v43 = vld [vmem:[%s12825_s7 + $0x36] sm:$0xff] }
 0x170   : > { %11615 = vmatmul.mubr.f32.gmra.mrb[32].mxu0 %v2590_v17  ;;  %11246 = vmatprep.mubr.f32.mxu1 %v13645_v54  ;;  %v2894_v54 = vld [vmem:[%s12825_s7 + $0x3e] sm:$0xff]  ;;  %v13908_v17 = vpop.permute.xlu1 %4327 }
 0x171   : > { %11617 = vmatprep.mubr.f32.mxu0 %v2591_v33  ;;  %12009 = vmatpush3.bf16.msra.mxu1 %v19729_v13  ;;  %19736 = vst [vmem:[#allocation12_spill] sm:$0xff] %v13908_v17  ;;  %v2923_v33 = vld [vmem:[%s12825_s7 + $0x126] sm:$0xff]  ;;  %v13911_v13 = vpop.permute.xlu0 %4331 }
 0x172   : > { %19737 = vst [vmem:[#allocation13_spill] sm:$0xff] %v13911_v13 }
 0x173   : > { %11247 = vmatmul.mubr.f32.gmra.mrb[16].mxu1 %v13655_v21  ;;  %v2896_v21 = vld [vmem:[%s12825_s7 + $0x4e] sm:$0xff] }
 0x174   : > { %11618 = vmatmul.mubr.f32.gmra.mrb[34].mxu0 %v2592_v10  ;;  %11249 = vmatprep.mubr.f32.mxu1 %v13659_v62  ;;  %v2897_v62 = vld [vmem:[%s12825_s7 + $0x56] sm:$0xff] }
 0x175   : > { %11652 = vmatprep.mubr.f32.mxu0 %v2891_v39  ;;  %v1588_v10 = vld [vmem:[%s12825_s7 + $0x11b] sm:$0xff]  ;;  %v2924_v39 = vld [vmem:[%s12825_s7 + $0x12e] sm:$0xff] }
 0x177   : > { %11250 = vmatmul.mubr.f32.gmra.mrb[18].mxu1 %v13668_v15  ;;  %v2898_v15 = vld [vmem:[%s12825_s7 + $0x5e] sm:$0xff] }
 0x178   : > { %11653 = vmatmul.mubr.f32.vlgmr.msra.gmra.mrb[0].mxu0 %v2892_v22  ;;  %11252 = vmatprep.mubr.f32.mxu1 %v13673_v12  ;;  %v2899_v12 = vld [vmem:[%s12825_s7 + $0x66] sm:$0xff] }
 0x179   : > { %11655 = vmatprep.mubr.f32.mxu0 %v2893_v43  ;;  %v1589_v22 = vld [vmem:[%s12825_s7 + $0x123] sm:$0xff]  ;;  %v2925_v43 = vld [vmem:[%s12825_s7 + $0x136] sm:$0xff] }
 0x17b   : > { %11253 = vmatmul.mubr.f32.gmra.mrb[20].mxu1 %v13682_v31  ;;  %v2900_v31 = vld [vmem:[%s12825_s7 + $0x6e] sm:$0xff] }
 0x17c   : > { %11656 = vmatmul.mubr.f32.gmra.mrb[2].mxu0 %v2894_v54  ;;  %11255 = vmatprep.mubr.f32.mxu1 %v13686_v2  ;;  %v2901_v2 = vld [vmem:[%s12825_s7 + $0x76] sm:$0xff]  ;;  %v13917_v54 = vpop.permute.xlu1 %4335 }
 0x17d   : > { %11658 = vmatprep.mubr.f32.mxu0 %v2895_v11  ;;  %19738 = vst [vmem:[#allocation14_spill] sm:$0xff] %v13917_v54  ;;  %v1590_v11 = vld [vmem:[%s12825_s7 + $0x12b] sm:$0xff] }
 0x17f   : > { %11256 = vmatmul.mubr.f32.gmra.mrb[22].mxu1 %v13695_v49  ;;  %v2902_v49 = vld [vmem:[%s12825_s7 + $0x7e] sm:$0xff] }
 0x180   : > { %11659 = vmatmul.mubr.f32.gmra.mrb[4].mxu0 %v2896_v21  ;;  %11258 = vmatprep.mubr.f32.mxu1 %v13699_v60  ;;  %v2903_v60 = vld [vmem:[%s12825_s7 + $0x86] sm:$0xff]  ;;  %v2926_v21 = vld [vmem:[%s12825_s7 + $0x13e] sm:$0xff] }
 0x181   : > { %11661 = vmatprep.mubr.f32.mxu0 %v2897_v62  ;;  %v13921_v62 = vpop.permute.xlu0 %4339 }
 0x182   : > { %19739 = vst [vmem:[#allocation15_spill] sm:$0xff] %v13921_v62 }
 0x183   : > { %11259 = vmatmul.mubr.f32.gmra.mrb[24].mxu1 %v13705_v45  ;;  %v2905_v45 = vld [vmem:[%s12825_s7 + $0x96] sm:$0xff] }
 0x184   : > { %11662 = vmatmul.mubr.f32.gmra.mrb[6].mxu0 %v2898_v15  ;;  %11261 = vmatprep.mubr.f32.mxu1 %v13709_v56  ;;  %v2906_v56 = vld [vmem:[%s12825_s7 + $0x9e] sm:$0xff]  ;;  %v13923_v15 = vpop.permute.xlu1 %4343 }
 0x185   : > { %11664 = vmatprep.mubr.f32.mxu0 %v2899_v12  ;;  %19740 = vst [vmem:[#allocation16_spill] sm:$0xff] %v13923_v15  ;;  %v13925_v12 = vpop.permute.xlu0 %5569 }
 0x187   : > { %11262 = vmatmul.mubr.f32.gmra.mrb[26].mxu1 %v13715_v38  ;;  %v2908_v38 = vld [vmem:[%s12825_s7 + $0xae] sm:$0xff] }
 0x188   : > { %11665 = vmatmul.mubr.f32.gmra.mrb[8].mxu0 %v2900_v31  ;;  %11264 = vmatprep.mubr.f32.mxu1 %v13719_v42  ;;  %v2909_v42 = vld [vmem:[%s12825_s7 + $0xb6] sm:$0xff]  ;;  %v13927_v31 = vpop.permute.xlu1 %5574 }
 0x189   : > { %11667 = vmatprep.mubr.f32.mxu0 %v2901_v2  ;;  %v13929_v2 = vpop.permute.xlu0 %5579 }
 0x18b   : > { %11265 = vmatmul.mubr.f32.gmra.mrb[28].mxu1 %v13725_v51  ;;  %v2911_v51 = vld [vmem:[%s12825_s7 + $0xc6] sm:$0xff] }
 0x18c   : > { %11668 = vmatmul.mubr.f32.gmra.mrb[10].mxu0 %v2902_v49  ;;  %11267 = vmatprep.mubr.f32.mxu1 %v13729_v44  ;;  %v13860_v44 = vld [vmem:[%s12825_s7 + $0xbb] sm:$0xff]  ;;  %v13931_v49 = vpop.permute.xlu1 %5584 }
 0x18d   : > { %11670 = vmatprep.mubr.f32.mxu0 %v2903_v60  ;;  %v13933_v60 = vpop.permute.xlu0 %5589 }
 0x18f   : > { %11268 = vmatmul.mubr.f32.gmra.mrb[30].mxu1 %v13735_v20  ;;  %v13866_v20 = vld [vmem:[%s12825_s7 + $0xc3] sm:$0xff] }
 0x190   : > { %11671 = vmatmul.mubr.f32.gmra.mrb[12].mxu0 %v2904_v50  ;;  %11270 = vmatprep.mubr.f32.mxu1 %v13739_v8  ;;  %19730 = vst [vmem:[#allocation19_spill] sm:$0xff] %v13866_v20  ;;  %v13872_v8 = vld [vmem:[%s12825_s7 + $0xcb] sm:$0xff]  ;;  %v13935_v50 = vpop.permute.xlu1 %5594 }
 0x191   : > { %11673 = vmatprep.mubr.f32.mxu0 %v2905_v45  ;;  %v13937_v45 = vpop.permute.xlu0 %5599 }
 0x193   : > { %11271 = vmatmul.mubr.f32.gmra.mrb[32].mxu1 %v13745_v40  ;;  %v2914_v40 = vld [vmem:[%s12825_s7 + $0xde] sm:$0xff] }
 0x194   : > { %11674 = vmatmul.mubr.f32.gmra.mrb[14].mxu0 %v2906_v56  ;;  %11273 = vmatprep.mubr.f32.mxu1 %v1255_v16  ;;  %v12638_v56 = vmov 1983009808  }
 0x195   : > { %11676 = vmatprep.mubr.f32.mxu0 %v2907_v23  ;;  %v3263_v16 = vunpack.c.l.s4 %v12638_v56  ;;  %v13939_v23 = vpop.permute.xlu1 %5604 }
 0x197   : > { %11274 = vmatmul.mubr.f32.gmra.mrb[34].mxu1 %v1256_v5  ;;  %v3265_v5 = vlaneseq }
 0x198   : > { %11677 = vmatmul.mubr.f32.gmra.mrb[16].mxu0 %v2908_v38  ;;  %11335 = vmatprep.mubr.f32.mxu1 %v13841_v61  ;;  %v13941_v38 = vpop.permute.xlu0 %5609 }
 0x199   : > { %11679 = vmatprep.mubr.f32.mxu0 %v2909_v42  ;;  %v3264_v42 = vunpack.c.0.s8 %v3263_v16 }
 0x19b   : > { %11336 = vmatmul.mubr.f32.vlgmr.msra.gmra.mrb[18].mxu1 %v13848_v55 }
 0x19c   : > { %11680 = vmatmul.mubr.f32.gmra.mrb[18].mxu0 %v2910_v48  ;;  %11338 = vmatprep.mubr.f32.mxu1 %v13852_v25  ;;  %v13943_v48 = vshrl.u32 %v3265_v5, 7 }
 0x19d   : > { %11682 = vmatprep.mubr.f32.mxu0 %v2911_v51  ;;  %v13945_v51 = vpop.permute.xlu1 %5614 }
 0x19f   : > { %11339 = vmatmul.mubr.f32.gmra.mrb[20].mxu1 %v13860_v44 }
 0x1a0   : > { %11683 = vmatmul.mubr.f32.gmra.mrb[20].mxu0 %v2912_v0  ;;  %11341 = vmatprep.mubr.f32.mxu1 %v13866_v20  ;;  %v12472_v0 = vld [vmem:[%s12825_s7 + $0x13] sm:$0xff] }
 0x1a1   : > { %11685 = vmatprep.mubr.f32.mxu0 %v2913_v63  ;;  %v8544_v63 = vcombine.high %v12472_v0, %v12472_v0 }
 0x1a3   : > { %11342 = vmatmul.mubr.f32.gmra.mrb[22].mxu1 %v13872_v8 }
 0x1a4   : > { %11686 = vmatmul.mubr.f32.gmra.mrb[22].mxu0 %v2914_v40  ;;  %11344 = vmatprep.mubr.f32.mxu1 %v13878_v9  ;;  %v12473_v40 = vld [vmem:[%s12825_s7 + $0x1b] sm:$0xff] }
 0x1a5   : > { %11688 = vmatprep.mubr.f32.mxu0 %v2915_v32  ;;  %v8561_v32 = vcombine.high %v12473_v40, %v12473_v40 }
 0x1a7   : > { %11345 = vmatmul.mubr.f32.gmra.mrb[24].mxu1 %v1580_v58  ;;  %v13950_v58 = vsub.s32 %v3264_v42, %v13943_v48 }
 0x1a8   : > { %11689 = vmatmul.mubr.f32.gmra.mrb[24].mxu0 %v2916_v59  ;;  %11347 = vmatprep.mubr.f32.mxu1 %v1581_v37  ;;  %v12474_v59 = vld [vmem:[%s12825_s7 + $0x23] sm:$0xff] }
 0x1a9   : > { %11691 = vmatprep.mubr.f32.mxu0 %v2917_v34  ;;  %19741 = vst [vmem:[#allocation17_spill] sm:$0xff] %v13950_v58  ;;  %v8578_v37 = vcombine.high %v12474_v59, %v12474_v59  ;;  %v13953_v34 = vpop.permute.xlu0 %5619 }
 0x1ab   : > { %11348 = vmatmul.mubr.f32.gmra.mrb[26].mxu1 %v1582_v6  ;;  %v12475_v6 = vld [vmem:[%s12825_s7 + $0x2b] sm:$0xff] }
 0x1ac   : > { %11692 = vmatmul.mubr.f32.gmra.mrb[26].mxu0 %v2918_v53  ;;  %11350 = vmatprep.mubr.f32.mxu1 %v1583_v4  ;;  %v8595_v53 = vcombine.high %v12475_v6, %v12475_v6  ;;  %v13957_v4 = vrot.slane %v12472_v0, %v13950_v58 }
 0x1ad   : > { %11694 = vmatprep.mubr.f32.mxu0 %v2919_v35  ;;  %v13960_v35 = vrot.slane %v12473_v40, %v13950_v58  ;;  %v13999_v42 = vpop.permute.xlu0 %5629 }
 0x1ae   : > { %19742 = vst [vmem:[#allocation18_spill] sm:$0xff] %v13957_v4 }
 0x1af   : > { %11351 = vmatmul.mubr.f32.gmra.mrb[28].mxu1 %v1584_v14  ;;  %19743 = vst [vmem:[#allocation24_spill] sm:$0xff] %v13960_v35  ;;  %v13963_v14 = vld [vmem:[%s12825_s7 + $0x33] sm:$0xff] }
 0x1b0   : > { %11695 = vmatmul.mubr.f32.gmra.mrb[28].mxu0 %v2920_v19  ;;  %11353 = vmatprep.mubr.f32.mxu1 %v1585_v41  ;;  %19744 = vst [vmem:[#allocation25_spill] sm:$0xff] %v13963_v14  ;;  %v8612_v19 = vcombine.high %v13963_v14, %v13963_v14  ;;  %v13968_v41 = vrot.slane %v8544_v63, %v13950_v58 }
 0x1b1   : > { %11697 = vmatprep.mubr.f32.mxu0 %v2921_v18  ;;  %v13971_v18 = vrot.slane %v8561_v32, %v13950_v58  ;;  %v12479_v32 = vld [vmem:[%s12825_s7 + $0x4b] sm:$0xff] }
 0x1b2   : > { %19745 = vst [vmem:[#allocation26_spill] sm:$0xff] %v13968_v41  ;;  %v13994_v16 = vrot.slane %v8612_v19, %v13950_v58  ;;  %v12480_v19 = vld [vmem:[%s12825_s7 + $0x5b] sm:$0xff]  ;;  %v14031_v0 = vrot.slane %v12479_v32, %v13950_v58 }
 0x1b3   : > { %11354 = vmatmul.mubr.f32.gmra.mrb[30].mxu1 %v1586_v1  ;;  %19746 = vst [vmem:[#allocation27_spill] sm:$0xff] %v13971_v18  ;;  %v13974_v1 = vrot.slane %v12474_v59, %v13950_v58  ;;  %v8662_v59 = vcombine.high %v12479_v32, %v12479_v32 }
 0x1b4   : > { %11698 = vmatmul.mubr.f32.gmra.mrb[30].mxu0 %v2922_v3  ;;  %11356 = vmatprep.mubr.f32.mxu1 %v1587_v47  ;;  %v13977_v3 = vrot.slane %v8578_v37, %v13950_v58  ;;  %v13980_v47 = vrot.slane %v12475_v6, %v13950_v58  ;;  %19751 = vst [vmem:[#allocation32_spill] sm:$0xff] %v13994_v16  ;;  %19756 = vst [vmem:[#allocation37_spill] sm:$0xff] %v14031_v0  ;;  %v12483_v6 = vld [vmem:[%s12825_s7 + $0x6b] sm:$0xff] }
 0x1b5   : > { %11700 = vmatprep.mubr.f32.mxu0 %v2923_v33  ;;  %19747 = vst [vmem:[#allocation28_spill] sm:$0xff] %v13974_v1  ;;  %v13982_v33 = vpop.permute.xlu1 %5624  ;;  %v8729_v16 = vcombine.high %v12483_v6, %v12483_v6  ;;  %v12484_v1 = vld [vmem:[%s12825_s7 + $0x73] sm:$0xff] }
 0x1b6   : > { %19748 = vst [vmem:[#allocation29_spill] sm:$0xff] %v13977_v3  ;;  %19749 = vst [vmem:[#allocation30_spill] sm:$0xff] %v13980_v47  ;;  %v8746_v32 = vcombine.high %v12484_v1, %v12484_v1  ;;  %v14076_v3 = vrot.slane %v12484_v1, %v13950_v58 }
 0x1b7   : > { %11357 = vmatmul.mubr.f32.gmra.mrb[32].mxu1 %v1588_v10  ;;  %v13985_v10 = vrot.slane %v8595_v53, %v13950_v58 }
 0x1b8   : > { %11701 = vmatmul.mubr.f32.gmra.mrb[32].mxu0 %v2924_v39  ;;  %11359 = vmatprep.mubr.f32.mxu1 %v1589_v22  ;;  %v12477_v39 = vld [vmem:[%s12825_s7 + $0x3b] sm:$0xff]  ;;  %19765 = vst [vmem:[#allocation46_spill] sm:$0xff] %v14076_v3  ;;  %v8846_v3 = vcombine.high %v13841_v61, %v13841_v61 }
 0x1b9   : > { %11703 = vmatprep.mubr.f32.mxu0 %v2925_v43  ;;  %19750 = vst [vmem:[#allocation31_spill] sm:$0xff] %v13985_v10  ;;  %v8628_v22 = vcombine.high %v12477_v39, %v12477_v39  ;;  %v12478_v43 = vld [vmem:[%s12825_s7 + $0x43] sm:$0xff]  ;;  %v13997_v5 = vrot.slane %v12477_v39, %v13950_v58  ;;  %v8695_v39 = vcombine.high %v12480_v19, %v12480_v19  ;;  %v14034_v10 = vpop.permute.xlu1 %5634 }
 0x1ba   : > { %v14013_v53 = vrot.slane %v12478_v43, %v13950_v58  ;;  %v14172_v41 = vrot.slane %v8846_v3, %v13950_v58  ;;  %v14190_v3 = vrot.slane %v13860_v44, %v13950_v58 }
 0x1bb   : > { %11360 = vmatmul.mubr.f32.gmra.mrb[34].mxu1 %v1590_v11  ;;  %v8645_v11 = vcombine.high %v12478_v43, %v12478_v43  ;;  %19752 = vst [vmem:[#allocation33_spill] sm:$0xff] %v13997_v5  ;;  %v14021_v56 = vrot.slane %v8628_v22, %v13950_v58  ;;  %v14037_v22 = vrot.slane %v8662_v59, %v13950_v58  ;;  %v14055_v59 = vpop.permute.xlu0 %5639 }
 0x1bc   : > { %11704 = vmatmul.mubr.f32.gmra.mrb[34].mxu0 %v2926_v21  ;;  %19753 = vst [vmem:[#allocation34_spill] sm:$0xff] %v14013_v53  ;;  %v12481_v21 = vld [vmem:[%s12825_s7 + $0x63] sm:$0xff]  ;;  %v14047_v43 = vrot.slane %v12480_v19, %v13950_v58  ;;  %v14050_v5 = vrot.slane %v8695_v39, %v13950_v58  ;;  %v14063_v53 = vld [vmem:[%s12825_s7 + $0x7b] sm:$0xff]  ;;  %19779 = vst [vmem:[#allocation60_spill] sm:$0xff] %v14172_v41 }
 0x1bd   : > { %19754 = vst [vmem:[#allocation35_spill] sm:$0xff] %v14021_v56  ;;  %v14024_v37 = vrot.slane %v8645_v11, %v13950_v58  ;;  %v8712_v63 = vcombine.high %v12481_v21, %v12481_v21  ;;  %19757 = vst [vmem:[#allocation38_spill] sm:$0xff] %v14037_v22  ;;  %v12482_v11 = vld [vmem:[%s12825_s7 + $0x53] sm:$0xff]  ;;  %v14053_v47 = vrot.slane %v12481_v21, %v13950_v58 }
 0x1be   : > { %v8679_v40 = vcombine.high %v12482_v11, %v12482_v11  ;;  %v14041_v14 = vrot.slane %v12482_v11, %v13950_v58  ;;  %19759 = vst [vmem:[#allocation40_spill] sm:$0xff] %v14047_v43  ;;  %19760 = vst [vmem:[#allocation41_spill] sm:$0xff] %v14050_v5  ;;  %v8763_v19 = vcombine.high %v14063_v53, %v14063_v53  ;;  %v12488_v5 = vld [vmem:[%s12825_s7 + $0x93] sm:$0xff] }
 0x1bf   : > { %19755 = vst [vmem:[#allocation36_spill] sm:$0xff] %v14024_v37  ;;  %19761 = vst [vmem:[#allocation42_spill] sm:$0xff] %v14053_v47  ;;  %v14070_v39 = vrot.slane %v8712_v63, %v13950_v58  ;;  %v14073_v11 = vrot.slane %v12483_v6, %v13950_v58  ;;  %v14086_v63 = vrot.slane %v8729_v16, %v13950_v58  ;;  %v12486_v37 = vld [vmem:[%s12825_s7 + $0x83] sm:$0xff]  ;;  %v12487_v6 = vld [vmem:[%s12825_s7 + $0x8b] sm:$0xff] }
 0x1c0   : > { %19758 = vst [vmem:[#allocation39_spill] sm:$0xff] %v14041_v14  ;;  %19762 = vst [vmem:[#allocation43_spill] sm:$0xff] %v14063_v53  ;;  %v14081_v56 = vrot.slane %v8679_v40, %v13950_v58  ;;  %v8779_v22 = vcombine.high %v12486_v37, %v12486_v37  ;;  %v14095_v40 = vpop.permute.xlu1 %5644  ;;  %v14101_v18 = vrot.slane %v8763_v19, %v13950_v58  ;;  %v14114_v14 = vpop.permute.xlu0 %5649 }
 0x1c1   : > { %19763 = vst [vmem:[#allocation44_spill] sm:$0xff] %v14070_v39  ;;  %19764 = vst [vmem:[#allocation45_spill] sm:$0xff] %v14073_v11  ;;  %v14104_v16 = vrot.slane %v12486_v37, %v13950_v58  ;;  %v8796_v43 = vcombine.high %v12487_v6, %v12487_v6  ;;  %v14124_v1 = vrot.slane %v12487_v6, %v13950_v58  ;;  %v12639_v6 = vmov 269488144  }
 0x1c2   : > { %19766 = vst [vmem:[#allocation47_spill] sm:$0xff] %v14081_v56  ;;  %19767 = vst [vmem:[#allocation48_spill] sm:$0xff] %v14086_v63  ;;  %v14098_v56 = vrot.slane %v8746_v32, %v13950_v58  ;;  %v8813_v32 = vcombine.high %v12488_v5, %v12488_v5  ;;  %v14121_v0 = vrot.slane %v8779_v22, %v13950_v58  ;;  %v4410_v53 = vunpack.c.l.s4 %v12639_v6 }
 0x1c3   : > { %19769 = vst [vmem:[#allocation50_spill] sm:$0xff] %v14101_v18  ;;  %19770 = vst [vmem:[#allocation51_spill] sm:$0xff] %v14104_v16  ;;  %v14133_v37 = vrot.slane %v8796_v43, %v13950_v58  ;;  %v14136_v19 = vrot.slane %v12488_v5, %v13950_v58  ;;  %v12640_v63 = vmov 842150450   ;;  %v12641_v16 = vmov 1414812756  }
 0x1c4   : > { %19768 = vst [vmem:[#allocation49_spill] sm:$0xff] %v14098_v56  ;;  %19771 = vst [vmem:[#allocation52_spill] sm:$0xff] %v14121_v0  ;;  %v14139_v22 = vrot.slane %v8813_v32, %v13950_v58  ;;  %v4417_v11 = vunpack.c.l.s4 %v12640_v63  ;;  %v14141_v47 = vpop.permute.xlu1 %5654  ;;  %v12489_v56 = vld [vmem:[%s12825_s7 + $0x9b] sm:$0xff]  ;;  %v4424_v43 = vunpack.c.l.s4 %v12641_v16  ;;  %v12642_v18 = vmov 1987475062   ;;  %v14154_v35 = vpop.permute.xlu0 %4347 }
 0x1c5   : > { %19772 = vst [vmem:[#allocation53_spill] sm:$0xff] %v14124_v1  ;;  %19773 = vst [vmem:[#allocation54_spill] sm:$0xff] %v14133_v37  ;;  %v8830_v21 = vcombine.high %v12489_v56, %v12489_v56  ;;  %v4431_v39 = vunpack.c.l.s4 %v12642_v18  ;;  %v8863_v63 = vcombine.high %v13848_v55, %v13848_v55  ;;  %v8880_v6 = vcombine.high %v13852_v25, %v13852_v25 }
 0x1c6   : > { %19774 = vst [vmem:[#allocation55_spill] sm:$0xff] %v14136_v19  ;;  %19775 = vst [vmem:[#allocation56_spill] sm:$0xff] %v14139_v22  ;;  %v14159_v16 = vrot.slane %v12489_v56, %v13950_v58  ;;  %v14163_v18 = vrot.slane %v13841_v61, %v13950_v58  ;;  %v8897_v32 = vcombine.high %v13860_v44, %v13860_v44  ;;  %v4411_v0 = vunpack.c.0.s8 %v4410_v53 }
 0x1c7   : > { %19776 = vst [vmem:[#allocation57_spill] sm:$0xff] %v14154_v35  ;;  %v4418_v4 = vunpack.c.0.s8 %v4417_v11  ;;  %v14176_v56 = vrot.slane %v13848_v55, %v13950_v58  ;;  %v4425_v61 = vunpack.c.0.s8 %v4424_v43  ;;  %v4432_v37 = vunpack.c.0.s8 %v4431_v39  ;;  %19784 = vst [vmem:[#allocation65_spill] sm:$0xff] %v14190_v3 }
 0x1c8   : > { %19777 = vst [vmem:[#allocation58_spill] sm:$0xff] %v14159_v16  ;;  %19778 = vst [vmem:[#allocation59_spill] sm:$0xff] %v14163_v18  ;;  %v14179_v35 = vrot.slane %v8863_v63, %v13950_v58  ;;  %v14183_v5 = vrot.slane %v13852_v25, %v13950_v58  ;;  %v14186_v1 = vrot.slane %v8880_v6, %v13950_v58  ;;  %v14192_v53 = vpop.permute.xlu1 %5659  ;;  %v14214_v6 = vpop.permute.xlu0 %4351 }
 0x1c9   : > { %19780 = vst [vmem:[#allocation61_spill] sm:$0xff] %v14176_v56  ;;  %v14195_v55 = vrot.slane %v8830_v21, %v13950_v58  ;;  %v14202_v25 = vrot.slane %v8897_v32, %v13950_v58  ;;  %v14205_v43 = vsub.s32 %v4411_v0, %v13943_v48  ;;  %v14208_v44 = vsub.s32 %v4418_v4, %v13943_v48 }
 0x1ca   : > { %19781 = vst [vmem:[#allocation62_spill] sm:$0xff] %v14179_v35  ;;  %19782 = vst [vmem:[#allocation63_spill] sm:$0xff] %v14183_v5  ;;  %v8914_v63 = vcombine.high %v13866_v20, %v13866_v20  ;;  %v8930_v21 = vcombine.high %v13872_v8, %v13872_v8  ;;  %v14221_v0 = vsub.s32 %v4425_v61, %v13943_v48 }
 0x1cb   : > { %19783 = vst [vmem:[#allocation64_spill] sm:$0xff] %v14186_v1  ;;  %19785 = vst [vmem:[#allocation66_spill] sm:$0xff] %v14195_v55  ;;  %v14224_v4 = vsub.s32 %v4432_v37, %v13943_v48  ;;  %v14240_v48 = vrot.slane %v13872_v8, %v13950_v58 }
 0x1cc   : > { %19786 = vst [vmem:[#allocation67_spill] sm:$0xff] %v14202_v25  ;;  %19787 = vst [vmem:[#allocation68_spill] sm:$0xff] %v14214_v6  ;;  %v14249_v39 = vrot.slane %v8914_v63, %v13950_v58  ;;  %v14252_v32 = vrot.slane %v8930_v21, %v13950_v58  ;;  %v14254_v61 = vpop.permute.xlu1 %5664  ;;  %v14272_v20 = vpop.permute.xlu0 %4355  ;;  %v14309_v63 = vld [vmem:[%s19081_s3] ss:$0 sm:$0xff] }
 0x1cd   : > { %19788 = vst [vmem:[#allocation69_spill] sm:$0xff] %v14240_v48  ;;  %19791 = vst [vmem:[#allocation72_spill] sm:$0xff] %v14272_v20  ;;  %v5727_v25 = vmul.f32 %v14309_v63, %v13925_v12  ;;  %v5728_v37 = vmul.f32 %v14309_v63, %v13927_v31  ;;  %v5729_v11 = vmul.f32 %v14309_v63, %v13929_v2 }
 0x1ce   : > { %19789 = vst [vmem:[#allocation70_spill] sm:$0xff] %v14249_v39  ;;  %19790 = vst [vmem:[#allocation71_spill] sm:$0xff] %v14252_v32  ;;  %v5730_v31 = vmul.f32 %v14309_v63, %v13931_v49  ;;  %v5731_v35 = vmul.f32 %v14309_v63, %v13933_v60  ;;  %v5733_v2 = vmul.f32 %v14309_v63, %v13937_v45 }
 0x1cf   : > { %v5791_v55 = vcombine.high %v5727_v25, %v5727_v25  ;;  %v14394_v56 = vrot.slane %v5727_v25, %v13950_v58  ;;  %v5808_v41 = vcombine.high %v5728_v37, %v5728_v37  ;;  %v5825_v18 = vcombine.high %v5729_v11, %v5729_v11 }
 0x1d0   : > { %v14311_v21 = vpop.permute.xlu1 %5669  ;;  %v14329_v1 = vpop.permute.xlu0 %4359  ;;  %v5842_v16 = vcombine.high %v5730_v31, %v5730_v31  ;;  %v5859_v25 = vcombine.high %v5731_v35, %v5731_v35  ;;  %v14410_v19 = vrot.slane %v5728_v37, %v13950_v58  ;;  %v14413_v3 = vrot.slane %v5729_v11, %v13950_v58 }
 0x1d1   : > { %19792 = vst [vmem:[#allocation73_spill] sm:$0xff] %v14329_v1  ;;  %v14401_v8 = vrot.slane %v5791_v55, %v13950_v58  ;;  %v5732_v55 = vmul.f32 %v14309_v63, %v13935_v50  ;;  %v14426_v37 = vrot.slane %v5808_v41, %v13950_v58  ;;  %v14433_v48 = vrot.slane %v5825_v18, %v13950_v58 }
 0x1d2   : > { %v14436_v45 = vrot.slane %v5730_v31, %v13950_v58  ;;  %v5734_v49 = vmul.f32 %v14309_v63, %v13939_v23  ;;  %v14441_v60 = vrot.slane %v5842_v16, %v13950_v58  ;;  %v14444_v41 = vrot.slane %v5731_v35, %v13950_v58 }
 0x1d3   : > { %v14447_v32 = vrot.slane %v5859_v25, %v13950_v58  ;;  %v5735_v50 = vmul.f32 %v14309_v63, %v13941_v38  ;;  %v5876_v39 = vcombine.high %v5732_v55, %v5732_v55  ;;  %v5893_v23 = vcombine.high %v5733_v2, %v5733_v2 }
 0x1d4   : > { %v14363_v5 = vpop.permute.xlu1 %5674  ;;  %v14379_v12 = vpop.permute.xlu0 %4363  ;;  %v14458_v35 = vrot.slane %v5732_v55, %v13950_v58  ;;  %v14461_v25 = vrot.slane %v5733_v2, %v13950_v58  ;;  %v5736_v38 = vmul.f32 %v14309_v63, %v13945_v51  ;;  %v5910_v15 = vcombine.high %v5734_v49, %v5734_v49 }
 0x1d5   : > { %19793 = vst [vmem:[#allocation74_spill] sm:$0xff] %v14379_v12  ;;  %v5737_v16 = vmul.f32 %v14309_v63, %v13953_v34  ;;  %v5927_v62 = vcombine.high %v5735_v50, %v5735_v50  ;;  %v14482_v18 = vrot.slane %v5876_v39, %v13950_v58  ;;  %v14485_v31 = vrot.slane %v5893_v23, %v13950_v58 }
 0x1d6   : > { %v14488_v34 = vrot.slane %v5734_v49, %v13950_v58  ;;  %v5738_v55 = vmul.f32 %v14309_v63, %v13982_v33  ;;  %v5944_v13 = vcombine.high %v5736_v38, %v5736_v38  ;;  %v5739_v39 = vmul.f32 %v14309_v63, %v13999_v42 }
 0x1d7   : > { %19796 = vst [vmem:[#allocation77_spill] sm:$0xff] %v14482_v18  ;;  %19797 = vst [vmem:[#allocation78_spill] sm:$0xff] %v14485_v31  ;;  %v14499_v17 = vrot.slane %v5910_v15, %v13950_v58  ;;  %v14502_v23 = vrot.slane %v5735_v50, %v13950_v58  ;;  %v5961_v49 = vcombine.high %v5737_v16, %v5737_v16 }
 0x1d8   : > { %v14407_v22 = vpop.permute.xlu1 %5679  ;;  %v14428_v11 = vpop.permute.xlu0 %4367  ;;  %19798 = vst [vmem:[#allocation79_spill] sm:$0xff] %v14488_v34  ;;  %v5740_v33 = vmul.f32 %v14309_v63, %v14034_v10  ;;  %v14507_v52 = vrot.slane %v5927_v62, %v13950_v58  ;;  %v14510_v2 = vrot.slane %v5736_v38, %v13950_v58  ;;  %v14513_v51 = vrot.slane %v5737_v16, %v13950_v58 }
 0x1d9   : > { %19794 = vst [vmem:[#allocation75_spill] sm:$0xff] %v14428_v11  ;;  %19799 = vst [vmem:[#allocation80_spill] sm:$0xff] %v14499_v17  ;;  %v5741_v15 = vmul.f32 %v14309_v63, %v14055_v59  ;;  %v5978_v7 = vcombine.high %v5738_v55, %v5738_v55  ;;  %v14526_v38 = vrot.slane %v5944_v13, %v13950_v58 }
 0x1da   : > { %19800 = vst [vmem:[#allocation81_spill] sm:$0xff] %v14507_v52  ;;  %19801 = vst [vmem:[#allocation82_spill] sm:$0xff] %v14510_v2  ;;  %v5995_v16 = vcombine.high %v5739_v39, %v5739_v39  ;;  %v5742_v28 = vmul.f32 %v14309_v63, %v14095_v40  ;;  %v5743_v59 = vmul.f32 %v14309_v63, %v14114_v14 }
 0x1db   : > { %19802 = vst [vmem:[#allocation83_spill] sm:$0xff] %v14513_v51  ;;  %19803 = vst [vmem:[#allocation84_spill] sm:$0xff] %v14526_v38  ;;  %v14539_v62 = vrot.slane %v5961_v49, %v13950_v58  ;;  %v6012_v13 = vcombine.high %v5740_v33, %v5740_v33  ;;  %v6029_v34 = vcombine.high %v5741_v15, %v5741_v15 }
 0x1dc   : > { %v14465_v9 = vpop.permute.xlu1 %5684  ;;  %v14479_v54 = vpop.permute.xlu0 %4371  ;;  %v14548_v31 = vrot.slane %v5738_v55, %v13950_v58  ;;  %v14551_v50 = vrot.slane %v5978_v7, %v13950_v58  ;;  %v14554_v49 = vrot.slane %v5739_v39, %v13950_v58  ;;  %v5744_v10 = vmul.f32 %v14309_v63, %v14141_v47 }
 0x1dd   : > { %19795 = vst [vmem:[#allocation76_spill] sm:$0xff] %v14479_v54  ;;  %19805 = vst [vmem:[#allocation86_spill] sm:$0xff] %v14539_v62  ;;  %v14561_v40 = vrot.slane %v5995_v16, %v13950_v58  ;;  %v6046_v14 = vcombine.high %v5742_v28, %v5742_v28  ;;  %v6063_v2 = vcombine.high %v5743_v59, %v5743_v59 }
 0x1de   : > { %19806 = vst [vmem:[#allocation87_spill] sm:$0xff] %v14548_v31  ;;  %19807 = vst [vmem:[#allocation88_spill] sm:$0xff] %v14554_v49  ;;  %v14568_v55 = vrot.slane %v5740_v33, %v13950_v58  ;;  %v14571_v39 = vrot.slane %v6012_v13, %v13950_v58  ;;  %v14574_v47 = vrot.slane %v5741_v15, %v13950_v58 }
 0x1df   : > { %19808 = vst [vmem:[#allocation89_spill] sm:$0xff] %v14561_v40  ;;  %v14577_v18 = vrot.slane %v6029_v34, %v13950_v58  ;;  %v14580_v16 = vrot.slane %v5742_v28, %v13950_v58  ;;  %v14583_v38 = vrot.slane %v5743_v59, %v13950_v58  ;;  %v5745_v7 = vmul.f32 %v14309_v63, %v14192_v53 }
 0x1e0   : > { %v14517_v42 = vpop.permute.xlu1 %5689  ;;  %v14532_v30 = vpop.permute.xlu0 %4375  ;;  %19809 = vst [vmem:[#allocation90_spill] sm:$0xff] %v14568_v55  ;;  %19810 = vst [vmem:[#allocation91_spill] sm:$0xff] %v14571_v39  ;;  %v6080_v13 = vcombine.high %v5744_v10, %v5744_v10  ;;  %v14602_v53 = vrot.slane %v6046_v14, %v13950_v58  ;;  %v14605_v52 = vrot.slane %v6063_v2, %v13950_v58 }
 0x1e1   : > { %19804 = vst [vmem:[#allocation85_spill] sm:$0xff] %v14532_v30  ;;  %19811 = vst [vmem:[#allocation92_spill] sm:$0xff] %v14574_v47  ;;  %v5746_v15 = vmul.f32 %v14309_v63, %v14254_v61  ;;  %v14616_v59 = vrot.slane %v5744_v10, %v13950_v58  ;;  %v6097_v40 = vcombine.high %v5745_v7, %v5745_v7 }
 0x1e2   : > { %19812 = vst [vmem:[#allocation93_spill] sm:$0xff] %v14577_v18  ;;  %19813 = vst [vmem:[#allocation94_spill] sm:$0xff] %v14580_v16  ;;  %v14629_v28 = vrot.slane %v6080_v13, %v13950_v58  ;;  %v5747_v2 = vmul.f32 %v14309_v63, %v14311_v21  ;;  %v14644_v13 = vrot.slane %v5745_v7, %v13950_v58 }
 0x1e3   : > { %19814 = vst [vmem:[#allocation95_spill] sm:$0xff] %v14583_v38  ;;  %19816 = vst [vmem:[#allocation97_spill] sm:$0xff] %v14602_v53  ;;  %v6114_v16 = vcombine.high %v5746_v15, %v5746_v15  ;;  %v5748_v61 = vmul.f32 %v14309_v63, %v14363_v5  ;;  %v14657_v38 = vrot.slane %v6097_v40, %v13950_v58 }
 0x1e4   : > { %v14563_v51 = vpop.permute.xlu1 %5694  ;;  %v14587_v33 = vpop.permute.xlu0 %4379  ;;  %19817 = vst [vmem:[#allocation98_spill] sm:$0xff] %v14605_v52  ;;  %19818 = vst [vmem:[#allocation99_spill] sm:$0xff] %v14616_v59  ;;  %v14664_v14 = vrot.slane %v5746_v15, %v13950_v58  ;;  %v6131_v21 = vcombine.high %v5747_v2, %v5747_v2  ;;  %v5749_v31 = vmul.f32 %v14309_v63, %v14407_v22 }
 0x1e5   : > { %19815 = vst [vmem:[#allocation96_spill] sm:$0xff] %v14587_v33  ;;  %19819 = vst [vmem:[#allocation100_spill] sm:$0xff] %v14629_v28  ;;  %v14679_v15 = vrot.slane %v6114_v16, %v13950_v58  ;;  %v14690_v6 = vrot.slane %v5747_v2, %v13950_v58  ;;  %v6148_v52 = vcombine.high %v5748_v61, %v5748_v61 }
 0x1e6   : > { %19821 = vst [vmem:[#allocation101_spill] sm:$0xff] %v14644_v13  ;;  %19823 = vst [vmem:[#allocation103_spill] sm:$0xff] %v14657_v38  ;;  %v14705_v2 = vrot.slane %v6131_v21, %v13950_v58  ;;  %v14710_v16 = vrot.slane %v5748_v61, %v13950_v58  ;;  %v5750_v7 = vmul.f32 %v14309_v63, %v14465_v9 }
 0x1e7   : > { %19824 = vst [vmem:[#allocation104_spill] sm:$0xff] %v14664_v14  ;;  %19825 = vst [vmem:[#allocation105_spill] sm:$0xff] %v14679_v15  ;;  %v6165_v38 = vcombine.high %v5749_v31, %v5749_v31  ;;  %v14725_v61 = vrot.slane %v6148_v52, %v13950_v58  ;;  %v5751_v20 = vmul.f32 %v14309_v63, %v14517_v42 }
 0x1e8   : > { %v14624_v34 = vpop.permute.xlu1 %5699  ;;  %v14646_v47 = vpop.permute.xlu0 %4383  ;;  %19826 = vst [vmem:[#allocation106_spill] sm:$0xff] %v14690_v6  ;;  %19828 = vst [vmem:[#allocation108_spill] sm:$0xff] %v14705_v2  ;;  %v14738_v40 = vrot.slane %v5749_v31, %v13950_v58  ;;  %v6182_v15 = vcombine.high %v5750_v7, %v5750_v7  ;;  %v14756_v12 = vrot.slane %v5750_v7, %v13950_v58 }
 0x1e9   : > { %19822 = vst [vmem:[#allocation102_spill] sm:$0xff] %v14646_v47  ;;  %19829 = vst [vmem:[#allocation109_spill] sm:$0xff] %v14710_v16  ;;  %v14751_v21 = vrot.slane %v6165_v38, %v13950_v58  ;;  %v5752_v9 = vmul.f32 %v14309_v63, %v14563_v51  ;;  %v6199_v16 = vcombine.high %v5751_v20, %v5751_v20 }
 0x1ea   : > { %19830 = vst [vmem:[#allocation110_spill] sm:$0xff] %v14725_v61  ;;  %19831 = vst [vmem:[#allocation111_spill] sm:$0xff] %v14738_v40  ;;  %v5753_v1 = vmul.f32 %v14309_v63, %v14624_v34  ;;  %v14779_v13 = vrot.slane %v6182_v15, %v13950_v58  ;;  %v14786_v61 = vrot.slane %v5751_v20, %v13950_v58 }
 0x1eb   : > { %19832 = vst [vmem:[#allocation112_spill] sm:$0xff] %v14751_v21  ;;  %19833 = vst [vmem:[#allocation113_spill] sm:$0xff] %v14756_v12  ;;  %v6216_v40 = vcombine.high %v5752_v9, %v5752_v9  ;;  %v14796_v38 = vrot.slane %v6199_v16, %v13950_v58  ;;  %v14803_v54 = vrot.slane %v5752_v9, %v13950_v58 }
 0x1ec   : > { %v5705_v28 = vpop.permute.xlu1 %5704  ;;  %v14700_v5 = vpop.permute.xlu0 %4387  ;;  %19835 = vst [vmem:[#allocation115_spill] sm:$0xff] %v14779_v13  ;;  %19836 = vst [vmem:[#allocation116_spill] sm:$0xff] %v14786_v61  ;;  %v14828_v30 = vrot.slane %v5753_v1, %v13950_v58 }
 0x1ed   : > { %19827 = vst [vmem:[#allocation107_spill] sm:$0xff] %v14700_v5  ;;  %v5754_v15 = vmul.f32 %v14309_v63, %v5705_v28  ;;  %19837 = vst [vmem:[#allocation117_spill] sm:$0xff] %v14796_v38  ;;  %v6233_v28 = vcombine.high %v5753_v1, %v5753_v1 }
 0x1ee   : > { %19838 = vst [vmem:[#allocation118_spill] sm:$0xff] %v14803_v54  ;;  %19841 = vst [vmem:[#allocation121_spill] sm:$0xff] %v14828_v30 }
 0x1ef   : > { %v6250_v39 = vcombine.high %v5754_v15, %v5754_v15  ;;  %v14853_v13 = vrot.slane %v5754_v15, %v13950_v58 }
 0x1f0   : > { %v5710_v52 = vpop.permute.xlu1 %5709  ;;  %v14760_v2 = vpop.permute.xlu0 %4391 }
 0x1f1   : > { %19834 = vst [vmem:[#allocation114_spill] sm:$0xff] %v14760_v2  ;;  %v5755_v12 = vmul.f32 %v14309_v63, %v5710_v52  ;;  %v14825_v52 = vrot.slane %v6216_v40, %v13950_v58  ;;  %v14840_v40 = vrot.slane %v6233_v28, %v13950_v58  ;;  %19843 = vst [vmem:[#allocation123_spill] sm:$0xff] %v14853_v13 }
 0x1f2   : > { %v14863_v33 = vrot.slane %v6250_v39, %v13950_v58 }
 0x1f3   : > { %19840 = vst [vmem:[#allocation120_spill] sm:$0xff] %v14825_v52  ;;  %19842 = vst [vmem:[#allocation122_spill] sm:$0xff] %v14840_v40  ;;  %v6267_v61 = vcombine.high %v5755_v12, %v5755_v12 }
 0x1f4   : > { %v5715_v11 = vpop.permute.xlu1 %5714  ;;  %v14810_v16 = vpop.permute.xlu0 %4395  ;;  %19844 = vst [vmem:[#allocation124_spill] sm:$0xff] %v14863_v33 }
 0x1f5   : > { %19839 = vst [vmem:[#allocation119_spill] sm:$0xff] %v14810_v16  ;;  %v5756_v31 = vmul.f32 %v14309_v63, %v5715_v11  ;;  %v14874_v11 = vrot.slane %v5755_v12, %v13950_v58  ;;  %v14881_v52 = vrot.slane %v6267_v61, %v13950_v58 }
 0x1f7   : > { %v6284_v20 = vcombine.high %v5756_v31, %v5756_v31  ;;  %19846 = vst [vmem:[#allocation126_spill] sm:$0xff] %v14874_v11  ;;  %19847 = vst [vmem:[#allocation127_spill] sm:$0xff] %v14881_v52  ;;  %v14884_v15 = vrot.slane %v5756_v31, %v13950_v58 }
 0x1f8   : > { %v5720_v9 = vpop.permute.xlu1 %5719  ;;  %v14865_v49 = vpop.permute.xlu0 %4399 }
 0x1f9   : > { %v5757_v28 = vmul.f32 %v14309_v63, %v5720_v9  ;;  %19845 = vst [vmem:[#allocation125_spill] sm:$0xff] %v14865_v49  ;;  %19848 = vst [vmem:[#allocation128_spill] sm:$0xff] %v14884_v15  ;;  %v14903_v51 = vrot.slane %v6284_v20, %v13950_v58  ;;  %v19855_v20 = vrot.slane %v13844_v57, %v14205_v43 }
 0x1fb   : > { %v6301_v9 = vcombine.high %v5757_v28, %v5757_v28  ;;  %19851 = vst [vmem:[#allocation131_spill] sm:$0xff] %v14903_v51  ;;  %v14912_v61 = vrot.slane %v5757_v28, %v13950_v58  ;;  %v19856_v28 = vrot.slane %v13830_v26, %v14205_v43 }
 0x1fc   : > { %v5725_v11 = vpop.permute.xlu1 %5724  ;;  %v14922_v1 = vpop.permute.xlu0 %4403 }
 0x1fd   : > { %19852 = vst [vmem:[#allocation132_spill] sm:$0xff] %v14912_v61  ;;  %19853 = vst [vmem:[#allocation133_spill] sm:$0xff] %v14922_v1  ;;  %v14925_v13 = vrot.slane %v6301_v9, %v13950_v58  ;;  %v14932_v39 = vmul.f32 %v14309_v63, %v5725_v11 }
 0x1ff   : > { %19854 = vst [vmem:[#allocation134_spill] sm:$0xff] %v14925_v13 }
 0x226   : > { %v14589_v62 = vpop.f32.mrb[0].mxu1 }
 0x227   : > { %v14597_v17 = vpop.f32.mrb[1].mxu1 }
 0x22a   : > { %v14626_v55 = vpop.f32.mrb[2].mxu1 }
 0x22b   : > { %v14637_v18 = vpop.f32.mrb[3].mxu1 }
 0x22e   : > { %v14666_v59 = vpop.f32.mrb[4].mxu1 }
 0x22f   : > { %v14674_v10 = vpop.f32.mrb[5].mxu1 }
 0x232   : > { %v14702_v53 = vpop.f32.mrb[6].mxu1 }
 0x233   : > { %v14714_v22 = vpop.f32.mrb[7].mxu1 }
 0x236   : > { %v14740_v6 = vpop.f32.mrb[8].mxu1 }
 0x237   : > { %v14748_v14 = vpop.f32.mrb[9].mxu1 }
 0x23a   : > { %v14776_v42 = vpop.f32.mrb[10].mxu1 }
 0x23b   : > { %v14788_v7 = vpop.f32.mrb[11].mxu1 }
 0x23e   : > { %v14812_v21 = vpop.f32.mrb[12].mxu1 }
 0x23f   : > { %v14822_v34 = vpop.f32.mrb[13].mxu1 }
 0x242   : > { %v14846_v38 = vpop.f32.mrb[14].mxu1 }
 0x243   : > { %v14856_v54 = vpop.f32.mrb[15].mxu1 }
 0x246   : > { %v14886_v30 = vpop.f32.mrb[16].mxu1 }
 0x247   : > { %19849 = vst [vmem:[#allocation129_spill] sm:$0xff] %v14886_v30  ;;  %v14894_v40 = vpop.f32.mrb[17].mxu1 }
 0x248   : > { %19850 = vst [vmem:[#allocation130_spill] sm:$0xff] %v14894_v40 }
 0x24b   : > { %v11654_v15 = vpop.f32.mrb[0].mxu0 }
 0x24c   : > { %v12010_v52 = vadd.f32 %v11654_v15, %v14589_v62  ;;  %v3010_v33 = vpop.f32.mrb[1].mxu0 }
 0x24d   : > { %v12011_v31 = vadd.f32 %v3010_v33, %v14597_v17 }
 0x24e   : > { %v3278_v9 = vcombine.high %v12010_v52, %v12010_v52  ;;  %v3285_v62 = vrot.slane %v12010_v52, %v13950_v58 }
 0x24f   : > { %v3261_v63 = vcombine.high %v12011_v31, %v12011_v31  ;;  %v3268_v11 = vrot.slane %v12011_v31, %v13950_v58  ;;  %v11657_v61 = vpop.f32.mrb[2].mxu0 }
 0x250   : > { %v3292_v17 = vrot.slane %v3278_v9, %v13950_v58  ;;  %v3293_v33 = vcombine.high %v3285_v62, %v3285_v62  ;;  %v5437_v12 = vmul.f32 %v19855_v20, %v3285_v62  ;;  %v12012_v1 = vadd.f32 %v11657_v61, %v14626_v55  ;;  %v3020_v52 = vpop.f32.mrb[3].mxu0 }
 0x251   : > { %v3275_v51 = vrot.slane %v3261_v63, %v13950_v58  ;;  %v3276_v15 = vcombine.high %v3268_v11, %v3268_v11  ;;  %v5433_v13 = vmul.f32 %v19856_v28, %v3268_v11  ;;  %v14968_v31 = vadd.f32 %v3020_v52, %v14637_v18 }
 0x252   : > { %v3294_v49 = vcombine.high %v3292_v17, %v3292_v17  ;;  %v19857_v9 = vrot.slane %v13844_v57, %v14208_v44  ;;  %v19858_v20 = vrot.slane %v13844_v57, %v14221_v0  ;;  %v14977_v61 = vadd.f32 %v14410_v19, %v5437_v12 }
 0x253   : > { %v3277_v63 = vcombine.high %v3275_v51, %v3275_v51  ;;  %v19860_v62 = vrot.slane %v13830_v26, %v14208_v44  ;;  %v19861_v18 = vrot.slane %v13830_v26, %v14221_v0  ;;  %v14986_v52 = vadd.f32 %v14394_v56, %v5433_v13 }
 0x254   : > { %v5438_v16 = vmul.f32 %v19857_v9, %v3293_v33  ;;  %v5439_v55 = vmul.f32 %v19858_v20, %v3292_v17  ;;  %19859 = vst [vmem:[#allocation135_spill] sm:$0xff] %v14977_v61  ;;  %v14988_v33 = vpop.f32.mrb[4].mxu0  ;;  %v19863_v17 = vrot.slane %v13844_v57, %v14224_v4  ;;  %v19864_v12 = vcombine.high %v14410_v19, %v14410_v19 }
 0x255   : > { %v5434_v28 = vmul.f32 %v19860_v62, %v3276_v15  ;;  %v5435_v11 = vmul.f32 %v19861_v18, %v3275_v51  ;;  %19862 = vst [vmem:[#allocation136_spill] sm:$0xff] %v14986_v52  ;;  %v7337_v51 = vmul.f32 %v14977_v61, %v14977_v61  ;;  %v15003_v62 = vpop.f32.mrb[5].mxu0  ;;  %v19867_v13 = vrot.slane %v13830_v26, %v14224_v4 }
 0x256   : > { %v5440_v9 = vmul.f32 %v19863_v17, %v3294_v49  ;;  %v14996_v20 = vadd.f32 %v19864_v12, %v5438_v16  ;;  %v14999_v15 = vadd.f32 %v14426_v37, %v5439_v55  ;;  %v19868_v57 = vcombine.high %v14394_v56, %v14394_v56 }
 0x257   : > { %v5436_v18 = vmul.f32 %v19867_v13, %v3277_v63  ;;  %v15014_v19 = vadd.f32 %v14401_v8, %v5435_v11  ;;  %v7333_v16 = vmul.f32 %v14986_v52, %v14986_v52  ;;  %v19871_v55 = vcombine.high %v14426_v37, %v14426_v37  ;;  %v15040_v13 = vpop.f32.mrb[6].mxu0 }
 0x258   : > { %19865 = vst [vmem:[#allocation137_spill] sm:$0xff] %v14996_v20  ;;  %19866 = vst [vmem:[#allocation138_spill] sm:$0xff] %v14999_v15  ;;  %v15011_v49 = vadd.f32 %v19868_v57, %v5434_v28  ;;  %v6736_v26 = vcombine.low %v14977_v61, %v14996_v20  ;;  %v7338_v63 = vmul.f32 %v14996_v20, %v14996_v20 }
 0x259   : > { %19870 = vst [vmem:[#allocation140_spill] sm:$0xff] %v15014_v19  ;;  %v15021_v17 = vadd.f32 %v19871_v55, %v5440_v9  ;;  %v7339_v56 = vmul.f32 %v14999_v15, %v14999_v15  ;;  %v19873_v28 = vcombine.high %v14401_v8, %v14401_v8  ;;  %v7335_v9 = vmul.f32 %v15014_v19, %v15014_v19 }
 0x25a   : > { %19869 = vst [vmem:[#allocation139_spill] sm:$0xff] %v15011_v49  ;;  %v6719_v12 = vcombine.low %v14986_v52, %v15011_v49  ;;  %v7334_v37 = vmul.f32 %v15011_v49, %v15011_v49  ;;  %v6744_v55 = vrot.slane %v6736_v26, %v13950_v58  ;;  %v3312_v47 = vcombine.high %v12012_v1, %v12012_v1 }
 0x25b   : > { %19872 = vst [vmem:[#allocation141_spill] sm:$0xff] %v15021_v17  ;;  %v15032_v11 = vadd.f32 %v19873_v28, %v5436_v18  ;;  %v6737_v57 = vcombine.low %v14999_v15, %v15021_v17  ;;  %v7340_v8 = vmul.f32 %v15021_v17, %v15021_v17  ;;  %v7606_v18 = vcombine.low %v7337_v51, %v7338_v63  ;;  %v15047_v28 = vpop.f32.mrb[7].mxu0 }
 0x25c   : > { %v6727_v49 = vrot.slane %v6719_v12, %v13950_v58  ;;  %v7589_v52 = vcombine.low %v7333_v16, %v7334_v37  ;;  %v3319_v5 = vrot.slane %v12012_v1, %v13950_v58  ;;  %v3326_v16 = vrot.slane %v3312_v47, %v13950_v58 }
 0x25d   : > { %19874 = vst [vmem:[#allocation142_spill] sm:$0xff] %v15032_v11  ;;  %v6720_v20 = vcombine.low %v15014_v19, %v15032_v11  ;;  %v7336_v61 = vmul.f32 %v15032_v11, %v15032_v11  ;;  %v6751_v2 = vrot.slane %v6737_v57, %v13950_v58  ;;  %v7607_v15 = vcombine.low %v7339_v56, %v7340_v8  ;;  %v15059_v19 = vpop.f32.mrb[8].mxu0 }
 0x25e   : > { %v7614_v26 = vrot.slane %v7606_v18, %v13950_v58  ;;  %v7597_v63 = vrot.slane %v7589_v52, %v13950_v58  ;;  %v3295_v56 = vcombine.high %v14968_v31, %v14968_v31  ;;  %v15065_v37 = vpop.f32.mrb[9].mxu0  ;;  %v19875_v52 = vrot.slane %v13837_v29, %v14224_v4 }
 0x25f   : > { %v6734_v17 = vrot.slane %v6720_v20, %v13950_v58  ;;  %v7590_v51 = vcombine.low %v7335_v9, %v7336_v61  ;;  %v6752_v12 = vcombine.low %v6744_v55, %v6751_v2  ;;  %v7621_v40 = vrot.slane %v7607_v15, %v13950_v58 }
 0x260   : > { %v3327_v61 = vcombine.high %v3319_v5, %v3319_v5  ;;  %v5444_v1 = vmul.f32 %v19875_v52, %v3319_v5  ;;  %v3328_v8 = vcombine.high %v3326_v16, %v3326_v16  ;;  %v19876_v2 = vrot.slane %v13855_v27, %v14208_v44 }
 0x261   : > { %v6735_v57 = vcombine.low %v6727_v49, %v6734_v17  ;;  %v7604_v20 = vrot.slane %v7590_v51, %v13950_v58  ;;  %v7622_v9 = vcombine.low %v7614_v26, %v7621_v40  ;;  %v3302_v47 = vrot.slane %v14968_v31, %v13950_v58  ;;  %v15086_v40 = vpop.f32.mrb[10].mxu0 }
 0x262   : > { %v5446_v15 = vmul.f32 %v19876_v2, %v3326_v16  ;;  %v19877_v49 = vrot.slane %v13855_v27, %v14205_v43  ;;  %v19878_v51 = vcombine.high %v14433_v48, %v14433_v48  ;;  %v19880_v26 = vrot.slane %v13855_v27, %v14221_v0 }
 0x263   : > { %v15076_v55 = vadd.f32 %v6752_v12, %v6735_v57  ;;  %v7605_v18 = vcombine.low %v7597_v63, %v7604_v20  ;;  %v19881_v31 = vcombine.high %v14436_v45, %v14436_v45  ;;  %v3309_v63 = vrot.slane %v3295_v56, %v13950_v58  ;;  %v15097_v20 = vpop.f32.mrb[11].mxu0 }
 0x264   : > { %v5445_v17 = vmul.f32 %v19877_v49, %v3327_v61  ;;  %v15084_v5 = vadd.f32 %v19878_v51, %v5444_v1  ;;  %v5447_v16 = vmul.f32 %v19880_v26, %v3328_v8  ;;  %v3310_v57 = vcombine.high %v3302_v47, %v3302_v47 }
 0x265   : > { %v15094_v12 = vadd.f32 %v19881_v31, %v5446_v15  ;;  %v15099_v61 = vadd.f32 %v7622_v9, %v7605_v18  ;;  %v12014_v8 = vadd.f32 %v14988_v33, %v14666_v59  ;;  %v3311_v15 = vcombine.high %v3309_v63, %v3309_v63 }
 0x266   : > { %19879 = vst [vmem:[#allocation143_spill] sm:$0xff] %v15084_v5  ;;  %v15102_v52 = vadd.f32 %v14436_v45, %v5445_v17  ;;  %v7344_v1 = vmul.f32 %v15084_v5, %v15084_v5  ;;  %v15109_v2 = vadd.f32 %v14441_v60, %v5447_v16  ;;  %v19885_v9 = vrot.slane %v13837_v29, %v14205_v43  ;;  %v15123_v17 = vpop.f32.mrb[12].mxu0 }
 0x267   : > { %19882 = vst [vmem:[#allocation144_spill] sm:$0xff] %v15094_v12  ;;  %v7346_v56 = vmul.f32 %v15094_v12, %v15094_v12  ;;  %v19886_v59 = vrot.slane %v13837_v29, %v14208_v44  ;;  %v3345_v49 = vcombine.high %v12014_v8, %v12014_v8  ;;  %v19887_v51 = vrot.slane %v13837_v29, %v14221_v0 }
 0x268   : > { %19883 = vst [vmem:[#allocation145_spill] sm:$0xff] %v15102_v52  ;;  %19884 = vst [vmem:[#allocation146_spill] sm:$0xff] %v15109_v2  ;;  %v5441_v47 = vmul.f32 %v19885_v9, %v3310_v57  ;;  %v6770_v45 = vcombine.low %v15102_v52, %v15094_v12  ;;  %v7345_v18 = vmul.f32 %v15102_v52, %v15102_v52  ;;  %v15134_v9 = vpop.f32.mrb[13].mxu0 }
 0x269   : > { %v5442_v33 = vmul.f32 %v19886_v59, %v3309_v63  ;;  %v5443_v26 = vmul.f32 %v19887_v51, %v3311_v15  ;;  %v3352_v31 = vrot.slane %v12014_v8, %v13950_v58  ;;  %v12015_v57 = vadd.f32 %v15003_v62, %v14674_v10 }
 0x26a   : > { %v15129_v16 = vadd.f32 %v14413_v3, %v5441_v47  ;;  %v15137_v12 = vrot.slane %v6770_v45, %v13950_v58  ;;  %v7640_v63 = vcombine.low %v7345_v18, %v7346_v56  ;;  %v19889_v59 = vcombine.high %v14413_v3, %v14413_v3 }
 0x26b   : > { %v3359_v29 = vrot.slane %v3345_v49, %v13950_v58  ;;  %v15146_v15 = vadd.f32 %v14433_v48, %v5443_v26  ;;  %v3360_v10 = vcombine.high %v3352_v31, %v3352_v31  ;;  %v19892_v62 = vrot.slane %v13862_v46, %v14221_v0  ;;  %v15160_v48 = vpop.f32.mrb[14].mxu0 }
 0x26c   : > { %19888 = vst [vmem:[#allocation147_spill] sm:$0xff] %v15129_v16  ;;  %v15142_v52 = vadd.f32 %v19889_v59, %v5442_v33  ;;  %v7341_v8 = vmul.f32 %v15129_v16, %v15129_v16  ;;  %v15154_v56 = vrot.slane %v7640_v63, %v13950_v58  ;;  %v19893_v51 = vrot.slane %v13862_v46, %v14224_v4  ;;  %v15172_v59 = vpop.f32.mrb[15].mxu0 }
 0x26d   : > { %19891 = vst [vmem:[#allocation149_spill] sm:$0xff] %v15146_v15  ;;  %v5451_v47 = vmul.f32 %v19892_v62, %v3352_v31  ;;  %v3361_v18 = vcombine.high %v3359_v29, %v3359_v29  ;;  %v6754_v33 = vcombine.low %v15146_v15, %v15084_v5  ;;  %v7343_v49 = vmul.f32 %v15146_v15, %v15146_v15 }
 0x26e   : > { %19890 = vst [vmem:[#allocation148_spill] sm:$0xff] %v15142_v52  ;;  %v6753_v3 = vcombine.low %v15129_v16, %v15142_v52  ;;  %v7342_v45 = vmul.f32 %v15142_v52, %v15142_v52  ;;  %v5452_v26 = vmul.f32 %v19893_v51, %v3360_v10  ;;  %v19894_v31 = vrot.slane %v13874_v24, %v14205_v43 }
 0x26f   : > { %v19895_v11 = vrot.slane %v13874_v24, %v14208_v44  ;;  %v15179_v16 = vadd.f32 %v14447_v32, %v5451_v47  ;;  %v6768_v15 = vrot.slane %v6754_v33, %v13950_v58  ;;  %v7624_v30 = vcombine.low %v7343_v49, %v7344_v1  ;;  %v15198_v1 = vpop.f32.mrb[16].mxu0 }
 0x270   : > { %v5453_v63 = vmul.f32 %v19894_v31, %v3359_v29  ;;  %v6761_v62 = vrot.slane %v6753_v3, %v13950_v58  ;;  %v7623_v52 = vcombine.low %v7341_v8, %v7342_v45  ;;  %v19897_v10 = vcombine.high %v14447_v32, %v14447_v32  ;;  %v15205_v49 = vpop.f32.mrb[17].mxu0 }
 0x271   : > { %v5454_v5 = vmul.f32 %v19895_v11, %v3361_v18  ;;  %19896 = vst [vmem:[#allocation150_spill] sm:$0xff] %v15179_v16  ;;  %v19900_v3 = vcombine.high %v14458_v35, %v14458_v35  ;;  %v7351_v47 = vmul.f32 %v15179_v16, %v15179_v16  ;;  %v3329_v45 = vcombine.high %v12015_v57, %v12015_v57 }
 0x272   : > { %v15185_v51 = vadd.f32 %v19897_v10, %v5452_v26  ;;  %v15188_v29 = vadd.f32 %v14458_v35, %v5453_v63  ;;  %v7631_v8 = vrot.slane %v7623_v52, %v13950_v58  ;;  %v6769_v18 = vcombine.low %v6761_v62, %v6768_v15  ;;  %v15218_v10 = vpop.f32.mrb[18].mxu1 }
 0x273   : > { %v15194_v11 = vadd.f32 %v19900_v3, %v5454_v5  ;;  %v7638_v32 = vrot.slane %v7624_v30, %v13950_v58  ;;  %v3336_v15 = vrot.slane %v12015_v57, %v13950_v58  ;;  %v15227_v57 = vpop.f32.mrb[18].mxu0 }
 0x274   : > { %19898 = vst [vmem:[#allocation151_spill] sm:$0xff] %v15185_v51  ;;  %19899 = vst [vmem:[#allocation152_spill] sm:$0xff] %v15188_v29  ;;  %v6788_v33 = vcombine.low %v15179_v16, %v15185_v51  ;;  %v7352_v52 = vmul.f32 %v15185_v51, %v15185_v51  ;;  %v7353_v5 = vmul.f32 %v15188_v29, %v15188_v29 }
 0x275   : > { %19901 = vst [vmem:[#allocation153_spill] sm:$0xff] %v15194_v11  ;;  %v6804_v35 = vcombine.low %v15188_v29, %v15194_v11  ;;  %v7354_v26 = vmul.f32 %v15194_v11, %v15194_v11  ;;  %v7296_v30 = vadd.f32 %v15076_v55, %v6769_v18  ;;  %v7639_v31 = vcombine.low %v7631_v8, %v7638_v32  ;;  %v15229_v55 = vpop.f32.mrb[19].mxu1 }
 0x276   : > { %v15216_v63 = vrot.slane %v6788_v33, %v13950_v58  ;;  %v7658_v62 = vcombine.low %v7351_v47, %v7352_v52  ;;  %v3343_v29 = vrot.slane %v3329_v45, %v13950_v58  ;;  %v19902_v11 = vrot.slane %v13855_v27, %v14224_v4  ;;  %v15239_v45 = vpop.f32.mrb[19].mxu0 }
 0x277   : > { %v15221_v3 = vrot.slane %v6804_v35, %v13950_v58  ;;  %v7674_v51 = vcombine.low %v7353_v5, %v7354_v26  ;;  %v8166_v8 = vadd.f32 %v15099_v61, %v7639_v31  ;;  %v7347_v18 = vmul.f32 %v15109_v2, %v15109_v2 }
 0x278   : > { %v5448_v16 = vmul.f32 %v19902_v11, %v3336_v15  ;;  %v15233_v47 = vrot.slane %v7658_v62, %v13950_v58  ;;  %v12016_v32 = vadd.f32 %v15040_v13, %v14702_v53  ;;  %v3344_v11 = vcombine.high %v3343_v29, %v3343_v29  ;;  %v15269_v62 = vpop.f32.mrb[20].mxu0 }
 0x279   : > { %v15242_v27 = vrot.slane %v7674_v51, %v13950_v58  ;;  %v19903_v33 = vrot.slane %v13862_v46, %v14205_v43  ;;  %v19904_v61 = vcombine.high %v14441_v60, %v14441_v60  ;;  %v12017_v53 = vadd.f32 %v15047_v28, %v14714_v22  ;;  %v15257_v51 = vpop.f32.mrb[20].mxu1  ;;  %19908 = vst [vmem:[#allocation156_spill] sm:$0xff] %v15269_v62 }
 0x27a   : > { %v3379_v5 = vcombine.high %v12016_v32, %v12016_v32  ;;  %v3386_v26 = vrot.slane %v12016_v32, %v13950_v58  ;;  %v12018_v13 = vadd.f32 %v15059_v19, %v14740_v6  ;;  %v19906_v15 = vrot.slane %v13862_v46, %v14208_v44  ;;  %v15271_v22 = vpop.f32.mrb[21].mxu1 }
 0x27b   : > { %v5449_v52 = vmul.f32 %v19903_v33, %v3343_v29  ;;  %v15250_v35 = vadd.f32 %v19904_v61, %v5448_v16  ;;  %19909 = vst [vmem:[#allocation157_spill] sm:$0xff] %v15271_v22  ;;  %v19910_v46 = vrot.slane %v13881_v36, %v14208_v44  ;;  %v3362_v32 = vcombine.high %v12017_v53, %v12017_v53 }
 0x27c   : > { %v5450_v29 = vmul.f32 %v19906_v15, %v3344_v11  ;;  %v3393_v6 = vrot.slane %v3379_v5, %v13950_v58  ;;  %v3394_v19 = vcombine.high %v3386_v26, %v3386_v26  ;;  %v15277_v11 = vpop.f32.mrb[21].mxu0  ;;  %v19912_v33 = vcombine.high %v14444_v41, %v14444_v41 }
 0x27d   : > { %19905 = vst [vmem:[#allocation154_spill] sm:$0xff] %v15250_v35  ;;  %v15263_v31 = vadd.f32 %v14444_v41, %v5449_v52  ;;  %v6771_v60 = vcombine.low %v15109_v2, %v15250_v35  ;;  %v7348_v16 = vmul.f32 %v15250_v35, %v15250_v35  ;;  %v5458_v28 = vmul.f32 %v19910_v46, %v3386_v26 }
 0x27e   : > { %19911 = vst [vmem:[#allocation158_spill] sm:$0xff] %v15277_v11  ;;  %v15282_v52 = vadd.f32 %v19912_v33, %v5450_v29  ;;  %v3395_v5 = vcombine.high %v3393_v6, %v3393_v6  ;;  %v19914_v2 = vrot.slane %v13881_v36, %v14221_v0  ;;  %v19915_v26 = vrot.slane %v13881_v36, %v14224_v4  ;;  %v15298_v33 = vpop.f32.mrb[22].mxu1  ;;  %v19923_v11 = vld [vmem:[#allocation78_spill] sm:$0xff] }
 0x27f   : > { %19907 = vst [vmem:[#allocation155_spill] sm:$0xff] %v15263_v31  ;;  %v6785_v61 = vrot.slane %v6771_v60, %v13950_v58  ;;  %v7349_v15 = vmul.f32 %v15263_v31, %v15263_v31  ;;  %v7641_v35 = vcombine.low %v7347_v18, %v7348_v16  ;;  %v19916_v41 = vcombine.high %v14461_v25, %v14461_v25 }
 0x280   : > { %19913 = vst [vmem:[#allocation159_spill] sm:$0xff] %v15282_v52  ;;  %v5459_v22 = vmul.f32 %v19914_v2, %v3394_v19  ;;  %v5460_v46 = vmul.f32 %v19915_v26, %v3393_v6  ;;  %19918 = vst [vmem:[#allocation161_spill] sm:$0xff] %v15298_v33  ;;  %v6787_v18 = vcombine.low %v15263_v31, %v15282_v52  ;;  %v15306_v19 = vpop.f32.mrb[22].mxu0  ;;  %v15308_v6 = vpop.f32.mrb[23].mxu1  ;;  %v19921_v26 = vld [vmem:[#allocation21_spill] sm:$0xff] }
 0x281   : > { %v15296_v29 = vadd.f32 %v19916_v41, %v5458_v28  ;;  %v6786_v60 = vcombine.low %v15137_v12, %v6785_v61  ;;  %v7350_v16 = vmul.f32 %v15282_v52, %v15282_v52  ;;  %v7655_v2 = vrot.slane %v7641_v35, %v13950_v58  ;;  %19919 = vst [vmem:[#allocation162_spill] sm:$0xff] %v15306_v19  ;;  %v15325_v35 = vpop.f32.mrb[23].mxu0  ;;  %v15338_v62 = vpop.f32.mrb[24].mxu1 }
 0x282   : > { %19920 = vst [vmem:[#allocation163_spill] sm:$0xff] %v15308_v6  ;;  %v19922_v28 = vrot.slane %v19921_v26, %v14205_v43  ;;  %v15314_v33 = vadd.f32 %v19923_v11, %v5459_v22  ;;  %v19925_v12 = vcombine.high %v19923_v11, %v19923_v11  ;;  %19927 = vst [vmem:[#allocation164_spill] sm:$0xff] %v15325_v35 }
 0x283   : > { %19917 = vst [vmem:[#allocation160_spill] sm:$0xff] %v15296_v29  ;;  %v15323_v52 = vmul.f32 %v15296_v29, %v15296_v29  ;;  %v6795_v31 = vrot.slane %v6787_v18, %v13950_v58  ;;  %v7297_v6 = vadd.f32 %v7296_v30, %v6786_v60  ;;  %v7656_v19 = vcombine.low %v15154_v56, %v7655_v2  ;;  %v15343_v60 = vpop.f32.mrb[24].mxu0 }
 0x284   : > { %v5461_v41 = vmul.f32 %v19922_v28, %v3395_v5  ;;  %19924 = vst [vmem:[#allocation21_spill] sm:$0xff] %v15314_v33  ;;  %v15319_v61 = vadd.f32 %v19925_v12, %v5460_v46  ;;  %v7657_v5 = vcombine.low %v7349_v15, %v7350_v16  ;;  %v19928_v28 = vld [vmem:[#allocation79_spill] sm:$0xff]  ;;  %v7359_v46 = vmul.f32 %v15314_v33, %v15314_v33  ;;  %v15345_v16 = vpop.f32.mrb[25].mxu1  ;;  %v15351_v35 = vpop.f32.mrb[25].mxu0 }
 0x285   : > { %v6803_v18 = vcombine.low %v6795_v31, %v15216_v63  ;;  %v8167_v56 = vadd.f32 %v8166_v8, %v7656_v19  ;;  %v3369_v15 = vrot.slane %v12017_v53, %v13950_v58  ;;  %19930 = vst [vmem:[#allocation165_spill] sm:$0xff] %v15343_v60  ;;  %19931 = vst [vmem:[#allocation166_spill] sm:$0xff] %v15345_v16 }
 0x286   : > { %19926 = vst [vmem:[#allocation78_spill] sm:$0xff] %v15319_v61  ;;  %v15330_v22 = vadd.f32 %v19928_v28, %v5461_v41  ;;  %v6822_v11 = vcombine.low %v15314_v33, %v15319_v61  ;;  %v7360_v12 = vmul.f32 %v15319_v61, %v15319_v61  ;;  %v7665_v30 = vrot.slane %v7657_v5, %v13950_v58 }
 0x287   : > { %v3376_v33 = vrot.slane %v3362_v32, %v13950_v58  ;;  %v3412_v61 = vcombine.high %v12018_v13, %v12018_v13  ;;  %19932 = vst [vmem:[#allocation167_spill] sm:$0xff] %v15351_v35  ;;  %v3377_v31 = vcombine.high %v3369_v15, %v3369_v15  ;;  %v19933_v8 = vrot.slane %v13874_v24, %v14221_v0  ;;  %v15362_v32 = vpop.f32.mrb[26].mxu1 }
 0x288   : > { %19929 = vst [vmem:[#allocation79_spill] sm:$0xff] %v15330_v22  ;;  %v15348_v2 = vrot.slane %v6822_v11, %v13950_v58  ;;  %v7692_v41 = vcombine.low %v7359_v46, %v7360_v12  ;;  %v7673_v63 = vcombine.low %v7665_v30, %v15233_v47  ;;  %v7298_v19 = vadd.f32 %v7297_v6, %v6803_v18  ;;  %v19935_v30 = vld [vmem:[#allocation77_spill] sm:$0xff]  ;;  %v15372_v18 = vpop.f32.mrb[26].mxu0 }
 0x289   : > { %v5455_v53 = vmul.f32 %v19933_v8, %v3369_v15  ;;  %v3378_v16 = vcombine.high %v3376_v33, %v3376_v33  ;;  %v3419_v11 = vrot.slane %v12018_v13, %v13950_v58  ;;  %v3426_v46 = vrot.slane %v3412_v61, %v13950_v58  ;;  %v15374_v33 = vpop.f32.mrb[27].mxu1  ;;  %v19938_v8 = vld [vmem:[#allocation22_spill] sm:$0xff] }
 0x28a   : > { %v15358_v5 = vrot.slane %v7692_v41, %v13950_v58  ;;  %v19934_v12 = vrot.slane %v13874_v24, %v14224_v4  ;;  %v8168_v60 = vadd.f32 %v8167_v56, %v7673_v63  ;;  %v12019_v6 = vadd.f32 %v15065_v37, %v14748_v14 }
 0x28b   : > { %v15368_v35 = vadd.f32 %v19935_v30, %v5455_v53  ;;  %v19937_v13 = vrot.slane %v13881_v36, %v14205_v43  ;;  %v3427_v15 = vcombine.high %v3419_v11, %v3419_v11  ;;  %v3428_v41 = vcombine.high %v3426_v46, %v3426_v46  ;;  %v15382_v53 = vpop.f32.mrb[27].mxu0 }
 0x28c   : > { %v5456_v47 = vmul.f32 %v19934_v12, %v3377_v31  ;;  %v19939_v24 = vrot.slane %v19938_v8, %v14205_v43  ;;  %v19940_v56 = vcombine.high %v19935_v30, %v19935_v30  ;;  %v19942_v36 = vrot.slane %v19938_v8, %v14221_v0 }
 0x28d   : > { %19936 = vst [vmem:[#allocation77_spill] sm:$0xff] %v15368_v35  ;;  %v5457_v61 = vmul.f32 %v19937_v13, %v3378_v16  ;;  %v7355_v37 = vmul.f32 %v15368_v35, %v15368_v35  ;;  %v3396_v63 = vcombine.high %v12019_v6, %v12019_v6  ;;  %v19945_v30 = vrot.slane %v19938_v8, %v14224_v4 }
 0x28e   : > { %v5465_v31 = vmul.f32 %v19939_v24, %v3419_v11  ;;  %v15387_v14 = vadd.f32 %v19940_v56, %v5456_v47  ;;  %v5467_v16 = vmul.f32 %v19942_v36, %v3426_v46  ;;  %v19944_v11 = vrot.slane %v19938_v8, %v14208_v44  ;;  %v19947_v36 = vld [vmem:[#allocation81_spill] sm:$0xff] }
 0x28f   : > { %v15395_v12 = vadd.f32 %v14461_v25, %v5457_v61  ;;  %v5468_v47 = vmul.f32 %v19945_v30, %v3428_v41  ;;  %v3403_v61 = vrot.slane %v12019_v6, %v13950_v58  ;;  %v19949_v8 = vcombine.high %v14502_v23, %v14502_v23 }
 0x290   : > { %19941 = vst [vmem:[#allocation22_spill] sm:$0xff] %v15387_v14  ;;  %v5466_v13 = vmul.f32 %v19944_v11, %v3427_v15  ;;  %v15404_v24 = vadd.f32 %v14502_v23, %v5465_v31  ;;  %v6805_v56 = vcombine.low %v15368_v35, %v15387_v14  ;;  %v7356_v46 = vmul.f32 %v15387_v14, %v15387_v14  ;;  %v15435_v35 = vpop.f32.mrb[28].mxu0 }
 0x291   : > { %19943 = vst [vmem:[#allocation168_spill] sm:$0xff] %v15395_v12  ;;  %v15411_v25 = vadd.f32 %v19947_v36, %v5467_v16  ;;  %v6821_v15 = vcombine.low %v15395_v12, %v15296_v29  ;;  %v7357_v41 = vmul.f32 %v15395_v12, %v15395_v12  ;;  %v19951_v11 = vcombine.high %v19947_v36, %v19947_v36  ;;  %v15433_v12 = vpop.f32.mrb[28].mxu1 }
 0x292   : > { %19946 = vst [vmem:[#allocation169_spill] sm:$0xff] %v15404_v24  ;;  %v15421_v31 = vadd.f32 %v19949_v8, %v5466_v13  ;;  %v6819_v16 = vrot.slane %v6805_v56, %v13950_v58  ;;  %v7675_v14 = vcombine.low %v7355_v37, %v7356_v46  ;;  %v7365_v6 = vmul.f32 %v15404_v24, %v15404_v24  ;;  %v15443_v56 = vpop.f32.mrb[29].mxu1  ;;  %v15445_v46 = vpop.f32.mrb[29].mxu0 }
 0x293   : > { %19948 = vst [vmem:[#allocation81_spill] sm:$0xff] %v15411_v25  ;;  %v15426_v30 = vadd.f32 %v19951_v11, %v5468_v47  ;;  %v7367_v29 = vmul.f32 %v15411_v25, %v15411_v25  ;;  %v6829_v23 = vrot.slane %v6821_v15, %v13950_v58  ;;  %v7691_v13 = vcombine.low %v7357_v41, %v15323_v52 }
 0x294   : > { %19950 = vst [vmem:[#allocation170_spill] sm:$0xff] %v15421_v31  ;;  %v6855_v47 = vcombine.low %v15404_v24, %v15421_v31  ;;  %19953 = vst [vmem:[#allocation172_spill] sm:$0xff] %v15445_v46  ;;  %v6820_v36 = vcombine.low %v15221_v3, %v6819_v16  ;;  %v7689_v8 = vrot.slane %v7675_v14, %v13950_v58 }
 0x295   : > { %19952 = vst [vmem:[#allocation171_spill] sm:$0xff] %v15426_v30  ;;  %v6856_v37 = vcombine.low %v15411_v25, %v15426_v30  ;;  %v7366_v11 = vmul.f32 %v15421_v31, %v15421_v31  ;;  %v7368_v52 = vmul.f32 %v15426_v30, %v15426_v30  ;;  %v6837_v15 = vcombine.low %v6829_v23, %v15348_v2  ;;  %v19966_v30 = vld [vmem:[#allocation11_spill] sm:$0xff] }
 0x296   : > { %v7699_v41 = vrot.slane %v7691_v13, %v13950_v58  ;;  %v15456_v25 = vrot.slane %v6855_v47, %v13950_v58  ;;  %v7299_v46 = vadd.f32 %v7298_v19, %v6820_v36  ;;  %v7690_v3 = vcombine.low %v15242_v27, %v7689_v8 }
 0x297   : > { %v15459_v24 = vrot.slane %v6856_v37, %v13950_v58  ;;  %v7725_v14 = vcombine.low %v7365_v6, %v7366_v11  ;;  %v7726_v16 = vcombine.low %v7367_v29, %v7368_v52  ;;  %v15464_v31 = vrot.slane %v14932_v39, %v13950_v58 }
 0x298   : > { %v19955_v2 = vcombine.high %v14932_v39, %v14932_v39  ;;  %v3410_v13 = vrot.slane %v3396_v63, %v13950_v58  ;;  %v3411_v47 = vcombine.high %v3403_v61, %v3403_v61  ;;  %v7707_v37 = vcombine.low %v7699_v41, %v15358_v5 }
 0x299   : > { %19954 = vst [vmem:[#allocation173_spill] sm:$0xff] %v15464_v31  ;;  %v8169_v19 = vadd.f32 %v8168_v60, %v7690_v3  ;;  %v19956_v29 = vrot.slane %v19921_v26, %v14208_v44  ;;  %v15480_v36 = vrot.slane %v7725_v14, %v13950_v58  ;;  %v15483_v39 = vrot.slane %v7726_v16, %v13950_v58  ;;  %v15500_v14 = vpop.f32.mrb[30].mxu1  ;;  %v15502_v16 = vpop.f32.mrb[30].mxu0 }
 0x29a   : > { %v15470_v23 = vrot.slane %v19955_v2, %v13950_v58  ;;  %v19957_v63 = vrot.slane %v19921_v26, %v14221_v0  ;;  %v19958_v60 = vrot.slane %v19921_v26, %v14224_v4  ;;  %v19959_v11 = vcombine.high %v19928_v28, %v19928_v28  ;;  %19961 = vst [vmem:[#allocation175_spill] sm:$0xff] %v15502_v16  ;;  %v19962_v2 = vld [vmem:[#allocation80_spill] sm:$0xff]  ;;  %v15566_v16 = vpop.f32.mrb[31].mxu0 }
 0x29b   : > { %v5462_v6 = vmul.f32 %v19956_v29, %v3403_v61  ;;  %v7300_v61 = vadd.f32 %v7299_v46, %v6837_v15  ;;  %v7361_v41 = vmul.f32 %v15330_v22, %v15330_v22  ;;  %v12020_v3 = vadd.f32 %v15086_v40, %v14776_v42 }
 0x29c   : > { %v5463_v8 = vmul.f32 %v19957_v63, %v3411_v47  ;;  %v5464_v5 = vmul.f32 %v19958_v60, %v3410_v13  ;;  %v19964_v26 = vcombine.high %v19962_v2, %v19962_v2  ;;  %v12021_v46 = vadd.f32 %v15097_v20, %v14788_v7 }
 0x29d   : > { %v15494_v52 = vadd.f32 %v19959_v11, %v5462_v6  ;;  %v15516_v15 = vadd.f32 %v15123_v17, %v14812_v21  ;;  %v3446_v13 = vcombine.high %v12020_v3, %v12020_v3  ;;  %v3453_v29 = vrot.slane %v12020_v3, %v13950_v58 }
 0x29e   : > { %v15505_v47 = vadd.f32 %v19962_v2, %v5463_v8  ;;  %v15510_v28 = vadd.f32 %v19964_v26, %v5464_v5  ;;  %v3429_v21 = vcombine.high %v12021_v46, %v12021_v46  ;;  %v3436_v3 = vrot.slane %v12021_v46, %v13950_v58 }
 0x29f   : > { %19960 = vst [vmem:[#allocation174_spill] sm:$0xff] %v15494_v52  ;;  %v6838_v42 = vcombine.low %v15330_v22, %v15494_v52  ;;  %v7362_v40 = vmul.f32 %v15494_v52, %v15494_v52  ;;  %v3460_v8 = vrot.slane %v3446_v13, %v13950_v58  ;;  %v3461_v60 = vcombine.high %v3453_v29, %v3453_v29 }
 0x2a0   : > { %19963 = vst [vmem:[#allocation80_spill] sm:$0xff] %v15505_v47  ;;  %19965 = vst [vmem:[#allocation176_spill] sm:$0xff] %v15510_v28  ;;  %v6839_v6 = vcombine.low %v15505_v47, %v15510_v28  ;;  %v7363_v63 = vmul.f32 %v15505_v47, %v15505_v47  ;;  %v7364_v7 = vmul.f32 %v15510_v28, %v15510_v28 }
 0x2a1   : > { %v6846_v20 = vrot.slane %v6838_v42, %v13950_v58  ;;  %v7708_v17 = vcombine.low %v7361_v41, %v7362_v40  ;;  %v3443_v2 = vrot.slane %v3429_v21, %v13950_v58  ;;  %v3462_v27 = vcombine.high %v3460_v8, %v3460_v8  ;;  %v19970_v21 = vld [vmem:[#allocation83_spill] sm:$0xff] }
 0x2a2   : > { %v6853_v5 = vrot.slane %v6839_v6, %v13950_v58  ;;  %v7709_v11 = vcombine.low %v7363_v63, %v7364_v7  ;;  %v19967_v28 = vrot.slane %v19966_v30, %v14205_v43  ;;  %v19968_v41 = vrot.slane %v19966_v30, %v14208_v44  ;;  %v15542_v63 = vpop.permute.xlu1 %4407 }
 0x2a3   : > { %v7716_v26 = vrot.slane %v7708_v17, %v13950_v58  ;;  %v3444_v29 = vcombine.high %v3436_v3, %v3436_v3  ;;  %v3445_v6 = vcombine.high %v3443_v2, %v3443_v2  ;;  %v19969_v46 = vrot.slane %v19966_v30, %v14221_v0 }
 0x2a4   : > { %v5473_v47 = vmul.f32 %v19967_v28, %v3461_v60  ;;  %v5474_v42 = vmul.f32 %v19968_v41, %v3460_v8  ;;  %v6854_v40 = vcombine.low %v6846_v20, %v6853_v5  ;;  %v7723_v13 = vrot.slane %v7709_v11, %v13950_v58  ;;  %v19974_v8 = vld [vmem:[#allocation23_spill] sm:$0xff] }
 0x2a5   : > { %v5475_v7 = vmul.f32 %v19969_v46, %v3462_v27  ;;  %v19972_v28 = vcombine.high %v19970_v21, %v19970_v21  ;;  %v19975_v20 = vrot.slane %v19974_v8, %v14205_v43  ;;  %v8170_v41 = vadd.f32 %v8169_v19, %v7707_v37  ;;  %v15564_v46 = vpop.f32.mrb[31].mxu1  ;;  %v19985_v19 = vld [vmem:[#allocation84_spill] sm:$0xff] }
 0x2a6   : > { %v15548_v17 = vadd.f32 %v19970_v21, %v5473_v47  ;;  %v7724_v11 = vcombine.low %v7716_v26, %v7723_v13  ;;  %v19976_v52 = vrot.slane %v19974_v8, %v14208_v44  ;;  %v19977_v27 = vrot.slane %v19974_v8, %v14221_v0  ;;  %v19979_v26 = vld [vmem:[#allocation82_spill] sm:$0xff] }
 0x2a7   : > { %v15553_v60 = vadd.f32 %v19972_v28, %v5474_v42  ;;  %v5469_v5 = vmul.f32 %v19975_v20, %v3436_v3  ;;  %v7301_v42 = vadd.f32 %v7300_v61, %v6854_v40  ;;  %v19981_v61 = vcombine.high %v19979_v26, %v19979_v26  ;;  %v19983_v20 = vld [vmem:[#allocation86_spill] sm:$0xff] }
 0x2a8   : > { %19971 = vst [vmem:[#allocation11_spill] sm:$0xff] %v15548_v17  ;;  %v5470_v22 = vmul.f32 %v19976_v52, %v3444_v29  ;;  %v5471_v47 = vmul.f32 %v19977_v27, %v3443_v2  ;;  %v7373_v3 = vmul.f32 %v15548_v17, %v15548_v17  ;;  %v19978_v52 = vrot.slane %v19974_v8, %v14224_v4 }
 0x2a9   : > { %19973 = vst [vmem:[#allocation83_spill] sm:$0xff] %v15553_v60  ;;  %v6889_v21 = vcombine.low %v15548_v17, %v15553_v60  ;;  %v7374_v37 = vmul.f32 %v15553_v60, %v15553_v60  ;;  %v15580_v13 = vadd.f32 %v19979_v26, %v5469_v5  ;;  %v7741_v28 = vcombine.low %v15480_v36, %v15483_v39 }
 0x2aa   : > { %v5472_v2 = vmul.f32 %v19978_v52, %v3445_v6  ;;  %v15585_v40 = vadd.f32 %v19981_v61, %v5470_v22  ;;  %v15592_v27 = vadd.f32 %v19983_v20, %v5475_v7  ;;  %v15595_v8 = vadd.f32 %v19985_v19, %v5471_v47 }
 0x2ab   : > { %19980 = vst [vmem:[#allocation23_spill] sm:$0xff] %v15580_v13  ;;  %v8171_v6 = vadd.f32 %v8170_v41, %v7724_v11  ;;  %v19987_v5 = vcombine.high %v19985_v19, %v19985_v19  ;;  %v15607_v36 = vrot.slane %v6889_v21, %v13950_v58  ;;  %v7759_v39 = vcombine.low %v7373_v3, %v7374_v37  ;;  %v15614_v41 = vpop.f32.mrb[32].mxu1  ;;  %v15616_v19 = vpop.f32.mrb[32].mxu0 }
 0x2ac   : > { %19982 = vst [vmem:[#allocation82_spill] sm:$0xff] %v15585_v40  ;;  %19984 = vst [vmem:[#allocation86_spill] sm:$0xff] %v15592_v27  ;;  %v6872_v22 = vcombine.low %v15580_v13, %v15585_v40  ;;  %v7370_v26 = vmul.f32 %v15585_v40, %v15585_v40  ;;  %v19989_v7 = vcombine.low %v15456_v25, %v15459_v24  ;;  %v19992_v40 = vld [vmem:[#allocation13_spill] sm:$0xff] }
 0x2ad   : > { %19986 = vst [vmem:[#allocation84_spill] sm:$0xff] %v15595_v8  ;;  %v15600_v52 = vadd.f32 %v19987_v5, %v5472_v2  ;;  %v3480_v11 = vcombine.high %v15516_v15, %v15516_v15  ;;  %v7369_v61 = vmul.f32 %v15580_v13, %v15580_v13  ;;  %v7371_v21 = vmul.f32 %v15595_v8, %v15595_v8 }
 0x2ae   : > { %v7302_v47 = vadd.f32 %v7301_v42, %v19989_v7  ;;  %v6880_v25 = vrot.slane %v6872_v22, %v13950_v58  ;;  %v3487_v42 = vrot.slane %v15516_v15, %v13950_v58  ;;  %v12023_v37 = vadd.f32 %v15134_v9, %v14822_v34 }
 0x2af   : > { %19988 = vst [vmem:[#allocation177_spill] sm:$0xff] %v15600_v52  ;;  %v6873_v2 = vcombine.low %v15595_v8, %v15600_v52  ;;  %v7372_v24 = vmul.f32 %v15600_v52, %v15600_v52  ;;  %v3494_v3 = vrot.slane %v3480_v11, %v13950_v58  ;;  %v7742_v7 = vcombine.low %v7369_v61, %v7370_v26  ;;  %v19990_v8 = vld [vmem:[#allocation12_spill] sm:$0xff] }
 0x2b0   : > { %v12024_v60 = vadd.f32 %v15160_v48, %v14846_v38  ;;  %v19991_v52 = vrot.slane %v19990_v8, %v14224_v4  ;;  %v19993_v15 = vrot.slane %v19992_v40, %v14205_v43  ;;  %v3463_v11 = vcombine.high %v12023_v37, %v12023_v37 }
 0x2b1   : > { %v6887_v5 = vrot.slane %v6873_v2, %v13950_v58  ;;  %v7743_v29 = vcombine.low %v7371_v21, %v7372_v24  ;;  %v3495_v17 = vcombine.high %v3494_v3, %v3494_v3  ;;  %v15642_v31 = vrot.slane %v7759_v39, %v13950_v58 }
 0x2b2   : > { %v5480_v22 = vmul.f32 %v19991_v52, %v3487_v42  ;;  %v5481_v13 = vmul.f32 %v19993_v15, %v3494_v3  ;;  %v8172_v9 = vadd.f32 %v8171_v6, %v7741_v28  ;;  %v3470_v26 = vrot.slane %v12023_v37, %v13950_v58 }
 0x2b3   : > { %v6888_v34 = vcombine.low %v6880_v25, %v6887_v5  ;;  %v7757_v2 = vrot.slane %v7743_v29, %v13950_v58  ;;  %v19994_v38 = vrot.slane %v19992_v40, %v14208_v44  ;;  %v19995_v52 = vcombine.high %v14551_v50, %v14551_v50  ;;  %v19998_v25 = vld [vmem:[#allocation88_spill] sm:$0xff] }
 0x2b4   : > { %v3477_v21 = vrot.slane %v3463_v11, %v13950_v58  ;;  %v7750_v39 = vrot.slane %v7742_v7, %v13950_v58  ;;  %v3478_v24 = vcombine.high %v3470_v26, %v3470_v26  ;;  %v19997_v28 = vrot.slane %v19966_v30, %v14224_v4  ;;  %v15671_v7 = vpop.f32.mrb[33].mxu0 }
 0x2b5   : > { %v5482_v48 = vmul.f32 %v19994_v38, %v3495_v17  ;;  %v15652_v61 = vadd.f32 %v19995_v52, %v5480_v22  ;;  %v7375_v29 = vmul.f32 %v15592_v27, %v15592_v27  ;;  %v15662_v42 = vadd.f32 %v19998_v25, %v5481_v13  ;;  %v15669_v22 = vpop.f32.mrb[33].mxu1 }
 0x2b6   : > { %v5476_v6 = vmul.f32 %v19997_v28, %v3470_v26  ;;  %v20000_v17 = vcombine.high %v19998_v25, %v19998_v25  ;;  %v3479_v37 = vcombine.high %v3477_v21, %v3477_v21  ;;  %v3513_v5 = vcombine.high %v12024_v60, %v12024_v60 }
 0x2b7   : > { %19996 = vst [vmem:[#allocation12_spill] sm:$0xff] %v15652_v61  ;;  %19999 = vst [vmem:[#allocation13_spill] sm:$0xff] %v15662_v42  ;;  %v7303_v15 = vadd.f32 %v7302_v47, %v6888_v34  ;;  %v20002_v30 = vrot.slane %v19990_v8, %v14205_v43  ;;  %v20003_v13 = vrot.slane %v19990_v8, %v14208_v44 }
 0x2b8   : > { %v15667_v3 = vadd.f32 %v20000_v17, %v5482_v48  ;;  %v20004_v38 = vcombine.high %v19983_v20, %v19983_v20  ;;  %v7758_v52 = vcombine.low %v7750_v39, %v7757_v2  ;;  %v7380_v28 = vmul.f32 %v15652_v61, %v15652_v61 }
 0x2b9   : > { %v5477_v11 = vmul.f32 %v20002_v30, %v3478_v24  ;;  %v5478_v26 = vmul.f32 %v20003_v13, %v3477_v21  ;;  %v20006_v47 = vrot.slane %v19990_v8, %v14221_v0  ;;  %v3520_v25 = vrot.slane %v12024_v60, %v13950_v58  ;;  %v20007_v24 = vld [vmem:[#allocation87_spill] sm:$0xff] }
 0x2ba   : > { %20001 = vst [vmem:[#allocation88_spill] sm:$0xff] %v15667_v3  ;;  %v15682_v48 = vadd.f32 %v20004_v38, %v5476_v6  ;;  %v20009_v21 = vcombine.high %v20007_v24, %v20007_v24  ;;  %v7381_v8 = vmul.f32 %v15662_v42, %v15662_v42  ;;  %v7382_v60 = vmul.f32 %v15667_v3, %v15667_v3 }
 0x2bb   : > { %v5479_v34 = vmul.f32 %v20006_v47, %v3479_v37  ;;  %v15691_v17 = vadd.f32 %v20007_v24, %v5477_v11  ;;  %v3527_v6 = vrot.slane %v3513_v5, %v13950_v58  ;;  %v8173_v38 = vadd.f32 %v8172_v9, %v7758_v52 }
 0x2bc   : > { %20005 = vst [vmem:[#allocation178_spill] sm:$0xff] %v15682_v48  ;;  %v15696_v30 = vadd.f32 %v20009_v21, %v5478_v26  ;;  %v6890_v20 = vcombine.low %v15592_v27, %v15682_v48  ;;  %v7376_v2 = vmul.f32 %v15682_v48, %v15682_v48  ;;  %v6923_v5 = vcombine.low %v15662_v42, %v15667_v3  ;;  %v15724_v48 = vpop.f32.mrb[34].mxu1 }
 0x2bd   : > { %20008 = vst [vmem:[#allocation87_spill] sm:$0xff] %v15691_v17  ;;  %v15707_v39 = vadd.f32 %v14551_v50, %v5479_v34  ;;  %v7377_v13 = vmul.f32 %v15691_v17, %v15691_v17  ;;  %v15730_v27 = vpop.f32.mrb[35].mxu1 }
 0x2be   : > { %20010 = vst [vmem:[#allocation179_spill] sm:$0xff] %v15696_v30  ;;  %v6904_v37 = vrot.slane %v6890_v20, %v13950_v58  ;;  %v6906_v11 = vcombine.low %v15691_v17, %v15696_v30  ;;  %v7378_v26 = vmul.f32 %v15696_v30, %v15696_v30  ;;  %v7760_v34 = vcombine.low %v7375_v29, %v7376_v2  ;;  %v15726_v17 = vpop.f32.mrb[34].mxu0 }
 0x2bf   : > { %20011 = vst [vmem:[#allocation180_spill] sm:$0xff] %v15707_v39  ;;  %v6907_v47 = vcombine.low %v15707_v39, %v15652_v61  ;;  %v7379_v50 = vmul.f32 %v15707_v39, %v15707_v39  ;;  %v3528_v20 = vcombine.high %v3520_v25, %v3520_v25  ;;  %20012 = vst [vmem:[#allocation181_spill] sm:$0xff] %v15726_v17  ;;  %v15732_v29 = vpop.f32.mrb[35].mxu0 }
 0x2c0   : > { %v6905_v24 = vcombine.low %v15607_v36, %v6904_v37  ;;  %v7776_v21 = vcombine.low %v7377_v13, %v7378_v26  ;;  %v7774_v52 = vrot.slane %v7760_v34, %v13950_v58  ;;  %v3529_v30 = vcombine.high %v3527_v6, %v3527_v6  ;;  %20013 = vst [vmem:[#allocation182_spill] sm:$0xff] %v15730_v27  ;;  %v20015_v36 = vld [vmem:[#allocation14_spill] sm:$0xff]  ;;  %v20018_v6 = vld [vmem:[#allocation15_spill] sm:$0xff] }
 0x2c1   : > { %v6921_v9 = vrot.slane %v6907_v47, %v13950_v58  ;;  %v7777_v61 = vcombine.low %v7379_v50, %v7380_v28  ;;  %20014 = vst [vmem:[#allocation183_spill] sm:$0xff] %v15732_v29  ;;  %v7793_v2 = vcombine.low %v7381_v8, %v7382_v60  ;;  %v6914_v3 = vrot.slane %v6906_v11, %v13950_v58  ;;  %v20020_v60 = vld [vmem:[#allocation91_spill] sm:$0xff] }
 0x2c2   : > { %v20016_v37 = vrot.slane %v20015_v36, %v14221_v0  ;;  %v20017_v26 = vrot.slane %v20015_v36, %v14224_v4  ;;  %v7304_v47 = vadd.f32 %v7303_v15, %v6905_v24  ;;  %v7784_v34 = vrot.slane %v7776_v21, %v13950_v58 }
 0x2c3   : > { %v7791_v28 = vrot.slane %v7777_v61, %v13950_v58  ;;  %v20019_v50 = vrot.slane %v20018_v6, %v14205_v43  ;;  %v6922_v8 = vcombine.low %v6914_v3, %v6921_v9  ;;  %v20021_v11 = vcombine.high %v20020_v60, %v20020_v60 }
 0x2c4   : > { %v5487_v13 = vmul.f32 %v20016_v37, %v3520_v25  ;;  %v5488_v42 = vmul.f32 %v20017_v26, %v3528_v20  ;;  %v12025_v25 = vadd.f32 %v15172_v59, %v14856_v54  ;;  %v20023_v37 = vld [vmem:[#allocation129_spill] sm:$0xff]  ;;  %v7775_v3 = vcombine.low %v15642_v31, %v7774_v52  ;;  %v20025_v20 = vld [vmem:[#allocation92_spill] sm:$0xff] }
 0x2c5   : > { %v5489_v39 = vmul.f32 %v20019_v50, %v3529_v30  ;;  %v12026_v15 = vadd.f32 %v15198_v1, %v20023_v37  ;;  %v15760_v30 = vrot.slane %v6923_v5, %v13950_v58  ;;  %v7792_v21 = vcombine.low %v7784_v34, %v7791_v28 }
 0x2c6   : > { %v15749_v29 = vadd.f32 %v20021_v11, %v5488_v42  ;;  %v15764_v42 = vrot.slane %v7793_v2, %v13950_v58  ;;  %v15767_v54 = vadd.f32 %v20020_v60, %v5487_v13  ;;  %v3496_v59 = vcombine.high %v12025_v25, %v12025_v25 }
 0x2c7   : > { %v8174_v1 = vadd.f32 %v8173_v38, %v7775_v3  ;;  %v15770_v9 = vadd.f32 %v20025_v20, %v5489_v39  ;;  %v3503_v26 = vrot.slane %v12025_v25, %v13950_v58  ;;  %v3547_v50 = vcombine.high %v12026_v15, %v12026_v15  ;;  %v20028_v39 = vld [vmem:[#allocation130_spill] sm:$0xff] }
 0x2c8   : > { %20022 = vst [vmem:[#allocation14_spill] sm:$0xff] %v15749_v29  ;;  %20024 = vst [vmem:[#allocation15_spill] sm:$0xff] %v15767_v54  ;;  %v6941_v5 = vcombine.low %v15767_v54, %v15749_v29  ;;  %v3510_v31 = vrot.slane %v3496_v59, %v13950_v58  ;;  %v7305_v52 = vadd.f32 %v7304_v47, %v6922_v8  ;;  %v20031_v59 = vld [vmem:[#allocation89_spill] sm:$0xff] }
 0x2c9   : > { %20026 = vst [vmem:[#allocation91_spill] sm:$0xff] %v15770_v9  ;;  %v3554_v2 = vrot.slane %v12026_v15, %v13950_v58  ;;  %v3511_v34 = vcombine.high %v3503_v26, %v3503_v26  ;;  %v20027_v13 = vrot.slane %v19992_v40, %v14221_v0  ;;  %v3561_v38 = vrot.slane %v3547_v50, %v13950_v58  ;;  %v20033_v50 = vld [vmem:[#allocation16_spill] sm:$0xff] }
 0x2ca   : > { %v12027_v60 = vadd.f32 %v15205_v49, %v20028_v39  ;;  %v7388_v11 = vmul.f32 %v15749_v29, %v15749_v29  ;;  %v3512_v25 = vcombine.high %v3510_v31, %v3510_v31  ;;  %v20029_v37 = vrot.slane %v20015_v36, %v14205_v43 }
 0x2cb   : > { %v5483_v28 = vmul.f32 %v20027_v13, %v3503_v26  ;;  %v3562_v8 = vcombine.high %v3554_v2, %v3554_v2  ;;  %v20030_v15 = vrot.slane %v19992_v40, %v14224_v4  ;;  %v20034_v13 = vrot.slane %v20033_v50, %v14208_v44  ;;  %v20037_v40 = vld [vmem:[#allocation90_spill] sm:$0xff] }
 0x2cc   : > { %v5485_v47 = vmul.f32 %v20029_v37, %v3510_v31  ;;  %v20035_v39 = vrot.slane %v20033_v50, %v14224_v4  ;;  %v7387_v24 = vmul.f32 %v15767_v54, %v15767_v54  ;;  %v20036_v31 = vrot.slane %v20015_v36, %v14208_v44 }
 0x2cd   : > { %v5484_v3 = vmul.f32 %v20030_v15, %v3511_v34  ;;  %v15792_v26 = vadd.f32 %v20031_v59, %v5483_v28  ;;  %v5494_v49 = vmul.f32 %v20034_v13, %v3554_v2  ;;  %v20039_v28 = vrot.slane %v20033_v50, %v14221_v0 }
 0x2ce   : > { %v5496_v61 = vmul.f32 %v20035_v39, %v3561_v38  ;;  %v5486_v37 = vmul.f32 %v20036_v31, %v3512_v25  ;;  %v15806_v34 = vadd.f32 %v20037_v40, %v5485_v47  ;;  %v15813_v2 = vmul.f32 %v15770_v9, %v15770_v9 }
 0x2cf   : > { %20032 = vst [vmem:[#allocation129_spill] sm:$0xff] %v15792_v26  ;;  %v5495_v15 = vmul.f32 %v20039_v28, %v3562_v8  ;;  %v20040_v38 = vcombine.high %v20031_v59, %v20031_v59  ;;  %v8175_v39 = vadd.f32 %v8174_v1, %v7792_v21  ;;  %v3530_v29 = vcombine.high %v12027_v60, %v12027_v60  ;;  %v20044_v59 = vld [vmem:[#allocation94_spill] sm:$0xff]  ;;  %v20047_v1 = vld [vmem:[#allocation97_spill] sm:$0xff] }
 0x2d0   : > { %20038 = vst [vmem:[#allocation92_spill] sm:$0xff] %v15806_v34  ;;  %v7811_v36 = vcombine.low %v7387_v24, %v7388_v11  ;;  %v20042_v25 = vcombine.high %v20037_v40, %v20037_v40  ;;  %v7383_v8 = vmul.f32 %v15792_v26, %v15792_v26  ;;  %v3537_v31 = vrot.slane %v12027_v60, %v13950_v58 }
 0x2d1   : > { %v15818_v13 = vadd.f32 %v20040_v38, %v5484_v3  ;;  %v20045_v21 = vcombine.high %v20044_v59, %v20044_v59  ;;  %v20048_v11 = vcombine.high %v20047_v1, %v20047_v1  ;;  %v7385_v60 = vmul.f32 %v15806_v34, %v15806_v34 }
 0x2d2   : > { %v15823_v47 = vadd.f32 %v20042_v25, %v5486_v37  ;;  %v15849_v25 = vadd.f32 %v20047_v1, %v5495_v15  ;;  %v3544_v54 = vrot.slane %v3530_v29, %v13950_v58  ;;  %v20051_v15 = vrot.slane %v20018_v6, %v14208_v44 }
 0x2d3   : > { %20041 = vst [vmem:[#allocation130_spill] sm:$0xff] %v15818_v13  ;;  %v6924_v28 = vcombine.low %v15792_v26, %v15818_v13  ;;  %v7384_v3 = vmul.f32 %v15818_v13, %v15818_v13  ;;  %v15835_v24 = vadd.f32 %v20045_v21, %v5494_v49  ;;  %v15840_v37 = vadd.f32 %v20048_v11, %v5496_v61 }
 0x2d4   : > { %20043 = vst [vmem:[#allocation89_spill] sm:$0xff] %v15823_v47  ;;  %v6940_v40 = vcombine.low %v15806_v34, %v15823_v47  ;;  %v7386_v38 = vmul.f32 %v15823_v47, %v15823_v47  ;;  %20050 = vst [vmem:[#allocation94_spill] sm:$0xff] %v15849_v25  ;;  %v3545_v13 = vcombine.high %v3537_v31, %v3537_v31 }
 0x2d5   : > { %20046 = vst [vmem:[#allocation16_spill] sm:$0xff] %v15835_v24  ;;  %20049 = vst [vmem:[#allocation90_spill] sm:$0xff] %v15840_v37  ;;  %v6938_v49 = vrot.slane %v6924_v28, %v13950_v58  ;;  %v7794_v21 = vcombine.low %v7383_v8, %v7384_v3  ;;  %v6955_v61 = vrot.slane %v6941_v5, %v13950_v58 }
 0x2d6   : > { %v7825_v11 = vrot.slane %v7811_v36, %v13950_v58  ;;  %v6948_v26 = vrot.slane %v6940_v40, %v13950_v58  ;;  %v7810_v27 = vcombine.low %v7385_v60, %v7386_v38  ;;  %v3546_v17 = vcombine.high %v3544_v54, %v3544_v54 }
 0x2d7   : > { %v6939_v34 = vcombine.low %v15760_v30, %v6938_v49  ;;  %v7808_v47 = vrot.slane %v7794_v21, %v13950_v58  ;;  %v5490_v28 = vmul.f32 %v20051_v15, %v3537_v31  ;;  %v6975_v29 = vcombine.low %v15849_v25, %v15840_v37 }
 0x2d8   : > { %v7394_v5 = vmul.f32 %v15835_v24, %v15835_v24  ;;  %v7396_v36 = vmul.f32 %v15840_v37, %v15840_v37  ;;  %v20052_v8 = vrot.slane %v20018_v6, %v14221_v0  ;;  %v7818_v3 = vrot.slane %v7810_v27, %v13950_v58 }
 0x2d9   : > { %v7395_v1 = vmul.f32 %v15849_v25, %v15849_v25  ;;  %v20053_v31 = vrot.slane %v20018_v6, %v14224_v4  ;;  %v20054_v60 = vrot.slane %v20033_v50, %v14205_v43  ;;  %v7809_v49 = vcombine.low %v15764_v42, %v7808_v47 }
 0x2da   : > { %v5491_v30 = vmul.f32 %v20052_v8, %v3545_v13  ;;  %v20055_v21 = vcombine.high %v20025_v20, %v20025_v20  ;;  %v20057_v13 = vld [vmem:[#allocation93_spill] sm:$0xff]  ;;  %v12028_v8 = vadd.f32 %v15227_v57, %v15218_v10  ;;  %v6956_v37 = vcombine.low %v6948_v26, %v6955_v61 }
 0x2db   : > { %v5492_v40 = vmul.f32 %v20053_v31, %v3544_v54  ;;  %v5493_v38 = vmul.f32 %v20054_v60, %v3546_v17  ;;  %v7306_v6 = vadd.f32 %v7305_v52, %v6939_v34  ;;  %v20059_v54 = vcombine.high %v20057_v13, %v20057_v13 }
 0x2dc   : > { %v15883_v15 = vadd.f32 %v20055_v21, %v5490_v28  ;;  %v15886_v27 = vadd.f32 %v20057_v13, %v5491_v30  ;;  %v3580_v10 = vcombine.high %v12028_v8, %v12028_v8  ;;  %v8176_v61 = vadd.f32 %v8175_v39, %v7809_v49 }
 0x2dd   : > { %v15893_v50 = vadd.f32 %v20059_v54, %v5492_v40  ;;  %v15896_v17 = vadd.f32 %v20044_v59, %v5493_v38  ;;  %v7826_v59 = vcombine.low %v7818_v3, %v7825_v11  ;;  %v7845_v28 = vcombine.low %v7395_v1, %v7396_v36  ;;  %v20062_v11 = vld [vmem:[#allocation68_spill] sm:$0xff] }
 0x2de   : > { %20056 = vst [vmem:[#allocation97_spill] sm:$0xff] %v15883_v15  ;;  %20058 = vst [vmem:[#allocation93_spill] sm:$0xff] %v15886_v27  ;;  %v6957_v42 = vcombine.low %v15770_v9, %v15883_v15  ;;  %v7390_v20 = vmul.f32 %v15883_v15, %v15883_v15  ;;  %v7391_v47 = vmul.f32 %v15886_v27, %v15886_v27 }
 0x2df   : > { %20060 = vst [vmem:[#allocation184_spill] sm:$0xff] %v15893_v50  ;;  %20061 = vst [vmem:[#allocation185_spill] sm:$0xff] %v15896_v17  ;;  %v6958_v57 = vcombine.low %v15886_v27, %v15893_v50  ;;  %v6974_v52 = vcombine.low %v15896_v17, %v15835_v24  ;;  %v7392_v26 = vmul.f32 %v15893_v50, %v15893_v50 }
 0x2e0   : > { %v7393_v34 = vmul.f32 %v15896_v17, %v15896_v17  ;;  %v3587_v30 = vrot.slane %v12028_v8, %v13950_v58  ;;  %v6965_v31 = vrot.slane %v6957_v42, %v13950_v58  ;;  %v7307_v21 = vadd.f32 %v7306_v6, %v6956_v37 }
 0x2e1   : > { %v6972_v40 = vrot.slane %v6958_v57, %v13950_v58  ;;  %v7828_v60 = vcombine.low %v7391_v47, %v7392_v26  ;;  %v7827_v13 = vcombine.low %v15813_v2, %v7390_v20  ;;  %v3594_v54 = vrot.slane %v3580_v10, %v13950_v58 }
 0x2e2   : > { %v7844_v38 = vcombine.low %v7393_v34, %v7394_v5  ;;  %v3595_v25 = vcombine.high %v3587_v30, %v3587_v30  ;;  %v6982_v17 = vrot.slane %v6974_v52, %v13950_v58  ;;  %v20063_v36 = vrot.slane %v20062_v11, %v14205_v43 }
 0x2e3   : > { %v6973_v24 = vcombine.low %v6965_v31, %v6972_v40  ;;  %v7842_v39 = vrot.slane %v7828_v60, %v13950_v58  ;;  %v3596_v49 = vcombine.high %v3594_v54, %v3594_v54  ;;  %v20064_v37 = vrot.slane %v20062_v11, %v14208_v44 }
 0x2e4   : > { %v5501_v3 = vmul.f32 %v20063_v36, %v3587_v30  ;;  %v15923_v1 = vrot.slane %v7844_v38, %v13950_v58  ;;  %v20065_v5 = vrot.slane %v20062_v11, %v14221_v0  ;;  %v6989_v6 = vrot.slane %v6975_v29, %v13950_v58  ;;  %v20070_v30 = vld [vmem:[#allocation100_spill] sm:$0xff] }
 0x2e5   : > { %v5502_v2 = vmul.f32 %v20064_v37, %v3595_v25  ;;  %v15933_v42 = vrot.slane %v7845_v28, %v13950_v58  ;;  %v8177_v20 = vadd.f32 %v8176_v61, %v7826_v59  ;;  %v12029_v47 = vadd.f32 %v15239_v45, %v15229_v55  ;;  %v20067_v25 = vld [vmem:[#allocation99_spill] sm:$0xff] }
 0x2e6   : > { %v5503_v8 = vmul.f32 %v20065_v5, %v3594_v54  ;;  %v7835_v10 = vrot.slane %v7827_v13, %v13950_v58  ;;  %v20066_v57 = vrot.slane %v20062_v11, %v14224_v4  ;;  %v20068_v26 = vcombine.high %v20067_v25, %v20067_v25  ;;  %v20075_v11 = vld [vmem:[#allocation57_spill] sm:$0xff] }
 0x2e7   : > { %v6990_v28 = vcombine.low %v6982_v17, %v6989_v6  ;;  %v15950_v59 = vadd.f32 %v20067_v25, %v5501_v3  ;;  %v3563_v61 = vcombine.high %v12029_v47, %v12029_v47  ;;  %v3570_v55 = vrot.slane %v12029_v47, %v13950_v58  ;;  %v20079_v6 = vld [vmem:[#allocation95_spill] sm:$0xff] }
 0x2e8   : > { %v5504_v52 = vmul.f32 %v20066_v57, %v3596_v49  ;;  %v15944_v34 = vadd.f32 %v20068_v26, %v5502_v2  ;;  %v15947_v29 = vadd.f32 %v20070_v30, %v5503_v8  ;;  %v7308_v45 = vadd.f32 %v7307_v21, %v6973_v24 }
 0x2e9   : > { %20072 = vst [vmem:[#allocation100_spill] sm:$0xff] %v15950_v59  ;;  %v7843_v31 = vcombine.low %v7835_v10, %v7842_v39  ;;  %v7860_v40 = vcombine.low %v15923_v1, %v15933_v42  ;;  %v20073_v60 = vcombine.high %v20070_v30, %v20070_v30  ;;  %v3577_v17 = vrot.slane %v3563_v61, %v13950_v58 }
 0x2ea   : > { %20069 = vst [vmem:[#allocation68_spill] sm:$0xff] %v15944_v34  ;;  %20071 = vst [vmem:[#allocation99_spill] sm:$0xff] %v15947_v29  ;;  %v7008_v13 = vcombine.low %v15950_v59, %v15944_v34  ;;  %v3578_v54 = vcombine.high %v3570_v55, %v3570_v55  ;;  %v20076_v36 = vrot.slane %v20075_v11, %v14205_v43 }
 0x2eb   : > { %v15958_v38 = vadd.f32 %v20073_v60, %v5504_v52  ;;  %v7402_v21 = vmul.f32 %v15944_v34, %v15944_v34  ;;  %v7403_v39 = vmul.f32 %v15947_v29, %v15947_v29  ;;  %v3579_v49 = vcombine.high %v3577_v17, %v3577_v17  ;;  %v20080_v52 = vld [vmem:[#allocation156_spill] sm:$0xff] }
 0x2ec   : > { %v5497_v3 = vmul.f32 %v20076_v36, %v3570_v55  ;;  %v20077_v37 = vrot.slane %v20075_v11, %v14208_v44  ;;  %v20078_v5 = vrot.slane %v20075_v11, %v14221_v0  ;;  %v8178_v47 = vadd.f32 %v8177_v20, %v7843_v31 }
 0x2ed   : > { %20074 = vst [vmem:[#allocation186_spill] sm:$0xff] %v15958_v38  ;;  %v7009_v24 = vcombine.low %v15947_v29, %v15958_v38  ;;  %v7404_v1 = vmul.f32 %v15958_v38, %v15958_v38  ;;  %v7401_v10 = vmul.f32 %v15950_v59, %v15950_v59  ;;  %v7309_v57 = vadd.f32 %v7308_v45, %v6990_v28  ;;  %v20096_v38 = vld [vmem:[#allocation157_spill] sm:$0xff]  ;;  %v20097_v29 = vld [vmem:[#allocation158_spill] sm:$0xff] }
 0x2ee   : > { %v5498_v2 = vmul.f32 %v20077_v37, %v3578_v54  ;;  %v5499_v8 = vmul.f32 %v20078_v5, %v3577_v17  ;;  %v15981_v42 = vadd.f32 %v20079_v6, %v5497_v3  ;;  %v12030_v25 = vadd.f32 %v20080_v52, %v15257_v51  ;;  %v20084_v17 = vld [vmem:[#allocation98_spill] sm:$0xff] }
 0x2ef   : > { %v7879_v26 = vcombine.low %v7403_v39, %v7404_v1  ;;  %v20081_v30 = vrot.slane %v20075_v11, %v14224_v4  ;;  %v20082_v55 = vcombine.high %v20079_v6, %v20079_v6  ;;  %v15999_v20 = vrot.slane %v7008_v13, %v13950_v58 }
 0x2f0   : > { %v15996_v54 = vadd.f32 %v20084_v17, %v5499_v8  ;;  %v7878_v28 = vcombine.low %v7401_v10, %v7402_v21  ;;  %v3614_v45 = vcombine.high %v12030_v25, %v12030_v25  ;;  %v3621_v51 = vrot.slane %v12030_v25, %v13950_v58  ;;  %v20090_v25 = vld [vmem:[#allocation73_spill] sm:$0xff] }
 0x2f1   : > { %v5500_v61 = vmul.f32 %v20081_v30, %v3579_v49  ;;  %v15993_v60 = vadd.f32 %v20082_v55, %v5498_v2  ;;  %v16003_v31 = vrot.slane %v7009_v24, %v13950_v58  ;;  %v20086_v11 = vcombine.high %v20084_v17, %v20084_v17  ;;  %v20088_v49 = vld [vmem:[#allocation72_spill] sm:$0xff] }
 0x2f2   : > { %20085 = vst [vmem:[#allocation95_spill] sm:$0xff] %v15996_v54  ;;  %v7397_v3 = vmul.f32 %v15981_v42, %v15981_v42  ;;  %v3628_v21 = vrot.slane %v3614_v45, %v13950_v58  ;;  %v3629_v1 = vcombine.high %v3621_v51, %v3621_v51  ;;  %v20089_v24 = vrot.slane %v20088_v49, %v14224_v4 }
 0x2f3   : > { %20083 = vst [vmem:[#allocation57_spill] sm:$0xff] %v15993_v60  ;;  %v16008_v36 = vadd.f32 %v20086_v11, %v5500_v61  ;;  %v7398_v39 = vmul.f32 %v15993_v60, %v15993_v60  ;;  %v6991_v13 = vcombine.low %v15981_v42, %v15993_v60  ;;  %v16021_v2 = vrot.slane %v7879_v26, %v13950_v58 }
 0x2f4   : > { %v5508_v37 = vmul.f32 %v20089_v24, %v3621_v51  ;;  %v7399_v8 = vmul.f32 %v15996_v54, %v15996_v54  ;;  %v3630_v52 = vcombine.high %v3628_v21, %v3628_v21  ;;  %v20091_v30 = vrot.slane %v20090_v25, %v14205_v43  ;;  %v20093_v51 = vld [vmem:[#allocation103_spill] sm:$0xff] }
 0x2f5   : > { %20087 = vst [vmem:[#allocation156_spill] sm:$0xff] %v16008_v36  ;;  %v6992_v5 = vcombine.low %v15996_v54, %v16008_v36  ;;  %v7400_v6 = vmul.f32 %v16008_v36, %v16008_v36  ;;  %v7861_v10 = vcombine.low %v7397_v3, %v7398_v39  ;;  %v20092_v55 = vrot.slane %v20090_v25, %v14208_v44 }
 0x2f6   : > { %v5509_v61 = vmul.f32 %v20091_v30, %v3629_v1  ;;  %v20094_v11 = vcombine.high %v20093_v51, %v20093_v51  ;;  %v12031_v3 = vadd.f32 %v20097_v29, %v20096_v38  ;;  %v16044_v39 = vrot.slane %v7878_v28, %v13950_v58 }
 0x2f7   : > { %v5510_v26 = vmul.f32 %v20092_v55, %v3628_v21  ;;  %v7006_v17 = vrot.slane %v6992_v5, %v13950_v58  ;;  %v7862_v45 = vcombine.low %v7399_v8, %v7400_v6  ;;  %v6999_v1 = vrot.slane %v6991_v13, %v13950_v58  ;;  %v20099_v55 = vld [vmem:[#allocation104_spill] sm:$0xff] }
 0x2f8   : > { %v16039_v24 = vadd.f32 %v20094_v11, %v5508_v37  ;;  %v20098_v30 = vrot.slane %v20090_v25, %v14221_v0  ;;  %v16051_v5 = vadd.f32 %v20099_v55, %v5509_v61  ;;  %v20101_v37 = vcombine.high %v20099_v55, %v20099_v55  ;;  %v20103_v55 = vld [vmem:[#allocation105_spill] sm:$0xff] }
 0x2f9   : > { %v7876_v8 = vrot.slane %v7862_v45, %v13950_v58  ;;  %v3597_v29 = vcombine.high %v12031_v3, %v12031_v3  ;;  %v3604_v38 = vrot.slane %v12031_v3, %v13950_v58  ;;  %v7024_v28 = vcombine.low %v15999_v20, %v16003_v31  ;;  %v20105_v20 = vld [vmem:[#allocation161_spill] sm:$0xff]  ;;  %v20106_v31 = vld [vmem:[#allocation162_spill] sm:$0xff] }
 0x2fa   : > { %20095 = vst [vmem:[#allocation98_spill] sm:$0xff] %v16039_v24  ;;  %v5511_v21 = vmul.f32 %v20098_v30, %v3630_v52  ;;  %20100 = vst [vmem:[#allocation72_spill] sm:$0xff] %v16051_v5  ;;  %v16057_v6 = vadd.f32 %v20101_v37, %v5510_v26  ;;  %v7894_v13 = vcombine.low %v16044_v39, %v16021_v2  ;;  %v20107_v2 = vld [vmem:[#allocation163_spill] sm:$0xff]  ;;  %v20108_v39 = vld [vmem:[#allocation164_spill] sm:$0xff] }
 0x2fb   : > { %v7869_v52 = vrot.slane %v7861_v10, %v13950_v58  ;;  %v8179_v61 = vadd.f32 %v8178_v47, %v7860_v40  ;;  %v7007_v11 = vcombine.low %v6999_v1, %v7006_v17  ;;  %v7408_v45 = vmul.f32 %v16039_v24, %v16039_v24 }
 0x2fc   : > { %20102 = vst [vmem:[#allocation73_spill] sm:$0xff] %v16057_v6  ;;  %v3611_v30 = vrot.slane %v3597_v29, %v13950_v58  ;;  %v3612_v26 = vcombine.high %v3604_v38, %v3604_v38  ;;  %v16069_v37 = vadd.f32 %v20103_v55, %v5511_v21  ;;  %v7409_v3 = vmul.f32 %v16051_v5, %v16051_v5 }
 0x2fd   : > { %v12032_v34 = vadd.f32 %v20106_v31, %v20105_v20  ;;  %v12033_v10 = vadd.f32 %v20108_v39, %v20107_v2  ;;  %v7877_v40 = vcombine.low %v7869_v52, %v7876_v8  ;;  %v7410_v47 = vmul.f32 %v16057_v6, %v16057_v6  ;;  %v20112_v39 = vld [vmem:[#allocation101_spill] sm:$0xff] }
 0x2fe   : > { %20104 = vst [vmem:[#allocation103_spill] sm:$0xff] %v16069_v37  ;;  %v3613_v17 = vcombine.high %v3611_v30, %v3611_v30  ;;  %v20109_v1 = vrot.slane %v20088_v49, %v14205_v43  ;;  %v7042_v21 = vcombine.low %v16051_v5, %v16057_v6  ;;  %v20110_v38 = vrot.slane %v20088_v49, %v14208_v44 }
 0x2ff   : > { %v3647_v20 = vcombine.high %v12032_v34, %v12032_v34  ;;  %v3654_v31 = vrot.slane %v12032_v34, %v13950_v58  ;;  %v7310_v2 = vadd.f32 %v7309_v57, %v7007_v11  ;;  %v20111_v8 = vrot.slane %v20088_v49, %v14221_v0 }
 0x300   : > { %v5505_v29 = vmul.f32 %v20109_v1, %v3612_v26  ;;  %v5506_v59 = vmul.f32 %v20110_v38, %v3611_v30  ;;  %v3631_v54 = vcombine.high %v12033_v10, %v12033_v10  ;;  %v20114_v26 = vcombine.high %v20112_v39, %v20112_v39  ;;  %v20116_v38 = vld [vmem:[#allocation74_spill] sm:$0xff] }
 0x301   : > { %v5507_v52 = vmul.f32 %v20111_v8, %v3613_v17  ;;  %v3661_v6 = vrot.slane %v3647_v20, %v13950_v58  ;;  %v3662_v30 = vcombine.high %v3654_v31, %v3654_v31  ;;  %v20117_v34 = vrot.slane %v20116_v38, %v14221_v0 }
 0x302   : > { %v16092_v36 = vadd.f32 %v20112_v39, %v5505_v29  ;;  %v16097_v1 = vadd.f32 %v20114_v26, %v5506_v59  ;;  %v8180_v11 = vadd.f32 %v8179_v61, %v7877_v40  ;;  %v7912_v5 = vcombine.low %v7409_v3, %v7410_v47  ;;  %v20120_v40 = vld [vmem:[#allocation75_spill] sm:$0xff] }
 0x303   : > { %v5515_v57 = vmul.f32 %v20117_v34, %v3654_v31  ;;  %v16104_v49 = vadd.f32 %v20093_v51, %v5507_v52  ;;  %v3663_v59 = vcombine.high %v3661_v6, %v3661_v6  ;;  %v20119_v20 = vrot.slane %v20116_v38, %v14224_v4  ;;  %v20123_v34 = vld [vmem:[#allocation108_spill] sm:$0xff] }
 0x304   : > { %20113 = vst [vmem:[#allocation157_spill] sm:$0xff] %v16092_v36  ;;  %20115 = vst [vmem:[#allocation158_spill] sm:$0xff] %v16097_v1  ;;  %v7405_v17 = vmul.f32 %v16092_v36, %v16092_v36  ;;  %v7406_v29 = vmul.f32 %v16097_v1, %v16097_v1  ;;  %v3645_v39 = vrot.slane %v3631_v54, %v13950_v58 }
 0x305   : > { %20118 = vst [vmem:[#allocation104_spill] sm:$0xff] %v16104_v49  ;;  %v5516_v8 = vmul.f32 %v20119_v20, %v3662_v30  ;;  %v7025_v61 = vcombine.low %v16092_v36, %v16097_v1  ;;  %v7026_v51 = vcombine.low %v16104_v49, %v16039_v24  ;;  %v7407_v3 = vmul.f32 %v16104_v49, %v16104_v49  ;;  %v20127_v36 = vld [vmem:[#allocation109_spill] sm:$0xff] }
 0x306   : > { %v20121_v47 = vrot.slane %v20120_v40, %v14205_v43  ;;  %v7895_v52 = vcombine.low %v7405_v17, %v7406_v29  ;;  %v20122_v26 = vrot.slane %v20120_v40, %v14208_v44  ;;  %v16127_v54 = vadd.f32 %v20123_v34, %v5515_v57 }
 0x307   : > { %v20125_v20 = vcombine.high %v20123_v34, %v20123_v34  ;;  %v7040_v24 = vrot.slane %v7026_v51, %v13950_v58  ;;  %v7896_v49 = vcombine.low %v7407_v3, %v7408_v45  ;;  %v7311_v17 = vadd.f32 %v7310_v2, %v7024_v28 }
 0x308   : > { %v5517_v31 = vmul.f32 %v20121_v47, %v3661_v6  ;;  %v5518_v30 = vmul.f32 %v20122_v26, %v3663_v59  ;;  %20124 = vst [vmem:[#allocation105_spill] sm:$0xff] %v16127_v54  ;;  %v3638_v6 = vrot.slane %v12033_v10, %v13950_v58  ;;  %v16140_v29 = vrot.slane %v7042_v21, %v13950_v58 }
 0x309   : > { %v16132_v1 = vadd.f32 %v20125_v20, %v5516_v8  ;;  %v20129_v57 = vcombine.high %v20127_v36, %v20127_v36  ;;  %v16150_v51 = vrot.slane %v7912_v5, %v13950_v58  ;;  %v7033_v45 = vrot.slane %v7025_v61, %v13950_v58 }
 0x30a   : > { %v16136_v60 = vadd.f32 %v20127_v36, %v5517_v31  ;;  %v3646_v28 = vcombine.high %v3645_v39, %v3645_v39  ;;  %v8181_v2 = vadd.f32 %v8180_v11, %v7894_v13  ;;  %v7903_v21 = vrot.slane %v7895_v52, %v13950_v58 }
 0x30b   : > { %20126 = vst [vmem:[#allocation161_spill] sm:$0xff] %v16132_v1  ;;  %v16145_v59 = vadd.f32 %v20129_v57, %v5518_v30  ;;  %v7060_v8 = vcombine.low %v16127_v54, %v16132_v1  ;;  %v7416_v10 = vmul.f32 %v16132_v1, %v16132_v1  ;;  %v7910_v3 = vrot.slane %v7896_v49, %v13950_v58  ;;  %v20141_v1 = vld [vmem:[#allocation76_spill] sm:$0xff] }
 0x30c   : > { %20128 = vst [vmem:[#allocation162_spill] sm:$0xff] %v16136_v60  ;;  %v7415_v36 = vmul.f32 %v16127_v54, %v16127_v54  ;;  %v7041_v47 = vcombine.low %v7033_v45, %v7040_v24  ;;  %v7417_v31 = vmul.f32 %v16136_v60, %v16136_v60  ;;  %v20131_v5 = vrot.slane %v20090_v25, %v14224_v4 }
 0x30d   : > { %20130 = vst [vmem:[#allocation163_spill] sm:$0xff] %v16145_v59  ;;  %v20132_v26 = vrot.slane %v20116_v38, %v14205_v43  ;;  %v16168_v13 = vrot.slane %v7060_v8, %v13950_v58  ;;  %v7076_v11 = vcombine.low %v16136_v60, %v16145_v59  ;;  %v7418_v24 = vmul.f32 %v16145_v59, %v16145_v59 }
 0x30e   : > { %v5512_v61 = vmul.f32 %v20131_v5, %v3638_v6  ;;  %v20133_v49 = vrot.slane %v20116_v38, %v14208_v44  ;;  %v7930_v34 = vcombine.low %v7415_v36, %v7416_v10  ;;  %v20134_v25 = vcombine.high %v20103_v55, %v20103_v55  ;;  %v20138_v38 = vld [vmem:[#allocation165_spill] sm:$0xff]  ;;  %v20140_v36 = vld [vmem:[#allocation167_spill] sm:$0xff] }
 0x30f   : > { %v5513_v30 = vmul.f32 %v20132_v26, %v3645_v39  ;;  %v20135_v39 = vld [vmem:[#allocation106_spill] sm:$0xff]  ;;  %v7411_v57 = vmul.f32 %v16069_v37, %v16069_v37  ;;  %v7911_v8 = vcombine.low %v7903_v21, %v7910_v3  ;;  %v12034_v10 = vadd.f32 %v20138_v38, %v15338_v62 }
 0x310   : > { %v5514_v52 = vmul.f32 %v20133_v49, %v3646_v28  ;;  %v16180_v20 = vadd.f32 %v20134_v25, %v5512_v61  ;;  %v20136_v45 = vcombine.high %v20135_v39, %v20135_v39  ;;  %v20139_v28 = vld [vmem:[#allocation166_spill] sm:$0xff]  ;;  %v12036_v3 = vadd.f32 %v15372_v18, %v15362_v32 }
 0x311   : > { %v16183_v6 = vadd.f32 %v20135_v39, %v5513_v30  ;;  %v12035_v55 = vadd.f32 %v20140_v36, %v20139_v28  ;;  %v3681_v49 = vcombine.high %v12034_v10, %v12034_v10  ;;  %v7946_v25 = vcombine.low %v7417_v31, %v7418_v24 }
 0x312   : > { %v16190_v5 = vadd.f32 %v20136_v45, %v5514_v52  ;;  %v7043_v61 = vcombine.low %v16069_v37, %v16180_v20  ;;  %v7412_v26 = vmul.f32 %v16180_v20, %v16180_v20  ;;  %v3688_v52 = vrot.slane %v12034_v10, %v13950_v58 }
 0x313   : > { %v7413_v21 = vmul.f32 %v16183_v6, %v16183_v6  ;;  %v3664_v38 = vcombine.high %v12035_v55, %v12035_v55  ;;  %v3695_v36 = vrot.slane %v3681_v49, %v13950_v58  ;;  %v3671_v32 = vrot.slane %v12035_v55, %v13950_v58 }
 0x314   : > { %20137 = vst [vmem:[#allocation164_spill] sm:$0xff] %v16190_v5  ;;  %v7059_v30 = vcombine.low %v16183_v6, %v16190_v5  ;;  %v7414_v62 = vmul.f32 %v16190_v5, %v16190_v5  ;;  %v7057_v39 = vrot.slane %v7043_v61, %v13950_v58  ;;  %v7913_v45 = vcombine.low %v7411_v57, %v7412_v26  ;;  %v20376_v37 = vld [vmem:[#allocation163_spill] sm:$0xff] }
 0x315   : > { %v3696_v59 = vcombine.high %v3688_v52, %v3688_v52  ;;  %v7312_v18 = vadd.f32 %v7311_v17, %v7041_v47  ;;  %v20142_v54 = vrot.slane %v20141_v1, %v14208_v44  ;;  %v3678_v10 = vrot.slane %v3664_v38, %v13950_v58 }
 0x316   : > { %v7929_v28 = vcombine.low %v7413_v21, %v7414_v62  ;;  %v7927_v60 = vrot.slane %v7913_v45, %v13950_v58  ;;  %v16218_v31 = vrot.slane %v7076_v11, %v13950_v58  ;;  %v7944_v24 = vrot.slane %v7930_v34, %v13950_v58  ;;  %v20145_v34 = vld [vmem:[#allocation111_spill] sm:$0xff] }
 0x317   : > { %v5522_v5 = vmul.f32 %v20142_v54, %v3688_v52  ;;  %v7067_v57 = vrot.slane %v7059_v30, %v13950_v58  ;;  %v20143_v61 = vrot.slane %v20141_v1, %v14221_v0  ;;  %v8182_v17 = vadd.f32 %v8181_v2, %v7911_v8  ;;  %v20148_v2 = vld [vmem:[#allocation112_spill] sm:$0xff] }
 0x318   : > { %v7937_v47 = vrot.slane %v7929_v28, %v13950_v58  ;;  %v3697_v26 = vcombine.high %v3695_v36, %v3695_v36  ;;  %v20144_v54 = vrot.slane %v20141_v1, %v14224_v4  ;;  %v16230_v62 = vrot.slane %v7946_v25, %v13950_v58 }
 0x319   : > { %v5523_v55 = vmul.f32 %v20143_v61, %v3696_v59  ;;  %v7058_v11 = vcombine.low %v16140_v29, %v7057_v39  ;;  %v20146_v30 = vcombine.high %v20145_v34, %v20145_v34  ;;  %v3679_v52 = vcombine.high %v3671_v32, %v3671_v32 }
 0x31a   : > { %v5524_v21 = vmul.f32 %v20144_v54, %v3695_v36  ;;  %v7928_v59 = vcombine.low %v16150_v51, %v7927_v60  ;;  %v20150_v45 = vcombine.high %v20148_v2, %v20148_v2  ;;  %v3680_v25 = vcombine.high %v3678_v10, %v3678_v10 }
 0x31b   : > { %v16236_v49 = vadd.f32 %v20146_v30, %v5522_v5  ;;  %v16240_v8 = vadd.f32 %v20148_v2, %v5523_v55  ;;  %v7075_v28 = vcombine.low %v7067_v57, %v16168_v13  ;;  %v7313_v29 = vadd.f32 %v7312_v18, %v7058_v11  ;;  %v20154_v55 = vld [vmem:[#allocation85_spill] sm:$0xff]  ;;  %v20157_v18 = vld [vmem:[#allocation110_spill] sm:$0xff] }
 0x31c   : > { %v16245_v38 = vadd.f32 %v20150_v45, %v5524_v21  ;;  %v20152_v39 = vrot.slane %v20120_v40, %v14221_v0  ;;  %v20153_v36 = vrot.slane %v20120_v40, %v14224_v4  ;;  %v7945_v51 = vcombine.low %v7937_v47, %v7944_v24 }
 0x31d   : > { %20147 = vst [vmem:[#allocation101_spill] sm:$0xff] %v16236_v49  ;;  %20149 = vst [vmem:[#allocation74_spill] sm:$0xff] %v16240_v8  ;;  %v8183_v61 = vadd.f32 %v8182_v17, %v7928_v59  ;;  %v20155_v54 = vrot.slane %v20154_v55, %v14205_v43  ;;  %v20156_v10 = vrot.slane %v20141_v1, %v14205_v43 }
 0x31e   : > { %20151 = vst [vmem:[#allocation75_spill] sm:$0xff] %v16245_v38  ;;  %v5519_v5 = vmul.f32 %v20152_v39, %v3671_v32  ;;  %v5520_v60 = vmul.f32 %v20153_v36, %v3679_v52  ;;  %v7422_v13 = vmul.f32 %v16236_v49, %v16236_v49  ;;  %v20158_v40 = vcombine.high %v20157_v18, %v20157_v18 }
 0x31f   : > { %v5525_v30 = vmul.f32 %v20155_v54, %v3697_v26  ;;  %v5521_v21 = vmul.f32 %v20156_v10, %v3680_v25  ;;  %v3714_v24 = vcombine.high %v12036_v3, %v12036_v3  ;;  %v7423_v17 = vmul.f32 %v16240_v8, %v16240_v8 }
 0x320   : > { %v16263_v57 = vadd.f32 %v20157_v18, %v5519_v5  ;;  %v16268_v32 = vadd.f32 %v20158_v40, %v5520_v60  ;;  %v7424_v47 = vmul.f32 %v16245_v38, %v16245_v38  ;;  %v3721_v26 = vrot.slane %v12036_v3, %v13950_v58  ;;  %v20159_v60 = vld [vmem:[#allocation96_spill] sm:$0xff] }
 0x321   : > { %v16275_v1 = vadd.f32 %v20145_v34, %v5521_v21  ;;  %v3728_v2 = vrot.slane %v3714_v24, %v13950_v58  ;;  %v7094_v45 = vcombine.low %v16240_v8, %v16245_v38  ;;  %v20160_v54 = vrot.slane %v20159_v60, %v14205_v43 }
 0x322   : > { %v7077_v11 = vcombine.low %v16263_v57, %v16268_v32  ;;  %v7419_v52 = vmul.f32 %v16263_v57, %v16263_v57  ;;  %v7420_v59 = vmul.f32 %v16268_v32, %v16268_v32  ;;  %v3729_v25 = vcombine.high %v3721_v26, %v3721_v26 }
 0x323   : > { %v7093_v34 = vcombine.low %v16275_v1, %v16236_v49  ;;  %v7421_v3 = vmul.f32 %v16275_v1, %v16275_v1  ;;  %v3730_v36 = vcombine.high %v3728_v2, %v3728_v2  ;;  %v5529_v10 = vmul.f32 %v20160_v54, %v3721_v26 }
 0x324   : > { %v7091_v39 = vrot.slane %v7077_v11, %v13950_v58  ;;  %v7947_v5 = vcombine.low %v7419_v52, %v7420_v59  ;;  %v7964_v21 = vcombine.low %v7423_v17, %v7424_v47  ;;  %v20161_v40 = vrot.slane %v20159_v60, %v14208_v44  ;;  %v20164_v47 = vld [vmem:[#allocation116_spill] sm:$0xff] }
 0x325   : > { %v7963_v18 = vcombine.low %v7421_v3, %v7422_v13  ;;  %v20162_v38 = vrot.slane %v20159_v60, %v14221_v0  ;;  %v16302_v49 = vrot.slane %v7093_v34, %v13950_v58  ;;  %v7314_v11 = vadd.f32 %v7313_v29, %v7075_v28 }
 0x326   : > { %v5530_v24 = vmul.f32 %v20161_v40, %v3729_v25  ;;  %v7961_v52 = vrot.slane %v7947_v5, %v13950_v58  ;;  %v20163_v59 = vrot.slane %v20159_v60, %v14224_v4  ;;  %v7092_v13 = vcombine.low %v16218_v31, %v7091_v39  ;;  %v20168_v25 = vld [vmem:[#allocation117_spill] sm:$0xff] }
 0x327   : > { %v5531_v8 = vmul.f32 %v20162_v38, %v3728_v2  ;;  %v16310_v17 = vrot.slane %v7963_v18, %v13950_v58  ;;  %v16313_v3 = vadd.f32 %v20164_v47, %v5529_v10  ;;  %v20166_v38 = vcombine.high %v20164_v47, %v20164_v47  ;;  %v20172_v10 = vld [vmem:[#allocation113_spill] sm:$0xff] }
 0x328   : > { %v5532_v26 = vmul.f32 %v20163_v59, %v3730_v36  ;;  %v7962_v29 = vcombine.low %v16230_v62, %v7961_v52  ;;  %v8184_v34 = vadd.f32 %v8183_v61, %v7945_v51  ;;  %v7108_v39 = vrot.slane %v7094_v45, %v13950_v58 }
 0x329   : > { %20165 = vst [vmem:[#allocation108_spill] sm:$0xff] %v16313_v3  ;;  %v16318_v2 = vadd.f32 %v20166_v38, %v5530_v24  ;;  %v16324_v5 = vadd.f32 %v20168_v25, %v5531_v8  ;;  %v7978_v36 = vrot.slane %v7964_v21, %v13950_v58  ;;  %v20170_v60 = vcombine.high %v20168_v25, %v20168_v25 }
 0x32a   : > { %v16336_v18 = vadd.f32 %v20172_v10, %v5525_v30  ;;  %v12037_v51 = vadd.f32 %v15382_v53, %v15374_v33  ;;  %v7109_v61 = vcombine.low %v16302_v49, %v7108_v39  ;;  %v7315_v45 = vadd.f32 %v7314_v11, %v7092_v13  ;;  %v20174_v49 = vld [vmem:[#allocation172_spill] sm:$0xff] }
 0x32b   : > { %20167 = vst [vmem:[#allocation109_spill] sm:$0xff] %v16318_v2  ;;  %20169 = vst [vmem:[#allocation106_spill] sm:$0xff] %v16324_v5  ;;  %v16333_v54 = vadd.f32 %v20170_v60, %v5532_v26  ;;  %v7127_v62 = vcombine.low %v16313_v3, %v16318_v2  ;;  %v7430_v8 = vmul.f32 %v16318_v2, %v16318_v2 }
 0x32c   : > { %20173 = vst [vmem:[#allocation166_spill] sm:$0xff] %v16336_v18  ;;  %v7979_v21 = vcombine.low %v16310_v17, %v7978_v36  ;;  %v7429_v40 = vmul.f32 %v16313_v3, %v16313_v3  ;;  %v8185_v24 = vadd.f32 %v8184_v34, %v7962_v29  ;;  %v7431_v30 = vmul.f32 %v16324_v5, %v16324_v5 }
 0x32d   : > { %20171 = vst [vmem:[#allocation165_spill] sm:$0xff] %v16333_v54  ;;  %v3698_v52 = vcombine.high %v12037_v51, %v12037_v51  ;;  %v3705_v59 = vrot.slane %v12037_v51, %v13950_v58  ;;  %v7128_v26 = vcombine.low %v16324_v5, %v16333_v54  ;;  %v7432_v33 = vmul.f32 %v16333_v54, %v16333_v54 }
 0x32e   : > { %v12038_v53 = vadd.f32 %v15435_v35, %v15433_v12  ;;  %v12039_v11 = vadd.f32 %v20174_v49, %v15443_v56  ;;  %v16360_v13 = vrot.slane %v7127_v62, %v13950_v58  ;;  %v7997_v17 = vcombine.low %v7429_v40, %v7430_v8  ;;  %v20179_v49 = vld [vmem:[#allocation115_spill] sm:$0xff] }
 0x32f   : > { %v3712_v47 = vrot.slane %v3698_v52, %v13950_v58  ;;  %v3713_v38 = vcombine.high %v3705_v59, %v3705_v59  ;;  %v20175_v29 = vrot.slane %v20154_v55, %v14208_v44  ;;  %v20176_v35 = vrot.slane %v20154_v55, %v14221_v0 }
 0x330   : > { %v3748_v25 = vcombine.high %v12038_v53, %v12038_v53  ;;  %v3755_v39 = vrot.slane %v12038_v53, %v13950_v58  ;;  %v3731_v36 = vcombine.high %v12039_v11, %v12039_v11  ;;  %v20177_v56 = vrot.slane %v20154_v55, %v14224_v4 }
 0x331   : > { %v5526_v34 = vmul.f32 %v20175_v29, %v3705_v59  ;;  %v5527_v12 = vmul.f32 %v20176_v35, %v3713_v38  ;;  %v7425_v62 = vmul.f32 %v16336_v18, %v16336_v18  ;;  %v3738_v8 = vrot.slane %v12039_v11, %v13950_v58 }
 0x332   : > { %v5528_v60 = vmul.f32 %v20177_v56, %v3712_v47  ;;  %v7998_v51 = vcombine.low %v7431_v30, %v7432_v33  ;;  %v20178_v40 = vcombine.high %v20172_v10, %v20172_v10  ;;  %v3762_v59 = vrot.slane %v3748_v25, %v13950_v58 }
 0x333   : > { %v3763_v53 = vcombine.high %v3755_v39, %v3755_v39  ;;  %v16383_v38 = vadd.f32 %v20179_v49, %v5527_v12  ;;  %v20180_v55 = vcombine.high %v20179_v49, %v20179_v49  ;;  %v3745_v29 = vrot.slane %v3731_v36, %v13950_v58 }
 0x334   : > { %v16379_v52 = vadd.f32 %v20178_v40, %v5526_v34  ;;  %v3746_v11 = vcombine.high %v3738_v8, %v3738_v8  ;;  %v3764_v33 = vcombine.high %v3762_v59, %v3762_v59  ;;  %v20182_v34 = vld [vmem:[#allocation107_spill] sm:$0xff]  ;;  %v16408_v40 = vrot.slane %v7128_v26, %v13950_v58 }
 0x335   : > { %v16388_v47 = vadd.f32 %v20180_v55, %v5528_v60  ;;  %v20183_v25 = vrot.slane %v20182_v34, %v14205_v43  ;;  %v7427_v12 = vmul.f32 %v16383_v38, %v16383_v38  ;;  %v20184_v56 = vrot.slane %v20182_v34, %v14208_v44  ;;  %v20185_v55 = vld [vmem:[#allocation102_spill] sm:$0xff] }
 0x336   : > { %v7110_v30 = vcombine.low %v16336_v18, %v16379_v52  ;;  %v7426_v10 = vmul.f32 %v16379_v52, %v16379_v52  ;;  %v16411_v49 = vrot.slane %v7998_v51, %v13950_v58  ;;  %v3747_v2 = vcombine.high %v3745_v29, %v3745_v29 }
 0x337   : > { %20181 = vst [vmem:[#allocation167_spill] sm:$0xff] %v16388_v47  ;;  %v5537_v39 = vmul.f32 %v20183_v25, %v3763_v53  ;;  %v7111_v35 = vcombine.low %v16383_v38, %v16388_v47  ;;  %v7428_v36 = vmul.f32 %v16388_v47, %v16388_v47  ;;  %v5538_v60 = vmul.f32 %v20184_v56, %v3762_v59  ;;  %v20188_v56 = vld [vmem:[#allocation121_spill] sm:$0xff] }
 0x338   : > { %v7316_v53 = vadd.f32 %v7315_v45, %v7109_v61  ;;  %v20186_v25 = vrot.slane %v20185_v55, %v14205_v43  ;;  %v7980_v54 = vcombine.low %v7425_v62, %v7426_v10  ;;  %v20187_v3 = vrot.slane %v20182_v34, %v14221_v0 }
 0x339   : > { %v7125_v28 = vrot.slane %v7111_v35, %v13950_v58  ;;  %v7981_v5 = vcombine.low %v7427_v12, %v7428_v36  ;;  %v16421_v26 = vadd.f32 %v20188_v56, %v5537_v39  ;;  %v20190_v51 = vcombine.high %v20188_v56, %v20188_v56 }
 0x33a   : > { %v5533_v31 = vmul.f32 %v20186_v25, %v3738_v8  ;;  %v5539_v59 = vmul.f32 %v20187_v3, %v3764_v33  ;;  %v20192_v45 = vrot.slane %v20185_v55, %v14208_v44  ;;  %v16432_v62 = vrot.slane %v7997_v17, %v13950_v58 }
 0x33b   : > { %20189 = vst [vmem:[#allocation76_spill] sm:$0xff] %v16421_v26  ;;  %v16426_v61 = vadd.f32 %v20190_v51, %v5538_v60  ;;  %v7118_v10 = vrot.slane %v7110_v30, %v13950_v58  ;;  %v7995_v35 = vrot.slane %v7981_v5, %v13950_v58  ;;  %v8186_v3 = vadd.f32 %v8185_v24, %v7979_v21  ;;  %v20195_v60 = vld [vmem:[#allocation118_spill] sm:$0xff] }
 0x33c   : > { %v5534_v8 = vmul.f32 %v20192_v45, %v3746_v11  ;;  %v20193_v33 = vrot.slane %v20185_v55, %v14221_v0  ;;  %v20194_v12 = vrot.slane %v20185_v55, %v14224_v4  ;;  %v16443_v25 = vadd.f32 %v20195_v60, %v5533_v31  ;;  %v20199_v30 = vld [vmem:[#allocation122_spill] sm:$0xff]  ;;  %v20201_v31 = vld [vmem:[#allocation120_spill] sm:$0xff] }
 0x33d   : > { %20191 = vst [vmem:[#allocation111_spill] sm:$0xff] %v16426_v61  ;;  %v20197_v17 = vcombine.high %v20195_v60, %v20195_v60  ;;  %v7126_v24 = vcombine.low %v7118_v10, %v7125_v28  ;;  %v16456_v55 = vadd.f32 %v20199_v30, %v5539_v59  ;;  %v20203_v51 = vcombine.high %v20201_v31, %v20201_v31  ;;  %v20205_v60 = vld [vmem:[#allocation175_spill] sm:$0xff] }
 0x33e   : > { %v5535_v39 = vmul.f32 %v20193_v33, %v3745_v29  ;;  %v5536_v36 = vmul.f32 %v20194_v12, %v3747_v2  ;;  %20196 = vst [vmem:[#allocation112_spill] sm:$0xff] %v16443_v25  ;;  %v7988_v29 = vrot.slane %v7980_v54, %v13950_v58  ;;  %v7161_v2 = vcombine.low %v16421_v26, %v16426_v61 }
 0x33f   : > { %v16448_v11 = vadd.f32 %v20197_v17, %v5534_v8  ;;  %20200 = vst [vmem:[#allocation110_spill] sm:$0xff] %v16456_v55  ;;  %v16470_v28 = vmul.f32 %v16421_v26, %v16421_v26  ;;  %v16474_v54 = vmul.f32 %v16426_v61, %v16426_v61  ;;  %v7317_v12 = vadd.f32 %v7316_v53, %v7126_v24 }
 0x340   : > { %v16461_v56 = vadd.f32 %v20201_v31, %v5535_v39  ;;  %v16466_v45 = vadd.f32 %v20203_v51, %v5536_v36  ;;  %v7996_v8 = vcombine.low %v7988_v29, %v7995_v35  ;;  %v7433_v35 = vmul.f32 %v16443_v25, %v16443_v25 }
 0x341   : > { %20198 = vst [vmem:[#allocation85_spill] sm:$0xff] %v16448_v11  ;;  %v7434_v59 = vmul.f32 %v16448_v11, %v16448_v11  ;;  %v7144_v10 = vcombine.low %v16443_v25, %v16448_v11  ;;  %v12040_v17 = vadd.f32 %v20205_v60, %v15500_v14  ;;  %v12041_v29 = vadd.f32 %v15566_v16, %v15564_v46  ;;  %v20209_v60 = vld [vmem:[#allocation119_spill] sm:$0xff] }
 0x342   : > { %20202 = vst [vmem:[#allocation96_spill] sm:$0xff] %v16461_v56  ;;  %20204 = vst [vmem:[#allocation116_spill] sm:$0xff] %v16466_v45  ;;  %v7145_v33 = vcombine.low %v16461_v56, %v16466_v45  ;;  %v7436_v39 = vmul.f32 %v16466_v45, %v16466_v45  ;;  %v7435_v36 = vmul.f32 %v16461_v56, %v16461_v56 }
 0x343   : > { %v16493_v31 = vrot.slane %v7161_v2, %v13950_v58  ;;  %v8014_v21 = vcombine.low %v7433_v35, %v7434_v59  ;;  %v12042_v5 = vadd.f32 %v15616_v19, %v15614_v41  ;;  %v3782_v53 = vcombine.high %v12040_v17, %v12040_v17 }
 0x344   : > { %v7159_v51 = vrot.slane %v7145_v33, %v13950_v58  ;;  %v8015_v61 = vcombine.low %v7435_v36, %v7436_v39  ;;  %v3789_v24 = vrot.slane %v12040_v17, %v13950_v58  ;;  %v3765_v26 = vcombine.high %v12041_v29, %v12041_v29  ;;  %v20206_v33 = vld [vmem:[#allocation114_spill] sm:$0xff] }
 0x345   : > { %v8187_v45 = vadd.f32 %v8186_v3, %v7996_v8  ;;  %v8031_v14 = vcombine.low %v16470_v28, %v16474_v54  ;;  %v7152_v16 = vrot.slane %v7144_v10, %v13950_v58  ;;  %v3772_v46 = vrot.slane %v12041_v29, %v13950_v58 }
 0x346   : > { %v3796_v2 = vrot.slane %v3782_v53, %v13950_v58  ;;  %v20207_v59 = vrot.slane %v20206_v33, %v14224_v4  ;;  %v3779_v41 = vrot.slane %v3765_v26, %v13950_v58  ;;  %v7439_v19 = vmul.f32 %v16456_v55, %v16456_v55  ;;  %v20211_v26 = vld [vmem:[#allocation124_spill] sm:$0xff]  ;;  %v20388_v18 = vld [vmem:[#allocation110_spill] sm:$0xff] }
 0x347   : > { %v7160_v39 = vcombine.low %v7152_v16, %v7159_v51  ;;  %v8022_v3 = vrot.slane %v8014_v21, %v13950_v58  ;;  %v3780_v8 = vcombine.high %v3772_v46, %v3772_v46  ;;  %v20208_v28 = vrot.slane %v20182_v34, %v14224_v4 }
 0x348   : > { %v5544_v35 = vmul.f32 %v20207_v59, %v3789_v24  ;;  %v8029_v10 = vrot.slane %v8015_v61, %v13950_v58  ;;  %v3797_v36 = vcombine.high %v3796_v2, %v3796_v2  ;;  %v20210_v17 = vrot.slane %v20209_v60, %v14205_v43 }
 0x349   : > { %v5540_v54 = vmul.f32 %v20208_v28, %v3772_v46  ;;  %v3781_v53 = vcombine.high %v3779_v41, %v3779_v41  ;;  %v20212_v24 = vcombine.high %v20211_v26, %v20211_v26  ;;  %v20214_v21 = vrot.slane %v20206_v33, %v14205_v43 }
 0x34a   : > { %v5545_v29 = vmul.f32 %v20210_v17, %v3796_v2  ;;  %v20215_v34 = vrot.slane %v20206_v33, %v14208_v44  ;;  %v20216_v61 = vcombine.high %v20199_v30, %v20199_v30  ;;  %v20218_v2 = vrot.slane %v20209_v60, %v14208_v44 }
 0x34b   : > { %v16521_v59 = vadd.f32 %v20212_v24, %v5544_v35  ;;  %v5541_v51 = vmul.f32 %v20214_v21, %v3780_v8  ;;  %v20219_v35 = vrot.slane %v20206_v33, %v14221_v0  ;;  %v3815_v24 = vcombine.high %v12042_v5, %v12042_v5  ;;  %v20220_v21 = vld [vmem:[#allocation123_spill] sm:$0xff]  ;;  %v20224_v33 = vld [vmem:[#allocation126_spill] sm:$0xff] }
 0x34c   : > { %v5542_v16 = vmul.f32 %v20215_v34, %v3779_v41  ;;  %v16532_v46 = vadd.f32 %v20216_v61, %v5540_v54  ;;  %v5546_v28 = vmul.f32 %v20218_v2, %v3797_v36  ;;  %v3822_v8 = vrot.slane %v12042_v5, %v13950_v58 }
 0x34d   : > { %20213 = vst [vmem:[#allocation117_spill] sm:$0xff] %v16521_v59  ;;  %v5543_v17 = vmul.f32 %v20219_v35, %v3781_v53  ;;  %v16542_v56 = vadd.f32 %v20220_v21, %v5541_v51  ;;  %v20222_v41 = vcombine.high %v20220_v21, %v20220_v21  ;;  %v8030_v34 = vcombine.low %v8022_v3, %v8029_v10 }
 0x34e   : > { %20217 = vst [vmem:[#allocation113_spill] sm:$0xff] %v16532_v46  ;;  %v7162_v54 = vcombine.low %v16456_v55, %v16532_v46  ;;  %v7440_v36 = vmul.f32 %v16532_v46, %v16532_v46  ;;  %v16554_v53 = vadd.f32 %v20224_v33, %v5545_v29  ;;  %v20226_v5 = vcombine.high %v20224_v33, %v20224_v33 }
 0x34f   : > { %20221 = vst [vmem:[#allocation172_spill] sm:$0xff] %v16542_v56  ;;  %v16547_v30 = vadd.f32 %v20222_v41, %v5542_v16  ;;  %v16562_v61 = vadd.f32 %v20211_v26, %v5543_v17  ;;  %v7444_v16 = vmul.f32 %v16521_v59, %v16521_v59  ;;  %v7441_v3 = vmul.f32 %v16542_v56, %v16542_v56 }
 0x350   : > { %20225 = vst [vmem:[#allocation107_spill] sm:$0xff] %v16554_v53  ;;  %v16559_v51 = vadd.f32 %v20226_v5, %v5546_v28  ;;  %v7176_v2 = vrot.slane %v7162_v54, %v13950_v58  ;;  %v20228_v17 = vcombine.low %v16360_v13, %v16408_v40  ;;  %v20229_v41 = vcombine.low %v16432_v62, %v16411_v49 }
 0x351   : > { %20223 = vst [vmem:[#allocation115_spill] sm:$0xff] %v16547_v30  ;;  %20227 = vst [vmem:[#allocation102_spill] sm:$0xff] %v16562_v61  ;;  %v7178_v35 = vcombine.low %v16542_v56, %v16547_v30  ;;  %v7179_v29 = vcombine.low %v16562_v61, %v16521_v59  ;;  %v7442_v26 = vmul.f32 %v16547_v30, %v16547_v30 }
 0x352   : > { %v7446_v10 = vmul.f32 %v16559_v51, %v16559_v51  ;;  %v7443_v28 = vmul.f32 %v16562_v61, %v16562_v61  ;;  %v7318_v21 = vadd.f32 %v7317_v12, %v20228_v17  ;;  %v8188_v54 = vadd.f32 %v8187_v45, %v20229_v41 }
 0x353   : > { %v8032_v33 = vcombine.low %v7439_v19, %v7440_v36  ;;  %v3829_v5 = vrot.slane %v3815_v24, %v13950_v58  ;;  %v8039_v56 = vrot.slane %v8031_v14, %v13950_v58  ;;  %v7195_v59 = vcombine.low %v16554_v53, %v16559_v51  ;;  %v20230_v24 = vld [vmem:[#allocation125_spill] sm:$0xff] }
 0x354   : > { %v7445_v30 = vmul.f32 %v16554_v53, %v16554_v53  ;;  %v8049_v61 = vcombine.low %v7443_v28, %v7444_v16  ;;  %v7319_v46 = vadd.f32 %v7318_v21, %v7160_v39  ;;  %v8189_v55 = vadd.f32 %v8188_v54, %v8030_v34 }
 0x355   : > { %v7193_v13 = vrot.slane %v7179_v29, %v13950_v58  ;;  %v3830_v40 = vcombine.high %v3822_v8, %v3822_v8  ;;  %v7177_v49 = vcombine.low %v16493_v31, %v7176_v2  ;;  %v7186_v62 = vrot.slane %v7178_v35, %v13950_v58  ;;  %v20233_v2 = vld [vmem:[#allocation181_spill] sm:$0xff]  ;;  %v20234_v29 = vld [vmem:[#allocation131_spill] sm:$0xff] }
 0x356   : > { %v8065_v12 = vcombine.low %v7445_v30, %v7446_v10  ;;  %v8048_v45 = vcombine.low %v7441_v3, %v7442_v26  ;;  %v8046_v14 = vrot.slane %v8032_v33, %v13950_v58  ;;  %v3831_v19 = vcombine.high %v3829_v5, %v3829_v5 }
 0x357   : > { %v20231_v36 = vrot.slane %v20230_v24, %v14224_v4  ;;  %v12043_v39 = vadd.f32 %v15671_v7, %v15669_v22  ;;  %v16601_v34 = vrot.slane %v7195_v59, %v13950_v58  ;;  %v8063_v30 = vrot.slane %v8049_v61, %v13950_v58 }
 0x358   : > { %v20232_v31 = vrot.slane %v20230_v24, %v14221_v0  ;;  %v12044_v35 = vadd.f32 %v20233_v2, %v15724_v48  ;;  %v7194_v3 = vcombine.low %v7186_v62, %v7193_v13  ;;  %v7320_v10 = vadd.f32 %v7319_v46, %v7177_v49  ;;  %v20237_v48 = vld [vmem:[#allocation133_spill] sm:$0xff]  ;;  %v20391_v47 = vld [vmem:[#allocation115_spill] sm:$0xff] }
 0x359   : > { %v5552_v17 = vmul.f32 %v20231_v36, %v3830_v40  ;;  %v20235_v26 = vcombine.high %v20234_v29, %v20234_v29  ;;  %v3798_v22 = vcombine.high %v12043_v39, %v12043_v39  ;;  %v8056_v7 = vrot.slane %v8048_v45, %v13950_v58 }
 0x35a   : > { %v5551_v16 = vmul.f32 %v20232_v31, %v3822_v8  ;;  %v3805_v59 = vrot.slane %v12043_v39, %v13950_v58  ;;  %v3849_v61 = vcombine.high %v12044_v35, %v12044_v35  ;;  %v3856_v21 = vrot.slane %v12044_v35, %v13950_v58  ;;  %v20242_v39 = vld [vmem:[#allocation127_spill] sm:$0xff]  ;;  %v20243_v35 = vld [vmem:[#allocation132_spill] sm:$0xff] }
 0x35b   : > { %v16612_v28 = vadd.f32 %v20235_v26, %v5552_v17  ;;  %v16618_v8 = vrot.slane %v8065_v12, %v13950_v58  ;;  %v8047_v41 = vcombine.low %v8039_v56, %v8046_v14  ;;  %v20238_v46 = vrot.slane %v20237_v48, %v14205_v43 }
 0x35c   : > { %v3812_v33 = vrot.slane %v3798_v22, %v13950_v58  ;;  %v8064_v5 = vcombine.low %v8056_v7, %v8063_v30  ;;  %v16625_v13 = vadd.f32 %v20234_v29, %v5551_v16  ;;  %v3813_v40 = vcombine.high %v3805_v59, %v3805_v59  ;;  %v20245_v7 = vld [vmem:[#allocation128_spill] sm:$0xff] }
 0x35d   : > { %20236 = vst [vmem:[#allocation121_spill] sm:$0xff] %v16612_v28  ;;  %v5553_v54 = vmul.f32 %v20238_v46, %v3831_v19  ;;  %v20239_v49 = vrot.slane %v20209_v60, %v14221_v0  ;;  %v7452_v12 = vmul.f32 %v16612_v28, %v16612_v28  ;;  %v20240_v56 = vrot.slane %v20230_v24, %v14205_v43 }
 0x35e   : > { %v3814_v45 = vcombine.high %v3812_v33, %v3812_v33  ;;  %v7321_v19 = vadd.f32 %v7320_v10, %v7194_v3  ;;  %v20241_v36 = vrot.slane %v20209_v60, %v14224_v4  ;;  %v3863_v31 = vrot.slane %v3849_v61, %v13950_v58 }
 0x35f   : > { %v5547_v62 = vmul.f32 %v20239_v49, %v3805_v59  ;;  %v5549_v14 = vmul.f32 %v20240_v56, %v3812_v33  ;;  %v3864_v16 = vcombine.high %v3856_v21, %v3856_v21  ;;  %v8190_v2 = vadd.f32 %v8189_v55, %v8047_v41 }
 0x360   : > { %v5548_v17 = vmul.f32 %v20241_v36, %v3813_v40  ;;  %v16643_v29 = vadd.f32 %v20243_v35, %v5553_v54  ;;  %v20244_v26 = vrot.slane %v20230_v24, %v14208_v44  ;;  %v7213_v60 = vcombine.low %v16625_v13, %v16612_v28 }
 0x361   : > { %v16639_v30 = vadd.f32 %v20242_v39, %v5547_v62  ;;  %v16649_v3 = vadd.f32 %v20245_v7, %v5549_v14  ;;  %v7451_v10 = vmul.f32 %v16625_v13, %v16625_v13  ;;  %v20246_v59 = vcombine.high %v20242_v39, %v20242_v39  ;;  %v20251_v62 = vld [vmem:[#allocation182_spill] sm:$0xff] }
 0x362   : > { %v5550_v22 = vmul.f32 %v20244_v26, %v3814_v45  ;;  %v20247_v61 = vrot.slane %v15542_v63, %v14208_v44  ;;  %v20248_v24 = vcombine.high %v20245_v7, %v20245_v7  ;;  %v20249_v54 = vrot.slane %v15542_v63, %v14221_v0  ;;  %v20252_v45 = vld [vmem:[#allocation183_spill] sm:$0xff] }
 0x363   : > { %v16658_v55 = vadd.f32 %v20246_v59, %v5548_v17  ;;  %v20250_v40 = vrot.slane %v15542_v63, %v14224_v4  ;;  %v12045_v56 = vadd.f32 %v20252_v45, %v20251_v62  ;;  %v8083_v14 = vcombine.low %v7451_v10, %v7452_v12  ;;  %v20253_v10 = vld [vmem:[#allocation173_spill] sm:$0xff] }
 0x364   : > { %v5558_v41 = vmul.f32 %v20247_v61, %v3856_v21  ;;  %v16666_v46 = vadd.f32 %v20248_v24, %v5550_v22  ;;  %v5559_v33 = vmul.f32 %v20249_v54, %v3864_v16  ;;  %v7447_v36 = vmul.f32 %v16639_v30, %v16639_v30 }
 0x365   : > { %v5560_v49 = vmul.f32 %v20250_v40, %v3863_v31  ;;  %v7196_v21 = vcombine.low %v16639_v30, %v16658_v55  ;;  %v7448_v17 = vmul.f32 %v16658_v55, %v16658_v55  ;;  %v7449_v16 = vmul.f32 %v16649_v3, %v16649_v3 }
 0x366   : > { %v7212_v39 = vcombine.low %v16649_v3, %v16666_v46  ;;  %v7450_v31 = vmul.f32 %v16666_v46, %v16666_v46  ;;  %v3832_v26 = vcombine.high %v12045_v56, %v12045_v56  ;;  %v7453_v12 = vmul.f32 %v16643_v29, %v16643_v29 }
 0x367   : > { %v7210_v22 = vrot.slane %v7196_v21, %v13950_v58  ;;  %v8066_v7 = vcombine.low %v7447_v36, %v7448_v17  ;;  %v20254_v59 = vcombine.high %v20253_v10, %v20253_v10  ;;  %v16697_v54 = vadd.f32 %v15470_v23, %v5559_v33 }
 0x368   : > { %v8082_v24 = vcombine.low %v7449_v16, %v7450_v31  ;;  %v20255_v40 = vcombine.high %v15470_v23, %v15470_v23  ;;  %v3839_v45 = vrot.slane %v12045_v56, %v13950_v58  ;;  %v7227_v28 = vrot.slane %v7213_v60, %v13950_v58 }
 0x369   : > { %v16694_v61 = vadd.f32 %v20254_v59, %v5558_v41  ;;  %v8080_v21 = vrot.slane %v8066_v7, %v13950_v58  ;;  %v8191_v36 = vadd.f32 %v8190_v2, %v8064_v5  ;;  %v3846_v17 = vrot.slane %v3832_v26, %v13950_v58 }
 0x36a   : > { %v16702_v62 = vadd.f32 %v20255_v40, %v5560_v49  ;;  %v8097_v41 = vrot.slane %v8083_v14, %v13950_v58  ;;  %v7211_v16 = vcombine.low %v16601_v34, %v7210_v22  ;;  %v7220_v33 = vrot.slane %v7212_v39, %v13950_v58 }
 0x36b   : > { %v3847_v31 = vcombine.high %v3839_v45, %v3839_v45  ;;  %v8090_v23 = vrot.slane %v8082_v24, %v13950_v58  ;;  %v7458_v49 = vmul.f32 %v16694_v61, %v16694_v61  ;;  %v3848_v56 = vcombine.high %v3846_v17, %v3846_v17 }
 0x36c   : > { %v20256_v60 = vrot.slane %v20237_v48, %v14208_v44  ;;  %v8081_v5 = vcombine.low %v16618_v8, %v8080_v21  ;;  %v7247_v2 = vcombine.low %v16697_v54, %v16702_v62  ;;  %v20257_v34 = vrot.slane %v20237_v48, %v14221_v0  ;;  %v20261_v21 = vld [vmem:[#allocation134_spill] sm:$0xff] }
 0x36d   : > { %v20258_v39 = vrot.slane %v20237_v48, %v14224_v4  ;;  %v7459_v22 = vmul.f32 %v16697_v54, %v16697_v54  ;;  %v7460_v44 = vmul.f32 %v16702_v62, %v16702_v62  ;;  %v20259_v8 = vrot.slane %v15542_v63, %v14205_v43 }
 0x36e   : > { %v5554_v7 = vmul.f32 %v20256_v60, %v3839_v45  ;;  %v5555_v14 = vmul.f32 %v20257_v34, %v3847_v31  ;;  %v20260_v24 = vcombine.high %v20243_v35, %v20243_v35  ;;  %v7228_v0 = vcombine.low %v7220_v33, %v7227_v28  ;;  %v12490_v34 = vld [vmem:[%s12825_s7 + $0xdb] sm:$0xff] }
 0x36f   : > { %v5556_v26 = vmul.f32 %v20258_v39, %v3846_v17  ;;  %v5557_v59 = vmul.f32 %v20259_v8, %v3848_v56  ;;  %v7322_v45 = vadd.f32 %v7321_v19, %v7211_v16  ;;  %v20262_v48 = vcombine.high %v20261_v21, %v20261_v21 }
 0x370   : > { %v16736_v40 = vadd.f32 %v20260_v24, %v5554_v7  ;;  %v16739_v4 = vadd.f32 %v20261_v21, %v5555_v14  ;;  %v8098_v31 = vcombine.low %v8090_v23, %v8097_v41  ;;  %v8192_v19 = vadd.f32 %v8191_v36, %v8081_v5  ;;  %v16771_v24 = vld.sshfl [vmem:[%s12825_s7 + $0xd3] sm:$0xff pattern:$0x76325410] }
 0x371   : > { %v16744_v17 = vadd.f32 %v20262_v48, %v5556_v26  ;;  %v16747_v43 = vadd.f32 %v20253_v10, %v5557_v59  ;;  %v8117_v33 = vcombine.low %v7459_v22, %v7460_v44  ;;  %v7323_v7 = vadd.f32 %v7322_v45, %v7228_v0  ;;  %20263 = vst [vmem:[#allocation118_spill] sm:$0xff] %v16771_v24  ;;  %v20338_v24 = vld [vmem:[#allocation130_spill] sm:$0xff] }
 0x372   : > { %v7229_v63 = vcombine.low %v16643_v29, %v16736_v40  ;;  %v7454_v28 = vmul.f32 %v16736_v40, %v16736_v40  ;;  %v7455_v16 = vmul.f32 %v16739_v4, %v16739_v4  ;;  %v8964_v14 = vcombine.high %v12490_v34, %v12490_v34 }
 0x373   : > { %v7230_v35 = vcombine.low %v16739_v4, %v16744_v17  ;;  %v7456_v41 = vmul.f32 %v16744_v17, %v16744_v17  ;;  %v7246_v10 = vcombine.low %v16747_v43, %v16694_v61  ;;  %v7457_v23 = vmul.f32 %v16747_v43, %v16747_v43 }
 0x374   : > { %v8099_v56 = vcombine.low %v7453_v12, %v7454_v28  ;;  %v7237_v36 = vrot.slane %v7229_v63, %v13950_v58  ;;  %v7261_v39 = vrot.slane %v7247_v2, %v13950_v58  ;;  %v8193_v59 = vadd.f32 %v8192_v19, %v8098_v31  ;;  %v20264_v2 = vld [vmem:[#allocation20_spill] sm:$0xff]  ;;  %v12492_v19 = vld [vmem:[%s12825_s7 + $0xe3] sm:$0xff] }
 0x375   : > { %v7244_v60 = vrot.slane %v7230_v35, %v13950_v58  ;;  %v8100_v5 = vcombine.low %v7455_v16, %v7456_v41  ;;  %v7254_v26 = vrot.slane %v7246_v10, %v13950_v58  ;;  %v8116_v22 = vcombine.low %v7457_v23, %v7458_v49  ;;  %v12493_v41 = vld [vmem:[%s12825_s7 + $0xeb] sm:$0xff] }
 0x376   : > { %v8107_v8 = vrot.slane %v8099_v56, %v13950_v58  ;;  %v8131_v0 = vrot.slane %v8117_v33, %v13950_v58  ;;  %v20265_v48 = vcombine.high %v20264_v2, %v20264_v2  ;;  %v16782_v49 = vrot.slane %v12490_v34, %v13950_v58 }
 0x377   : > { %v7245_v44 = vcombine.low %v7237_v36, %v7244_v60  ;;  %v8114_v12 = vrot.slane %v8100_v5, %v13950_v58  ;;  %v7262_v45 = vcombine.low %v7254_v26, %v7261_v39  ;;  %v8124_v21 = vrot.slane %v8116_v22, %v13950_v58  ;;  %v12494_v22 = vld [vmem:[%s12825_s7 + $0xf3] sm:$0xff]  ;;  %v12499_v60 = vld [vmem:[%s12825_s7 + $0x11b] sm:$0xff] }
 0x378   : > { %v16779_v63 = vrot.slane %v20265_v48, %v13950_v58  ;;  %20267 = vst [vmem:[#allocation120_spill] sm:$0xff] %v16782_v49  ;;  %v16785_v31 = vrot.slane %v8964_v14, %v13950_v58  ;;  %v8981_v16 = vcombine.high %v12492_v19, %v12492_v19  ;;  %v8997_v33 = vcombine.high %v12493_v41, %v12493_v41 }
 0x379   : > { %v7324_v28 = vadd.f32 %v7323_v7, %v7245_v44  ;;  %v8115_v35 = vcombine.low %v8107_v8, %v8114_v12  ;;  %v8132_v10 = vcombine.low %v8124_v21, %v8131_v0  ;;  %v16798_v26 = vrot.slane %v12492_v19, %v13950_v58  ;;  %v16833_v8 = vld [vmem:[%s12825_s7 + $0x10b] sm:$0xff] }
 0x37a   : > { %20266 = vst [vmem:[#allocation122_spill] sm:$0xff] %v16779_v63  ;;  %20268 = vst [vmem:[#allocation175_spill] sm:$0xff] %v16785_v31  ;;  %v9014_v44 = vcombine.high %v12494_v22, %v12494_v22  ;;  %v16808_v21 = vrot.slane %v8981_v16, %v13950_v58  ;;  %v16811_v2 = vrot.slane %v12493_v41, %v13950_v58 }
 0x37b   : > { %v7325_v5 = vadd.f32 %v7324_v28, %v7262_v45  ;;  %v8194_v34 = vadd.f32 %v8193_v59, %v8115_v35  ;;  %20272 = vst [vmem:[#allocation114_spill] sm:$0xff] %v16798_v26  ;;  %v16814_v48 = vrot.slane %v8997_v33, %v13950_v58  ;;  %v16817_v28 = vrot.slane %v12494_v22, %v13950_v58  ;;  %v12495_v35 = vld [vmem:[%s12825_s7 + $0xfb] sm:$0xff]  ;;  %v12496_v33 = vld [vmem:[%s12825_s7 + $0x103] sm:$0xff]  ;;  %v12498_v45 = vld [vmem:[%s12825_s7 + $0x113] sm:$0xff] }
 0x37c   : > { %20273 = vst [vmem:[#allocation119_spill] sm:$0xff] %v16808_v21  ;;  %20274 = vst [vmem:[#allocation124_spill] sm:$0xff] %v16811_v2  ;;  %v9031_v19 = vcombine.high %v12495_v35, %v12495_v35  ;;  %v16823_v16 = vrot.slane %v9014_v44, %v13950_v58  ;;  %v16826_v41 = vrot.slane %v12495_v35, %v13950_v58  ;;  %v12500_v44 = vld [vmem:[%s12825_s7 + $0x123] sm:$0xff] }
 0x37d   : > { %v7326_v0 = vrot.slane %v7325_v5, 4  ;;  %v8195_v59 = vadd.f32 %v8194_v34, %v8132_v10  ;;  %20275 = vst [vmem:[#allocation123_spill] sm:$0xff] %v16814_v48  ;;  %20276 = vst [vmem:[#allocation126_spill] sm:$0xff] %v16817_v28  ;;  %v9048_v12 = vcombine.high %v12496_v33, %v12496_v33  ;;  %v16830_v22 = vrot.slane %v12496_v33, %v13950_v58  ;;  %v20292_v33 = vld [vmem:[#allocation142_spill] sm:$0xff] }
 0x37e   : > { %20277 = vst [vmem:[#allocation125_spill] sm:$0xff] %v16823_v16  ;;  %20278 = vst [vmem:[#allocation181_spill] sm:$0xff] %v16826_v41  ;;  %v9081_v7 = vcombine.high %v12498_v45, %v12498_v45  ;;  %v9098_v56 = vcombine.high %v12499_v60, %v12499_v60  ;;  %v16846_v21 = vrot.slane %v9031_v19, %v13950_v58 }
 0x37f   : > { %v7327_v10 = vadd.f32 %v7326_v0, %v7325_v5  ;;  %v8196_v34 = vrot.slane %v8195_v59, 4  ;;  %20279 = vst [vmem:[#allocation131_spill] sm:$0xff] %v16830_v22  ;;  %20280 = vst [vmem:[#allocation133_spill] sm:$0xff] %v16833_v8  ;;  %v9065_v5 = vcombine.high %v16833_v8, %v16833_v8  ;;  %v16853_v35 = vrot.slane %v9048_v12, %v13950_v58 }
 0x380   : > { %20281 = vst [vmem:[#allocation127_spill] sm:$0xff] %v16846_v21  ;;  %v9115_v48 = vcombine.high %v12500_v44, %v12500_v44  ;;  %v16862_v28 = vrot.slane %v12498_v45, %v13950_v58  ;;  %v16868_v12 = vrot.slane %v12499_v60, %v13950_v58  ;;  %v12501_v45 = vld [vmem:[%s12825_s7 + $0x12b] sm:$0xff] }
 0x381   : > { %v7328_v0 = vrot.slane %v7327_v10, 2  ;;  %v8197_v14 = vadd.f32 %v8196_v34, %v8195_v59  ;;  %20282 = vst [vmem:[#allocation132_spill] sm:$0xff] %v16853_v35  ;;  %v16859_v19 = vrot.slane %v9065_v5, %v13950_v58  ;;  %v16865_v59 = vrot.slane %v9081_v7, %v13950_v58 }
 0x382   : > { %20284 = vst [vmem:[#allocation182_spill] sm:$0xff] %v16862_v28  ;;  %20286 = vst [vmem:[#allocation173_spill] sm:$0xff] %v16868_v12  ;;  %v16871_v34 = vrot.slane %v9098_v56, %v13950_v58  ;;  %v16881_v7 = vrot.slane %v9115_v48, %v13950_v58  ;;  %v9132_v60 = vcombine.high %v12501_v45, %v12501_v45  ;;  %v20290_v12 = vld [vmem:[#allocation139_spill] sm:$0xff]  ;;  %v20339_v28 = vld [vmem:[#allocation92_spill] sm:$0xff] }
 0x383   : > { %v7329_v26 = vadd.f32 %v7328_v0, %v7327_v10  ;;  %v8198_v31 = vrot.slane %v8197_v14, 2  ;;  %20283 = vst [vmem:[#allocation128_spill] sm:$0xff] %v16859_v19  ;;  %20285 = vst [vmem:[#allocation183_spill] sm:$0xff] %v16865_v59  ;;  %v16885_v41 = vrot.slane %v12501_v45, %v13950_v58 }
 0x385   : > { %v7330_v10 = vrot.slane %v7329_v26, 1  ;;  %v8199_v0 = vadd.f32 %v8198_v31, %v8197_v14  ;;  %v16878_v14 = vrot.slane %v12500_v44, %v13950_v58 }
 0x387   : > { %v7331_v22 = vadd.f32 %v7330_v10, %v7329_v26  ;;  %v8200_v31 = vrot.slane %v8199_v0, 1  ;;  %v20294_v10 = vld [vmem:[#allocation138_spill] sm:$0xff] }
 0x389   : > { %v7332_v5 = vmul.f32 0.00390625, %v7331_v22  ;;  %v8201_v26 = vadd.f32 %v8200_v31, %v8199_v0  ;;  %v16907_v31 = vrot.slane %v9132_v60, %v13950_v58  ;;  %v20287_v60 = vld [vmem:[#allocation136_spill] sm:$0xff]  ;;  %v20288_v0 = vld [vmem:[#allocation135_spill] sm:$0xff]  ;;  %v20293_v22 = vld [vmem:[#allocation137_spill] sm:$0xff] }
 0x38b   : > { %v8202_v8 = vmul.f32 0.00390625, %v8201_v26  ;;  %v8203_v21 = vmul.f32 %v7332_v5, %v7332_v5  ;;  %v8207_v56 = vcombine.high %v7332_v5, %v7332_v5  ;;  %v16900_v35 = vrot.slane %v7332_v5, %v13950_v58 }
 0x38d   : > { %v8204_v48 = vsub.f32 %v8202_v8, %v8203_v21  ;;  %v16912_v26 = vrot.slane %v8207_v56, %v13950_v58  ;;  %v16916_v5 = vcombine.high %v16900_v35, %v16900_v35  ;;  %v20337_v21 = vld [vmem:[#allocation129_spill] sm:$0xff]  ;;  %v20343_v36 = vsub.f32 %v16643_v29, %v16900_v35 }
 0x38e   : > { %v20344_v63 = vsub.f32 %v16747_v43, %v16900_v35 }
 0x38f   : > { %v8205_v56 = vmax.f32 %v8204_v48, 0.0  ;;  %v16930_v45 = vcombine.high %v16912_v26, %v16912_v26  ;;  %v20291_v48 = vld [vmem:[#allocation140_spill] sm:$0xff]  ;;  %v20348_v43 = vsub.f32 %v16736_v40, %v16916_v5  ;;  %v20350_v9 = vsub.f32 %v16694_v61, %v16916_v5 }
 0x390   : > { %v20351_v23 = vsub.f32 %v16697_v54, %v16912_v26  ;;  %v20352_v40 = vcombine.high %v16871_v34, %v16871_v34  ;;  %v20396_v11 = vsub.f32 %v20290_v12, %v16916_v5 }
 0x391   : > { %v8356_v19 = vadd.f32 1e-05, %v8205_v56  ;;  %v20355_v61 = vsub.f32 %v16744_v17, %v16930_v45  ;;  %v20356_v54 = vsub.f32 %v16702_v62, %v16930_v45  ;;  %v20398_v53 = vsub.f32 %v20292_v33, %v16930_v45 }
 0x393   : > { %12470 = vrsqrt.f32 %v8356_v19 }
 0x39d   : > { %v12471_v59 = vpop.eup %12470 }
 0x39e   : > { %v8359_v56 = vcombine.high %v12471_v59, %v12471_v59  ;;  %v17045_v39 = vrot.slane %v12471_v59, %v13950_v58 }
 0x3a0   : > { %v17060_v59 = vrot.slane %v8359_v56, %v13950_v58  ;;  %v17064_v2 = vcombine.high %v17045_v39, %v17045_v39  ;;  %v8500_v8 = vmul.f32 %v17045_v39, %v20343_v36  ;;  %v8504_v19 = vmul.f32 %v17045_v39, %v20344_v63 }
 0x3a1   : > { %v20349_v36 = vsub.f32 %v16739_v4, %v16912_v26 }
 0x3a2   : > { %v17084_v29 = vcombine.high %v17060_v59, %v17060_v59  ;;  %v8501_v63 = vmul.f32 %v17064_v2, %v20348_v43  ;;  %v8505_v44 = vmul.f32 %v17064_v2, %v20350_v9  ;;  %v8506_v49 = vmul.f32 %v17060_v59, %v20351_v23 }
 0x3a3   : > { %v8502_v27 = vmul.f32 %v17060_v59, %v20349_v36  ;;  %v9396_v15 = vadd.f32 %v20352_v40, %v8500_v8  ;;  %v20353_v43 = vcombine.high %v16881_v7, %v16881_v7  ;;  %v20357_v8 = vcombine.high %v16878_v14, %v16878_v14 }
 0x3a4   : > { %v8503_v9 = vmul.f32 %v17084_v29, %v20355_v61  ;;  %v8507_v23 = vmul.f32 %v17084_v29, %v20356_v54  ;;  %v9397_v34 = vadd.f32 %v16878_v14, %v8501_v63  ;;  %v20359_v14 = vld [vmem:[#allocation57_spill] sm:$0xff] }
 0x3a5   : > { %v9400_v4 = vadd.f32 %v20353_v43, %v8504_v19  ;;  %v9398_v40 = vadd.f32 %v20357_v8, %v8502_v27  ;;  %v9401_v19 = vadd.f32 %v16885_v41, %v8505_v44  ;;  %v20358_v43 = vcombine.high %v16885_v41, %v16885_v41  ;;  %v20393_v27 = vld [vmem:[#allocation117_spill] sm:$0xff] }
 0x3a6   : > { %v9524_v17 = vmax.f32 %v9396_v15, 0.0  ;;  %v9399_v61 = vadd.f32 %v16881_v7, %v8503_v9  ;;  %v9403_v62 = vadd.f32 %v16907_v31, %v8507_v23  ;;  %v9525_v54 = vmax.f32 %v9397_v34, 0.0  ;;  %v20360_v15 = vld [vmem:[#allocation95_spill] sm:$0xff]  ;;  %v20361_v9 = vld [vmem:[#allocation156_spill] sm:$0xff]  ;;  %v20366_v31 = vld [vmem:[#allocation157_spill] sm:$0xff] }
 0x3a7   : > { %v9402_v56 = vadd.f32 %v20358_v43, %v8506_v49  ;;  %v9528_v36 = vmax.f32 %v9400_v4, 0.0  ;;  %v9526_v50 = vmax.f32 %v9398_v40, 0.0  ;;  %v9529_v63 = vmax.f32 %v9401_v19, 0.0  ;;  %v20362_v23 = vld [vmem:[#allocation100_spill] sm:$0xff]  ;;  %v20367_v34 = vld [vmem:[#allocation158_spill] sm:$0xff] }
 0x3a8   : > { %v9527_v8 = vmax.f32 %v9399_v61, 0.0  ;;  %v9531_v41 = vmax.f32 %v9403_v62, 0.0  ;;  %v10170_v49 = vcombine.low %v9524_v17, %v9525_v54  ;;  %v20364_v17 = vld [vmem:[#allocation99_spill] sm:$0xff]  ;;  %v20392_v4 = vld [vmem:[#allocation102_spill] sm:$0xff] }
 0x3a9   : > { %v9530_v16 = vmax.f32 %v9402_v56, 0.0  ;;  %v10187_v7 = vcombine.low %v9528_v36, %v9529_v63  ;;  %v20363_v56 = vld [vmem:[#allocation68_spill] sm:$0xff]  ;;  %v20365_v36 = vld [vmem:[#allocation186_spill] sm:$0xff]  ;;  %v20387_v62 = vld [vmem:[#allocation111_spill] sm:$0xff] }
 0x3aa   : > { %v10171_v19 = vcombine.low %v9526_v50, %v9527_v8  ;;  %v10178_v43 = vrot.slane %v10170_v49, %v13950_v58  ;;  %v20375_v63 = vld [vmem:[#allocation162_spill] sm:$0xff]  ;;  %v20394_v49 = vld [vmem:[#allocation121_spill] sm:$0xff] }
 0x3ab   : > { %v10188_v61 = vcombine.low %v9530_v16, %v9531_v41  ;;  %v10195_v54 = vrot.slane %v10187_v7, %v13950_v58  ;;  %v20368_v16 = vld [vmem:[#allocation104_spill] sm:$0xff]  ;;  %v20373_v41 = vld [vmem:[#allocation105_spill] sm:$0xff] }
 0x3ac   : > { %v10185_v40 = vrot.slane %v10171_v19, %v13950_v58  ;;  %v20374_v7 = vld [vmem:[#allocation161_spill] sm:$0xff]  ;;  %v20378_v19 = vld [vmem:[#allocation74_spill] sm:$0xff] }
 0x3ad   : > { %v10202_v50 = vrot.slane %v10188_v61, %v13950_v58  ;;  %v20372_v58 = vld [vmem:[#allocation164_spill] sm:$0xff] }
 0x3ae   : > { %v10186_v44 = vcombine.low %v10178_v43, %v10185_v40  ;;  %v20390_v43 = vld [vmem:[#allocation172_spill] sm:$0xff]  ;;  %v20397_v40 = vsub.f32 %v20291_v48, %v16912_v26 }
 0x3af   : > { %v10203_v61 = vcombine.low %v10195_v54, %v10202_v50  ;;  %v20377_v50 = vld [vmem:[#allocation101_spill] sm:$0xff]  ;;  %v17259_v54 = vmul.f32 %v17064_v2, %v20396_v11  ;;  %v20402_v11 = vsub.f32 %v20293_v22, %v16916_v5 }
 0x3b0   : > { %10266 = vst [vmem:[%s17177_s23 + $0xf0] sm:$0xff] %v10186_v44  ;;  %v20395_v44 = vsub.f32 %v20287_v60, %v16900_v35  ;;  %v17265_v8 = vmul.f32 %v17060_v59, %v20397_v40  ;;  %v17271_v60 = vmul.f32 %v17084_v29, %v20398_v53  ;;  %v20404_v40 = vsub.f32 %v20294_v10, %v16912_v26  ;;  %v20406_v53 = vld [vmem:[#allocation141_spill] sm:$0xff] }
 0x3b1   : > { %10267 = vst [vmem:[%s17177_s23 + $0xf8] sm:$0xff] %v10203_v61  ;;  %v20389_v61 = vld [vmem:[#allocation113_spill] sm:$0xff]  ;;  %v17283_v48 = vmul.f32 %v17064_v2, %v20402_v11  ;;  %v20412_v11 = vld [vmem:[#allocation148_spill] sm:$0xff] }
 0x3b2   : > { %v17253_v25 = vmul.f32 %v17045_v39, %v20395_v44  ;;  %20399 = vst [vmem:[#allocation134_spill] sm:$0xff] %v17271_v60  ;;  %v20400_v44 = vsub.f32 %v20288_v0, %v16900_v35  ;;  %v17289_v33 = vmul.f32 %v17060_v59, %v20404_v40  ;;  %v20407_v60 = vsub.f32 %v20406_v53, %v16930_v45  ;;  %v20415_v40 = vld [vmem:[#allocation149_spill] sm:$0xff] }
 0x3b3   : > { %20403 = vst [vmem:[#allocation136_spill] sm:$0xff] %v17283_v48  ;;  %v20413_v48 = vsub.f32 %v20412_v11, %v16916_v5 }
 0x3b4   : > { %v17277_v12 = vmul.f32 %v17045_v39, %v20400_v44  ;;  %20405 = vst [vmem:[#allocation135_spill] sm:$0xff] %v17289_v33  ;;  %v17295_v0 = vmul.f32 %v17084_v29, %v20407_v60  ;;  %v20409_v44 = vld [vmem:[#allocation147_spill] sm:$0xff]  ;;  %v20416_v33 = vsub.f32 %v20415_v40, %v16912_v26 }
 0x3b5   : > { %v17307_v10 = vmul.f32 %v17064_v2, %v20413_v48  ;;  %v20418_v60 = vld [vmem:[#allocation143_spill] sm:$0xff]  ;;  %v20424_v48 = vld [vmem:[#allocation144_spill] sm:$0xff] }
 0x3b6   : > { %20401 = vst [vmem:[#allocation20_spill] sm:$0xff] %v17277_v12  ;;  %20408 = vst [vmem:[#allocation139_spill] sm:$0xff] %v17295_v0  ;;  %v20410_v12 = vsub.f32 %v20409_v44, %v16900_v35  ;;  %v17313_v53 = vmul.f32 %v17060_v59, %v20416_v33  ;;  %v20419_v0 = vsub.f32 %v20418_v60, %v16930_v45  ;;  %v20427_v33 = vld [vmem:[#allocation146_spill] sm:$0xff] }
 0x3b7   : > { %20414 = vst [vmem:[#allocation142_spill] sm:$0xff] %v17307_v10  ;;  %v20425_v10 = vsub.f32 %v20424_v48, %v16916_v5 }
 0x3b8   : > { %v17301_v22 = vmul.f32 %v17045_v39, %v20410_v12  ;;  %20417 = vst [vmem:[#allocation137_spill] sm:$0xff] %v17313_v53  ;;  %v17319_v44 = vmul.f32 %v17084_v29, %v20419_v0  ;;  %v20421_v12 = vld [vmem:[#allocation145_spill] sm:$0xff]  ;;  %v20428_v53 = vsub.f32 %v20427_v33, %v16912_v26  ;;  %v20430_v0 = vld [vmem:[#allocation154_spill] sm:$0xff] }
 0x3b9   : > { %v17331_v40 = vmul.f32 %v17064_v2, %v20425_v10  ;;  %v20436_v10 = vld [vmem:[#allocation159_spill] sm:$0xff] }
 0x3ba   : > { %20411 = vst [vmem:[#allocation140_spill] sm:$0xff] %v17301_v22  ;;  %20420 = vst [vmem:[#allocation138_spill] sm:$0xff] %v17319_v44  ;;  %v20422_v22 = vsub.f32 %v20421_v12, %v16900_v35  ;;  %v17337_v60 = vmul.f32 %v17060_v59, %v20428_v53  ;;  %v20431_v44 = vsub.f32 %v20430_v0, %v16930_v45  ;;  %v20439_v53 = vld [vmem:[#allocation150_spill] sm:$0xff] }
 0x3bb   : > { %20426 = vst [vmem:[#allocation130_spill] sm:$0xff] %v17331_v40  ;;  %v20437_v40 = vsub.f32 %v20436_v10, %v16916_v5 }
 0x3bc   : > { %v17325_v11 = vmul.f32 %v17045_v39, %v20422_v22  ;;  %20429 = vst [vmem:[#allocation92_spill] sm:$0xff] %v17337_v60  ;;  %v17343_v12 = vmul.f32 %v17084_v29, %v20431_v44  ;;  %v20433_v22 = vld [vmem:[#allocation155_spill] sm:$0xff]  ;;  %v20440_v60 = vsub.f32 %v20439_v53, %v16912_v26 }
 0x3bd   : > { %v17355_v33 = vmul.f32 %v17064_v2, %v20437_v40  ;;  %v20442_v44 = vld [vmem:[#allocation151_spill] sm:$0xff]  ;;  %v20448_v40 = vld [vmem:[#allocation153_spill] sm:$0xff] }
 0x3be   : > { %20423 = vst [vmem:[#allocation129_spill] sm:$0xff] %v17325_v11  ;;  %20432 = vst [vmem:[#allocation57_spill] sm:$0xff] %v17343_v12  ;;  %v20434_v11 = vsub.f32 %v20433_v22, %v16900_v35  ;;  %v17361_v0 = vmul.f32 %v17060_v59, %v20440_v60  ;;  %v20443_v12 = vsub.f32 %v20442_v44, %v16930_v45  ;;  %v20451_v60 = vld [vmem:[#allocation77_spill] sm:$0xff] }
 0x3bf   : > { %20438 = vst [vmem:[#allocation156_spill] sm:$0xff] %v17355_v33  ;;  %v20449_v33 = vsub.f32 %v20448_v40, %v16916_v5 }
 0x3c0   : > { %v17349_v48 = vmul.f32 %v17045_v39, %v20434_v11  ;;  %20441 = vst [vmem:[#allocation100_spill] sm:$0xff] %v17361_v0  ;;  %v17367_v22 = vmul.f32 %v17084_v29, %v20443_v12  ;;  %v20445_v11 = vld [vmem:[#allocation152_spill] sm:$0xff]  ;;  %v20452_v0 = vsub.f32 %v20451_v60, %v16912_v26  ;;  %v20454_v12 = vld [vmem:[#allocation22_spill] sm:$0xff] }
 0x3c1   : > { %v17379_v53 = vmul.f32 %v17064_v2, %v20449_v33  ;;  %v20460_v33 = vld [vmem:[#allocation160_spill] sm:$0xff] }
 0x3c2   : > { %20435 = vst [vmem:[#allocation95_spill] sm:$0xff] %v17349_v48  ;;  %20444 = vst [vmem:[#allocation68_spill] sm:$0xff] %v17367_v22  ;;  %v20446_v48 = vsub.f32 %v20445_v11, %v16900_v35  ;;  %v17385_v44 = vmul.f32 %v17060_v59, %v20452_v0  ;;  %v20455_v22 = vsub.f32 %v20454_v12, %v16930_v45  ;;  %v20463_v0 = vld [vmem:[#allocation21_spill] sm:$0xff] }
 0x3c3   : > { %20450 = vst [vmem:[#allocation186_spill] sm:$0xff] %v17379_v53  ;;  %v20461_v53 = vsub.f32 %v20460_v33, %v16916_v5 }
 0x3c4   : > { %v17373_v10 = vmul.f32 %v17045_v39, %v20446_v48  ;;  %20453 = vst [vmem:[#allocation157_spill] sm:$0xff] %v17385_v44  ;;  %v17391_v11 = vmul.f32 %v17084_v29, %v20455_v22  ;;  %v20457_v48 = vld [vmem:[#allocation168_spill] sm:$0xff]  ;;  %v20464_v44 = vsub.f32 %v20463_v0, %v16912_v26  ;;  %v20466_v22 = vld [vmem:[#allocation78_spill] sm:$0xff] }
 0x3c5   : > { %v17403_v60 = vmul.f32 %v17064_v2, %v20461_v53  ;;  %v20472_v53 = vld [vmem:[#allocation174_spill] sm:$0xff] }
 0x3c6   : > { %20447 = vst [vmem:[#allocation99_spill] sm:$0xff] %v17373_v10  ;;  %20456 = vst [vmem:[#allocation158_spill] sm:$0xff] %v17391_v11  ;;  %v20458_v10 = vsub.f32 %v20457_v48, %v16900_v35  ;;  %v17409_v12 = vmul.f32 %v17060_v59, %v20464_v44  ;;  %v20467_v11 = vsub.f32 %v20466_v22, %v16930_v45  ;;  %v20475_v44 = vld [vmem:[#allocation80_spill] sm:$0xff] }
 0x3c7   : > { %20462 = vst [vmem:[#allocation164_spill] sm:$0xff] %v17403_v60  ;;  %v20473_v60 = vsub.f32 %v20472_v53, %v16916_v5 }
 0x3c8   : > { %v17397_v40 = vmul.f32 %v17045_v39, %v20458_v10  ;;  %20465 = vst [vmem:[#allocation105_spill] sm:$0xff] %v17409_v12  ;;  %v17415_v48 = vmul.f32 %v17084_v29, %v20467_v11  ;;  %v20469_v10 = vld [vmem:[#allocation79_spill] sm:$0xff]  ;;  %v20476_v12 = vsub.f32 %v20475_v44, %v16912_v26  ;;  %v20478_v11 = vld [vmem:[#allocation176_spill] sm:$0xff] }
 0x3c9   : > { %v17427_v0 = vmul.f32 %v17064_v2, %v20473_v60  ;;  %v20484_v60 = vld [vmem:[#allocation170_spill] sm:$0xff] }
 0x3ca   : > { %20459 = vst [vmem:[#allocation104_spill] sm:$0xff] %v17397_v40  ;;  %20468 = vst [vmem:[#allocation161_spill] sm:$0xff] %v17415_v48  ;;  %v20470_v40 = vsub.f32 %v20469_v10, %v16900_v35  ;;  %v17433_v22 = vmul.f32 %v17060_v59, %v20476_v12  ;;  %v20479_v48 = vsub.f32 %v20478_v11, %v16930_v45  ;;  %v20487_v12 = vld [vmem:[#allocation81_spill] sm:$0xff] }
 0x3cb   : > { %20474 = vst [vmem:[#allocation163_spill] sm:$0xff] %v17427_v0  ;;  %v20485_v0 = vsub.f32 %v20484_v60, %v16916_v5 }
 0x3cc   : > { %v17421_v33 = vmul.f32 %v17045_v39, %v20470_v40  ;;  %20477 = vst [vmem:[#allocation101_spill] sm:$0xff] %v17433_v22  ;;  %v17439_v10 = vmul.f32 %v17084_v29, %v20479_v48  ;;  %v20481_v40 = vld [vmem:[#allocation169_spill] sm:$0xff]  ;;  %v20488_v22 = vsub.f32 %v20487_v12, %v16912_v26  ;;  %v20490_v48 = vld [vmem:[#allocation171_spill] sm:$0xff] }
 0x3cd   : > { %v17451_v44 = vmul.f32 %v17064_v2, %v20485_v0  ;;  %v20496_v0 = vld [vmem:[#allocation82_spill] sm:$0xff] }
 0x3ce   : > { %20471 = vst [vmem:[#allocation162_spill] sm:$0xff] %v17421_v33  ;;  %20480 = vst [vmem:[#allocation74_spill] sm:$0xff] %v17439_v10  ;;  %v20482_v33 = vsub.f32 %v20481_v40, %v16900_v35  ;;  %v17457_v11 = vmul.f32 %v17060_v59, %v20488_v22  ;;  %v20491_v10 = vsub.f32 %v20490_v48, %v16930_v45  ;;  %v20499_v22 = vld [vmem:[#allocation84_spill] sm:$0xff] }
 0x3cf   : > { %20486 = vst [vmem:[#allocation110_spill] sm:$0xff] %v17451_v44  ;;  %v20497_v44 = vsub.f32 %v20496_v0, %v16916_v5 }
 0x3d0   : > { %v17445_v53 = vmul.f32 %v17045_v39, %v20482_v33  ;;  %20489 = vst [vmem:[#allocation113_spill] sm:$0xff] %v17457_v11  ;;  %v17463_v40 = vmul.f32 %v17084_v29, %v20491_v10  ;;  %v20493_v33 = vld [vmem:[#allocation23_spill] sm:$0xff]  ;;  %v20500_v11 = vsub.f32 %v20499_v22, %v16912_v26  ;;  %v20502_v10 = vld [vmem:[#allocation177_spill] sm:$0xff] }
 0x3d1   : > { %v17475_v12 = vmul.f32 %v17064_v2, %v20497_v44  ;;  %v20508_v44 = vld [vmem:[#allocation83_spill] sm:$0xff] }
 0x3d2   : > { %20483 = vst [vmem:[#allocation111_spill] sm:$0xff] %v17445_v53  ;;  %20492 = vst [vmem:[#allocation172_spill] sm:$0xff] %v17463_v40  ;;  %v20494_v53 = vsub.f32 %v20493_v33, %v16900_v35  ;;  %v17481_v48 = vmul.f32 %v17060_v59, %v20500_v11  ;;  %v20503_v40 = vsub.f32 %v20502_v10, %v16930_v45  ;;  %v20511_v11 = vld [vmem:[#allocation86_spill] sm:$0xff] }
 0x3d3   : > { %20498 = vst [vmem:[#allocation102_spill] sm:$0xff] %v17475_v12  ;;  %v20509_v12 = vsub.f32 %v20508_v44, %v16916_v5 }
 0x3d4   : > { %v17469_v60 = vmul.f32 %v17045_v39, %v20494_v53  ;;  %20501 = vst [vmem:[#allocation117_spill] sm:$0xff] %v17481_v48  ;;  %v17487_v33 = vmul.f32 %v17084_v29, %v20503_v40  ;;  %v20505_v53 = vld [vmem:[#allocation11_spill] sm:$0xff]  ;;  %v20512_v48 = vsub.f32 %v20511_v11, %v16912_v26  ;;  %v20514_v40 = vld [vmem:[#allocation178_spill] sm:$0xff] }
 0x3d5   : > { %v17499_v22 = vmul.f32 %v17064_v2, %v20509_v12  ;;  %v20520_v12 = vld [vmem:[#allocation179_spill] sm:$0xff] }
 0x3d6   : > { %20495 = vst [vmem:[#allocation115_spill] sm:$0xff] %v17469_v60  ;;  %20504 = vst [vmem:[#allocation121_spill] sm:$0xff] %v17487_v33  ;;  %v20506_v60 = vsub.f32 %v20505_v53, %v16900_v35  ;;  %v17505_v10 = vmul.f32 %v17060_v59, %v20512_v48  ;;  %v20515_v33 = vsub.f32 %v20514_v40, %v16930_v45  ;;  %v20523_v48 = vld [vmem:[#allocation180_spill] sm:$0xff] }
 0x3d7   : > { %20510 = vst [vmem:[#allocation147_spill] sm:$0xff] %v17499_v22  ;;  %v20521_v22 = vsub.f32 %v20520_v12, %v16916_v5 }
 0x3d8   : > { %v17493_v0 = vmul.f32 %v17045_v39, %v20506_v60  ;;  %20513 = vst [vmem:[#allocation148_spill] sm:$0xff] %v17505_v10  ;;  %v17511_v53 = vmul.f32 %v17084_v29, %v20515_v33  ;;  %v20517_v60 = vld [vmem:[#allocation87_spill] sm:$0xff]  ;;  %v20524_v10 = vsub.f32 %v20523_v48, %v16912_v26  ;;  %v20525_v33 = vld [vmem:[#allocation12_spill] sm:$0xff] }
 0x3d9   : > { %v17523_v11 = vmul.f32 %v17064_v2, %v20521_v22  ;;  %v20529_v22 = vld [vmem:[#allocation88_spill] sm:$0xff] }
 0x3da   : > { %20507 = vst [vmem:[#allocation141_spill] sm:$0xff] %v17493_v0  ;;  %20516 = vst [vmem:[#allocation149_spill] sm:$0xff] %v17511_v53  ;;  %v20518_v0 = vsub.f32 %v20517_v60, %v16900_v35  ;;  %v17529_v40 = vmul.f32 %v17060_v59, %v20524_v10  ;;  %v20526_v53 = vsub.f32 %v20525_v33, %v16930_v45 }
 0x3db   : > { %20522 = vst [vmem:[#allocation145_spill] sm:$0xff] %v17523_v11  ;;  %v20530_v11 = vsub.f32 %v20529_v22, %v16916_v5  ;;  %v20532_v10 = vsub.f32 %v20337_v21, %v16912_v26 }
 0x3dc   : > { %v17517_v44 = vmul.f32 %v17045_v39, %v20518_v0  ;;  %v17535_v60 = vmul.f32 %v17084_v29, %v20526_v53  ;;  %v20527_v0 = vld [vmem:[#allocation13_spill] sm:$0xff]  ;;  %v20534_v53 = vsub.f32 %v20338_v24, %v16930_v45 }
 0x3dd   : > { %v17547_v48 = vmul.f32 %v17064_v2, %v20530_v11  ;;  %v17553_v33 = vmul.f32 %v17060_v59, %v20532_v10  ;;  %v20538_v11 = vld [vmem:[#allocation89_spill] sm:$0xff]  ;;  %v20541_v10 = vld [vmem:[#allocation15_spill] sm:$0xff] }
 0x3de   : > { %20519 = vst [vmem:[#allocation143_spill] sm:$0xff] %v17517_v44  ;;  %v20528_v44 = vsub.f32 %v20527_v0, %v16900_v35  ;;  %v17559_v0 = vmul.f32 %v17084_v29, %v20534_v53  ;;  %v20544_v53 = vld [vmem:[#allocation14_spill] sm:$0xff] }
 0x3df   : > { %20531 = vst [vmem:[#allocation144_spill] sm:$0xff] %v17547_v48  ;;  %20533 = vst [vmem:[#allocation146_spill] sm:$0xff] %v17553_v33  ;;  %v20539_v48 = vsub.f32 %v20538_v11, %v16916_v5  ;;  %v20542_v33 = vsub.f32 %v20541_v10, %v16912_v26 }
 0x3e0   : > { %v17541_v12 = vmul.f32 %v17045_v39, %v20528_v44  ;;  %20535 = vst [vmem:[#allocation154_spill] sm:$0xff] %v17559_v0  ;;  %v20536_v44 = vsub.f32 %v20339_v28, %v16900_v35  ;;  %v20545_v0 = vsub.f32 %v20544_v53, %v16930_v45 }
 0x3e1   : > { %v17571_v21 = vmul.f32 %v17064_v2, %v20539_v48  ;;  %v17577_v24 = vmul.f32 %v17060_v59, %v20542_v33  ;;  %v20550_v48 = vld [vmem:[#allocation97_spill] sm:$0xff] }
 0x3e2   : > { %v17565_v22 = vmul.f32 %v17045_v39, %v20536_v44  ;;  %v17583_v28 = vmul.f32 %v17084_v29, %v20545_v0  ;;  %v20547_v44 = vld [vmem:[#allocation91_spill] sm:$0xff]  ;;  %v20553_v33 = vld [vmem:[#allocation93_spill] sm:$0xff]  ;;  %v20556_v0 = vld [vmem:[#allocation184_spill] sm:$0xff] }
 0x3e3   : > { %20540 = vst [vmem:[#allocation159_spill] sm:$0xff] %v17571_v21  ;;  %20543 = vst [vmem:[#allocation150_spill] sm:$0xff] %v17577_v24  ;;  %v20551_v21 = vsub.f32 %v20550_v48, %v16916_v5  ;;  %v20554_v24 = vsub.f32 %v20553_v33, %v16912_v26 }
 0x3e4   : > { %20537 = vst [vmem:[#allocation155_spill] sm:$0xff] %v17565_v22  ;;  %20546 = vst [vmem:[#allocation151_spill] sm:$0xff] %v17583_v28  ;;  %v20548_v22 = vsub.f32 %v20547_v44, %v16900_v35  ;;  %v20557_v28 = vsub.f32 %v20556_v0, %v16930_v45 }
 0x3e5   : > { %v17595_v10 = vmul.f32 %v17064_v2, %v20551_v21  ;;  %v17601_v53 = vmul.f32 %v17060_v59, %v20554_v24  ;;  %v20561_v21 = vld [vmem:[#allocation16_spill] sm:$0xff]  ;;  %v20563_v24 = vld [vmem:[#allocation94_spill] sm:$0xff] }
 0x3e6   : > { %v17589_v11 = vmul.f32 %v17045_v39, %v20548_v22  ;;  %v17607_v44 = vmul.f32 %v17084_v29, %v20557_v28  ;;  %v20559_v22 = vld [vmem:[#allocation185_spill] sm:$0xff]  ;;  %v20565_v28 = vld [vmem:[#allocation90_spill] sm:$0xff] }
 0x3e7   : > { %20552 = vst [vmem:[#allocation153_spill] sm:$0xff] %v17595_v10  ;;  %20555 = vst [vmem:[#allocation77_spill] sm:$0xff] %v17601_v53  ;;  %v20562_v10 = vsub.f32 %v20561_v21, %v16916_v5  ;;  %v20564_v53 = vsub.f32 %v20563_v24, %v16912_v26 }
 0x3e8   : > { %20549 = vst [vmem:[#allocation152_spill] sm:$0xff] %v17589_v11  ;;  %20558 = vst [vmem:[#allocation22_spill] sm:$0xff] %v17607_v44  ;;  %v20560_v11 = vsub.f32 %v20559_v22, %v16900_v35  ;;  %v20566_v44 = vsub.f32 %v20565_v28, %v16930_v45 }
 0x3e9   : > { %v17619_v33 = vmul.f32 %v17064_v2, %v20562_v10  ;;  %v17625_v0 = vmul.f32 %v17060_v59, %v20564_v53  ;;  %v20568_v10 = vsub.f32 %v20359_v14, %v16916_v5  ;;  %v20569_v53 = vsub.f32 %v20360_v15, %v16912_v26 }
 0x3ea   : > { %v17613_v48 = vmul.f32 %v17045_v39, %v20560_v11  ;;  %v17631_v22 = vmul.f32 %v17084_v29, %v20566_v44  ;;  %v20567_v11 = vsub.f32 %v15981_v42, %v16900_v35  ;;  %v20570_v44 = vsub.f32 %v20361_v9, %v16930_v45 }
 0x3eb   : > { %v17643_v24 = vmul.f32 %v17064_v2, %v20568_v10  ;;  %v17649_v28 = vmul.f32 %v17060_v59, %v20569_v53  ;;  %v20572_v10 = vsub.f32 %v20363_v56, %v16916_v5  ;;  %v20573_v53 = vsub.f32 %v20364_v17, %v16912_v26 }
 0x3ec   : > { %v17637_v21 = vmul.f32 %v17045_v39, %v20567_v11  ;;  %v17655_v42 = vmul.f32 %v17084_v29, %v20570_v44  ;;  %v20571_v11 = vsub.f32 %v20362_v23, %v16900_v35  ;;  %v20574_v44 = vsub.f32 %v20365_v36, %v16930_v45 }
 0x3ed   : > { %v17667_v15 = vmul.f32 %v17064_v2, %v20572_v10  ;;  %v17673_v9 = vmul.f32 %v17060_v59, %v20573_v53  ;;  %v20578_v10 = vsub.f32 %v20367_v34, %v16916_v5  ;;  %v20580_v53 = vsub.f32 %v20368_v16, %v16912_v26 }
 0x3ee   : > { %v17661_v14 = vmul.f32 %v17045_v39, %v20571_v11  ;;  %v17679_v23 = vmul.f32 %v17084_v29, %v20574_v44  ;;  %v20576_v11 = vsub.f32 %v20366_v31, %v16900_v35  ;;  %v20582_v44 = vld [vmem:[#allocation98_spill] sm:$0xff] }
 0x3ef   : > { %v17691_v17 = vmul.f32 %v17064_v2, %v20578_v10  ;;  %v17697_v36 = vmul.f32 %v17060_v59, %v20580_v53  ;;  %v20586_v10 = vld [vmem:[#allocation73_spill] sm:$0xff]  ;;  %v20588_v53 = vld [vmem:[#allocation103_spill] sm:$0xff] }
 0x3f0   : > { %20575 = vst [vmem:[#allocation168_spill] sm:$0xff] %v17679_v23  ;;  %v17685_v56 = vmul.f32 %v17045_v39, %v20576_v11  ;;  %v20583_v23 = vsub.f32 %v20582_v44, %v16930_v45  ;;  %v20584_v11 = vld [vmem:[#allocation72_spill] sm:$0xff] }
 0x3f1   : > { %20579 = vst [vmem:[#allocation21_spill] sm:$0xff] %v17691_v17  ;;  %20581 = vst [vmem:[#allocation78_spill] sm:$0xff] %v17697_v36  ;;  %v20587_v17 = vsub.f32 %v20586_v10, %v16916_v5  ;;  %v20589_v36 = vsub.f32 %v20588_v53, %v16912_v26 }
 0x3f2   : > { %20577 = vst [vmem:[#allocation160_spill] sm:$0xff] %v17685_v56  ;;  %v17703_v31 = vmul.f32 %v17084_v29, %v20583_v23  ;;  %v20585_v56 = vsub.f32 %v20584_v11, %v16900_v35  ;;  %v20590_v23 = vsub.f32 %v16180_v20, %v16930_v45 }
 0x3f3   : > { %v17715_v16 = vmul.f32 %v17064_v2, %v20587_v17  ;;  %v17721_v44 = vmul.f32 %v17060_v59, %v20589_v36  ;;  %v20592_v17 = vsub.f32 %v20372_v58, %v16916_v5  ;;  %v20593_v36 = vsub.f32 %v20373_v41, %v16912_v26 }
 0x3f4   : > { %v17709_v34 = vmul.f32 %v17045_v39, %v20585_v56  ;;  %v17727_v11 = vmul.f32 %v17084_v29, %v20590_v23  ;;  %v20591_v56 = vsub.f32 %v16183_v6, %v16900_v35  ;;  %v20594_v23 = vsub.f32 %v20374_v7, %v16930_v45 }
 0x3f5   : > { %v17739_v53 = vmul.f32 %v17064_v2, %v20592_v17  ;;  %v17745_v20 = vmul.f32 %v17060_v59, %v20593_v36  ;;  %v20596_v17 = vsub.f32 %v20376_v37, %v16916_v5  ;;  %v20597_v36 = vsub.f32 %v16263_v57, %v16912_v26 }
 0x3f6   : > { %v17733_v10 = vmul.f32 %v17045_v39, %v20591_v56  ;;  %v17751_v6 = vmul.f32 %v17084_v29, %v20594_v23  ;;  %v20595_v56 = vsub.f32 %v20375_v63, %v16900_v35  ;;  %v20598_v23 = vsub.f32 %v16268_v32, %v16930_v45 }
 0x3f7   : > { %v17763_v41 = vmul.f32 %v17064_v2, %v20596_v17  ;;  %v17769_v7 = vmul.f32 %v17060_v59, %v20597_v36  ;;  %v20602_v17 = vsub.f32 %v20377_v50, %v16916_v5  ;;  %v20603_v36 = vsub.f32 %v20378_v19, %v16912_v26 }
 0x3f8   : > { %v17757_v58 = vmul.f32 %v17045_v39, %v20595_v56  ;;  %v17775_v63 = vmul.f32 %v17084_v29, %v20598_v23  ;;  %v20600_v56 = vsub.f32 %v16275_v1, %v16900_v35  ;;  %v20604_v23 = vld [vmem:[#allocation75_spill] sm:$0xff] }
 0x3f9   : > { %v17787_v57 = vmul.f32 %v17064_v2, %v20602_v17  ;;  %v17793_v32 = vmul.f32 %v17060_v59, %v20603_v36  ;;  %v20610_v17 = vsub.f32 %v16379_v52, %v16916_v5  ;;  %v20612_v36 = vsub.f32 %v16383_v38, %v16912_v26 }
 0x3fa   : > { %20599 = vst [vmem:[#allocation79_spill] sm:$0xff] %v17775_v63  ;;  %v17781_v37 = vmul.f32 %v17045_v39, %v20600_v56  ;;  %v20605_v63 = vsub.f32 %v20604_v23, %v16930_v45  ;;  %v20607_v56 = vld [vmem:[#allocation166_spill] sm:$0xff] }
 0x3fb   : > { %v17811_v19 = vmul.f32 %v17064_v2, %v20610_v17  ;;  %v17817_v23 = vmul.f32 %v17060_v59, %v20612_v36  ;;  %v20620_v17 = vld [vmem:[#allocation109_spill] sm:$0xff]  ;;  %v20623_v36 = vld [vmem:[#allocation106_spill] sm:$0xff] }
 0x3fc   : > { %20601 = vst [vmem:[#allocation174_spill] sm:$0xff] %v17781_v37  ;;  %v17799_v1 = vmul.f32 %v17084_v29, %v20605_v63  ;;  %v20608_v37 = vsub.f32 %v20607_v56, %v16900_v35  ;;  %v20614_v63 = vld [vmem:[#allocation167_spill] sm:$0xff] }
 0x3fd   : > { %20611 = vst [vmem:[#allocation169_spill] sm:$0xff] %v17811_v19  ;;  %20613 = vst [vmem:[#allocation170_spill] sm:$0xff] %v17817_v23  ;;  %v20621_v19 = vsub.f32 %v20620_v17, %v16916_v5  ;;  %v20624_v23 = vsub.f32 %v20623_v36, %v16912_v26 }
 0x3fe   : > { %20606 = vst [vmem:[#allocation80_spill] sm:$0xff] %v17799_v1  ;;  %v17805_v50 = vmul.f32 %v17045_v39, %v20608_v37  ;;  %v20615_v1 = vsub.f32 %v20614_v63, %v16930_v45  ;;  %v20617_v37 = vld [vmem:[#allocation108_spill] sm:$0xff] }
 0x3ff   : > { %v17835_v38 = vmul.f32 %v17064_v2, %v20621_v19  ;;  %v17841_v63 = vmul.f32 %v17060_v59, %v20624_v23  ;;  %v20632_v19 = vld [vmem:[#allocation85_spill] sm:$0xff]  ;;  %v20634_v23 = vld [vmem:[#allocation96_spill] sm:$0xff] }
 0x400   : > { %20609 = vst [vmem:[#allocation176_spill] sm:$0xff] %v17805_v50  ;;  %v17823_v56 = vmul.f32 %v17084_v29, %v20615_v1  ;;  %v20618_v50 = vsub.f32 %v20617_v37, %v16900_v35  ;;  %v20626_v1 = vld [vmem:[#allocation165_spill] sm:$0xff] }
 0x401   : > { %20622 = vst [vmem:[#allocation23_spill] sm:$0xff] %v17835_v38  ;;  %20625 = vst [vmem:[#allocation82_spill] sm:$0xff] %v17841_v63  ;;  %v20633_v38 = vsub.f32 %v20632_v19, %v16916_v5  ;;  %v20635_v63 = vsub.f32 %v20634_v23, %v16912_v26 }
 0x402   : > { %20616 = vst [vmem:[#allocation81_spill] sm:$0xff] %v17823_v56  ;;  %v17829_v52 = vmul.f32 %v17045_v39, %v20618_v50  ;;  %v20627_v56 = vsub.f32 %v20626_v1, %v16930_v45  ;;  %v20629_v50 = vld [vmem:[#allocation112_spill] sm:$0xff] }
 0x403   : > { %v17859_v36 = vmul.f32 %v17064_v2, %v20633_v38  ;;  %v17865_v1 = vmul.f32 %v17060_v59, %v20635_v63  ;;  %v20640_v38 = vsub.f32 %v20387_v62, %v16916_v5  ;;  %v20641_v63 = vsub.f32 %v20388_v18, %v16912_v26 }
 0x404   : > { %20619 = vst [vmem:[#allocation171_spill] sm:$0xff] %v17829_v52  ;;  %v17847_v37 = vmul.f32 %v17084_v29, %v20627_v56  ;;  %v20630_v52 = vsub.f32 %v20629_v50, %v16900_v35  ;;  %v20636_v56 = vld [vmem:[#allocation116_spill] sm:$0xff] }
 0x405   : > { %v17883_v23 = vmul.f32 %v17064_v2, %v20640_v38  ;;  %v20645_v38 = vsub.f32 %v20391_v47, %v16916_v5 }
 0x406   : > { %20628 = vst [vmem:[#allocation84_spill] sm:$0xff] %v17847_v37  ;;  %v17853_v17 = vmul.f32 %v17045_v39, %v20630_v52  ;;  %v20637_v37 = vsub.f32 %v20636_v56, %v16930_v45  ;;  %v20638_v52 = vld [vmem:[#allocation76_spill] sm:$0xff]  ;;  %v17889_v56 = vmul.f32 %v17060_v59, %v20641_v63  ;;  %v20646_v63 = vsub.f32 %v20392_v4, %v16912_v26 }
 0x407   : > { %v17907_v18 = vmul.f32 %v17064_v2, %v20645_v38  ;;  %v20650_v38 = vsub.f32 %v16559_v51, %v16916_v5 }
 0x408   : > { %20631 = vst [vmem:[#allocation177_spill] sm:$0xff] %v17853_v17  ;;  %v17871_v50 = vmul.f32 %v17084_v29, %v20637_v37  ;;  %v20639_v17 = vsub.f32 %v20638_v52, %v16900_v35  ;;  %v20642_v37 = vsub.f32 %v20389_v61, %v16930_v45  ;;  %v17913_v61 = vmul.f32 %v17060_v59, %v20646_v63 }
 0x409   : > { %v17931_v4 = vmul.f32 %v17064_v2, %v20650_v38  ;;  %v20651_v63 = vsub.f32 %v16639_v30, %v16912_v26  ;;  %v20654_v38 = vsub.f32 %v16666_v46, %v16916_v5  ;;  %v20663_v5 = vld [vmem:[#allocation134_spill] sm:$0xff] }
 0x40a   : > { %v17877_v19 = vmul.f32 %v17045_v39, %v20639_v17  ;;  %v17895_v52 = vmul.f32 %v17084_v29, %v20642_v37  ;;  %v20643_v17 = vsub.f32 %v20390_v43, %v16900_v35  ;;  %v20647_v37 = vsub.f32 %v20393_v27, %v16930_v45 }
 0x40b   : > { %v17937_v27 = vmul.f32 %v17060_v59, %v20651_v63  ;;  %v17955_v30 = vmul.f32 %v17064_v2, %v20654_v38  ;;  %v20655_v63 = vsub.f32 %v16625_v13, %v16912_v26  ;;  %v20661_v13 = vld [vmem:[#allocation26_spill] sm:$0xff] }
 0x40c   : > { %v17901_v62 = vmul.f32 %v17045_v39, %v20643_v17  ;;  %v17919_v43 = vmul.f32 %v17084_v29, %v20647_v37  ;;  %v20648_v17 = vld [vmem:[#allocation107_spill] sm:$0xff]  ;;  %v20652_v37 = vsub.f32 %v16658_v55, %v16930_v45  ;;  %v17981_v26 = vadd.f32 %v20661_v13, %v17265_v8 }
 0x40d   : > { %v17961_v55 = vmul.f32 %v17060_v59, %v20655_v63  ;;  %v20672_v63 = vld [vmem:[#allocation135_spill] sm:$0xff] }
 0x40e   : > { %20644 = vst [vmem:[#allocation11_spill] sm:$0xff] %v17901_v62  ;;  %v20649_v62 = vsub.f32 %v20648_v17, %v16900_v35  ;;  %v17943_v17 = vmul.f32 %v17084_v29, %v20652_v37  ;;  %v20656_v37 = vsub.f32 %v20394_v49, %v16930_v45  ;;  %20662 = vst [vmem:[#allocation178_spill] sm:$0xff] %v17981_v26  ;;  %v20667_v49 = vld [vmem:[#allocation24_spill] sm:$0xff]  ;;  %v20705_v26 = vld [vmem:[#allocation95_spill] sm:$0xff] }
 0x40f   : > { %v20664_v45 = vcombine.high %v20661_v13, %v20661_v13  ;;  %v20670_v38 = vcombine.high %v20667_v49, %v20667_v49 }
 0x410   : > { %v17925_v47 = vmul.f32 %v17045_v39, %v20649_v62  ;;  %v20653_v62 = vsub.f32 %v16649_v3, %v16900_v35  ;;  %v17967_v3 = vmul.f32 %v17084_v29, %v20656_v37  ;;  %v20666_v29 = vld [vmem:[#allocation20_spill] sm:$0xff]  ;;  %v20673_v37 = vld [vmem:[#allocation27_spill] sm:$0xff] }
 0x411   : > { %v17987_v59 = vadd.f32 %v20664_v45, %v20663_v5  ;;  %v18001_v8 = vadd.f32 %v20673_v37, %v20672_v63  ;;  %v20678_v5 = vld [vmem:[#allocation140_spill] sm:$0xff] }
 0x412   : > { %v17949_v51 = vmul.f32 %v17045_v39, %v20653_v62  ;;  %v20657_v39 = vld [vmem:[#allocation18_spill] sm:$0xff]  ;;  %v20669_v62 = vld [vmem:[#allocation136_spill] sm:$0xff] }
 0x413   : > { %v17971_v35 = vadd.f32 %v20657_v39, %v17253_v25  ;;  %v20659_v46 = vcombine.high %v20657_v39, %v20657_v39  ;;  %20665 = vst [vmem:[#allocation87_spill] sm:$0xff] %v17987_v59  ;;  %v17991_v25 = vadd.f32 %v20667_v49, %v20666_v29  ;;  %20674 = vst [vmem:[#allocation12_spill] sm:$0xff] %v18001_v8  ;;  %v20675_v39 = vld [vmem:[#allocation139_spill] sm:$0xff]  ;;  %v20679_v45 = vld [vmem:[#allocation28_spill] sm:$0xff] }
 0x414   : > { %v20680_v29 = vcombine.high %v20679_v45, %v20679_v45  ;;  %v20682_v59 = vld [vmem:[#allocation142_spill] sm:$0xff]  ;;  %v20683_v49 = vld [vmem:[#allocation29_spill] sm:$0xff] }
 0x415   : > { %20658 = vst [vmem:[#allocation83_spill] sm:$0xff] %v17971_v35  ;;  %v17977_v2 = vadd.f32 %v20659_v46, %v17259_v54  ;;  %20668 = vst [vmem:[#allocation179_spill] sm:$0xff] %v17991_v25  ;;  %v17997_v54 = vadd.f32 %v20670_v38, %v20669_v62  ;;  %v20676_v46 = vcombine.high %v20673_v37, %v20673_v37  ;;  %v20685_v38 = vld [vmem:[#allocation137_spill] sm:$0xff]  ;;  %v20689_v37 = vld [vmem:[#allocation30_spill] sm:$0xff] }
 0x416   : > { %v18013_v25 = vadd.f32 %v20680_v29, %v20678_v5  ;;  %v18017_v62 = vadd.f32 %v20683_v49, %v20682_v59  ;;  %v20686_v63 = vcombine.high %v20683_v49, %v20683_v49  ;;  %v20692_v45 = vcombine.high %v20689_v37, %v20689_v37  ;;  %v20694_v29 = vld [vmem:[#allocation130_spill] sm:$0xff] }
 0x417   : > { %20660 = vst [vmem:[#allocation86_spill] sm:$0xff] %v17977_v2  ;;  %20671 = vst [vmem:[#allocation180_spill] sm:$0xff] %v17997_v54  ;;  %v18007_v13 = vadd.f32 %v20676_v46, %v20675_v39  ;;  %v20688_v54 = vld [vmem:[#allocation138_spill] sm:$0xff]  ;;  %v20691_v46 = vld [vmem:[#allocation129_spill] sm:$0xff] }
 0x418   : > { %20681 = vst [vmem:[#allocation88_spill] sm:$0xff] %v18013_v25  ;;  %20684 = vst [vmem:[#allocation89_spill] sm:$0xff] %v18017_v62  ;;  %v18023_v8 = vadd.f32 %v20686_v63, %v20685_v38  ;;  %v18027_v39 = vadd.f32 %v20689_v37, %v20688_v54  ;;  %v18033_v5 = vadd.f32 %v20692_v45, %v20691_v46  ;;  %v20695_v25 = vld [vmem:[#allocation31_spill] sm:$0xff]  ;;  %v20697_v62 = vld [vmem:[#allocation92_spill] sm:$0xff] }
 0x419   : > { %20677 = vst [vmem:[#allocation13_spill] sm:$0xff] %v18007_v13  ;;  %v18037_v59 = vadd.f32 %v20695_v25, %v20694_v29  ;;  %v20698_v49 = vcombine.high %v20695_v25, %v20695_v25  ;;  %v20700_v63 = vld [vmem:[#allocation57_spill] sm:$0xff]  ;;  %v20706_v37 = vld [vmem:[#allocation32_spill] sm:$0xff] }
 0x41a   : > { %20687 = vst [vmem:[#allocation15_spill] sm:$0xff] %v18023_v8  ;;  %20690 = vst [vmem:[#allocation14_spill] sm:$0xff] %v18027_v39  ;;  %v20701_v8 = vld [vmem:[#allocation25_spill] sm:$0xff]  ;;  %v18053_v46 = vadd.f32 %v20706_v37, %v20705_v26  ;;  %v20708_v45 = vld [vmem:[#allocation156_spill] sm:$0xff]  ;;  %v20709_v29 = vcombine.high %v20706_v37, %v20706_v37 }
 0x41b   : > { %20693 = vst [vmem:[#allocation91_spill] sm:$0xff] %v18033_v5  ;;  %20696 = vst [vmem:[#allocation97_spill] sm:$0xff] %v18037_v59  ;;  %v18043_v38 = vadd.f32 %v20698_v49, %v20697_v62  ;;  %v20702_v54 = vld [vmem:[#allocation17_spill] sm:$0xff]  ;;  %v20711_v5 = vld [vmem:[#allocation100_spill] sm:$0xff] }
 0x41c   : > { %v20703_v39 = vrot.slane %v20701_v8, %v20702_v54  ;;  %20707 = vst [vmem:[#allocation185_spill] sm:$0xff] %v18053_v46  ;;  %v18059_v59 = vadd.f32 %v20709_v29, %v20708_v45  ;;  %v20712_v25 = vld [vmem:[#allocation33_spill] sm:$0xff]  ;;  %v20714_v49 = vld [vmem:[#allocation68_spill] sm:$0xff]  ;;  %v20720_v46 = vld [vmem:[#allocation186_spill] sm:$0xff] }
 0x41d   : > { %20699 = vst [vmem:[#allocation93_spill] sm:$0xff] %v18043_v38  ;;  %v18063_v62 = vadd.f32 %v20712_v25, %v20711_v5  ;;  %v20715_v8 = vcombine.high %v20712_v25, %v20712_v25  ;;  %v20723_v29 = vld [vmem:[#allocation157_spill] sm:$0xff]  ;;  %v20733_v38 = vld [vmem:[#allocation164_spill] sm:$0xff] }
 0x41e   : > { %v18049_v13 = vadd.f32 %v20703_v39, %v20700_v63  ;;  %20710 = vst [vmem:[#allocation16_spill] sm:$0xff] %v18059_v59  ;;  %v20717_v63 = vld [vmem:[#allocation99_spill] sm:$0xff]  ;;  %v20724_v59 = vld [vmem:[#allocation34_spill] sm:$0xff] }
 0x41f   : > { %20713 = vst [vmem:[#allocation94_spill] sm:$0xff] %v18063_v62  ;;  %v18069_v39 = vadd.f32 %v20715_v8, %v20714_v49  ;;  %v18083_v5 = vadd.f32 %v20724_v59, %v20723_v29  ;;  %v20726_v62 = vld [vmem:[#allocation158_spill] sm:$0xff]  ;;  %v20727_v25 = vcombine.high %v20724_v59, %v20724_v59  ;;  %v20729_v8 = vld [vmem:[#allocation104_spill] sm:$0xff] }
 0x420   : > { %20704 = vst [vmem:[#allocation184_spill] sm:$0xff] %v18049_v13  ;;  %v20718_v13 = vld [vmem:[#allocation35_spill] sm:$0xff]  ;;  %v20740_v59 = vld [vmem:[#allocation38_spill] sm:$0xff] }
 0x421   : > { %20716 = vst [vmem:[#allocation90_spill] sm:$0xff] %v18069_v39  ;;  %v18073_v26 = vadd.f32 %v20718_v13, %v20717_v63  ;;  %v20721_v37 = vcombine.high %v20718_v13, %v20718_v13  ;;  %20725 = vst [vmem:[#allocation73_spill] sm:$0xff] %v18083_v5  ;;  %v18089_v49 = vadd.f32 %v20727_v25, %v20726_v62  ;;  %v20730_v39 = vld [vmem:[#allocation36_spill] sm:$0xff]  ;;  %v20734_v13 = vld [vmem:[#allocation37_spill] sm:$0xff] }
 0x422   : > { %v20731_v63 = vcombine.high %v20730_v39, %v20730_v39  ;;  %v20737_v29 = vcombine.high %v20734_v13, %v20734_v13  ;;  %v20742_v25 = vld [vmem:[#allocation162_spill] sm:$0xff]  ;;  %v20743_v39 = vcombine.high %v20740_v59, %v20740_v59 }
 0x423   : > { %20719 = vst [vmem:[#allocation98_spill] sm:$0xff] %v18073_v26  ;;  %v18079_v45 = vadd.f32 %v20721_v37, %v20720_v46  ;;  %20728 = vst [vmem:[#allocation103_spill] sm:$0xff] %v18089_v49  ;;  %v18099_v46 = vadd.f32 %v20734_v13, %v20733_v38  ;;  %v20736_v37 = vld [vmem:[#allocation105_spill] sm:$0xff]  ;;  %v20754_v49 = vld [vmem:[#allocation40_spill] sm:$0xff] }
 0x424   : > { %v18095_v26 = vadd.f32 %v20731_v63, %v20729_v8  ;;  %v18105_v5 = vadd.f32 %v20737_v29, %v20736_v37  ;;  %v18115_v8 = vadd.f32 %v20743_v39, %v20742_v25  ;;  %v20745_v63 = vld [vmem:[#allocation163_spill] sm:$0xff]  ;;  %v20750_v29 = vld [vmem:[#allocation74_spill] sm:$0xff]  ;;  %v20757_v25 = vcombine.high %v20754_v49, %v20754_v49 }
 0x425   : > { %20722 = vst [vmem:[#allocation72_spill] sm:$0xff] %v18079_v45  ;;  %20735 = vst [vmem:[#allocation166_spill] sm:$0xff] %v18099_v46  ;;  %v20739_v45 = vld [vmem:[#allocation161_spill] sm:$0xff] }
 0x426   : > { %20732 = vst [vmem:[#allocation75_spill] sm:$0xff] %v18095_v26  ;;  %20738 = vst [vmem:[#allocation167_spill] sm:$0xff] %v18105_v5  ;;  %v18109_v62 = vadd.f32 %v20740_v59, %v20739_v45  ;;  %v20746_v26 = vld [vmem:[#allocation39_spill] sm:$0xff]  ;;  %v20748_v46 = vld [vmem:[#allocation101_spill] sm:$0xff] }
 0x427   : > { %20744 = vst [vmem:[#allocation109_spill] sm:$0xff] %v18115_v8  ;;  %v18119_v38 = vadd.f32 %v20746_v26, %v20745_v63  ;;  %v20749_v13 = vcombine.high %v20746_v26, %v20746_v26  ;;  %v20751_v5 = vld [vmem:[#allocation47_spill] sm:$0xff]  ;;  %v20756_v59 = vld [vmem:[#allocation110_spill] sm:$0xff]  ;;  %v20759_v63 = vld [vmem:[#allocation113_spill] sm:$0xff] }
 0x428   : > { %20741 = vst [vmem:[#allocation108_spill] sm:$0xff] %v18109_v62  ;;  %v18129_v45 = vadd.f32 %v20751_v5, %v20750_v29  ;;  %v20753_v62 = vld [vmem:[#allocation111_spill] sm:$0xff]  ;;  %v18139_v39 = vadd.f32 %v20757_v25, %v20756_v59  ;;  %v20762_v26 = vld [vmem:[#allocation172_spill] sm:$0xff]  ;;  %v20766_v29 = vld [vmem:[#allocation42_spill] sm:$0xff] }
 0x429   : > { %20747 = vst [vmem:[#allocation106_spill] sm:$0xff] %v18119_v38  ;;  %v18125_v37 = vadd.f32 %v20749_v13, %v20748_v46  ;;  %v18133_v2 = vadd.f32 %v20754_v49, %v20753_v62  ;;  %v20760_v38 = vld [vmem:[#allocation41_spill] sm:$0xff]  ;;  %v20765_v13 = vld [vmem:[#allocation115_spill] sm:$0xff]  ;;  %v20769_v49 = vcombine.high %v20766_v29, %v20766_v29 }
 0x42a   : > { %20752 = vst [vmem:[#allocation165_spill] sm:$0xff] %v18129_v45  ;;  %20758 = vst [vmem:[#allocation85_spill] sm:$0xff] %v18139_v39  ;;  %v18143_v8 = vadd.f32 %v20760_v38, %v20759_v63  ;;  %v20763_v46 = vcombine.high %v20760_v38, %v20760_v38  ;;  %v18153_v62 = vadd.f32 %v20766_v29, %v20765_v13  ;;  %v20771_v25 = vld [vmem:[#allocation117_spill] sm:$0xff]  ;;  %v20772_v39 = vld [vmem:[#allocation44_spill] sm:$0xff] }
 0x42b   : > { %20755 = vst [vmem:[#allocation112_spill] sm:$0xff] %v18133_v2  ;;  %v20768_v2 = vld [vmem:[#allocation102_spill] sm:$0xff]  ;;  %v18163_v63 = vadd.f32 %v20772_v39, %v20771_v25  ;;  %v20775_v38 = vcombine.high %v20772_v39, %v20772_v39  ;;  %v20781_v45 = vld [vmem:[#allocation147_spill] sm:$0xff]  ;;  %v20782_v29 = vld [vmem:[#allocation48_spill] sm:$0xff] }
 0x42c   : > { %20761 = vst [vmem:[#allocation96_spill] sm:$0xff] %v18143_v8  ;;  %v18149_v5 = vadd.f32 %v20763_v46, %v20762_v26  ;;  %20767 = vst [vmem:[#allocation76_spill] sm:$0xff] %v18153_v62  ;;  %v18159_v59 = vadd.f32 %v20769_v49, %v20768_v2  ;;  %v20774_v8 = vld [vmem:[#allocation121_spill] sm:$0xff]  ;;  %v18179_v2 = vadd.f32 %v20782_v29, %v20781_v45  ;;  %v20784_v49 = vld [vmem:[#allocation148_spill] sm:$0xff] }
 0x42d   : > { %20773 = vst [vmem:[#allocation18_spill] sm:$0xff] %v18163_v63  ;;  %v18169_v26 = vadd.f32 %v20775_v38, %v20774_v8  ;;  %v20777_v46 = vld [vmem:[#allocation141_spill] sm:$0xff]  ;;  %v20785_v25 = vcombine.high %v20782_v29, %v20782_v29  ;;  %v20788_v39 = vld [vmem:[#allocation46_spill] sm:$0xff]  ;;  %v20790_v38 = vld [vmem:[#allocation143_spill] sm:$0xff] }
 0x42e   : > { %20764 = vst [vmem:[#allocation116_spill] sm:$0xff] %v18149_v5  ;;  %20770 = vst [vmem:[#allocation107_spill] sm:$0xff] %v18159_v59  ;;  %v20778_v5 = vld [vmem:[#allocation45_spill] sm:$0xff] }
 0x42f   : > { %20776 = vst [vmem:[#allocation26_spill] sm:$0xff] %v18169_v26  ;;  %v20779_v13 = vcombine.high %v20778_v5, %v20778_v5  ;;  %20783 = vst [vmem:[#allocation20_spill] sm:$0xff] %v18179_v2  ;;  %v18185_v63 = vadd.f32 %v20785_v25, %v20784_v49  ;;  %v20787_v59 = vld [vmem:[#allocation149_spill] sm:$0xff]  ;;  %v20791_v5 = vcombine.high %v20788_v39, %v20788_v39  ;;  %v20798_v25 = vld [vmem:[#allocation43_spill] sm:$0xff] }
 0x430   : > { %v18189_v8 = vadd.f32 %v20788_v39, %v20787_v59  ;;  %v20799_v59 = vrot.slane %v20798_v25, %v20702_v54  ;;  %v20801_v39 = vld [vmem:[#allocation50_spill] sm:$0xff] }
 0x431   : > { %v18175_v62 = vadd.f32 %v20779_v13, %v20777_v46  ;;  %20786 = vst [vmem:[#allocation24_spill] sm:$0xff] %v18185_v63  ;;  %v18195_v46 = vadd.f32 %v20791_v5, %v20790_v38  ;;  %v20793_v13 = vld [vmem:[#allocation145_spill] sm:$0xff]  ;;  %v18215_v38 = vadd.f32 %v20801_v39, %v17541_v12  ;;  %v20803_v5 = vld [vmem:[#allocation144_spill] sm:$0xff] }
 0x432   : > { %20789 = vst [vmem:[#allocation136_spill] sm:$0xff] %v18189_v8  ;;  %v18211_v8 = vadd.f32 %v20799_v59, %v17535_v60  ;;  %v20812_v59 = vld [vmem:[#allocation155_spill] sm:$0xff] }
 0x433   : > { %20780 = vst [vmem:[#allocation134_spill] sm:$0xff] %v18175_v62  ;;  %20792 = vst [vmem:[#allocation135_spill] sm:$0xff] %v18195_v46  ;;  %v20794_v62 = vld [vmem:[#allocation49_spill] sm:$0xff]  ;;  %v20806_v46 = vld [vmem:[#allocation146_spill] sm:$0xff] }
 0x434   : > { %v18199_v45 = vadd.f32 %v20794_v62, %v20793_v13  ;;  %v20796_v29 = vcombine.high %v20794_v62, %v20794_v62  ;;  %20800 = vst [vmem:[#allocation140_spill] sm:$0xff] %v18211_v8  ;;  %20802 = vst [vmem:[#allocation28_spill] sm:$0xff] %v18215_v38  ;;  %v20804_v13 = vcombine.high %v20801_v39, %v20801_v39  ;;  %v20807_v62 = vld [vmem:[#allocation51_spill] sm:$0xff]  ;;  %v20813_v8 = vld [vmem:[#allocation52_spill] sm:$0xff] }
 0x435   : > { %v20810_v25 = vcombine.high %v20807_v62, %v20807_v62  ;;  %v18235_v12 = vadd.f32 %v20813_v8, %v20812_v59  ;;  %v20815_v38 = vld [vmem:[#allocation159_spill] sm:$0xff]  ;;  %v20816_v39 = vcombine.high %v20813_v8, %v20813_v8 }
 0x436   : > { %20795 = vst [vmem:[#allocation27_spill] sm:$0xff] %v18199_v45  ;;  %v18205_v49 = vadd.f32 %v20796_v29, %v17529_v40  ;;  %v18221_v45 = vadd.f32 %v20804_v13, %v20803_v5  ;;  %v18225_v40 = vadd.f32 %v20807_v62, %v20806_v46  ;;  %v20809_v29 = vld [vmem:[#allocation154_spill] sm:$0xff]  ;;  %v20828_v8 = vld [vmem:[#allocation55_spill] sm:$0xff] }
 0x437   : > { %v18231_v60 = vadd.f32 %v20810_v25, %v20809_v29  ;;  %20814 = vst [vmem:[#allocation138_spill] sm:$0xff] %v18235_v12  ;;  %v18241_v5 = vadd.f32 %v20816_v39, %v20815_v38  ;;  %v20818_v13 = vld [vmem:[#allocation150_spill] sm:$0xff]  ;;  %v20823_v25 = vld [vmem:[#allocation152_spill] sm:$0xff]  ;;  %v20830_v39 = vld [vmem:[#allocation77_spill] sm:$0xff] }
 0x438   : > { %20797 = vst [vmem:[#allocation139_spill] sm:$0xff] %v18205_v49  ;;  %20805 = vst [vmem:[#allocation142_spill] sm:$0xff] %v18221_v45  ;;  %v20819_v45 = vld [vmem:[#allocation53_spill] sm:$0xff] }
 0x439   : > { %20808 = vst [vmem:[#allocation29_spill] sm:$0xff] %v18225_v40  ;;  %20811 = vst [vmem:[#allocation137_spill] sm:$0xff] %v18231_v60  ;;  %v18245_v46 = vadd.f32 %v20819_v45, %v20818_v13  ;;  %v20821_v40 = vld [vmem:[#allocation151_spill] sm:$0xff]  ;;  %v20822_v62 = vcombine.high %v20819_v45, %v20819_v45  ;;  %v20824_v60 = vld [vmem:[#allocation54_spill] sm:$0xff]  ;;  %v20831_v13 = vcombine.high %v20828_v8, %v20828_v8 }
 0x43a   : > { %20817 = vst [vmem:[#allocation30_spill] sm:$0xff] %v18241_v5  ;;  %v20825_v59 = vcombine.high %v20824_v60, %v20824_v60  ;;  %v20827_v49 = vld [vmem:[#allocation153_spill] sm:$0xff]  ;;  %v20833_v5 = vld [vmem:[#allocation22_spill] sm:$0xff]  ;;  %v20834_v45 = vld [vmem:[#allocation56_spill] sm:$0xff] }
 0x43b   : > { %20820 = vst [vmem:[#allocation129_spill] sm:$0xff] %v18245_v46  ;;  %v18251_v29 = vadd.f32 %v20822_v62, %v20821_v40  ;;  %v18261_v38 = vadd.f32 %v20828_v8, %v20827_v49  ;;  %v18267_v46 = vadd.f32 %v20831_v13, %v20830_v39  ;;  %v18271_v40 = vadd.f32 %v20834_v45, %v20833_v5  ;;  %v20839_v39 = vld [vmem:[#allocation66_spill] sm:$0xff]  ;;  %v20840_v13 = vld [vmem:[#allocation59_spill] sm:$0xff] }
 0x43c   : > { %v18257_v12 = vadd.f32 %v20825_v59, %v20823_v25  ;;  %v20836_v60 = vcombine.high %v20834_v45, %v20834_v45  ;;  %v20837_v25 = vld [vmem:[#allocation58_spill] sm:$0xff]  ;;  %v18291_v5 = vadd.f32 %v20839_v39, %v17631_v22  ;;  %v20842_v45 = vld [vmem:[#allocation60_spill] sm:$0xff]  ;;  %v21008_v35 = vld [vmem:[#allocation135_spill] sm:$0xff] }
 0x43d   : > { %20829 = vst [vmem:[#allocation31_spill] sm:$0xff] %v18261_v38  ;;  %20832 = vst [vmem:[#allocation92_spill] sm:$0xff] %v18267_v46  ;;  %v18281_v49 = vadd.f32 %v20837_v25, %v17619_v33  ;;  %v20838_v59 = vcombine.high %v20837_v25, %v20837_v25  ;;  %v20845_v25 = vld [vmem:[#allocation61_spill] sm:$0xff]  ;;  %v20848_v39 = vld [vmem:[#allocation62_spill] sm:$0xff] }
 0x43e   : > { %20826 = vst [vmem:[#allocation130_spill] sm:$0xff] %v18257_v12  ;;  %20835 = vst [vmem:[#allocation57_spill] sm:$0xff] %v18271_v40  ;;  %v18277_v62 = vadd.f32 %v20836_v60, %v17613_v48  ;;  %v18295_v40 = vadd.f32 %v20840_v13, %v17637_v21  ;;  %v20841_v48 = vcombine.high %v20840_v13, %v20840_v13  ;;  %v20850_v13 = vld [vmem:[#allocation168_spill] sm:$0xff]  ;;  %v21016_v2 = vld [vmem:[#allocation138_spill] sm:$0xff] }
 0x43f   : > { %v18287_v8 = vadd.f32 %v20838_v59, %v17625_v0  ;;  %v18305_v60 = vadd.f32 %v20842_v45, %v17649_v28  ;;  %v20843_v0 = vcombine.high %v20842_v45, %v20842_v45  ;;  %v18315_v21 = vadd.f32 %v20845_v25, %v17661_v14  ;;  %v20852_v45 = vld [vmem:[#allocation160_spill] sm:$0xff] }
 0x440   : > { %v18301_v33 = vadd.f32 %v20841_v48, %v17643_v24  ;;  %v20847_v59 = vcombine.high %v20845_v25, %v20845_v25  ;;  %v18325_v28 = vadd.f32 %v20848_v39, %v17673_v9  ;;  %v20851_v48 = vcombine.high %v20848_v39, %v20848_v39  ;;  %v20857_v25 = vld [vmem:[#allocation64_spill] sm:$0xff]  ;;  %v20862_v39 = vld [vmem:[#allocation65_spill] sm:$0xff] }
 0x441   : > { %v18311_v22 = vadd.f32 %v20843_v0, %v17655_v42  ;;  %20846 = vst [vmem:[#allocation95_spill] sm:$0xff] %v18315_v21  ;;  %v20853_v0 = vld [vmem:[#allocation63_spill] sm:$0xff]  ;;  %v20860_v9 = vcombine.high %v20857_v25, %v20857_v25  ;;  %v21014_v26 = vld [vmem:[#allocation29_spill] sm:$0xff]  ;;  %v21017_v63 = vld [vmem:[#allocation30_spill] sm:$0xff] }
 0x442   : > { %v18321_v24 = vadd.f32 %v20847_v59, %v17667_v15  ;;  %20849 = vst [vmem:[#allocation32_spill] sm:$0xff] %v18325_v28  ;;  %v18331_v42 = vadd.f32 %v20851_v48, %v20850_v13  ;;  %v20854_v14 = vcombine.high %v20853_v0, %v20853_v0  ;;  %v20859_v59 = vld [vmem:[#allocation78_spill] sm:$0xff]  ;;  %v18351_v13 = vadd.f32 %v20862_v39, %v17703_v31  ;;  %v20866_v0 = vld [vmem:[#allocation67_spill] sm:$0xff] }
 0x443   : > { %20844 = vst [vmem:[#allocation25_spill] sm:$0xff] %v18311_v22  ;;  %v20856_v22 = vld [vmem:[#allocation21_spill] sm:$0xff]  ;;  %v18347_v28 = vadd.f32 %v20860_v9, %v20859_v59  ;;  %v20864_v48 = vcombine.high %v20862_v39, %v20862_v39  ;;  %v20870_v59 = vld [vmem:[#allocation19_spill] sm:$0xff]  ;;  %v20873_v39 = vld [vmem:[#allocation70_spill] sm:$0xff] }
 0x444   : > { %v18337_v21 = vadd.f32 %v20854_v14, %v20852_v45  ;;  %v18341_v15 = vadd.f32 %v20857_v25, %v20856_v22  ;;  %20863 = vst [vmem:[#allocation68_spill] sm:$0xff] %v18351_v13  ;;  %v18361_v22 = vadd.f32 %v20866_v0, %v17715_v16  ;;  %v20868_v14 = vcombine.high %v20866_v0, %v20866_v0  ;;  %v20877_v0 = vld [vmem:[#allocation69_spill] sm:$0xff] }
 0x445   : > { %20861 = vst [vmem:[#allocation33_spill] sm:$0xff] %v18347_v28  ;;  %v18357_v45 = vadd.f32 %v20864_v48, %v17709_v34  ;;  %v20871_v31 = vrot.slane %v20870_v59, %v20702_v54  ;;  %v18377_v34 = vadd.f32 %v20873_v39, %v17733_v10  ;;  %v20875_v16 = vcombine.high %v20873_v39, %v20873_v39  ;;  %v20881_v59 = vld [vmem:[#allocation71_spill] sm:$0xff]  ;;  %v20885_v39 = vld [vmem:[#allocation118_spill] sm:$0xff] }
 0x446   : > { %20855 = vst [vmem:[#allocation156_spill] sm:$0xff] %v18337_v21  ;;  %20858 = vst [vmem:[#allocation100_spill] sm:$0xff] %v18341_v15  ;;  %v18367_v25 = vadd.f32 %v20868_v14, %v17721_v44  ;;  %v18387_v44 = vadd.f32 %v20877_v0, %v17745_v20  ;;  %v20879_v14 = vcombine.high %v20877_v0, %v20877_v0 }
 0x447   : > { %20865 = vst [vmem:[#allocation99_spill] sm:$0xff] %v18357_v45  ;;  %20867 = vst [vmem:[#allocation35_spill] sm:$0xff] %v18361_v22  ;;  %v18373_v9 = vadd.f32 %v20871_v31, %v17727_v11  ;;  %v18383_v48 = vadd.f32 %v20875_v16, %v17739_v53  ;;  %v18397_v10 = vadd.f32 %v20881_v59, %v17757_v58  ;;  %v20887_v16 = vld [vmem:[#allocation79_spill] sm:$0xff] }
 0x448   : > { %20869 = vst [vmem:[#allocation186_spill] sm:$0xff] %v18367_v25  ;;  %20874 = vst [vmem:[#allocation34_spill] sm:$0xff] %v18377_v34  ;;  %v18393_v11 = vadd.f32 %v20879_v14, %v17751_v6  ;;  %v20883_v31 = vcombine.high %v20881_v59, %v20881_v59  ;;  %v18407_v20 = vadd.f32 %v20885_v39, %v17769_v7  ;;  %v20890_v14 = vld [vmem:[#allocation174_spill] sm:$0xff]  ;;  %v20894_v59 = vld [vmem:[#allocation120_spill] sm:$0xff] }
 0x449   : > { %20872 = vst [vmem:[#allocation157_spill] sm:$0xff] %v18373_v9  ;;  %20876 = vst [vmem:[#allocation158_spill] sm:$0xff] %v18383_v48  ;;  %v20888_v0 = vcombine.high %v20885_v39, %v20885_v39  ;;  %v20896_v7 = vcombine.high %v20894_v59, %v20894_v59  ;;  %v20899_v39 = vld [vmem:[#allocation175_spill] sm:$0xff]  ;;  %v21022_v46 = vld [vmem:[#allocation32_spill] sm:$0xff] }
 0x44a   : > { %20878 = vst [vmem:[#allocation104_spill] sm:$0xff] %v18387_v44  ;;  %20880 = vst [vmem:[#allocation36_spill] sm:$0xff] %v18393_v11  ;;  %v18403_v53 = vadd.f32 %v20883_v31, %v17763_v41  ;;  %v20891_v11 = vld [vmem:[#allocation122_spill] sm:$0xff]  ;;  %v18423_v41 = vadd.f32 %v20894_v59, %v17787_v57  ;;  %v21020_v12 = vld [vmem:[#allocation25_spill] sm:$0xff] }
 0x44b   : > { %20882 = vst [vmem:[#allocation164_spill] sm:$0xff] %v18397_v10  ;;  %20886 = vst [vmem:[#allocation105_spill] sm:$0xff] %v18407_v20  ;;  %v18413_v6 = vadd.f32 %v20888_v0, %v20887_v16  ;;  %v20892_v58 = vcombine.high %v20891_v11, %v20891_v11  ;;  %v18429_v31 = vadd.f32 %v20896_v7, %v17793_v32  ;;  %v20898_v20 = vld [vmem:[#allocation80_spill] sm:$0xff]  ;;  %v20910_v7 = vld [vmem:[#allocation81_spill] sm:$0xff] }
 0x44c   : > { %20884 = vst [vmem:[#allocation37_spill] sm:$0xff] %v18403_v53  ;;  %20895 = vst [vmem:[#allocation162_spill] sm:$0xff] %v18423_v41  ;;  %v18433_v16 = vadd.f32 %v20899_v39, %v20898_v20  ;;  %v20901_v0 = vld [vmem:[#allocation176_spill] sm:$0xff]  ;;  %v20902_v11 = vcombine.high %v20899_v39, %v20899_v39  ;;  %v20907_v41 = vld [vmem:[#allocation170_spill] sm:$0xff] }
 0x44d   : > { %20889 = vst [vmem:[#allocation161_spill] sm:$0xff] %v18413_v6  ;;  %v18419_v10 = vadd.f32 %v20892_v58, %v20890_v14  ;;  %20897 = vst [vmem:[#allocation163_spill] sm:$0xff] %v18429_v31  ;;  %v20904_v58 = vld [vmem:[#allocation169_spill] sm:$0xff]  ;;  %v20911_v31 = vld [vmem:[#allocation119_spill] sm:$0xff] }
 0x44e   : > { %20900 = vst [vmem:[#allocation39_spill] sm:$0xff] %v18433_v16  ;;  %v18439_v14 = vadd.f32 %v20902_v11, %v20901_v0  ;;  %v18453_v20 = vadd.f32 %v20911_v31, %v20910_v7  ;;  %v20913_v16 = vld [vmem:[#allocation171_spill] sm:$0xff]  ;;  %v20914_v6 = vld [vmem:[#allocation124_spill] sm:$0xff]  ;;  %v20926_v7 = vld [vmem:[#allocation126_spill] sm:$0xff] }
 0x44f   : > { %20893 = vst [vmem:[#allocation38_spill] sm:$0xff] %v18419_v10  ;;  %v20905_v10 = vld [vmem:[#allocation114_spill] sm:$0xff]  ;;  %v18457_v53 = vadd.f32 %v20914_v6, %v20913_v16  ;;  %v20916_v39 = vld [vmem:[#allocation23_spill] sm:$0xff]  ;;  %v20917_v0 = vcombine.high %v20914_v6, %v20914_v6  ;;  %v20928_v6 = vcombine.high %v20926_v7, %v20926_v7  ;;  %v21091_v48 = vld [vmem:[#allocation73_spill] sm:$0xff] }
 0x450   : > { %20903 = vst [vmem:[#allocation101_spill] sm:$0xff] %v18439_v14  ;;  %v18443_v57 = vadd.f32 %v20905_v10, %v20904_v58  ;;  %v20908_v59 = vcombine.high %v20905_v10, %v20905_v10  ;;  %20912 = vst [vmem:[#allocation111_spill] sm:$0xff] %v18453_v20  ;;  %v20919_v58 = vld [vmem:[#allocation82_spill] sm:$0xff]  ;;  %v20922_v10 = vld [vmem:[#allocation84_spill] sm:$0xff] }
 0x451   : > { %20915 = vst [vmem:[#allocation40_spill] sm:$0xff] %v18457_v53  ;;  %v18463_v11 = vadd.f32 %v20917_v0, %v20916_v39  ;;  %v18483_v39 = vadd.f32 %v20928_v6, %v17859_v36  ;;  %v20930_v0 = vld [vmem:[#allocation125_spill] sm:$0xff]  ;;  %v21021_v38 = vld [vmem:[#allocation95_spill] sm:$0xff]  ;;  %v21023_v21 = vld [vmem:[#allocation36_spill] sm:$0xff] }
 0x452   : > { %20906 = vst [vmem:[#allocation74_spill] sm:$0xff] %v18443_v57  ;;  %v18449_v32 = vadd.f32 %v20908_v59, %v20907_v41  ;;  %v20920_v57 = vld [vmem:[#allocation123_spill] sm:$0xff]  ;;  %v20925_v59 = vld [vmem:[#allocation177_spill] sm:$0xff]  ;;  %v21024_v15 = vld [vmem:[#allocation164_spill] sm:$0xff] }
 0x453   : > { %20918 = vst [vmem:[#allocation110_spill] sm:$0xff] %v18463_v11  ;;  %v18467_v14 = vadd.f32 %v20920_v57, %v20919_v58  ;;  %v20923_v41 = vcombine.high %v20920_v57, %v20920_v57  ;;  %v18477_v16 = vadd.f32 %v20926_v7, %v20925_v59  ;;  %20929 = vst [vmem:[#allocation115_spill] sm:$0xff] %v18483_v39  ;;  %v20937_v7 = vld [vmem:[#allocation127_spill] sm:$0xff]  ;;  %v21025_v28 = vld [vmem:[#allocation37_spill] sm:$0xff] }
 0x454   : > { %20909 = vst [vmem:[#allocation47_spill] sm:$0xff] %v18449_v32  ;;  %v18487_v58 = vadd.f32 %v20930_v0, %v17865_v1  ;;  %v20932_v57 = vcombine.high %v20930_v0, %v20930_v0  ;;  %v18503_v36 = vadd.f32 %v20937_v7, %v17883_v23  ;;  %v20939_v1 = vcombine.high %v20937_v7, %v20937_v7  ;;  %v20941_v0 = vld [vmem:[#allocation131_spill] sm:$0xff]  ;;  %v21026_v13 = vld [vmem:[#allocation105_spill] sm:$0xff]  ;;  %v21029_v25 = vld [vmem:[#allocation162_spill] sm:$0xff] }
 0x455   : > { %20921 = vst [vmem:[#allocation113_spill] sm:$0xff] %v18467_v14  ;;  %v18473_v31 = vadd.f32 %v20923_v41, %v20922_v10  ;;  %20927 = vst [vmem:[#allocation172_spill] sm:$0xff] %v18477_v16  ;;  %v20934_v41 = vld [vmem:[#allocation181_spill] sm:$0xff]  ;;  %v21030_v9 = vld [vmem:[#allocation163_spill] sm:$0xff] }
 0x456   : > { %20931 = vst [vmem:[#allocation42_spill] sm:$0xff] %v18487_v58  ;;  %v18493_v10 = vadd.f32 %v20932_v57, %v17871_v50  ;;  %v20935_v59 = vcombine.high %v20934_v41, %v20934_v41  ;;  %20938 = vst [vmem:[#allocation44_spill] sm:$0xff] %v18503_v36  ;;  %v18509_v6 = vadd.f32 %v20939_v1, %v17889_v56  ;;  %v20943_v57 = vld [vmem:[#allocation11_spill] sm:$0xff]  ;;  %v20950_v1 = vld [vmem:[#allocation133_spill] sm:$0xff] }
 0x457   : > { %20924 = vst [vmem:[#allocation41_spill] sm:$0xff] %v18473_v31  ;;  %v18513_v50 = vadd.f32 %v20941_v0, %v17895_v52  ;;  %v20944_v41 = vcombine.high %v20941_v0, %v20941_v0  ;;  %v20951_v52 = vrot.slane %v20950_v1, %v20702_v54  ;;  %v20953_v0 = vld [vmem:[#allocation128_spill] sm:$0xff]  ;;  %v20961_v1 = vld [vmem:[#allocation183_spill] sm:$0xff]  ;;  %v21027_v45 = vld [vmem:[#allocation161_spill] sm:$0xff] }
 0x458   : > { %20933 = vst [vmem:[#allocation102_spill] sm:$0xff] %v18493_v10  ;;  %v18499_v16 = vadd.f32 %v20935_v59, %v17877_v19  ;;  %20940 = vst [vmem:[#allocation121_spill] sm:$0xff] %v18509_v6  ;;  %v20946_v59 = vld [vmem:[#allocation132_spill] sm:$0xff]  ;;  %v21010_v54 = vld [vmem:[#allocation139_spill] sm:$0xff] }
 0x459   : > { %20942 = vst [vmem:[#allocation141_spill] sm:$0xff] %v18513_v50  ;;  %v18519_v19 = vadd.f32 %v20944_v41, %v20943_v57  ;;  %v18523_v23 = vadd.f32 %v20946_v59, %v17907_v18  ;;  %v20948_v7 = vcombine.high %v20946_v59, %v20946_v59  ;;  %v18535_v50 = vadd.f32 %v20951_v52, %v17919_v43  ;;  %v20957_v59 = vld [vmem:[#allocation182_spill] sm:$0xff]  ;;  %v21031_v34 = vld [vmem:[#allocation39_spill] sm:$0xff]  ;;  %v21053_v10 = vld [vmem:[#allocation180_spill] sm:$0xff] }
 0x45a   : > { %20936 = vst [vmem:[#allocation117_spill] sm:$0xff] %v18499_v16  ;;  %v18539_v57 = vadd.f32 %v20953_v0, %v17925_v47  ;;  %v20955_v18 = vcombine.high %v20953_v0, %v20953_v0  ;;  %v18559_v47 = vadd.f32 %v20961_v1, %v17949_v51  ;;  %v20963_v52 = vcombine.high %v20961_v1, %v20961_v1  ;;  %v20965_v0 = vld [vmem:[#allocation173_spill] sm:$0xff]  ;;  %v21009_v51 = vld [vmem:[#allocation27_spill] sm:$0xff]  ;;  %v21033_v44 = vld [vmem:[#allocation74_spill] sm:$0xff] }
 0x45b   : > { %20945 = vst [vmem:[#allocation45_spill] sm:$0xff] %v18519_v19  ;;  %20947 = vst [vmem:[#allocation147_spill] sm:$0xff] %v18523_v23  ;;  %v18529_v56 = vadd.f32 %v20948_v7, %v17913_v61  ;;  %v18549_v61 = vadd.f32 %v20957_v59, %v17937_v27  ;;  %v20959_v7 = vcombine.high %v20957_v59, %v20957_v59  ;;  %v21045_v23 = vld [vmem:[#allocation86_spill] sm:$0xff]  ;;  %v21055_v16 = vld [vmem:[#allocation179_spill] sm:$0xff] }
 0x45c   : > { %20952 = vst [vmem:[#allocation148_spill] sm:$0xff] %v18535_v50  ;;  %20954 = vst [vmem:[#allocation149_spill] sm:$0xff] %v18539_v57  ;;  %v18545_v41 = vadd.f32 %v20955_v18, %v17931_v4  ;;  %v18565_v4 = vadd.f32 %v20963_v52, %v17955_v30  ;;  %v18569_v27 = vadd.f32 %v20965_v0, %v17961_v55  ;;  %v20987_v50 = vld [vmem:[#allocation90_spill] sm:$0xff]  ;;  %v21015_v55 = vld [vmem:[#allocation137_spill] sm:$0xff]  ;;  %v21046_v59 = vmax.f32 %v21045_v23, 0.0 }
 0x45d   : > { %20949 = vst [vmem:[#allocation48_spill] sm:$0xff] %v18529_v56  ;;  %20958 = vst [vmem:[#allocation143_spill] sm:$0xff] %v18549_v61  ;;  %v18555_v43 = vadd.f32 %v20959_v7, %v17943_v17  ;;  %v20967_v18 = vcombine.high %v20965_v0, %v20965_v0  ;;  %v21019_v30 = vld [vmem:[#allocation57_spill] sm:$0xff]  ;;  %v21047_v56 = vld [vmem:[#allocation83_spill] sm:$0xff]  ;;  %v21054_v61 = vmax.f32 %v21053_v10, 0.0 }
 0x45e   : > { %20956 = vst [vmem:[#allocation46_spill] sm:$0xff] %v18545_v41  ;;  %20962 = vst [vmem:[#allocation49_spill] sm:$0xff] %v18559_v47  ;;  %v20997_v41 = vld [vmem:[#allocation106_spill] sm:$0xff]  ;;  %v21048_v7 = vmax.f32 %v21047_v56, 0.0  ;;  %v21049_v47 = vld [vmem:[#allocation87_spill] sm:$0xff] }
 0x45f   : > { %20960 = vst [vmem:[#allocation145_spill] sm:$0xff] %v18555_v43  ;;  %20964 = vst [vmem:[#allocation43_spill] sm:$0xff] %v18565_v4  ;;  %v18575_v17 = vadd.f32 %v20967_v18, %v17967_v3  ;;  %v20998_v3 = vld [vmem:[#allocation165_spill] sm:$0xff]  ;;  %v21011_v43 = vld [vmem:[#allocation140_spill] sm:$0xff]  ;;  %v21050_v39 = vmax.f32 %v21049_v47, 0.0 }
 0x460   : > { %20966 = vst [vmem:[#allocation50_spill] sm:$0xff] %v18569_v27  ;;  %v21013_v4 = vld [vmem:[#allocation142_spill] sm:$0xff]  ;;  %v9660_v22 = vcombine.low %v21048_v7, %v21046_v59  ;;  %v21056_v27 = vmax.f32 %v21055_v16, 0.0  ;;  %v21057_v57 = vld [vmem:[#allocation13_spill] sm:$0xff]  ;;  %v21059_v0 = vld [vmem:[#allocation12_spill] sm:$0xff] }
 0x461   : > { %20968 = vst [vmem:[#allocation144_spill] sm:$0xff] %v18575_v17  ;;  %v21018_v17 = vld [vmem:[#allocation129_spill] sm:$0xff]  ;;  %v21051_v1 = vld [vmem:[#allocation178_spill] sm:$0xff]  ;;  %v21058_v6 = vmax.f32 %v21057_v57, 0.0  ;;  %v21060_v53 = vmax.f32 %v21059_v0, 0.0  ;;  %v21063_v14 = vld [vmem:[#allocation88_spill] sm:$0xff] }
 0x462   : > { %v21052_v58 = vmax.f32 %v21051_v1, 0.0  ;;  %v9677_v36 = vcombine.low %v21056_v27, %v21054_v61  ;;  %v21061_v19 = vld [vmem:[#allocation89_spill] sm:$0xff]  ;;  %v21064_v56 = vmax.f32 %v21063_v14, 0.0  ;;  %v21065_v7 = vld [vmem:[#allocation14_spill] sm:$0xff]  ;;  %v21067_v31 = vld [vmem:[#allocation15_spill] sm:$0xff] }
 0x463   : > { %v9678_v18 = vcombine.low %v21060_v53, %v21058_v6  ;;  %v21062_v23 = vmax.f32 %v21061_v19, 0.0  ;;  %v21066_v47 = vmax.f32 %v21065_v7, 0.0  ;;  %v21068_v1 = vmax.f32 %v21067_v31, 0.0  ;;  %v21070_v61 = vld [vmem:[#allocation97_spill] sm:$0xff]  ;;  %v21072_v57 = vld [vmem:[#allocation91_spill] sm:$0xff]  ;;  %v21074_v53 = vld [vmem:[#allocation184_spill] sm:$0xff] }
 0x464   : > { %v9661_v52 = vcombine.low %v21052_v58, %v21050_v39  ;;  %v21069_v58 = vld [vmem:[#allocation17_spill] sm:$0xff]  ;;  %v21071_v27 = vmax.f32 %v21070_v61, 0.0  ;;  %v21073_v11 = vmax.f32 %v21072_v57, 0.0  ;;  %v21075_v6 = vmax.f32 %v21074_v53, 0.0  ;;  %v21083_v53 = vld [vmem:[#allocation94_spill] sm:$0xff]  ;;  %v21089_v20 = vld [vmem:[#allocation103_spill] sm:$0xff] }
 0x465   : > { %v9694_v59 = vcombine.low %v21064_v56, %v21062_v23  ;;  %v9695_v39 = vcombine.low %v21068_v1, %v21066_v47  ;;  %v9668_v10 = vrot.slane %v9660_v22, %v21069_v58  ;;  %v21076_v19 = vld [vmem:[#allocation93_spill] sm:$0xff]  ;;  %v9685_v23 = vrot.slane %v9677_v36, %v21069_v58  ;;  %v21078_v47 = vld [vmem:[#allocation16_spill] sm:$0xff] }
 0x466   : > { %v9675_v16 = vrot.slane %v9661_v52, %v21069_v58  ;;  %v9711_v0 = vcombine.low %v21073_v11, %v21071_v27  ;;  %v21077_v32 = vmax.f32 %v21076_v19, 0.0  ;;  %v9692_v31 = vrot.slane %v9678_v18, %v21069_v58  ;;  %v21080_v61 = vld [vmem:[#allocation185_spill] sm:$0xff] }
 0x467   : > { %v9702_v56 = vrot.slane %v9694_v59, %v21069_v58  ;;  %v9709_v22 = vrot.slane %v9695_v39, %v21069_v58  ;;  %v21079_v1 = vmax.f32 %v21078_v47, 0.0  ;;  %v21081_v27 = vmax.f32 %v21080_v61, 0.0  ;;  %v21085_v39 = vld [vmem:[#allocation72_spill] sm:$0xff] }
 0x468   : > { %v9712_v14 = vcombine.low %v21077_v32, %v21075_v6  ;;  %v9676_v52 = vcombine.low %v9668_v10, %v9675_v16  ;;  %v9719_v7 = vrot.slane %v9711_v0, %v21069_v58  ;;  %v9693_v36 = vcombine.low %v9685_v23, %v9692_v31  ;;  %v21087_v16 = vld [vmem:[#allocation98_spill] sm:$0xff] }
 0x469   : > { %v9728_v32 = vcombine.low %v21081_v27, %v21079_v1  ;;  %v9710_v57 = vcombine.low %v9702_v56, %v9709_v22  ;;  %v21082_v18 = vmax.f32 %v20987_v50, 0.0  ;;  %v21084_v59 = vmax.f32 %v21083_v53, 0.0  ;;  %v21093_v31 = vld [vmem:[#allocation166_spill] sm:$0xff]  ;;  %v21095_v50 = vld [vmem:[#allocation75_spill] sm:$0xff] }
 0x46a   : > { %v9726_v11 = vrot.slane %v9712_v14, %v21069_v58  ;;  %v21086_v10 = vmax.f32 %v21085_v39, 0.0  ;;  %v21088_v0 = vmax.f32 %v21087_v16, 0.0  ;;  %v21090_v61 = vmax.f32 %v21089_v20, 0.0  ;;  %10236 = vst [vmem:[%s17177_s23] sm:$0xff] %v9676_v52  ;;  %10237 = vst [vmem:[%s17177_s23 + $0x8] sm:$0xff] %v9693_v36 }
 0x46b   : > { %v9729_v6 = vcombine.low %v21084_v59, %v21082_v18  ;;  %v9736_v47 = vrot.slane %v9728_v32, %v21069_v58  ;;  %v21092_v1 = vmax.f32 %v21091_v48, 0.0  ;;  %v21094_v56 = vmax.f32 %v21093_v31, 0.0  ;;  %v21097_v59 = vld [vmem:[#allocation108_spill] sm:$0xff]  ;;  %10238 = vst [vmem:[%s17177_s23 + $0x10] sm:$0xff] %v9710_v57 }
 0x46c   : > { %v9745_v19 = vcombine.low %v21088_v0, %v21086_v10  ;;  %v9727_v14 = vcombine.low %v9719_v7, %v9726_v11  ;;  %v21096_v22 = vmax.f32 %v21095_v50, 0.0  ;;  %v21098_v39 = vmax.f32 %v21097_v59, 0.0  ;;  %v21099_v7 = vld [vmem:[#allocation167_spill] sm:$0xff]  ;;  %v21102_v10 = vld [vmem:[#allocation109_spill] sm:$0xff]  ;;  %v21112_v59 = vld [vmem:[#allocation96_spill] sm:$0xff] }
 0x46d   : > { %v9746_v23 = vcombine.low %v21092_v1, %v21090_v61  ;;  %v9743_v18 = vrot.slane %v9729_v6, %v21069_v58  ;;  %v21100_v11 = vmax.f32 %v21099_v7, 0.0  ;;  %v21101_v20 = vmax.f32 %v20997_v41, 0.0  ;;  %v21106_v1 = vld [vmem:[#allocation85_spill] sm:$0xff] }
 0x46e   : > { %v9762_v27 = vcombine.low %v21096_v22, %v21094_v56  ;;  %v9753_v53 = vrot.slane %v9745_v19, %v21069_v58  ;;  %v21103_v48 = vmax.f32 %v21102_v10, 0.0  ;;  %v21104_v6 = vmax.f32 %v20998_v3, 0.0  ;;  %v21108_v56 = vld [vmem:[#allocation112_spill] sm:$0xff]  ;;  %10239 = vst [vmem:[%s17177_s23 + $0x18] sm:$0xff] %v9727_v14 }
 0x46f   : > { %v9763_v32 = vcombine.low %v21100_v11, %v21098_v39  ;;  %v9760_v0 = vrot.slane %v9746_v23, %v21069_v58  ;;  %v21105_v19 = vmax.f32 %v18125_v37, 0.0  ;;  %v21107_v31 = vmax.f32 %v21106_v1, 0.0  ;;  %v21110_v23 = vld [vmem:[#allocation116_spill] sm:$0xff] }
 0x470   : > { %v9779_v16 = vcombine.low %v21103_v48, %v21101_v20  ;;  %v9770_v52 = vrot.slane %v9762_v27, %v21069_v58  ;;  %v21109_v50 = vmax.f32 %v21108_v56, 0.0  ;;  %v9744_v22 = vcombine.low %v9736_v47, %v9743_v18  ;;  %v21114_v20 = vld [vmem:[#allocation107_spill] sm:$0xff]  ;;  %v21116_v48 = vld [vmem:[#allocation76_spill] sm:$0xff] }
 0x471   : > { %v9780_v61 = vcombine.low %v21105_v19, %v21104_v6  ;;  %v9777_v36 = vrot.slane %v9763_v32, %v21069_v58  ;;  %v21111_v27 = vmax.f32 %v21110_v23, 0.0  ;;  %v21113_v3 = vmax.f32 %v21112_v59, 0.0  ;;  %v21120_v19 = vld [vmem:[#allocation18_spill] sm:$0xff]  ;;  %v21122_v56 = vld [vmem:[#allocation20_spill] sm:$0xff] }
 0x472   : > { %v9796_v41 = vcombine.low %v21109_v50, %v21107_v31  ;;  %v9787_v57 = vrot.slane %v9779_v16, %v21069_v58  ;;  %v9761_v37 = vcombine.low %v9753_v53, %v9760_v0  ;;  %v21115_v10 = vmax.f32 %v21114_v20, 0.0  ;;  %v21118_v16 = vld [vmem:[#allocation26_spill] sm:$0xff]  ;;  %10240 = vst [vmem:[%s17177_s23 + $0x20] sm:$0xff] %v9744_v22 }
 0x473   : > { %v9797_v39 = vcombine.low %v21113_v3, %v21111_v27  ;;  %v9794_v7 = vrot.slane %v9780_v61, %v21069_v58  ;;  %v21117_v14 = vmax.f32 %v21116_v48, 0.0  ;;  %v9778_v18 = vcombine.low %v9770_v52, %v9777_v36  ;;  %v21124_v0 = vld [vmem:[#allocation134_spill] sm:$0xff]  ;;  %v21126_v27 = vld [vmem:[#allocation136_spill] sm:$0xff] }
 0x474   : > { %v9804_v11 = vrot.slane %v9796_v41, %v21069_v58  ;;  %v21119_v6 = vmax.f32 %v21118_v16, 0.0  ;;  %v21121_v1 = vmax.f32 %v21120_v19, 0.0  ;;  %v21123_v53 = vmax.f32 %v21122_v56, 0.0  ;;  %v21128_v52 = vld [vmem:[#allocation24_spill] sm:$0xff]  ;;  %10241 = vst [vmem:[%s17177_s23 + $0x28] sm:$0xff] %v9761_v37 }
 0x475   : > { %v9813_v47 = vcombine.low %v21117_v14, %v21115_v10  ;;  %v9811_v32 = vrot.slane %v9797_v39, %v21069_v58  ;;  %v21125_v61 = vmax.f32 %v21124_v0, 0.0  ;;  %v9795_v41 = vcombine.low %v9787_v57, %v9794_v7  ;;  %10242 = vst [vmem:[%s17177_s23 + $0x30] sm:$0xff] %v9778_v18 }
 0x476   : > { %v9814_v31 = vcombine.low %v21121_v1, %v21119_v6  ;;  %v21127_v59 = vmax.f32 %v21126_v27, 0.0  ;;  %v21129_v36 = vmax.f32 %v21128_v52, 0.0  ;;  %v21130_v39 = vmax.f32 %v21009_v51, 0.0  ;;  %v21135_v6 = vld [vmem:[#allocation28_spill] sm:$0xff] }
 0x477   : > { %v9830_v50 = vcombine.low %v21125_v61, %v21123_v53  ;;  %v9821_v23 = vrot.slane %v9813_v47, %v21069_v58  ;;  %v21131_v20 = vmax.f32 %v21008_v35, 0.0  ;;  %v9812_v48 = vcombine.low %v9804_v11, %v9811_v32  ;;  %10243 = vst [vmem:[%s17177_s23 + $0x38] sm:$0xff] %v9795_v41  ;;  %v21148_v52 = vld [vmem:[#allocation92_spill] sm:$0xff] }
 0x478   : > { %v9831_v3 = vcombine.low %v21129_v36, %v21127_v59  ;;  %v9828_v14 = vrot.slane %v9814_v31, %v21069_v58  ;;  %v21132_v57 = vmax.f32 %v21011_v43, 0.0  ;;  %v21133_v7 = vmax.f32 %v21010_v54, 0.0 }
 0x479   : > { %v9847_v10 = vcombine.low %v21131_v20, %v21130_v39  ;;  %v9838_v22 = vrot.slane %v9830_v50, %v21069_v58  ;;  %v21134_v35 = vmax.f32 %v21013_v4, 0.0  ;;  %v21136_v19 = vmax.f32 %v21135_v6, 0.0  ;;  %10244 = vst [vmem:[%s17177_s23 + $0x40] sm:$0xff] %v9812_v48  ;;  %v21143_v50 = vld [vmem:[#allocation31_spill] sm:$0xff] }
 0x47a   : > { %v9848_v47 = vcombine.low %v21133_v7, %v21132_v57  ;;  %v9845_v16 = vrot.slane %v9831_v3, %v21069_v58  ;;  %v21137_v11 = vmax.f32 %v21015_v55, 0.0  ;;  %v21138_v32 = vmax.f32 %v21014_v26, 0.0 }
 0x47b   : > { %v9855_v51 = vrot.slane %v9847_v10, %v21069_v58  ;;  %v9864_v37 = vcombine.low %v21136_v19, %v21134_v35  ;;  %v9829_v43 = vcombine.low %v9821_v23, %v9828_v14  ;;  %v21139_v18 = vmax.f32 %v21017_v63, 0.0  ;;  %v21145_v23 = vld [vmem:[#allocation130_spill] sm:$0xff] }
 0x47c   : > { %v9865_v1 = vcombine.low %v21138_v32, %v21137_v11  ;;  %v9862_v54 = vrot.slane %v9848_v47, %v21069_v58  ;;  %v21140_v31 = vmax.f32 %v21016_v2, 0.0  ;;  %v21141_v4 = vmax.f32 %v18251_v29, 0.0 }
 0x47d   : > { %v21142_v53 = vmax.f32 %v21018_v17, 0.0  ;;  %v9846_v55 = vcombine.low %v9838_v22, %v9845_v16  ;;  %v9872_v26 = vrot.slane %v9864_v37, %v21069_v58  ;;  %v21144_v41 = vmax.f32 %v21143_v50, 0.0  ;;  %10245 = vst [vmem:[%s17177_s23 + $0x48] sm:$0xff] %v9829_v43  ;;  %v21162_v43 = vld [vmem:[#allocation100_spill] sm:$0xff]  ;;  %v21170_v50 = vld [vmem:[#allocation35_spill] sm:$0xff] }
 0x47e   : > { %v9881_v56 = vcombine.low %v21140_v31, %v21139_v18  ;;  %v9879_v61 = vrot.slane %v9865_v1, %v21069_v58  ;;  %v21146_v27 = vmax.f32 %v21145_v23, 0.0  ;;  %v9863_v2 = vcombine.low %v9855_v51, %v9862_v54  ;;  %v21164_v18 = vld [vmem:[#allocation156_spill] sm:$0xff]  ;;  %v21172_v23 = vld [vmem:[#allocation99_spill] sm:$0xff] }
 0x47f   : > { %v9882_v0 = vcombine.low %v21142_v53, %v21141_v4  ;;  %v21147_v17 = vmax.f32 %v21019_v30, 0.0  ;;  %v21149_v36 = vmax.f32 %v21148_v52, 0.0  ;;  %v21150_v10 = vmax.f32 %v18281_v49, 0.0  ;;  %10246 = vst [vmem:[%s17177_s23 + $0x50] sm:$0xff] %v9846_v55  ;;  %v21168_v53 = vld [vmem:[#allocation33_spill] sm:$0xff] }
 0x480   : > { %v9898_v63 = vcombine.low %v21146_v27, %v21144_v41  ;;  %v9889_v59 = vrot.slane %v9881_v56, %v21069_v58  ;;  %v9880_v39 = vcombine.low %v9872_v26, %v9879_v61  ;;  %v21151_v48 = vmax.f32 %v18277_v62, 0.0  ;;  %10247 = vst [vmem:[%s17177_s23 + $0x58] sm:$0xff] %v9863_v2  ;;  %v21166_v56 = vld [vmem:[#allocation68_spill] sm:$0xff]  ;;  %v21174_v2 = vld [vmem:[#allocation157_spill] sm:$0xff] }
 0x481   : > { %v9896_v29 = vrot.slane %v9882_v0, %v21069_v58  ;;  %v9899_v3 = vcombine.low %v21149_v36, %v21147_v17  ;;  %v21152_v22 = vmax.f32 %v18291_v5, 0.0  ;;  %v21153_v57 = vmax.f32 %v18287_v8, 0.0 }
 0x482   : > { %v9906_v20 = vrot.slane %v9898_v63, %v21069_v58  ;;  %v9915_v14 = vcombine.low %v21151_v48, %v21150_v10  ;;  %v21154_v16 = vmax.f32 %v18301_v33, 0.0  ;;  %v21155_v51 = vmax.f32 %v18295_v40, 0.0  ;;  %10248 = vst [vmem:[%s17177_s23 + $0x60] sm:$0xff] %v9880_v39  ;;  %v21178_v39 = vld [vmem:[#allocation158_spill] sm:$0xff] }
 0x483   : > { %v9916_v7 = vcombine.low %v21153_v57, %v21152_v22  ;;  %v9897_v30 = vcombine.low %v9889_v59, %v9896_v29  ;;  %v9913_v47 = vrot.slane %v9899_v3, %v21069_v58  ;;  %v21156_v49 = vmax.f32 %v21020_v12, 0.0  ;;  %v21176_v29 = vld [vmem:[#allocation186_spill] sm:$0xff]  ;;  %v21183_v57 = vld [vmem:[#allocation104_spill] sm:$0xff] }
 0x484   : > { %v9932_v35 = vcombine.low %v21155_v51, %v21154_v16  ;;  %v21157_v62 = vmax.f32 %v18305_v60, 0.0  ;;  %v9923_v5 = vrot.slane %v9915_v14, %v21069_v58  ;;  %v21158_v19 = vmax.f32 %v18321_v24, 0.0  ;;  %v21180_v10 = vld [vmem:[#allocation34_spill] sm:$0xff] }
 0x485   : > { %v9930_v8 = vrot.slane %v9916_v7, %v21069_v58  ;;  %v21159_v37 = vmax.f32 %v21021_v38, 0.0  ;;  %v21160_v33 = vmax.f32 %v18331_v42, 0.0  ;;  %v21161_v40 = vmax.f32 %v21022_v46, 0.0  ;;  %10249 = vst [vmem:[%s17177_s23 + $0x68] sm:$0xff] %v9897_v30 }
 0x486   : > { %v9933_v6 = vcombine.low %v21157_v62, %v21156_v49  ;;  %v9914_v12 = vcombine.low %v9906_v20, %v9913_v47  ;;  %v9940_v60 = vrot.slane %v9932_v35, %v21069_v58  ;;  %v21163_v54 = vmax.f32 %v21162_v43, 0.0  ;;  %v21195_v43 = vld [vmem:[#allocation101_spill] sm:$0xff] }
 0x487   : > { %v9949_v11 = vcombine.low %v21159_v37, %v21158_v19  ;;  %v9950_v32 = vcombine.low %v21161_v40, %v21160_v33  ;;  %v21165_v31 = vmax.f32 %v21164_v18, 0.0  ;;  %v9931_v38 = vcombine.low %v9923_v5, %v9930_v8 }
 0x488   : > { %v9947_v1 = vrot.slane %v9933_v6, %v21069_v58  ;;  %v21167_v4 = vmax.f32 %v21166_v56, 0.0  ;;  %v21169_v0 = vmax.f32 %v21168_v53, 0.0  ;;  %v21171_v41 = vmax.f32 %v21170_v50, 0.0  ;;  %10250 = vst [vmem:[%s17177_s23 + $0x70] sm:$0xff] %v9914_v12  ;;  %v21201_v56 = vld [vmem:[#allocation110_spill] sm:$0xff]  ;;  %v21203_v53 = vld [vmem:[#allocation40_spill] sm:$0xff] }
 0x489   : > { %v9966_v24 = vcombine.low %v21165_v31, %v21163_v54  ;;  %v9957_v42 = vrot.slane %v9949_v11, %v21069_v58  ;;  %v9964_v46 = vrot.slane %v9950_v32, %v21069_v58  ;;  %v21173_v27 = vmax.f32 %v21172_v23, 0.0  ;;  %10251 = vst [vmem:[%s17177_s23 + $0x78] sm:$0xff] %v9931_v38  ;;  %v21190_v11 = vld [vmem:[#allocation38_spill] sm:$0xff]  ;;  %v21197_v31 = vld [vmem:[#allocation111_spill] sm:$0xff] }
 0x48a   : > { %v9967_v55 = vcombine.low %v21169_v0, %v21167_v4  ;;  %v9948_v26 = vcombine.low %v9940_v60, %v9947_v1  ;;  %v21175_v59 = vmax.f32 %v21174_v2, 0.0  ;;  %v21177_v17 = vmax.f32 %v21176_v29, 0.0  ;;  %v21199_v38 = vld [vmem:[#allocation47_spill] sm:$0xff] }
 0x48b   : > { %v9974_v61 = vrot.slane %v9966_v24, %v21069_v58  ;;  %v9983_v63 = vcombine.low %v21173_v27, %v21171_v41  ;;  %v9965_v36 = vcombine.low %v9957_v42, %v9964_v46  ;;  %v21179_v20 = vmax.f32 %v21178_v39, 0.0 }
 0x48c   : > { %v9984_v52 = vcombine.low %v21177_v17, %v21175_v59  ;;  %v9981_v3 = vrot.slane %v9967_v55, %v21069_v58  ;;  %v21181_v48 = vmax.f32 %v21180_v10, 0.0  ;;  %v21182_v22 = vmax.f32 %v21023_v21, 0.0  ;;  %10252 = vst [vmem:[%s17177_s23 + $0x80] sm:$0xff] %v9948_v26  ;;  %v21205_v26 = vld [vmem:[#allocation41_spill] sm:$0xff]  ;;  %v21211_v59 = vld [vmem:[#allocation172_spill] sm:$0xff] }
 0x48d   : > { %v21184_v7 = vmax.f32 %v21183_v57, 0.0  ;;  %v9991_v47 = vrot.slane %v9983_v63, %v21069_v58  ;;  %v21185_v51 = vmax.f32 %v21025_v28, 0.0  ;;  %v21186_v35 = vmax.f32 %v21024_v15, 0.0  ;;  %10253 = vst [vmem:[%s17177_s23 + $0x88] sm:$0xff] %v9965_v36  ;;  %v21209_v63 = vld [vmem:[#allocation115_spill] sm:$0xff] }
 0x48e   : > { %v10000_v14 = vcombine.low %v21181_v48, %v21179_v20  ;;  %v9998_v16 = vrot.slane %v9984_v52, %v21069_v58  ;;  %v21187_v62 = vmax.f32 %v21027_v45, 0.0  ;;  %v21188_v6 = vmax.f32 %v21026_v13, 0.0  ;;  %v21213_v52 = vld [vmem:[#allocation102_spill] sm:$0xff] }
 0x48f   : > { %v10001_v30 = vcombine.low %v21184_v7, %v21182_v22  ;;  %v10017_v49 = vcombine.low %v21186_v35, %v21185_v51  ;;  %v9982_v21 = vcombine.low %v9974_v61, %v9981_v3  ;;  %v21189_v37 = vmax.f32 %v21029_v25, 0.0  ;;  %v21207_v61 = vld [vmem:[#allocation113_spill] sm:$0xff]  ;;  %v21215_v3 = vld [vmem:[#allocation42_spill] sm:$0xff]  ;;  %v21217_v22 = vld [vmem:[#allocation44_spill] sm:$0xff] }
 0x490   : > { %v10018_v5 = vcombine.low %v21188_v6, %v21187_v62  ;;  %v10008_v8 = vrot.slane %v10000_v14, %v21069_v58  ;;  %v21191_v33 = vmax.f32 %v21190_v11, 0.0  ;;  %v9999_v15 = vcombine.low %v9991_v47, %v9998_v16  ;;  %v21219_v7 = vld [vmem:[#allocation117_spill] sm:$0xff] }
 0x491   : > { %v10015_v19 = vrot.slane %v10001_v30, %v21069_v58  ;;  %v10025_v45 = vrot.slane %v10017_v49, %v21069_v58  ;;  %v21192_v40 = vmax.f32 %v21031_v34, 0.0  ;;  %v21193_v32 = vmax.f32 %v21030_v9, 0.0  ;;  %10254 = vst [vmem:[%s17177_s23 + $0x90] sm:$0xff] %v9982_v21  ;;  %v21221_v49 = vld [vmem:[#allocation141_spill] sm:$0xff] }
 0x492   : > { %v10034_v28 = vcombine.low %v21191_v33, %v21189_v37  ;;  %v10032_v13 = vrot.slane %v10018_v5, %v21069_v58  ;;  %v21194_v25 = vmax.f32 %v21033_v44, 0.0  ;;  %v21196_v54 = vmax.f32 %v21195_v43, 0.0  ;;  %10255 = vst [vmem:[%s17177_s23 + $0x98] sm:$0xff] %v9999_v15  ;;  %v21223_v6 = vld [vmem:[#allocation121_spill] sm:$0xff]  ;;  %v21225_v37 = vld [vmem:[#allocation147_spill] sm:$0xff] }
 0x493   : > { %v10035_v12 = vcombine.low %v21193_v32, %v21192_v40  ;;  %v10016_v60 = vcombine.low %v10008_v8, %v10015_v19  ;;  %v21198_v24 = vmax.f32 %v21197_v31, 0.0  ;;  %v21200_v42 = vmax.f32 %v21199_v38, 0.0  ;;  %v21227_v33 = vld [vmem:[#allocation45_spill] sm:$0xff]  ;;  %v21231_v40 = vld [vmem:[#allocation48_spill] sm:$0xff] }
 0x494   : > { %v10042_v1 = vrot.slane %v10034_v28, %v21069_v58  ;;  %v10051_v18 = vcombine.low %v21196_v54, %v21194_v25  ;;  %v10033_v34 = vcombine.low %v10025_v45, %v10032_v13  ;;  %v21202_v4 = vmax.f32 %v21201_v56, 0.0  ;;  %v21229_v45 = vld [vmem:[#allocation148_spill] sm:$0xff]  ;;  %v21233_v25 = vld [vmem:[#allocation46_spill] sm:$0xff]  ;;  %v21235_v54 = vld [vmem:[#allocation149_spill] sm:$0xff] }
 0x495   : > { %v10052_v46 = vcombine.low %v21200_v42, %v21198_v24  ;;  %v10049_v9 = vrot.slane %v10035_v12, %v21069_v58  ;;  %v21204_v0 = vmax.f32 %v21203_v53, 0.0  ;;  %v21206_v44 = vmax.f32 %v21205_v26, 0.0  ;;  %10256 = vst [vmem:[%s17177_s23 + $0xa0] sm:$0xff] %v10016_v60  ;;  %v21237_v24 = vld [vmem:[#allocation145_spill] sm:$0xff]  ;;  %v21239_v42 = vld [vmem:[#allocation143_spill] sm:$0xff] }
 0x496   : > { %v21208_v50 = vmax.f32 %v21207_v61, 0.0  ;;  %v10059_v23 = vrot.slane %v10051_v18, %v21069_v58  ;;  %v21210_v2 = vmax.f32 %v21209_v63, 0.0  ;;  %v21212_v29 = vmax.f32 %v21211_v59, 0.0  ;;  %10257 = vst [vmem:[%s17177_s23 + $0xa8] sm:$0xff] %v10033_v34 }
 0x497   : > { %v10068_v55 = vcombine.low %v21204_v0, %v21202_v4  ;;  %v10066_v27 = vrot.slane %v10052_v46, %v21069_v58  ;;  %v21214_v36 = vmax.f32 %v21213_v52, 0.0  ;;  %v21216_v39 = vmax.f32 %v21215_v3, 0.0  ;;  %v21241_v4 = vld [vmem:[#allocation43_spill] sm:$0xff]  ;;  %v21243_v0 = vld [vmem:[#allocation49_spill] sm:$0xff] }
 0x498   : > { %v10069_v41 = vcombine.low %v21208_v50, %v21206_v44  ;;  %v10085_v17 = vcombine.low %v21212_v29, %v21210_v2  ;;  %v10050_v10 = vcombine.low %v10042_v1, %v10049_v9  ;;  %v21218_v57 = vmax.f32 %v21217_v22, 0.0  ;;  %v21245_v44 = vld [vmem:[#allocation144_spill] sm:$0xff]  ;;  %v21247_v50 = vld [vmem:[#allocation50_spill] sm:$0xff] }
 0x499   : > { %v10086_v20 = vcombine.low %v21216_v39, %v21214_v36  ;;  %v10076_v48 = vrot.slane %v10068_v55, %v21069_v58  ;;  %v21220_v30 = vmax.f32 %v21219_v7, 0.0  ;;  %v10067_v16 = vcombine.low %v10059_v23, %v10066_v27 }
 0x49a   : > { %v10083_v14 = vrot.slane %v10069_v41, %v21069_v58  ;;  %v10093_v51 = vrot.slane %v10085_v17, %v21069_v58  ;;  %v21222_v62 = vmax.f32 %v21221_v49, 0.0  ;;  %v21224_v5 = vmax.f32 %v21223_v6, 0.0  ;;  %10258 = vst [vmem:[%s17177_s23 + $0xb0] sm:$0xff] %v10050_v10 }
 0x49b   : > { %v10102_v47 = vcombine.low %v21220_v30, %v21218_v57  ;;  %v10100_v35 = vrot.slane %v10086_v20, %v21069_v58  ;;  %v21226_v11 = vmax.f32 %v21225_v37, 0.0  ;;  %v21228_v28 = vmax.f32 %v21227_v33, 0.0  ;;  %10259 = vst [vmem:[%s17177_s23 + $0xb8] sm:$0xff] %v10067_v16 }
 0x49c   : > { %v10103_v21 = vcombine.low %v21224_v5, %v21222_v62  ;;  %v10084_v8 = vcombine.low %v10076_v48, %v10083_v14  ;;  %v21230_v13 = vmax.f32 %v21229_v45, 0.0  ;;  %v21232_v32 = vmax.f32 %v21231_v40, 0.0 }
 0x49d   : > { %v10110_v19 = vrot.slane %v10102_v47, %v21069_v58  ;;  %v10119_v15 = vcombine.low %v21228_v28, %v21226_v11  ;;  %v10101_v60 = vcombine.low %v10093_v51, %v10100_v35  ;;  %v21234_v43 = vmax.f32 %v21233_v25, 0.0 }
 0x49e   : > { %v10120_v12 = vcombine.low %v21232_v32, %v21230_v13  ;;  %v10117_v1 = vrot.slane %v10103_v21, %v21069_v58  ;;  %v21236_v18 = vmax.f32 %v21235_v54, 0.0  ;;  %v21238_v38 = vmax.f32 %v21237_v24, 0.0  ;;  %10260 = vst [vmem:[%s17177_s23 + $0xc0] sm:$0xff] %v10084_v8 }
 0x49f   : > { %v21240_v46 = vmax.f32 %v21239_v42, 0.0  ;;  %v10127_v9 = vrot.slane %v10119_v15, %v21069_v58  ;;  %v21242_v53 = vmax.f32 %v21241_v4, 0.0  ;;  %v21244_v55 = vmax.f32 %v21243_v0, 0.0  ;;  %10261 = vst [vmem:[%s17177_s23 + $0xc8] sm:$0xff] %v10101_v60 }
 0x4a0   : > { %v10136_v31 = vcombine.low %v21236_v18, %v21234_v43  ;;  %v10134_v56 = vrot.slane %v10120_v12, %v21069_v58  ;;  %v21246_v61 = vmax.f32 %v21245_v44, 0.0  ;;  %v21248_v41 = vmax.f32 %v21247_v50, 0.0 }
 0x4a1   : > { %v10137_v34 = vcombine.low %v21240_v46, %v21238_v38  ;;  %v10153_v26 = vcombine.low %v21244_v55, %v21242_v53  ;;  %v10118_v27 = vcombine.low %v10110_v19, %v10117_v1 }
 0x4a2   : > { %v10154_v23 = vcombine.low %v21248_v41, %v21246_v61  ;;  %v10144_v63 = vrot.slane %v10136_v31, %v21069_v58  ;;  %v10135_v59 = vcombine.low %v10127_v9, %v10134_v56 }
 0x4a3   : > { %v10151_v2 = vrot.slane %v10137_v34, %v21069_v58  ;;  %v10161_v29 = vrot.slane %v10153_v26, %v21069_v58  ;;  %10262 = vst [vmem:[%s17177_s23 + $0xd0] sm:$0xff] %v10118_v27 }
 0x4a4   : > { %v10168_v17 = vrot.slane %v10154_v23, %v21069_v58  ;;  %10263 = vst [vmem:[%s17177_s23 + $0xd8] sm:$0xff] %v10135_v59 }
 0x4a5   : > { %v10152_v52 = vcombine.low %v10144_v63, %v10151_v2 }
 0x4a6   : > { %v10169_v36 = vcombine.low %v10161_v29, %v10168_v17 }
 0x4a7   : > { %10264 = vst [vmem:[%s17177_s23 + $0xe0] sm:$0xff] %v10152_v52 }
 0x4a8   : > { %10265 = vst [vmem:[%s17177_s23 + $0xe8] sm:$0xff] %v10169_v36 }
 0x4a9   : > { %12574 = shalt.err (!%p12571_p9)
}
 0x4aa   : > { %s12575_s15 = scalar_lea.hbm %s19029_s22, 4096  ;;  %s12579_s13 = scalar_lea.hbm %s19082_s4, 8192 }
 0x4ab   : > { %p12576_p1 = scmp.ne.s32.totalorder %s19029_s22, %s12575_s15  ;;  %p12580_p13 = scmp.lt.u32.totalorder %s19029_s22, %s19082_s4 }
 0x4ac   : > { %p12581_p2 = scmp.lt.u32.totalorder %s12579_s13, %s12575_s15  ;;  %p12583_p6 = scmp.lt.u32.totalorder %s12575_s15, %s19029_s22 }
 0x4ad   : > { %p12577_p0 = pnand %p12576_p1, %p12770_p12 }
 0x4ae   : > { %p12582_p4 = por %p12581_p2, %p12580_p13 }
 0x4af   : > { %p12578_p5 = pneg %p12577_p0 }
 0x4b0   : > { %p12584_p8 = por %p12583_p6, %p12582_p4 }
 0x4b2   : > { %p12585_p10 = pnand %p12584_p8, %p12578_p5 }
 0x4b4   : > { %12588 = shalt.err (!%p12585_p10)
}
 0x4b5   : > { %s12644_s10 = smov 128   ;;  %s12645_s7 = smov 8  }
 0x4b6   : > { %12307 = dma.vmem_to_hbm [thread:$0]  (%p12770_p12), %s19031_s28, 4096, %s19029_s22, %s10302_s26, %s12644_s10, %s12644_s10, %s12645_s7  }
 0x4b7 PF: > { %s10338_s24 = sand.u32 1, %s12619_s18   ;;  %p21249_p11 = scmp.ne.s32.totalorder %s19693_s25, 0 }
 0x4b8   : > { %p21250_p3 = scmp.ge.s32.totalorder %s12631_s21, 2  ;;  %s10339_s17 = scalar_lea.sflag [#allocation4], %s10338_s24 }
 0x4ba   : > { %p12318_p7 = pnand %p21250_p3, %p21249_p11 }
 0x4bc   : > { %12614 = dma.done.wait (!%p12318_p7), %s10339_s17, 4096  }
 0x4bd   : > { %12616 = vsyncadd (!%p12318_p7), %s10339_s17, 4294963200  ;;  %p20_p9 = scmp.ge.s32.totalorder %s12732_s30, 4   ;;  %s21251_s18 = smov %s12623_s19 }
 0x4be   : > { %s21252_s19 = smov %s12627_s20  ;;  %s21253_s20 = smov %s12766_s8 }
 0x4bf   : > { %s21254_s21 = smov %s12732_s30  ;;  %22 = sbr.rel (!%p20_p9) target bundleno = 6 (0x6), region = 108 }
 0x4c6   :  { %10352 = vsyncpa [#allocation3], 1 }
 0x4c7   :  { %10354 = vsyncpa [#allocation3 + $0x1], 1 }
 0x4c8   :  { %10355 = vsyncpa [#allocation6], 1 }
 0x4c9   :  { %10356 = vsyncpa [#allocation4], 1 }
 0x4ca   :  { %10358 = vsyncpa [#allocation4 + $0x1], 1 }

</bundles_post_ra>
